<compile_context>
chip_gen: v7x
topology: tpu7x:2x2x1
jax: 0.10.0
libtpu: 0.0.40
codegen_flags: <defaults>
</compile_context>

<pallas_src>
import functools

import jax
import jax.numpy as jnp
from jax.experimental import pallas as pl
from jax.experimental.pallas import tpu as pltpu


# ----------------------------------------------------------------------------
# Pallas kernels
# ----------------------------------------------------------------------------
def _conv3x3_kernel(xp_ref, w_ref, b_ref, o_ref, *, H, W, relu):
    """Fused 3x3 conv for one (image, Cout-tile) grid cell.

    xp_ref: (1, H+2, W+2, Cin)  bf16   replicate-padded image
    w_ref : (3, 3, Cin, tn)     bf16   weights (tap-major layout)
    b_ref : (1, tn)             f32    bias
    o_ref : (1, H, W, tn)              output (bias + optional ReLU fused)
    """
    cin = xp_ref.shape[-1]
    tn = o_ref.shape[-1]

    xv = xp_ref[...]          # load halo block once into vregs/VMEM value
    wv = w_ref[...]

    acc = jnp.zeros((H * W, tn), jnp.float32)
    for dy in range(3):       # 9 taps, unrolled: in-kernel im2col
        for dx in range(3):
            a = xv[0, dy:dy + H, dx:dx + W, :].reshape(H * W, cin)
            acc = acc + jnp.dot(a, wv[dy, dx],
                                preferred_element_type=jnp.float32)

    r = acc + b_ref[...]      # (H*W, tn) + (1, tn)
    if relu:
        r = jnp.maximum(r, 0.0)
    o_ref[...] = r.reshape(1, H, W, tn).astype(o_ref.dtype)


def _maxpool2x2_kernel(x_ref, o_ref):
    """x_ref: (tr, 2, W/2, 2, C) -> o_ref: (tr, 1, W/2, 1, C)."""
    v = x_ref[...]
    m = jnp.max(v, axis=3, keepdims=True)   # max over adjacent columns
    m = jnp.max(m, axis=1, keepdims=True)   # max over adjacent rows
    o_ref[...] = m


# ----------------------------------------------------------------------------
# Pallas wrappers
# ----------------------------------------------------------------------------
def conv3x3(x, wk, bias, *, relu, out_dtype):
    """3x3 conv, padding='same', padding_mode='replicate', fused bias(+ReLU).

    x    : (N, H, W, Cin)   bf16
    wk   : (3, 3, Cin, Cout) bf16   (prepared once from PyTorch (Cout,Cin,3,3))
    bias : (1, Cout)        f32
    """
    N, H, W, cin = x.shape
    cout = wk.shape[-1]

    xp = jnp.pad(x, ((0, 0), (1, 1), (1, 1), (0, 0)), mode="edge")

    tn = min(cout, 128)
    assert cout % tn == 0
    n_co = cout // tn

    return pl.pallas_call(
        functools.partial(_conv3x3_kernel, H=H, W=W, relu=relu),
        out_shape=jax.ShapeDtypeStruct((N, H, W, cout), out_dtype),
        grid_spec=pltpu.PrefetchScalarGridSpec(
            num_scalar_prefetch=0,
            grid=(n_co, N),                      # batch innermost: weights/bias
            in_specs=[                           # keep the same block -> no re-DMA
                pl.BlockSpec((1, H + 2, W + 2, cin), lambda j, n: (n, 0, 0, 0)),
                pl.BlockSpec((3, 3, cin, tn),        lambda j, n: (0, 0, 0, j)),
                pl.BlockSpec((1, tn),                lambda j, n: (0, j)),
            ],
            out_specs=pl.BlockSpec((1, H, W, tn), lambda j, n: (n, 0, 0, j)),
        ),
        compiler_params=pltpu.CompilerParams(
            dimension_semantics=("parallel", "parallel")),
    )(xp, wk, bias)


def maxpool2x2(x):
    """nn.MaxPool2d((2,2)) on NHWC, gridded Pallas kernel (no host slices)."""
    N, H, W, C = x.shape
    assert H % 2 == 0 and W % 2 == 0
    R = N * (H // 2)
    xr = x.reshape(R, 2, W // 2, 2, C)          # free reshape of contiguous NHWC

    tr = min(R, 64)
    while R % tr:                               # largest divisor of R <= 64
        tr -= 1

    out = pl.pallas_call(
        _maxpool2x2_kernel,
        out_shape=jax.ShapeDtypeStruct((R, 1, W // 2, 1, C), x.dtype),
        grid_spec=pltpu.PrefetchScalarGridSpec(
            num_scalar_prefetch=0,
            grid=(R // tr,),
            in_specs=[pl.BlockSpec((tr, 2, W // 2, 2, C),
                                   lambda i: (i, 0, 0, 0, 0))],
            out_specs=pl.BlockSpec((tr, 1, W // 2, 1, C),
                                   lambda i: (i, 0, 0, 0, 0)),
        ),
        compiler_params=pltpu.CompilerParams(dimension_semantics=("parallel",)),
    )(xr)
    return out.reshape(N, H // 2, W // 2, C)


# ----------------------------------------------------------------------------
# encoder_block forward
# ----------------------------------------------------------------------------
def encoder_block_forward(x_nchw, prepared):
    """PyTorch encoder_block.forward: returns (conv_block(x), maxpool(conv_block(x)))."""
    x = jnp.transpose(x_nchw, (0, 2, 3, 1)).astype(jnp.bfloat16)   # NCHW->NHWC, bf16
    w1, b1 = prepared["conv1"]
    w2, b2 = prepared["conv2"]

    # conv_block: conv1 -> relu -> conv2 -> (dropout=id) -> relu -> (dropout=id)
    h = conv3x3(x, w1, b1, relu=True, out_dtype=jnp.bfloat16)
    s = conv3x3(h, w2, b2, relu=True, out_dtype=jnp.float32)

    p = maxpool2x2(s)

    return (jnp.transpose(s, (0, 3, 1, 2)),      # x  (skip), NCHW
            jnp.transpose(p, (0, 3, 1, 2)))      # p  (pooled), NCHW


# ----------------------------------------------------------------------------
# Parameters: PyTorch-layout init, then one-time prep into kernel layout
# ----------------------------------------------------------------------------
def _init_conv(key, cin, cout):
    kw, kb = jax.random.split(key)
    fan_in = cin * 9
    w = jax.random.normal(kw, (cout, cin, 3, 3), jnp.float32) / (fan_in ** 0.5)
    b = 0.01 * jax.random.normal(kb, (cout,), jnp.float32)
    return w, b


def init_params(key, in_c, out_c):
    k1, k2 = jax.random.split(key)
    return {"conv1": _init_conv(k1, in_c, out_c),
            "conv2": _init_conv(k2, out_c, out_c)}


def prepare_params(params):
    """Run ONCE (outside the jitted forward): transpose + cast weights, shape bias."""
    def prep(w, b):
        wk = jnp.transpose(w, (2, 3, 1, 0)).astype(jnp.bfloat16)   # (3,3,Cin,Cout)
        return wk, b.astype(jnp.float32).reshape(1, -1)            # (1,Cout)
    return {k: prep(*v) for k, v in params.items()}


# ----------------------------------------------------------------------------
if __name__ == "__main__":
    key = jax.random.PRNGKey(0)
    kx, kp = jax.random.split(key)

    N, Cin, H, W, Cout = 2, 4, 16, 16, 32
    x = jax.random.normal(kx, (N, Cin, H, W), jnp.float32)
    params = init_params(kp, Cin, Cout)
    prepared = prepare_params(params)          # one-time weight layout prep

    fwd = jax.jit(encoder_block_forward)
    s, p = jax.block_until_ready(fwd(x, prepared))

    assert s.shape == (N, Cout, H, W), s.shape
    assert p.shape == (N, Cout, H // 2, W // 2), p.shape
    assert bool(jnp.all(jnp.isfinite(s))) and bool(jnp.all(jnp.isfinite(p)))
    print("KERNEL_OK")
</pallas_src>

<mosaic_0001>
module attributes {stable_mosaic.version = 11 : i64} {
  func.func @_conv3x3_kernel(%arg0: i32, %arg1: i32, %arg2: memref<1x18x18x4xbf16, #tpu.memory_space<vmem>>, %arg3: memref<3x3x4x32xbf16, #tpu.memory_space<vmem>>, %arg4: memref<1x32xf32, #tpu.memory_space<vmem>>, %arg5: memref<1x16x16x32xbf16, #tpu.memory_space<vmem>>) attributes {dimension_semantics = [#tpu.dimension_semantics<parallel>, #tpu.dimension_semantics<parallel>], iteration_bounds = array<i64: 1, 2>, scalar_prefetch = 0 : i64, scratch_operands = 0 : i64, tpu.core_type = #tpu.core_type<tc>, window_params = [{transform_indices = @transform_0, window_bounds = array<i64: 1, 18, 18, 4>}, {transform_indices = @transform_1, window_bounds = array<i64: 3, 3, 4, 32>}, {transform_indices = @transform_2, window_bounds = array<i64: 1, 32>}, {transform_indices = @transform_3, window_bounds = array<i64: 1, 16, 16, 32>}]} {
    %c0 = arith.constant 0 : index
    %c0_0 = arith.constant 0 : index
    %c0_1 = arith.constant 0 : index
    %c0_2 = arith.constant 0 : index
    %0 = vector.load %arg2[%c0, %c0_0, %c0_1, %c0_2] : memref<1x18x18x4xbf16, #tpu.memory_space<vmem>>, vector<1x18x18x4xbf16>
    %c0_3 = arith.constant 0 : index
    %c0_4 = arith.constant 0 : index
    %c0_5 = arith.constant 0 : index
    %c0_6 = arith.constant 0 : index
    %1 = vector.load %arg3[%c0_3, %c0_4, %c0_5, %c0_6] : memref<3x3x4x32xbf16, #tpu.memory_space<vmem>>, vector<3x3x4x32xbf16>
    %cst = arith.constant 0.000000e+00 : f32
    %2 = vector.broadcast %cst : f32 to vector<256x32xf32>
    %3 = vector.extract_strided_slice %0 {offsets = [0, 0, 0, 0], sizes = [1, 16, 16, 4], strides = [1, 1, 1, 1]} : vector<1x18x18x4xbf16> to vector<1x16x16x4xbf16>
    %4 = vector.shape_cast %3 : vector<1x16x16x4xbf16> to vector<16x16x4xbf16>
    %5 = vector.shape_cast %4 : vector<16x16x4xbf16> to vector<256x4xbf16>
    %6 = vector.extract_strided_slice %1 {offsets = [0, 0, 0, 0], sizes = [1, 1, 4, 32], strides = [1, 1, 1, 1]} : vector<3x3x4x32xbf16> to vector<1x1x4x32xbf16>
    %7 = vector.shape_cast %6 : vector<1x1x4x32xbf16> to vector<4x32xbf16>
    %cst_7 = arith.constant dense<0.000000e+00> : vector<256x32xf32>
    %8 = tpu.matmul %5, %7, %cst_7 {dimension_numbers = #tpu.dot_dimension_numbers<[1], [0], [0], [1], [0, 0, 1, 1], [], []>} : vector<256x4xbf16>, vector<4x32xbf16>, vector<256x32xf32> -> vector<256x32xf32>
    %9 = arith.addf %2, %8 : vector<256x32xf32>
    %10 = vector.extract_strided_slice %0 {offsets = [0, 0, 1, 0], sizes = [1, 16, 16, 4], strides = [1, 1, 1, 1]} : vector<1x18x18x4xbf16> to vector<1x16x16x4xbf16>
    %11 = vector.shape_cast %10 : vector<1x16x16x4xbf16> to vector<16x16x4xbf16>
    %12 = vector.shape_cast %11 : vector<16x16x4xbf16> to vector<256x4xbf16>
    %13 = vector.extract_strided_slice %1 {offsets = [0, 1, 0, 0], sizes = [1, 1, 4, 32], strides = [1, 1, 1, 1]} : vector<3x3x4x32xbf16> to vector<1x1x4x32xbf16>
    %14 = vector.shape_cast %13 : vector<1x1x4x32xbf16> to vector<4x32xbf16>
    %cst_8 = arith.constant dense<0.000000e+00> : vector<256x32xf32>
    %15 = tpu.matmul %12, %14, %cst_8 {dimension_numbers = #tpu.dot_dimension_numbers<[1], [0], [0], [1], [0, 0, 1, 1], [], []>} : vector<256x4xbf16>, vector<4x32xbf16>, vector<256x32xf32> -> vector<256x32xf32>
    %16 = arith.addf %9, %15 : vector<256x32xf32>
    %17 = vector.extract_strided_slice %0 {offsets = [0, 0, 2, 0], sizes = [1, 16, 16, 4], strides = [1, 1, 1, 1]} : vector<1x18x18x4xbf16> to vector<1x16x16x4xbf16>
    %18 = vector.shape_cast %17 : vector<1x16x16x4xbf16> to vector<16x16x4xbf16>
    %19 = vector.shape_cast %18 : vector<16x16x4xbf16> to vector<256x4xbf16>
    %20 = vector.extract_strided_slice %1 {offsets = [0, 2, 0, 0], sizes = [1, 1, 4, 32], strides = [1, 1, 1, 1]} : vector<3x3x4x32xbf16> to vector<1x1x4x32xbf16>
    %21 = vector.shape_cast %20 : vector<1x1x4x32xbf16> to vector<4x32xbf16>
    %cst_9 = arith.constant dense<0.000000e+00> : vector<256x32xf32>
    %22 = tpu.matmul %19, %21, %cst_9 {dimension_numbers = #tpu.dot_dimension_numbers<[1], [0], [0], [1], [0, 0, 1, 1], [], []>} : vector<256x4xbf16>, vector<4x32xbf16>, vector<256x32xf32> -> vector<256x32xf32>
    %23 = arith.addf %16, %22 : vector<256x32xf32>
    %24 = vector.extract_strided_slice %0 {offsets = [0, 1, 0, 0], sizes = [1, 16, 16, 4], strides = [1, 1, 1, 1]} : vector<1x18x18x4xbf16> to vector<1x16x16x4xbf16>
    %25 = vector.shape_cast %24 : vector<1x16x16x4xbf16> to vector<16x16x4xbf16>
    %26 = vector.shape_cast %25 : vector<16x16x4xbf16> to vector<256x4xbf16>
    %27 = vector.extract_strided_slice %1 {offsets = [1, 0, 0, 0], sizes = [1, 1, 4, 32], strides = [1, 1, 1, 1]} : vector<3x3x4x32xbf16> to vector<1x1x4x32xbf16>
    %28 = vector.shape_cast %27 : vector<1x1x4x32xbf16> to vector<4x32xbf16>
    %cst_10 = arith.constant dense<0.000000e+00> : vector<256x32xf32>
    %29 = tpu.matmul %26, %28, %cst_10 {dimension_numbers = #tpu.dot_dimension_numbers<[1], [0], [0], [1], [0, 0, 1, 1], [], []>} : vector<256x4xbf16>, vector<4x32xbf16>, vector<256x32xf32> -> vector<256x32xf32>
    %30 = arith.addf %23, %29 : vector<256x32xf32>
    %31 = vector.extract_strided_slice %0 {offsets = [0, 1, 1, 0], sizes = [1, 16, 16, 4], strides = [1, 1, 1, 1]} : vector<1x18x18x4xbf16> to vector<1x16x16x4xbf16>
    %32 = vector.shape_cast %31 : vector<1x16x16x4xbf16> to vector<16x16x4xbf16>
    %33 = vector.shape_cast %32 : vector<16x16x4xbf16> to vector<256x4xbf16>
    %34 = vector.extract_strided_slice %1 {offsets = [1, 1, 0, 0], sizes = [1, 1, 4, 32], strides = [1, 1, 1, 1]} : vector<3x3x4x32xbf16> to vector<1x1x4x32xbf16>
    %35 = vector.shape_cast %34 : vector<1x1x4x32xbf16> to vector<4x32xbf16>
    %cst_11 = arith.constant dense<0.000000e+00> : vector<256x32xf32>
    %36 = tpu.matmul %33, %35, %cst_11 {dimension_numbers = #tpu.dot_dimension_numbers<[1], [0], [0], [1], [0, 0, 1, 1], [], []>} : vector<256x4xbf16>, vector<4x32xbf16>, vector<256x32xf32> -> vector<256x32xf32>
    %37 = arith.addf %30, %36 : vector<256x32xf32>
    %38 = vector.extract_strided_slice %0 {offsets = [0, 1, 2, 0], sizes = [1, 16, 16, 4], strides = [1, 1, 1, 1]} : vector<1x18x18x4xbf16> to vector<1x16x16x4xbf16>
    %39 = vector.shape_cast %38 : vector<1x16x16x4xbf16> to vector<16x16x4xbf16>
    %40 = vector.shape_cast %39 : vector<16x16x4xbf16> to vector<256x4xbf16>
    %41 = vector.extract_strided_slice %1 {offsets = [1, 2, 0, 0], sizes = [1, 1, 4, 32], strides = [1, 1, 1, 1]} : vector<3x3x4x32xbf16> to vector<1x1x4x32xbf16>
    %42 = vector.shape_cast %41 : vector<1x1x4x32xbf16> to vector<4x32xbf16>
    %cst_12 = arith.constant dense<0.000000e+00> : vector<256x32xf32>
    %43 = tpu.matmul %40, %42, %cst_12 {dimension_numbers = #tpu.dot_dimension_numbers<[1], [0], [0], [1], [0, 0, 1, 1], [], []>} : vector<256x4xbf16>, vector<4x32xbf16>, vector<256x32xf32> -> vector<256x32xf32>
    %44 = arith.addf %37, %43 : vector<256x32xf32>
    %45 = vector.extract_strided_slice %0 {offsets = [0, 2, 0, 0], sizes = [1, 16, 16, 4], strides = [1, 1, 1, 1]} : vector<1x18x18x4xbf16> to vector<1x16x16x4xbf16>
    %46 = vector.shape_cast %45 : vector<1x16x16x4xbf16> to vector<16x16x4xbf16>
    %47 = vector.shape_cast %46 : vector<16x16x4xbf16> to vector<256x4xbf16>
    %48 = vector.extract_strided_slice %1 {offsets = [2, 0, 0, 0], sizes = [1, 1, 4, 32], strides = [1, 1, 1, 1]} : vector<3x3x4x32xbf16> to vector<1x1x4x32xbf16>
    %49 = vector.shape_cast %48 : vector<1x1x4x32xbf16> to vector<4x32xbf16>
    %cst_13 = arith.constant dense<0.000000e+00> : vector<256x32xf32>
    %50 = tpu.matmul %47, %49, %cst_13 {dimension_numbers = #tpu.dot_dimension_numbers<[1], [0], [0], [1], [0, 0, 1, 1], [], []>} : vector<256x4xbf16>, vector<4x32xbf16>, vector<256x32xf32> -> vector<256x32xf32>
    %51 = arith.addf %44, %50 : vector<256x32xf32>
    %52 = vector.extract_strided_slice %0 {offsets = [0, 2, 1, 0], sizes = [1, 16, 16, 4], strides = [1, 1, 1, 1]} : vector<1x18x18x4xbf16> to vector<1x16x16x4xbf16>
    %53 = vector.shape_cast %52 : vector<1x16x16x4xbf16> to vector<16x16x4xbf16>
    %54 = vector.shape_cast %53 : vector<16x16x4xbf16> to vector<256x4xbf16>
    %55 = vector.extract_strided_slice %1 {offsets = [2, 1, 0, 0], sizes = [1, 1, 4, 32], strides = [1, 1, 1, 1]} : vector<3x3x4x32xbf16> to vector<1x1x4x32xbf16>
    %56 = vector.shape_cast %55 : vector<1x1x4x32xbf16> to vector<4x32xbf16>
    %cst_14 = arith.constant dense<0.000000e+00> : vector<256x32xf32>
    %57 = tpu.matmul %54, %56, %cst_14 {dimension_numbers = #tpu.dot_dimension_numbers<[1], [0], [0], [1], [0, 0, 1, 1], [], []>} : vector<256x4xbf16>, vector<4x32xbf16>, vector<256x32xf32> -> vector<256x32xf32>
    %58 = arith.addf %51, %57 : vector<256x32xf32>
    %59 = vector.extract_strided_slice %0 {offsets = [0, 2, 2, 0], sizes = [1, 16, 16, 4], strides = [1, 1, 1, 1]} : vector<1x18x18x4xbf16> to vector<1x16x16x4xbf16>
    %60 = vector.shape_cast %59 : vector<1x16x16x4xbf16> to vector<16x16x4xbf16>
    %61 = vector.shape_cast %60 : vector<16x16x4xbf16> to vector<256x4xbf16>
    %62 = vector.extract_strided_slice %1 {offsets = [2, 2, 0, 0], sizes = [1, 1, 4, 32], strides = [1, 1, 1, 1]} : vector<3x3x4x32xbf16> to vector<1x1x4x32xbf16>
    %63 = vector.shape_cast %62 : vector<1x1x4x32xbf16> to vector<4x32xbf16>
    %cst_15 = arith.constant dense<0.000000e+00> : vector<256x32xf32>
    %64 = tpu.matmul %61, %63, %cst_15 {dimension_numbers = #tpu.dot_dimension_numbers<[1], [0], [0], [1], [0, 0, 1, 1], [], []>} : vector<256x4xbf16>, vector<4x32xbf16>, vector<256x32xf32> -> vector<256x32xf32>
    %65 = arith.addf %58, %64 : vector<256x32xf32>
    %c0_16 = arith.constant 0 : index
    %c0_17 = arith.constant 0 : index
    %66 = vector.load %arg4[%c0_16, %c0_17] : memref<1x32xf32, #tpu.memory_space<vmem>>, vector<1x32xf32>
    %67 = vector.broadcast %66 : vector<1x32xf32> to vector<256x32xf32>
    %68 = arith.addf %65, %67 : vector<256x32xf32>
    %cst_18 = arith.constant 0.000000e+00 : f32
    %69 = vector.broadcast %cst_18 : f32 to vector<256x32xf32>
    %70 = arith.maximumf %68, %69 : vector<256x32xf32>
    %71 = vector.shape_cast %70 : vector<256x32xf32> to vector<1x16x16x32xf32>
    %72 = arith.truncf %71 : vector<1x16x16x32xf32> to vector<1x16x16x32xbf16>
    %c0_19 = arith.constant 0 : index
    %c0_20 = arith.constant 0 : index
    %c0_21 = arith.constant 0 : index
    %c0_22 = arith.constant 0 : index
    %73 = vector.load %arg5[%c0_19, %c0_20, %c0_21, %c0_22] : memref<1x16x16x32xbf16, #tpu.memory_space<vmem>>, vector<1x16x16x32xbf16>
    tpu.vector_store %arg5[%c0_19, %c0_20, %c0_21, %c0_22], %72 {strides = array<i32>} : memref<1x16x16x32xbf16, #tpu.memory_space<vmem>>, vector<1x16x16x32xbf16>,
    return
  }
  func.func @transform_0(%arg0: i32, %arg1: i32) -> (i32, i32, i32, i32) {
    %c0_i32 = arith.constant 0 : i32
    %c0_i32_0 = arith.constant 0 : i32
    %c0_i32_1 = arith.constant 0 : i32
    %c0_i32_2 = arith.constant 0 : i32
    return %arg1, %c0_i32, %c0_i32_0, %c0_i32_1 : i32, i32, i32, i32
  }
  func.func @transform_1(%arg0: i32, %arg1: i32) -> (i32, i32, i32, i32) {
    %c0_i32 = arith.constant 0 : i32
    %c0_i32_0 = arith.constant 0 : i32
    %c0_i32_1 = arith.constant 0 : i32
    %c0_i32_2 = arith.constant 0 : i32
    return %c0_i32, %c0_i32_0, %c0_i32_1, %arg0 : i32, i32, i32, i32
  }
  func.func @transform_2(%arg0: i32, %arg1: i32) -> (i32, i32) {
    %c0_i32 = arith.constant 0 : i32
    %c0_i32_0 = arith.constant 0 : i32
    return %c0_i32, %arg0 : i32, i32
  }
  func.func @transform_3(%arg0: i32, %arg1: i32) -> (i32, i32, i32, i32) {
    %c0_i32 = arith.constant 0 : i32
    %c0_i32_0 = arith.constant 0 : i32
    %c0_i32_1 = arith.constant 0 : i32
    return %arg1, %c0_i32, %c0_i32_0, %arg0 : i32, i32, i32, i32
  }
}

module attributes {stable_mosaic.version = 11 : i64} {
  func.func @_conv3x3_kernel(%arg0: i32, %arg1: i32, %arg2: memref<1x18x18x32xbf16, #tpu.memory_space<vmem>>, %arg3: memref<3x3x32x32xbf16, #tpu.memory_space<vmem>>, %arg4: memref<1x32xf32, #tpu.memory_space<vmem>>, %arg5: memref<1x16x16x32xf32, #tpu.memory_space<vmem>>) attributes {dimension_semantics = [#tpu.dimension_semantics<parallel>, #tpu.dimension_semantics<parallel>], iteration_bounds = array<i64: 1, 2>, scalar_prefetch = 0 : i64, scratch_operands = 0 : i64, tpu.core_type = #tpu.core_type<tc>, window_params = [{transform_indices = @transform_0, window_bounds = array<i64: 1, 18, 18, 32>}, {transform_indices = @transform_1, window_bounds = array<i64: 3, 3, 32, 32>}, {transform_indices = @transform_2, window_bounds = array<i64: 1, 32>}, {transform_indices = @transform_3, window_bounds = array<i64: 1, 16, 16, 32>}]} {
    %c0 = arith.constant 0 : index
    %c0_0 = arith.constant 0 : index
    %c0_1 = arith.constant 0 : index
    %c0_2 = arith.constant 0 : index
    %0 = vector.load %arg2[%c0, %c0_0, %c0_1, %c0_2] : memref<1x18x18x32xbf16, #tpu.memory_space<vmem>>, vector<1x18x18x32xbf16>
    %c0_3 = arith.constant 0 : index
    %c0_4 = arith.constant 0 : index
    %c0_5 = arith.constant 0 : index
    %c0_6 = arith.constant 0 : index
    %1 = vector.load %arg3[%c0_3, %c0_4, %c0_5, %c0_6] : memref<3x3x32x32xbf16, #tpu.memory_space<vmem>>, vector<3x3x32x32xbf16>
    %cst = arith.constant 0.000000e+00 : f32
    %2 = vector.broadcast %cst : f32 to vector<256x32xf32>
    %3 = vector.extract_strided_slice %0 {offsets = [0, 0, 0, 0], sizes = [1, 16, 16, 32], strides = [1, 1, 1, 1]} : vector<1x18x18x32xbf16> to vector<1x16x16x32xbf16>
    %4 = vector.shape_cast %3 : vector<1x16x16x32xbf16> to vector<16x16x32xbf16>
    %5 = vector.shape_cast %4 : vector<16x16x32xbf16> to vector<256x32xbf16>
    %6 = vector.extract_strided_slice %1 {offsets = [0, 0, 0, 0], sizes = [1, 1, 32, 32], strides = [1, 1, 1, 1]} : vector<3x3x32x32xbf16> to vector<1x1x32x32xbf16>
    %7 = vector.shape_cast %6 : vector<1x1x32x32xbf16> to vector<32x32xbf16>
    %cst_7 = arith.constant dense<0.000000e+00> : vector<256x32xf32>
    %8 = tpu.matmul %5, %7, %cst_7 {dimension_numbers = #tpu.dot_dimension_numbers<[1], [0], [0], [1], [0, 0, 1, 1], [], []>} : vector<256x32xbf16>, vector<32x32xbf16>, vector<256x32xf32> -> vector<256x32xf32>
    %9 = arith.addf %2, %8 : vector<256x32xf32>
    %10 = vector.extract_strided_slice %0 {offsets = [0, 0, 1, 0], sizes = [1, 16, 16, 32], strides = [1, 1, 1, 1]} : vector<1x18x18x32xbf16> to vector<1x16x16x32xbf16>
    %11 = vector.shape_cast %10 : vector<1x16x16x32xbf16> to vector<16x16x32xbf16>
    %12 = vector.shape_cast %11 : vector<16x16x32xbf16> to vector<256x32xbf16>
    %13 = vector.extract_strided_slice %1 {offsets = [0, 1, 0, 0], sizes = [1, 1, 32, 32], strides = [1, 1, 1, 1]} : vector<3x3x32x32xbf16> to vector<1x1x32x32xbf16>
    %14 = vector.shape_cast %13 : vector<1x1x32x32xbf16> to vector<32x32xbf16>
    %cst_8 = arith.constant dense<0.000000e+00> : vector<256x32xf32>
    %15 = tpu.matmul %12, %14, %cst_8 {dimension_numbers = #tpu.dot_dimension_numbers<[1], [0], [0], [1], [0, 0, 1, 1], [], []>} : vector<256x32xbf16>, vector<32x32xbf16>, vector<256x32xf32> -> vector<256x32xf32>
    %16 = arith.addf %9, %15 : vector<256x32xf32>
    %17 = vector.extract_strided_slice %0 {offsets = [0, 0, 2, 0], sizes = [1, 16, 16, 32], strides = [1, 1, 1, 1]} : vector<1x18x18x32xbf16> to vector<1x16x16x32xbf16>
    %18 = vector.shape_cast %17 : vector<1x16x16x32xbf16> to vector<16x16x32xbf16>
    %19 = vector.shape_cast %18 : vector<16x16x32xbf16> to vector<256x32xbf16>
    %20 = vector.extract_strided_slice %1 {offsets = [0, 2, 0, 0], sizes = [1, 1, 32, 32], strides = [1, 1, 1, 1]} : vector<3x3x32x32xbf16> to vector<1x1x32x32xbf16>
    %21 = vector.shape_cast %20 : vector<1x1x32x32xbf16> to vector<32x32xbf16>
    %cst_9 = arith.constant dense<0.000000e+00> : vector<256x32xf32>
    %22 = tpu.matmul %19, %21, %cst_9 {dimension_numbers = #tpu.dot_dimension_numbers<[1], [0], [0], [1], [0, 0, 1, 1], [], []>} : vector<256x32xbf16>, vector<32x32xbf16>, vector<256x32xf32> -> vector<256x32xf32>
    %23 = arith.addf %16, %22 : vector<256x32xf32>
    %24 = vector.extract_strided_slice %0 {offsets = [0, 1, 0, 0], sizes = [1, 16, 16, 32], strides = [1, 1, 1, 1]} : vector<1x18x18x32xbf16> to vector<1x16x16x32xbf16>
    %25 = vector.shape_cast %24 : vector<1x16x16x32xbf16> to vector<16x16x32xbf16>
    %26 = vector.shape_cast %25 : vector<16x16x32xbf16> to vector<256x32xbf16>
    %27 = vector.extract_strided_slice %1 {offsets = [1, 0, 0, 0], sizes = [1, 1, 32, 32], strides = [1, 1, 1, 1]} : vector<3x3x32x32xbf16> to vector<1x1x32x32xbf16>
    %28 = vector.shape_cast %27 : vector<1x1x32x32xbf16> to vector<32x32xbf16>
    %cst_10 = arith.constant dense<0.000000e+00> : vector<256x32xf32>
    %29 = tpu.matmul %26, %28, %cst_10 {dimension_numbers = #tpu.dot_dimension_numbers<[1], [0], [0], [1], [0, 0, 1, 1], [], []>} : vector<256x32xbf16>, vector<32x32xbf16>, vector<256x32xf32> -> vector<256x32xf32>
    %30 = arith.addf %23, %29 : vector<256x32xf32>
    %31 = vector.extract_strided_slice %0 {offsets = [0, 1, 1, 0], sizes = [1, 16, 16, 32], strides = [1, 1, 1, 1]} : vector<1x18x18x32xbf16> to vector<1x16x16x32xbf16>
    %32 = vector.shape_cast %31 : vector<1x16x16x32xbf16> to vector<16x16x32xbf16>
    %33 = vector.shape_cast %32 : vector<16x16x32xbf16> to vector<256x32xbf16>
    %34 = vector.extract_strided_slice %1 {offsets = [1, 1, 0, 0], sizes = [1, 1, 32, 32], strides = [1, 1, 1, 1]} : vector<3x3x32x32xbf16> to vector<1x1x32x32xbf16>
    %35 = vector.shape_cast %34 : vector<1x1x32x32xbf16> to vector<32x32xbf16>
    %cst_11 = arith.constant dense<0.000000e+00> : vector<256x32xf32>
    %36 = tpu.matmul %33, %35, %cst_11 {dimension_numbers = #tpu.dot_dimension_numbers<[1], [0], [0], [1], [0, 0, 1, 1], [], []>} : vector<256x32xbf16>, vector<32x32xbf16>, vector<256x32xf32> -> vector<256x32xf32>
    %37 = arith.addf %30, %36 : vector<256x32xf32>
    %38 = vector.extract_strided_slice %0 {offsets = [0, 1, 2, 0], sizes = [1, 16, 16, 32], strides = [1, 1, 1, 1]} : vector<1x18x18x32xbf16> to vector<1x16x16x32xbf16>
    %39 = vector.shape_cast %38 : vector<1x16x16x32xbf16> to vector<16x16x32xbf16>
    %40 = vector.shape_cast %39 : vector<16x16x32xbf16> to vector<256x32xbf16>
    %41 = vector.extract_strided_slice %1 {offsets = [1, 2, 0, 0], sizes = [1, 1, 32, 32], strides = [1, 1, 1, 1]} : vector<3x3x32x32xbf16> to vector<1x1x32x32xbf16>
    %42 = vector.shape_cast %41 : vector<1x1x32x32xbf16> to vector<32x32xbf16>
    %cst_12 = arith.constant dense<0.000000e+00> : vector<256x32xf32>
    %43 = tpu.matmul %40, %42, %cst_12 {dimension_numbers = #tpu.dot_dimension_numbers<[1], [0], [0], [1], [0, 0, 1, 1], [], []>} : vector<256x32xbf16>, vector<32x32xbf16>, vector<256x32xf32> -> vector<256x32xf32>
    %44 = arith.addf %37, %43 : vector<256x32xf32>
    %45 = vector.extract_strided_slice %0 {offsets = [0, 2, 0, 0], sizes = [1, 16, 16, 32], strides = [1, 1, 1, 1]} : vector<1x18x18x32xbf16> to vector<1x16x16x32xbf16>
    %46 = vector.shape_cast %45 : vector<1x16x16x32xbf16> to vector<16x16x32xbf16>
    %47 = vector.shape_cast %46 : vector<16x16x32xbf16> to vector<256x32xbf16>
    %48 = vector.extract_strided_slice %1 {offsets = [2, 0, 0, 0], sizes = [1, 1, 32, 32], strides = [1, 1, 1, 1]} : vector<3x3x32x32xbf16> to vector<1x1x32x32xbf16>
    %49 = vector.shape_cast %48 : vector<1x1x32x32xbf16> to vector<32x32xbf16>
    %cst_13 = arith.constant dense<0.000000e+00> : vector<256x32xf32>
    %50 = tpu.matmul %47, %49, %cst_13 {dimension_numbers = #tpu.dot_dimension_numbers<[1], [0], [0], [1], [0, 0, 1, 1], [], []>} : vector<256x32xbf16>, vector<32x32xbf16>, vector<256x32xf32> -> vector<256x32xf32>
    %51 = arith.addf %44, %50 : vector<256x32xf32>
    %52 = vector.extract_strided_slice %0 {offsets = [0, 2, 1, 0], sizes = [1, 16, 16, 32], strides = [1, 1, 1, 1]} : vector<1x18x18x32xbf16> to vector<1x16x16x32xbf16>
    %53 = vector.shape_cast %52 : vector<1x16x16x32xbf16> to vector<16x16x32xbf16>
    %54 = vector.shape_cast %53 : vector<16x16x32xbf16> to vector<256x32xbf16>
    %55 = vector.extract_strided_slice %1 {offsets = [2, 1, 0, 0], sizes = [1, 1, 32, 32], strides = [1, 1, 1, 1]} : vector<3x3x32x32xbf16> to vector<1x1x32x32xbf16>
    %56 = vector.shape_cast %55 : vector<1x1x32x32xbf16> to vector<32x32xbf16>
    %cst_14 = arith.constant dense<0.000000e+00> : vector<256x32xf32>
    %57 = tpu.matmul %54, %56, %cst_14 {dimension_numbers = #tpu.dot_dimension_numbers<[1], [0], [0], [1], [0, 0, 1, 1], [], []>} : vector<256x32xbf16>, vector<32x32xbf16>, vector<256x32xf32> -> vector<256x32xf32>
    %58 = arith.addf %51, %57 : vector<256x32xf32>
    %59 = vector.extract_strided_slice %0 {offsets = [0, 2, 2, 0], sizes = [1, 16, 16, 32], strides = [1, 1, 1, 1]} : vector<1x18x18x32xbf16> to vector<1x16x16x32xbf16>
    %60 = vector.shape_cast %59 : vector<1x16x16x32xbf16> to vector<16x16x32xbf16>
    %61 = vector.shape_cast %60 : vector<16x16x32xbf16> to vector<256x32xbf16>
    %62 = vector.extract_strided_slice %1 {offsets = [2, 2, 0, 0], sizes = [1, 1, 32, 32], strides = [1, 1, 1, 1]} : vector<3x3x32x32xbf16> to vector<1x1x32x32xbf16>
    %63 = vector.shape_cast %62 : vector<1x1x32x32xbf16> to vector<32x32xbf16>
    %cst_15 = arith.constant dense<0.000000e+00> : vector<256x32xf32>
    %64 = tpu.matmul %61, %63, %cst_15 {dimension_numbers = #tpu.dot_dimension_numbers<[1], [0], [0], [1], [0, 0, 1, 1], [], []>} : vector<256x32xbf16>, vector<32x32xbf16>, vector<256x32xf32> -> vector<256x32xf32>
    %65 = arith.addf %58, %64 : vector<256x32xf32>
    %c0_16 = arith.constant 0 : index
    %c0_17 = arith.constant 0 : index
    %66 = vector.load %arg4[%c0_16, %c0_17] : memref<1x32xf32, #tpu.memory_space<vmem>>, vector<1x32xf32>
    %67 = vector.broadcast %66 : vector<1x32xf32> to vector<256x32xf32>
    %68 = arith.addf %65, %67 : vector<256x32xf32>
    %cst_18 = arith.constant 0.000000e+00 : f32
    %69 = vector.broadcast %cst_18 : f32 to vector<256x32xf32>
    %70 = arith.maximumf %68, %69 : vector<256x32xf32>
    %71 = vector.shape_cast %70 : vector<256x32xf32> to vector<1x16x16x32xf32>
    %c0_19 = arith.constant 0 : index
    %c0_20 = arith.constant 0 : index
    %c0_21 = arith.constant 0 : index
    %c0_22 = arith.constant 0 : index
    %72 = vector.load %arg5[%c0_19, %c0_20, %c0_21, %c0_22] : memref<1x16x16x32xf32, #tpu.memory_space<vmem>>, vector<1x16x16x32xf32>
    tpu.vector_store %arg5[%c0_19, %c0_20, %c0_21, %c0_22], %71 {strides = array<i32>} : memref<1x16x16x32xf32, #tpu.memory_space<vmem>>, vector<1x16x16x32xf32>,
    return
  }
  func.func @transform_0(%arg0: i32, %arg1: i32) -> (i32, i32, i32, i32) {
    %c0_i32 = arith.constant 0 : i32
    %c0_i32_0 = arith.constant 0 : i32
    %c0_i32_1 = arith.constant 0 : i32
    %c0_i32_2 = arith.constant 0 : i32
    return %arg1, %c0_i32, %c0_i32_0, %c0_i32_1 : i32, i32, i32, i32
  }
  func.func @transform_1(%arg0: i32, %arg1: i32) -> (i32, i32, i32, i32) {
    %c0_i32 = arith.constant 0 : i32
    %c0_i32_0 = arith.constant 0 : i32
    %c0_i32_1 = arith.constant 0 : i32
    %c0_i32_2 = arith.constant 0 : i32
    return %c0_i32, %c0_i32_0, %c0_i32_1, %arg0 : i32, i32, i32, i32
  }
  func.func @transform_2(%arg0: i32, %arg1: i32) -> (i32, i32) {
    %c0_i32 = arith.constant 0 : i32
    %c0_i32_0 = arith.constant 0 : i32
    return %c0_i32, %arg0 : i32, i32
  }
  func.func @transform_3(%arg0: i32, %arg1: i32) -> (i32, i32, i32, i32) {
    %c0_i32 = arith.constant 0 : i32
    %c0_i32_0 = arith.constant 0 : i32
    %c0_i32_1 = arith.constant 0 : i32
    return %arg1, %c0_i32, %c0_i32_0, %arg0 : i32, i32, i32, i32
  }
}

module attributes {stable_mosaic.version = 11 : i64} {
  func.func @_maxpool2x2_kernel(%arg0: i32, %arg1: memref<16x2x8x2x32xf32, #tpu.memory_space<vmem>>, %arg2: memref<16x1x8x1x32xf32, #tpu.memory_space<vmem>>) attributes {dimension_semantics = [#tpu.dimension_semantics<parallel>], iteration_bounds = array<i64: 1>, scalar_prefetch = 0 : i64, scratch_operands = 0 : i64, tpu.core_type = #tpu.core_type<tc>, window_params = [{transform_indices = @transform_0, window_bounds = array<i64: 16, 2, 8, 2, 32>}, {transform_indices = @transform_1, window_bounds = array<i64: 16, 1, 8, 1, 32>}]} {
    %c0 = arith.constant 0 : index
    %c0_0 = arith.constant 0 : index
    %c0_1 = arith.constant 0 : index
    %c0_2 = arith.constant 0 : index
    %c0_3 = arith.constant 0 : index
    %0 = vector.load %arg1[%c0, %c0_0, %c0_1, %c0_2, %c0_3] : memref<16x2x8x2x32xf32, #tpu.memory_space<vmem>>, vector<16x2x8x2x32xf32>
    %cst = arith.constant dense<0xFF800000> : vector<16x2x8x32xf32>
    %1 = vector.multi_reduction <maximumf>, %0, %cst [3] : vector<16x2x8x2x32xf32> to vector<16x2x8x32xf32>
    %2 = vector.shape_cast %1 : vector<16x2x8x32xf32> to vector<16x2x8x1x32xf32>
    %cst_4 = arith.constant dense<0xFF800000> : vector<16x8x1x32xf32>
    %3 = vector.multi_reduction <maximumf>, %2, %cst_4 [1] : vector<16x2x8x1x32xf32> to vector<16x8x1x32xf32>
    %4 = vector.shape_cast %3 : vector<16x8x1x32xf32> to vector<16x1x8x1x32xf32>
    %c0_5 = arith.constant 0 : index
    %c0_6 = arith.constant 0 : index
    %c0_7 = arith.constant 0 : index
    %c0_8 = arith.constant 0 : index
    %c0_9 = arith.constant 0 : index
    %5 = vector.load %arg2[%c0_5, %c0_6, %c0_7, %c0_8, %c0_9] : memref<16x1x8x1x32xf32, #tpu.memory_space<vmem>>, vector<16x1x8x1x32xf32>
    tpu.vector_store %arg2[%c0_5, %c0_6, %c0_7, %c0_8, %c0_9], %4 {strides = array<i32>} : memref<16x1x8x1x32xf32, #tpu.memory_space<vmem>>, vector<16x1x8x1x32xf32>,
    return
  }
  func.func @transform_0(%arg0: i32) -> (i32, i32, i32, i32, i32) {
    %c0_i32 = arith.constant 0 : i32
    %c0_i32_0 = arith.constant 0 : i32
    %c0_i32_1 = arith.constant 0 : i32
    %c0_i32_2 = arith.constant 0 : i32
    %c0_i32_3 = arith.constant 0 : i32
    return %arg0, %c0_i32, %c0_i32_0, %c0_i32_1, %c0_i32_2 : i32, i32, i32, i32, i32
  }
  func.func @transform_1(%arg0: i32) -> (i32, i32, i32, i32, i32) {
    %c0_i32 = arith.constant 0 : i32
    %c0_i32_0 = arith.constant 0 : i32
    %c0_i32_1 = arith.constant 0 : i32
    %c0_i32_2 = arith.constant 0 : i32
    %c0_i32_3 = arith.constant 0 : i32
    return %arg0, %c0_i32, %c0_i32_0, %c0_i32_1, %c0_i32_2 : i32, i32, i32, i32, i32
  }
}

</mosaic_0001>

<bundles_post_ra>
// kernel: encoder_block_forward.5
= control target key start
LH: loop header
LB: loop body
LE: loop exit
PB: predicated region body
PF: predicated region fallthrough
CT: control target
= control target key end

     0   :  { %vm265_vm0 = vcmask 254976   ;;  %vm2058_vm1 = vcmask 261120   ;;  %vm2443_vm2 = vcmask 253952   ;;  %s4048_s0 = inlined_call_operand.vmem [shape: f32[16,2,8,2,32], index: 0, kind: input, shape index: {}]   ;;  %s4049_s1 = inlined_call_operand.hbm [shape: f32[16,1,8,1,32], index: 1, kind: output, shape index: {}]  }
   0x1   :  { %v9_v0 = vld [vmem:[%s4048_s0] sm:$0x3]  ;;  %v17_v1 = vld [vmem:[%s4048_s0 + $0x10] sm:$0x3]  ;;  %v10_v4 = vld [vmem:[%s4048_s0 + $0x2] sm:$0x3] }
   0x2   :  { %v266_v2 = vsel %vm265_vm0, %v9_v0, -inf  ;;  %v322_v3 = vsel %vm265_vm0, %v17_v1, -inf  ;;  %v18_v7 = vld [vmem:[%s4048_s0 + $0x12] sm:$0x3]  ;;  %v273_v8 = vsel %vm265_vm0, %v10_v4, -inf }
   0x3   :  { %v267_v5 = vrot.slane %v266_v2, 4  ;;  %v323_v6 = vrot.slane %v322_v3, 4  ;;  %v274_v9 = vrot.slane %v273_v8, 4  ;;  %v329_v10 = vsel %vm265_vm0, %v18_v7, -inf  ;;  %v11_v11 = vld [vmem:[%s4048_s0 + $0x4] sm:$0x3] }
   0x4   :  { %v19_v12 = vld [vmem:[%s4048_s0 + $0x14] sm:$0x3]  ;;  %v330_v15 = vrot.slane %v329_v10, 4  ;;  %v280_v16 = vsel %vm265_vm0, %v11_v11, -inf  ;;  %v12_v17 = vld [vmem:[%s4048_s0 + $0x6] sm:$0x3] }
   0x5   :  { %v268_v13 = vmax.f32 %v266_v2, %v267_v5  ;;  %v324_v14 = vmax.f32 %v322_v3, %v323_v6  ;;  %v20_v18 = vld [vmem:[%s4048_s0 + $0x16] sm:$0x3]  ;;  %v275_v19 = vmax.f32 %v273_v8, %v274_v9  ;;  %v281_v20 = vrot.slane %v280_v16, 4  ;;  %v13_v55 = vld [vmem:[%s4048_s0 + $0x8] sm:$0x3] }
   0x6   :  { %v336_v21 = vsel %vm265_vm0, %v19_v12, -inf  ;;  %v287_v22 = vsel %vm265_vm0, %v12_v17, -inf  ;;  %v331_v25 = vmax.f32 %v329_v10, %v330_v15  ;;  %v343_v30 = vsel %vm265_vm0, %v20_v18, -inf  ;;  %v21_v0 = vld [vmem:[%s4048_s0 + $0x18] sm:$0x3] }
   0x7   :  { %v269_v23 = vrot.slane %v268_v13, 2  ;;  %v325_v24 = vrot.slane %v324_v14, 2  ;;  %v337_v26 = vrot.slane %v336_v21, 4  ;;  %v276_v27 = vrot.slane %v275_v19, 2  ;;  %v14_v1 = vld [vmem:[%s4048_s0 + $0xa] sm:$0x3] }
   0x8   :  { %v282_v28 = vmax.f32 %v280_v16, %v281_v20  ;;  %v288_v29 = vrot.slane %v287_v22, 4  ;;  %v332_v33 = vrot.slane %v331_v25, 2  ;;  %v344_v38 = vrot.slane %v343_v30, 4  ;;  %v22_v10 = vld [vmem:[%s4048_s0 + $0x1a] sm:$0x3] }
   0x9   :  { %v270_v31 = vmax.f32 %v268_v13, %v269_v23  ;;  %v326_v32 = vmax.f32 %v324_v14, %v325_v24  ;;  %v338_v34 = vmax.f32 %v336_v21, %v337_v26  ;;  %v277_v35 = vmax.f32 %v275_v19, %v276_v27  ;;  %v15_v11 = vld [vmem:[%s4048_s0 + $0xc] sm:$0x3]  ;;  %v23_v20 = vld [vmem:[%s4048_s0 + $0x1c] sm:$0x3]  ;;  %v16_v21 = vld [vmem:[%s4048_s0 + $0xe] sm:$0x3] }
   0xa   :  { %v283_v36 = vrot.slane %v282_v28, 2  ;;  %v289_v37 = vmax.f32 %v287_v22, %v288_v29  ;;  %v333_v41 = vmax.f32 %v331_v25, %v332_v33  ;;  %v345_v46 = vmax.f32 %v343_v30, %v344_v38  ;;  %v24_v33 = vld [vmem:[%s4048_s0 + $0x1e] sm:$0x3] }
   0xb   :  { %v271_v39 = vrot.slane %v270_v31, 1  ;;  %v327_v40 = vrot.slane %v326_v32, 1  ;;  %v339_v42 = vrot.slane %v338_v34, 2  ;;  %v278_v43 = vrot.slane %v277_v35, 1 }
   0xc   :  { %v284_v44 = vmax.f32 %v282_v28, %v283_v36  ;;  %v290_v45 = vrot.slane %v289_v37, 2  ;;  %v334_v49 = vrot.slane %v333_v41, 1  ;;  %v346_v54 = vrot.slane %v345_v46, 2 }
   0xd   :  { %v272_v47 = vmax.f32 %v270_v31, %v271_v39  ;;  %v328_v48 = vmax.f32 %v326_v32, %v327_v40  ;;  %v340_v50 = vmax.f32 %v338_v34, %v339_v42  ;;  %v279_v51 = vmax.f32 %v277_v35, %v278_v43 }
   0xe   :  { %v285_v52 = vrot.slane %v284_v44, 1  ;;  %v291_v53 = vmax.f32 %v289_v37, %v290_v45  ;;  %v335_v58 = vmax.f32 %v333_v41, %v334_v49  ;;  %v347_v4 = vmax.f32 %v345_v46, %v346_v54 }
   0xf   :  { %v2059_v56 = vsel %vm2058_vm1, %v272_v47, -inf  ;;  %v2060_v57 = vsel %vm2058_vm1, %v328_v48, -inf  ;;  %v341_v59 = vrot.slane %v340_v50, 1  ;;  %v2062_v61 = vsel %vm2058_vm1, %v279_v51, -inf }
  0x10   :  { %v2061_v60 = vmax.f32 %v2059_v56, %v2060_v57  ;;  %v286_v62 = vmax.f32 %v284_v44, %v285_v52  ;;  %v292_v63 = vrot.slane %v291_v53, 1  ;;  %v2063_v2 = vsel %vm2058_vm1, %v335_v58, -inf }
  0x11   :  { %v342_v3 = vmax.f32 %v340_v50, %v341_v59  ;;  %v294_v5 = vsel %vm265_vm0, %v13_v55, -inf  ;;  %v2064_v6 = vmax.f32 %v2062_v61, %v2063_v2  ;;  %v348_v13 = vrot.slane %v347_v4, 1  ;;  %v25_v59 = vld [vmem:[%s4048_s0 + $0x20] sm:$0x3] }
  0x12   :  { %2444 = vst.msk [vmem:[#allocation2] sm:$0x1] %vm2443_vm2, %v2061_v60  ;;  %v2065_v7 = vsel %vm2058_vm1, %v286_v62, -inf  ;;  %v293_v8 = vmax.f32 %v291_v53, %v292_v63  ;;  %v295_v9 = vrot.slane %v294_v5, 4  ;;  %v350_v14 = vsel %vm265_vm0, %v21_v0, -inf }
  0x13   :  { %v2066_v12 = vsel %vm2058_vm1, %v342_v3, -inf  ;;  %v301_v15 = vsel %vm265_vm0, %v14_v1, -inf  ;;  %2445 = vst.msk [vmem:[#allocation2 + $0x1] sm:$0x1] %vm2443_vm2, %v2064_v6  ;;  %v351_v19 = vrot.slane %v350_v14, 4  ;;  %v349_v22 = vmax.f32 %v347_v4, %v348_v13 }
  0x14   :  { %v2067_v16 = vmax.f32 %v2065_v7, %v2066_v12  ;;  %v2068_v17 = vsel %vm2058_vm1, %v293_v8, -inf  ;;  %v296_v18 = vmax.f32 %v294_v5, %v295_v9  ;;  %v302_v23 = vrot.slane %v301_v15, 4  ;;  %v33_v7 = vld [vmem:[%s4048_s0 + $0x30] sm:$0x3]  ;;  %v26_v13 = vld [vmem:[%s4048_s0 + $0x22] sm:$0x3] }
  0x15   :  { %v357_v24 = vsel %vm265_vm0, %v22_v10, -inf  ;;  %v308_v25 = vsel %vm265_vm0, %v15_v11, -inf  ;;  %v352_v27 = vmax.f32 %v350_v14, %v351_v19  ;;  %v2069_v30 = vsel %vm2058_vm1, %v349_v22, -inf  ;;  %v34_v14 = vld [vmem:[%s4048_s0 + $0x32] sm:$0x3] }
  0x16   :  { %2446 = vst.msk [vmem:[#allocation2 + $0x2] sm:$0x1] %vm2443_vm2, %v2067_v16  ;;  %v297_v26 = vrot.slane %v296_v18, 2  ;;  %v358_v28 = vrot.slane %v357_v24, 4  ;;  %v309_v29 = vrot.slane %v308_v25, 4  ;;  %v303_v31 = vmax.f32 %v301_v15, %v302_v23 }
  0x17   :  { %v364_v32 = vsel %vm265_vm0, %v23_v20, -inf  ;;  %v315_v34 = vsel %vm265_vm0, %v16_v21, -inf  ;;  %v2070_v35 = vmax.f32 %v2068_v17, %v2069_v30  ;;  %v353_v37 = vrot.slane %v352_v27, 2  ;;  %v27_v19 = vld [vmem:[%s4048_s0 + $0x24] sm:$0x3] }
  0x18   :  { %v298_v36 = vmax.f32 %v296_v18, %v297_v26  ;;  %v359_v38 = vmax.f32 %v357_v24, %v358_v28  ;;  %v304_v39 = vrot.slane %v303_v31, 2  ;;  %v310_v40 = vmax.f32 %v308_v25, %v309_v29  ;;  %v35_v28 = vld [vmem:[%s4048_s0 + $0x34] sm:$0x3] }
  0x19   :  { %v365_v41 = vrot.slane %v364_v32, 4  ;;  %v316_v42 = vrot.slane %v315_v34, 4  ;;  %2447 = vst.msk [vmem:[#allocation2 + $0x3] sm:$0x1] %vm2443_vm2, %v2070_v35  ;;  %v354_v44 = vmax.f32 %v352_v27, %v353_v37  ;;  %v371_v46 = vsel %vm265_vm0, %v24_v33, -inf }
  0x1a   :  { %v299_v43 = vrot.slane %v298_v36, 1  ;;  %v360_v45 = vrot.slane %v359_v38, 2  ;;  %v305_v47 = vmax.f32 %v303_v31, %v304_v39  ;;  %v311_v48 = vrot.slane %v310_v40, 2  ;;  %v28_v33 = vld [vmem:[%s4048_s0 + $0x26] sm:$0x3] }
  0x1b   :  { %v366_v49 = vmax.f32 %v364_v32, %v365_v41  ;;  %v317_v50 = vmax.f32 %v315_v34, %v316_v42  ;;  %v355_v52 = vrot.slane %v354_v44, 1  ;;  %v372_v54 = vrot.slane %v371_v46, 4 }
  0x1c   :  { %v300_v51 = vmax.f32 %v298_v36, %v299_v43  ;;  %v361_v53 = vmax.f32 %v359_v38, %v360_v45  ;;  %v306_v55 = vrot.slane %v305_v47, 1  ;;  %v312_v56 = vmax.f32 %v310_v40, %v311_v48  ;;  %v36_v45 = vld [vmem:[%s4048_s0 + $0x36] sm:$0x3] }
  0x1d   :  { %v367_v57 = vrot.slane %v366_v49, 2  ;;  %v318_v58 = vrot.slane %v317_v50, 2  ;;  %v356_v60 = vmax.f32 %v354_v44, %v355_v52  ;;  %v373_v63 = vmax.f32 %v371_v46, %v372_v54 }
  0x1e   :  { %v2071_v61 = vsel %vm2058_vm1, %v300_v51, -inf  ;;  %v362_v62 = vrot.slane %v361_v53, 1  ;;  %v307_v0 = vmax.f32 %v305_v47, %v306_v55  ;;  %v313_v1 = vrot.slane %v312_v56, 1 }
  0x1f   :  { %v368_v2 = vmax.f32 %v366_v49, %v367_v57  ;;  %v319_v3 = vmax.f32 %v317_v50, %v318_v58  ;;  %v2072_v4 = vsel %vm2058_vm1, %v356_v60, -inf  ;;  %v374_v6 = vrot.slane %v373_v63, 2 }
  0x20   :  { %v363_v5 = vmax.f32 %v361_v53, %v362_v62  ;;  %v378_v8 = vsel %vm265_vm0, %v25_v59, -inf  ;;  %v2073_v9 = vmax.f32 %v2071_v61, %v2072_v4  ;;  %v2074_v10 = vsel %vm2058_vm1, %v307_v0, -inf }
  0x21   :  { %v314_v11 = vmax.f32 %v312_v56, %v313_v1  ;;  %v369_v12 = vrot.slane %v368_v2, 1  ;;  %v320_v16 = vrot.slane %v319_v3, 1  ;;  %v375_v17 = vmax.f32 %v373_v63, %v374_v6 }
  0x22   :  { %v2075_v15 = vsel %vm2058_vm1, %v363_v5, -inf  ;;  %v379_v18 = vrot.slane %v378_v8, 4  ;;  %2448 = vst.msk [vmem:[#allocation2 + $0x4] sm:$0x1] %vm2443_vm2, %v2073_v9  ;;  %v434_v23 = vsel %vm265_vm0, %v33_v7, -inf  ;;  %v385_v30 = vsel %vm265_vm0, %v26_v13, -inf }
  0x23   :  { %v2076_v20 = vmax.f32 %v2074_v10, %v2075_v15  ;;  %v370_v21 = vmax.f32 %v368_v2, %v369_v12  ;;  %v2077_v22 = vsel %vm2058_vm1, %v314_v11, -inf  ;;  %v321_v24 = vmax.f32 %v319_v3, %v320_v16  ;;  %v29_v3 = vld [vmem:[%s4048_s0 + $0x28] sm:$0x3] }
  0x24   :  { %v376_v25 = vrot.slane %v375_v17, 1  ;;  %v380_v26 = vmax.f32 %v378_v8, %v379_v18  ;;  %v435_v27 = vrot.slane %v434_v23, 4  ;;  %v441_v31 = vsel %vm265_vm0, %v34_v14, -inf }
  0x25   :  { %2449 = vst.msk [vmem:[#allocation2 + $0x5] sm:$0x1] %vm2443_vm2, %v2076_v20  ;;  %v2078_v29 = vsel %vm2058_vm1, %v370_v21, -inf  ;;  %v392_v32 = vsel %vm265_vm0, %v27_v19, -inf  ;;  %v2080_v36 = vsel %vm2058_vm1, %v321_v24, -inf  ;;  %v386_v39 = vrot.slane %v385_v30, 4 }
  0x26   :  { %v2079_v34 = vmax.f32 %v2077_v22, %v2078_v29  ;;  %v377_v35 = vmax.f32 %v375_v17, %v376_v25  ;;  %v381_v37 = vrot.slane %v380_v26, 2  ;;  %v436_v38 = vmax.f32 %v434_v23, %v435_v27  ;;  %v37_v24 = vld [vmem:[%s4048_s0 + $0x38] sm:$0x3]  ;;  %v30_v25 = vld [vmem:[%s4048_s0 + $0x2a] sm:$0x3] }
  0x27   :  { %v442_v40 = vrot.slane %v441_v31, 4  ;;  %v393_v41 = vrot.slane %v392_v32, 4  ;;  %v448_v44 = vsel %vm265_vm0, %v35_v28, -inf  ;;  %v399_v46 = vsel %vm265_vm0, %v28_v33, -inf }
  0x28   :  { %2450 = vst.msk [vmem:[#allocation2 + $0x6] sm:$0x1] %vm2443_vm2, %v2079_v34  ;;  %v2081_v42 = vsel %vm2058_vm1, %v377_v35, -inf  ;;  %v382_v43 = vmax.f32 %v380_v26, %v381_v37  ;;  %v437_v48 = vrot.slane %v436_v38, 2  ;;  %v387_v49 = vmax.f32 %v385_v30, %v386_v39  ;;  %v38_v34 = vld [vmem:[%s4048_s0 + $0x3a] sm:$0x3] }
  0x29   :  { %v2082_v47 = vmax.f32 %v2080_v36, %v2081_v42  ;;  %v443_v50 = vmax.f32 %v441_v31, %v442_v40  ;;  %v394_v52 = vmax.f32 %v392_v32, %v393_v41  ;;  %v449_v53 = vrot.slane %v448_v44, 4  ;;  %v31_v39 = vld [vmem:[%s4048_s0 + $0x2c] sm:$0x3] }
  0x2a   :  { %v383_v51 = vrot.slane %v382_v43, 1  ;;  %v400_v54 = vrot.slane %v399_v46, 4  ;;  %v438_v55 = vmax.f32 %v436_v38, %v437_v48  ;;  %v388_v56 = vrot.slane %v387_v49, 2 }
  0x2b   :  { %2451 = vst.msk [vmem:[#allocation2 + $0x7] sm:$0x1] %vm2443_vm2, %v2082_v47  ;;  %v444_v57 = vrot.slane %v443_v50, 2  ;;  %v455_v58 = vsel %vm265_vm0, %v36_v45, -inf  ;;  %v395_v60 = vrot.slane %v394_v52, 2  ;;  %v450_v61 = vmax.f32 %v448_v44, %v449_v53 }
  0x2c   :  { %v384_v59 = vmax.f32 %v382_v43, %v383_v51  ;;  %v401_v62 = vmax.f32 %v399_v46, %v400_v54  ;;  %v439_v63 = vrot.slane %v438_v55, 1  ;;  %v389_v0 = vmax.f32 %v387_v49, %v388_v56  ;;  %v39_v44 = vld [vmem:[%s4048_s0 + $0x3c] sm:$0x3]  ;;  %v32_v53 = vld [vmem:[%s4048_s0 + $0x2e] sm:$0x3] }
  0x2d   :  { %v445_v1 = vmax.f32 %v443_v50, %v444_v57  ;;  %v456_v2 = vrot.slane %v455_v58, 4  ;;  %v396_v5 = vmax.f32 %v394_v52, %v395_v60  ;;  %v451_v6 = vrot.slane %v450_v61, 2 }
  0x2e   :  { %v2083_v4 = vsel %vm2058_vm1, %v384_v59, -inf  ;;  %v402_v7 = vrot.slane %v401_v62, 2  ;;  %v440_v8 = vmax.f32 %v438_v55, %v439_v63  ;;  %v390_v9 = vrot.slane %v389_v0, 1 }
  0x2f   :  { %v446_v10 = vrot.slane %v445_v1, 1  ;;  %v457_v11 = vmax.f32 %v455_v58, %v456_v2  ;;  %v397_v12 = vrot.slane %v396_v5, 1  ;;  %v452_v13 = vmax.f32 %v450_v61, %v451_v6 }
  0x30   :  { %v403_v14 = vmax.f32 %v401_v62, %v402_v7  ;;  %v406_v15 = vsel %vm265_vm0, %v29_v3, -inf  ;;  %v2084_v16 = vsel %vm2058_vm1, %v440_v8, -inf  ;;  %v391_v17 = vmax.f32 %v389_v0, %v390_v9  ;;  %v40_v62 = vld [vmem:[%s4048_s0 + $0x3e] sm:$0x3] }
  0x31   :  { %v447_v18 = vmax.f32 %v445_v1, %v446_v10  ;;  %v458_v19 = vrot.slane %v457_v11, 2  ;;  %v2085_v20 = vmax.f32 %v2083_v4, %v2084_v16  ;;  %v398_v21 = vmax.f32 %v396_v5, %v397_v12 }
  0x32   :  { %v453_v22 = vrot.slane %v452_v13, 1  ;;  %v404_v23 = vrot.slane %v403_v14, 1  ;;  %v2086_v26 = vsel %vm2058_vm1, %v391_v17, -inf  ;;  %v407_v29 = vrot.slane %v406_v15, 4 }
  0x33   :  { %v2087_v27 = vsel %vm2058_vm1, %v447_v18, -inf  ;;  %v459_v28 = vmax.f32 %v457_v11, %v458_v19  ;;  %2452 = vst.msk [vmem:[#allocation2 + $0x8] sm:$0x1] %vm2443_vm2, %v2085_v20  ;;  %v2089_v32 = vsel %vm2058_vm1, %v398_v21, -inf  ;;  %v462_v37 = vsel %vm265_vm0, %v37_v24, -inf }
  0x34   :  { %v2088_v30 = vmax.f32 %v2086_v26, %v2087_v27  ;;  %v454_v31 = vmax.f32 %v452_v13, %v453_v22  ;;  %v405_v33 = vmax.f32 %v403_v14, %v404_v23  ;;  %v408_v36 = vmax.f32 %v406_v15, %v407_v29 }
  0x35   :  { %v460_v35 = vrot.slane %v459_v28, 1  ;;  %v413_v38 = vsel %vm265_vm0, %v30_v25, -inf  ;;  %v463_v42 = vrot.slane %v462_v37, 4  ;;  %v469_v48 = vsel %vm265_vm0, %v38_v34, -inf }
  0x36   :  { %2453 = vst.msk [vmem:[#allocation2 + $0x9] sm:$0x1] %vm2443_vm2, %v2088_v30  ;;  %v2090_v40 = vsel %vm2058_vm1, %v454_v31, -inf  ;;  %v2092_v41 = vsel %vm2058_vm1, %v405_v33, -inf  ;;  %v414_v43 = vrot.slane %v413_v38, 4  ;;  %v409_v47 = vrot.slane %v408_v36, 2 }
  0x37   :  { %v2091_v45 = vmax.f32 %v2089_v32, %v2090_v40  ;;  %v461_v46 = vmax.f32 %v459_v28, %v460_v35  ;;  %v464_v49 = vmax.f32 %v462_v37, %v463_v42  ;;  %v470_v51 = vrot.slane %v469_v48, 4 }
  0x38   :  { %v415_v50 = vmax.f32 %v413_v38, %v414_v43  ;;  %v420_v52 = vsel %vm265_vm0, %v31_v39, -inf  ;;  %v410_v55 = vmax.f32 %v408_v36, %v409_v47  ;;  %v476_v57 = vsel %vm265_vm0, %v39_v44, -inf }
  0x39   :  { %2454 = vst.msk [vmem:[#allocation2 + $0xa] sm:$0x1] %vm2443_vm2, %v2091_v45  ;;  %v2093_v54 = vsel %vm2058_vm1, %v461_v46, -inf  ;;  %v421_v56 = vrot.slane %v420_v52, 4  ;;  %v465_v59 = vrot.slane %v464_v49, 2  ;;  %v471_v61 = vmax.f32 %v469_v48, %v470_v51 }
  0x3a   :  { %v2094_v58 = vmax.f32 %v2092_v41, %v2093_v54  ;;  %v416_v60 = vrot.slane %v415_v50, 2  ;;  %v411_v63 = vrot.slane %v410_v55, 1  ;;  %v477_v1 = vrot.slane %v476_v57, 4 }
  0x3b   :  { %v422_v0 = vmax.f32 %v420_v52, %v421_v56  ;;  %v427_v2 = vsel %vm265_vm0, %v32_v53, -inf  ;;  %v466_v3 = vmax.f32 %v464_v49, %v465_v59  ;;  %v472_v5 = vrot.slane %v471_v61, 2 }
  0x3c   :  { %2455 = vst.msk [vmem:[#allocation2 + $0xb] sm:$0x1] %vm2443_vm2, %v2094_v58  ;;  %v417_v4 = vmax.f32 %v415_v50, %v416_v60  ;;  %v428_v6 = vrot.slane %v427_v2, 4 }
  0x3d   :  { %6 = vsyncpa [#allocation3], 0  ;;  %v412_v7 = vmax.f32 %v410_v55, %v411_v63  ;;  %v423_v8 = vrot.slane %v422_v0, 2  ;;  %v478_v9 = vmax.f32 %v476_v57, %v477_v1  ;;  %v483_v10 = vsel %vm265_vm0, %v40_v62, -inf  ;;  %v41_v15 = vld [vmem:[%s4048_s0 + $0x40] sm:$0x3] }
  0x3e   :  { %v467_v11 = vrot.slane %v466_v3, 1  ;;  %v418_v12 = vrot.slane %v417_v4, 1  ;;  %v473_v13 = vmax.f32 %v471_v61, %v472_v5  ;;  %v429_v14 = vmax.f32 %v427_v2, %v428_v6  ;;  %v49_v27 = vld [vmem:[%s4048_s0 + $0x50] sm:$0x3]  ;;  %v42_v37 = vld [vmem:[%s4048_s0 + $0x42] sm:$0x3] }
  0x3f   :  { %v2095_v16 = vsel %vm2058_vm1, %v412_v7, -inf  ;;  %v424_v17 = vmax.f32 %v422_v0, %v423_v8  ;;  %v479_v18 = vrot.slane %v478_v9, 2  ;;  %v484_v19 = vrot.slane %v483_v10, 4  ;;  %v50_v42 = vld [vmem:[%s4048_s0 + $0x52] sm:$0x3] }
  0x40   :  { %v468_v20 = vmax.f32 %v466_v3, %v467_v11  ;;  %v419_v21 = vmax.f32 %v417_v4, %v418_v12  ;;  %v474_v22 = vrot.slane %v473_v13, 1  ;;  %v430_v23 = vrot.slane %v429_v14, 2  ;;  %v43_v51 = vld [vmem:[%s4048_s0 + $0x44] sm:$0x3]  ;;  %v51_v56 = vld [vmem:[%s4048_s0 + $0x54] sm:$0x3] }
  0x41   :  { %v425_v24 = vrot.slane %v424_v17, 1  ;;  %v480_v25 = vmax.f32 %v478_v9, %v479_v18  ;;  %v485_v26 = vmax.f32 %v483_v10, %v484_v19  ;;  %v490_v28 = vsel %vm265_vm0, %v41_v15, -inf  ;;  %v44_v5 = vld [vmem:[%s4048_s0 + $0x46] sm:$0x3] }
  0x42   :  { %v2096_v29 = vsel %vm2058_vm1, %v468_v20, -inf  ;;  %v475_v30 = vmax.f32 %v473_v13, %v474_v22  ;;  %v2098_v31 = vsel %vm2058_vm1, %v419_v21, -inf  ;;  %v431_v32 = vmax.f32 %v429_v14, %v430_v23  ;;  %v52_v14 = vld [vmem:[%s4048_s0 + $0x56] sm:$0x3] }
  0x43   :  { %v2097_v33 = vmax.f32 %v2095_v16, %v2096_v29  ;;  %v426_v34 = vmax.f32 %v424_v17, %v425_v24  ;;  %v481_v35 = vrot.slane %v480_v25, 1  ;;  %v486_v36 = vrot.slane %v485_v26, 2 }
  0x44   :  { %v2099_v38 = vsel %vm2058_vm1, %v475_v30, -inf  ;;  %v432_v39 = vrot.slane %v431_v32, 1  ;;  %v491_v40 = vrot.slane %v490_v28, 4  ;;  %v546_v41 = vsel %vm265_vm0, %v49_v27, -inf  ;;  %v45_v27 = vld [vmem:[%s4048_s0 + $0x48] sm:$0x3] }
  0x45   :  { %2456 = vst.msk [vmem:[#allocation2 + $0xc] sm:$0x1] %vm2443_vm2, %v2097_v33  ;;  %v2100_v43 = vmax.f32 %v2098_v31, %v2099_v38  ;;  %v482_v44 = vmax.f32 %v480_v25, %v481_v35  ;;  %v2101_v45 = vsel %vm2058_vm1, %v426_v34, -inf  ;;  %v487_v46 = vmax.f32 %v485_v26, %v486_v36  ;;  %v53_v36 = vld [vmem:[%s4048_s0 + $0x58] sm:$0x3] }
  0x46   :  { %v433_v47 = vmax.f32 %v431_v32, %v432_v39  ;;  %v492_v48 = vmax.f32 %v490_v28, %v491_v40  ;;  %v547_v49 = vrot.slane %v546_v41, 4  ;;  %v497_v50 = vsel %vm265_vm0, %v42_v37, -inf }
  0x47   :  { %2457 = vst.msk [vmem:[#allocation2 + $0xd] sm:$0x1] %vm2443_vm2, %v2100_v43  ;;  %v2102_v52 = vsel %vm2058_vm1, %v482_v44, -inf  ;;  %v488_v53 = vrot.slane %v487_v46, 1  ;;  %v498_v54 = vrot.slane %v497_v50, 4  ;;  %v553_v55 = vsel %vm265_vm0, %v50_v42, -inf }
  0x48   :  { %v2103_v57 = vmax.f32 %v2101_v45, %v2102_v52  ;;  %v2104_v58 = vsel %vm2058_vm1, %v433_v47, -inf  ;;  %v493_v59 = vrot.slane %v492_v48, 2  ;;  %v548_v60 = vmax.f32 %v546_v41, %v547_v49  ;;  %v46_v41 = vld [vmem:[%s4048_s0 + $0x4a] sm:$0x3] }
  0x49   :  { %v489_v61 = vmax.f32 %v487_v46, %v488_v53  ;;  %v499_v62 = vmax.f32 %v497_v50, %v498_v54  ;;  %v554_v63 = vrot.slane %v553_v55, 4  ;;  %v504_v0 = vsel %vm265_vm0, %v43_v51, -inf  ;;  %v54_v53 = vld [vmem:[%s4048_s0 + $0x5a] sm:$0x3] }
  0x4a   :  { %2458 = vst.msk [vmem:[#allocation2 + $0xe] sm:$0x1] %vm2443_vm2, %v2103_v57  ;;  %v494_v1 = vmax.f32 %v492_v48, %v493_v59  ;;  %v549_v2 = vrot.slane %v548_v60, 2  ;;  %v505_v3 = vrot.slane %v504_v0, 4  ;;  %v560_v4 = vsel %vm265_vm0, %v51_v56, -inf }
  0x4b   :  { %v2105_v6 = vsel %vm2058_vm1, %v489_v61, -inf  ;;  %v500_v7 = vrot.slane %v499_v62, 2  ;;  %v555_v8 = vmax.f32 %v553_v55, %v554_v63  ;;  %v561_v9 = vrot.slane %v560_v4, 4  ;;  %v47_v59 = vld [vmem:[%s4048_s0 + $0x4c] sm:$0x3] }
  0x4c   :  { %v2106_v10 = vmax.f32 %v2104_v58, %v2105_v6  ;;  %v495_v11 = vrot.slane %v494_v1, 1  ;;  %v550_v12 = vmax.f32 %v548_v60, %v549_v2  ;;  %v506_v13 = vmax.f32 %v504_v0, %v505_v3  ;;  %v55_v0 = vld [vmem:[%s4048_s0 + $0x5c] sm:$0x3] }
  0x4d   :  { %v501_v15 = vmax.f32 %v499_v62, %v500_v7  ;;  %v556_v16 = vrot.slane %v555_v8, 2  ;;  %v562_v17 = vmax.f32 %v560_v4, %v561_v9  ;;  %v511_v18 = vsel %vm265_vm0, %v44_v5, -inf  ;;  %v48_v9 = vld [vmem:[%s4048_s0 + $0x4e] sm:$0x3] }
  0x4e   :  { %2459 = vst.msk [vmem:[#allocation2 + $0xf] sm:$0x1] %vm2443_vm2, %v2106_v10  ;;  %v496_v19 = vmax.f32 %v494_v1, %v495_v11  ;;  %v551_v20 = vrot.slane %v550_v12, 1  ;;  %v507_v21 = vrot.slane %v506_v13, 2  ;;  %v512_v22 = vrot.slane %v511_v18, 4 }
  0x4f   :  { %v502_v23 = vrot.slane %v501_v15, 1  ;;  %v557_v24 = vmax.f32 %v555_v8, %v556_v16  ;;  %v563_v25 = vrot.slane %v562_v17, 2  ;;  %v567_v26 = vsel %vm265_vm0, %v52_v14, -inf }
  0x50   :  { %v552_v28 = vmax.f32 %v550_v12, %v551_v20  ;;  %v2107_v29 = vsel %vm2058_vm1, %v496_v19, -inf  ;;  %v508_v30 = vmax.f32 %v506_v13, %v507_v21  ;;  %v513_v31 = vmax.f32 %v511_v18, %v512_v22 }
  0x51   :  { %v503_v32 = vmax.f32 %v501_v15, %v502_v23  ;;  %v558_v33 = vrot.slane %v557_v24, 1  ;;  %v564_v34 = vmax.f32 %v562_v17, %v563_v25  ;;  %v568_v35 = vrot.slane %v567_v26, 4 }
  0x52   :  { %v2108_v37 = vsel %vm2058_vm1, %v552_v28, -inf  ;;  %v509_v38 = vrot.slane %v508_v30, 1  ;;  %v514_v39 = vrot.slane %v513_v31, 2  ;;  %v518_v40 = vsel %vm265_vm0, %v45_v27, -inf }
  0x53   :  { %v2109_v42 = vmax.f32 %v2107_v29, %v2108_v37  ;;  %v559_v43 = vmax.f32 %v557_v24, %v558_v33  ;;  %v2110_v44 = vsel %vm2058_vm1, %v503_v32, -inf  ;;  %v565_v45 = vrot.slane %v564_v34, 1  ;;  %v56_v29 = vld [vmem:[%s4048_s0 + $0x5e] sm:$0x3] }
  0x54   :  { %v510_v46 = vmax.f32 %v508_v30, %v509_v38  ;;  %v515_v47 = vmax.f32 %v513_v31, %v514_v39  ;;  %v569_v48 = vmax.f32 %v567_v26, %v568_v35  ;;  %v519_v49 = vrot.slane %v518_v40, 4  ;;  %v57_v39 = vld [vmem:[%s4048_s0 + $0x60] sm:$0x3] }
  0x55   :  { %2460 = vst.msk [vmem:[#allocation2 + $0x10] sm:$0x1] %vm2443_vm2, %v2109_v42  ;;  %v2111_v50 = vsel %vm2058_vm1, %v559_v43, -inf  ;;  %v566_v51 = vmax.f32 %v564_v34, %v565_v45  ;;  %v574_v52 = vsel %vm265_vm0, %v53_v36, -inf  ;;  %v525_v54 = vsel %vm265_vm0, %v46_v41, -inf }
  0x56   :  { %v2112_v55 = vmax.f32 %v2110_v44, %v2111_v50  ;;  %v2113_v56 = vsel %vm2058_vm1, %v510_v46, -inf  ;;  %v516_v57 = vrot.slane %v515_v47, 1  ;;  %v570_v58 = vrot.slane %v569_v48, 2 }
  0x57   :  { %v2114_v60 = vsel %vm2058_vm1, %v566_v51, -inf  ;;  %v520_v61 = vmax.f32 %v518_v40, %v519_v49  ;;  %v575_v62 = vrot.slane %v574_v52, 4  ;;  %v526_v63 = vrot.slane %v525_v54, 4 }
  0x58   :  { %2461 = vst.msk [vmem:[#allocation2 + $0x11] sm:$0x1] %vm2443_vm2, %v2112_v55  ;;  %v2115_v1 = vmax.f32 %v2113_v56, %v2114_v60  ;;  %v517_v2 = vmax.f32 %v515_v47, %v516_v57  ;;  %v571_v3 = vmax.f32 %v569_v48, %v570_v58  ;;  %v581_v4 = vsel %vm265_vm0, %v54_v53, -inf  ;;  %v65_v48 = vld [vmem:[%s4048_s0 + $0x70] sm:$0x3] }
  0x59   :  { %v521_v5 = vrot.slane %v520_v61, 2  ;;  %v576_v6 = vmax.f32 %v574_v52, %v575_v62  ;;  %v527_v7 = vmax.f32 %v525_v54, %v526_v63  ;;  %v582_v8 = vrot.slane %v581_v4, 4 }
  0x5a   :  { %2462 = vst.msk [vmem:[#allocation2 + $0x12] sm:$0x1] %vm2443_vm2, %v2115_v1  ;;  %v572_v10 = vrot.slane %v571_v3, 1  ;;  %v2116_v11 = vsel %vm2058_vm1, %v517_v2, -inf  ;;  %v532_v12 = vsel %vm265_vm0, %v47_v59, -inf  ;;  %v588_v13 = vsel %vm265_vm0, %v55_v0, -inf }
  0x5b   :  { %v522_v14 = vmax.f32 %v520_v61, %v521_v5  ;;  %v577_v15 = vrot.slane %v576_v6, 2  ;;  %v528_v16 = vrot.slane %v527_v7, 2  ;;  %v583_v17 = vmax.f32 %v581_v4, %v582_v8  ;;  %v58_v61 = vld [vmem:[%s4048_s0 + $0x62] sm:$0x3] }
  0x5c   :  { %v573_v18 = vmax.f32 %v571_v3, %v572_v10  ;;  %v533_v19 = vrot.slane %v532_v12, 4  ;;  %v589_v20 = vrot.slane %v588_v13, 4  ;;  %v539_v21 = vsel %vm265_vm0, %v48_v9, -inf }
  0x5d   :  { %v523_v22 = vrot.slane %v522_v14, 1  ;;  %v578_v23 = vmax.f32 %v576_v6, %v577_v15  ;;  %v529_v24 = vmax.f32 %v527_v7, %v528_v16  ;;  %v584_v25 = vrot.slane %v583_v17, 2  ;;  %v66_v6 = vld [vmem:[%s4048_s0 + $0x72] sm:$0x3]  ;;  %v59_v7 = vld [vmem:[%s4048_s0 + $0x64] sm:$0x3] }
  0x5e   :  { %v2117_v26 = vsel %vm2058_vm1, %v573_v18, -inf  ;;  %v534_v27 = vmax.f32 %v532_v12, %v533_v19  ;;  %v590_v28 = vmax.f32 %v588_v13, %v589_v20  ;;  %v540_v30 = vrot.slane %v539_v21, 4  ;;  %v67_v16 = vld [vmem:[%s4048_s0 + $0x74] sm:$0x3] }
  0x5f   :  { %v2118_v31 = vmax.f32 %v2116_v11, %v2117_v26  ;;  %v524_v32 = vmax.f32 %v522_v14, %v523_v22  ;;  %v579_v33 = vrot.slane %v578_v23, 1  ;;  %v530_v34 = vrot.slane %v529_v24, 1 }
  0x60   :  { %v585_v35 = vmax.f32 %v583_v17, %v584_v25  ;;  %v535_v36 = vrot.slane %v534_v27, 2  ;;  %v591_v37 = vrot.slane %v590_v28, 2  ;;  %v541_v38 = vmax.f32 %v539_v21, %v540_v30  ;;  %v60_v25 = vld [vmem:[%s4048_s0 + $0x66] sm:$0x3] }
  0x61   :  { %2463 = vst.msk [vmem:[#allocation2 + $0x13] sm:$0x1] %vm2443_vm2, %v2118_v31  ;;  %v580_v40 = vmax.f32 %v578_v23, %v579_v33  ;;  %v2119_v41 = vsel %vm2058_vm1, %v524_v32, -inf  ;;  %v531_v42 = vmax.f32 %v529_v24, %v530_v34  ;;  %v595_v43 = vsel %vm265_vm0, %v56_v29, -inf }
  0x62   :  { %v586_v44 = vrot.slane %v585_v35, 1  ;;  %v536_v45 = vmax.f32 %v534_v27, %v535_v36  ;;  %v592_v46 = vmax.f32 %v590_v28, %v591_v37  ;;  %v542_v47 = vrot.slane %v541_v38, 2 }
  0x63   :  { %v2120_v49 = vsel %vm2058_vm1, %v580_v40, -inf  ;;  %v2122_v50 = vsel %vm2058_vm1, %v531_v42, -inf  ;;  %v596_v51 = vrot.slane %v595_v43, 4  ;;  %v602_v52 = vsel %vm265_vm0, %v57_v39, -inf  ;;  %v68_v42 = vld [vmem:[%s4048_s0 + $0x76] sm:$0x3] }
  0x64   :  { %v2121_v53 = vmax.f32 %v2119_v41, %v2120_v49  ;;  %v587_v54 = vmax.f32 %v585_v35, %v586_v44  ;;  %v537_v55 = vrot.slane %v536_v45, 1  ;;  %v593_v56 = vrot.slane %v592_v46, 1 }
  0x65   :  { %v543_v57 = vmax.f32 %v541_v38, %v542_v47  ;;  %v597_v58 = vmax.f32 %v595_v43, %v596_v51  ;;  %v603_v59 = vrot.slane %v602_v52, 4  ;;  %v658_v60 = vsel %vm265_vm0, %v65_v48, -inf  ;;  %v61_v51 = vld [vmem:[%s4048_s0 + $0x68] sm:$0x3] }
  0x66   :  { %2464 = vst.msk [vmem:[#allocation2 + $0x14] sm:$0x1] %vm2443_vm2, %v2121_v53  ;;  %v2123_v62 = vsel %vm2058_vm1, %v587_v54, -inf  ;;  %v538_v63 = vmax.f32 %v536_v45, %v537_v55  ;;  %v594_v0 = vmax.f32 %v592_v46, %v593_v56  ;;  %v659_v1 = vrot.slane %v658_v60, 4 }
  0x67   :  { %v2124_v2 = vmax.f32 %v2122_v50, %v2123_v62  ;;  %v544_v3 = vrot.slane %v543_v57, 1  ;;  %v598_v4 = vrot.slane %v597_v58, 2  ;;  %v604_v5 = vmax.f32 %v602_v52, %v603_v59 }
  0x68   :  { %v2125_v8 = vsel %vm2058_vm1, %v538_v63, -inf  ;;  %v2126_v9 = vsel %vm2058_vm1, %v594_v0, -inf  ;;  %v660_v10 = vmax.f32 %v658_v60, %v659_v1  ;;  %v609_v11 = vsel %vm265_vm0, %v58_v61, -inf  ;;  %v69_v60 = vld [vmem:[%s4048_s0 + $0x78] sm:$0x3] }
  0x69   :  { %2465 = vst.msk [vmem:[#allocation2 + $0x15] sm:$0x1] %vm2443_vm2, %v2124_v2  ;;  %v2127_v12 = vmax.f32 %v2125_v8, %v2126_v9  ;;  %v545_v13 = vmax.f32 %v543_v57, %v544_v3  ;;  %v599_v14 = vmax.f32 %v597_v58, %v598_v4  ;;  %v605_v15 = vrot.slane %v604_v5, 2  ;;  %v62_v9 = vld [vmem:[%s4048_s0 + $0x6a] sm:$0x3] }
  0x6a   :  { %v661_v17 = vrot.slane %v660_v10, 2  ;;  %v610_v18 = vrot.slane %v609_v11, 4  ;;  %v665_v19 = vsel %vm265_vm0, %v66_v6, -inf  ;;  %v616_v20 = vsel %vm265_vm0, %v59_v7, -inf }
  0x6b   :  { %2466 = vst.msk [vmem:[#allocation2 + $0x16] sm:$0x1] %vm2443_vm2, %v2127_v12  ;;  %v600_v21 = vrot.slane %v599_v14, 1  ;;  %v2128_v22 = vsel %vm2058_vm1, %v545_v13, -inf  ;;  %v606_v23 = vmax.f32 %v604_v5, %v605_v15  ;;  %v666_v24 = vrot.slane %v665_v19, 4 }
  0x6c   :  { %v662_v26 = vmax.f32 %v660_v10, %v661_v17  ;;  %v611_v27 = vmax.f32 %v609_v11, %v610_v18  ;;  %v617_v28 = vrot.slane %v616_v20, 4  ;;  %v672_v29 = vsel %vm265_vm0, %v67_v16, -inf }
  0x6d   :  { %v601_v30 = vmax.f32 %v599_v14, %v600_v21  ;;  %v607_v31 = vrot.slane %v606_v23, 1  ;;  %v667_v32 = vmax.f32 %v665_v19, %v666_v24  ;;  %v673_v33 = vrot.slane %v672_v29, 4  ;;  %v70_v14 = vld [vmem:[%s4048_s0 + $0x7a] sm:$0x3]  ;;  %v63_v19 = vld [vmem:[%s4048_s0 + $0x6c] sm:$0x3] }
  0x6e   :  { %v663_v34 = vrot.slane %v662_v26, 1  ;;  %v612_v35 = vrot.slane %v611_v27, 2  ;;  %v618_v36 = vmax.f32 %v616_v20, %v617_v28  ;;  %v623_v37 = vsel %vm265_vm0, %v60_v25, -inf  ;;  %v71_v28 = vld [vmem:[%s4048_s0 + $0x7c] sm:$0x3] }
  0x6f   :  { %v2129_v38 = vsel %vm2058_vm1, %v601_v30, -inf  ;;  %v608_v39 = vmax.f32 %v606_v23, %v607_v31  ;;  %v668_v40 = vrot.slane %v667_v32, 2  ;;  %v674_v41 = vmax.f32 %v672_v29, %v673_v33 }
  0x70   :  { %v2130_v43 = vmax.f32 %v2128_v22, %v2129_v38  ;;  %v664_v44 = vmax.f32 %v662_v26, %v663_v34  ;;  %v613_v45 = vmax.f32 %v611_v27, %v612_v35  ;;  %v619_v46 = vrot.slane %v618_v36, 2 }
  0x71   :  { %v2131_v47 = vsel %vm2058_vm1, %v608_v39, -inf  ;;  %v669_v48 = vmax.f32 %v667_v32, %v668_v40  ;;  %v675_v49 = vrot.slane %v674_v41, 2  ;;  %v624_v50 = vrot.slane %v623_v37, 4 }
  0x72   :  { %2467 = vst.msk [vmem:[#allocation2 + $0x17] sm:$0x1] %vm2443_vm2, %v2130_v43  ;;  %v2132_v52 = vsel %vm2058_vm1, %v664_v44, -inf  ;;  %v614_v53 = vrot.slane %v613_v45, 1  ;;  %v620_v54 = vmax.f32 %v618_v36, %v619_v46  ;;  %v679_v55 = vsel %vm265_vm0, %v68_v42, -inf }
  0x73   :  { %v2133_v56 = vmax.f32 %v2131_v47, %v2132_v52  ;;  %v670_v57 = vrot.slane %v669_v48, 1  ;;  %v676_v58 = vmax.f32 %v674_v41, %v675_v49  ;;  %v625_v59 = vmax.f32 %v623_v37, %v624_v50  ;;  %v64_v37 = vld [vmem:[%s4048_s0 + $0x6e] sm:$0x3]  ;;  %v72_v49 = vld [vmem:[%s4048_s0 + $0x7e] sm:$0x3] }
  0x74   :  { %v615_v61 = vmax.f32 %v613_v45, %v614_v53  ;;  %v621_v62 = vrot.slane %v620_v54, 1  ;;  %v680_v63 = vrot.slane %v679_v55, 4  ;;  %v630_v0 = vsel %vm265_vm0, %v61_v51, -inf }
  0x75   :  { %2468 = vst.msk [vmem:[#allocation2 + $0x18] sm:$0x1] %vm2443_vm2, %v2133_v56  ;;  %v671_v1 = vmax.f32 %v669_v48, %v670_v57  ;;  %v677_v2 = vrot.slane %v676_v58, 1  ;;  %v626_v3 = vrot.slane %v625_v59, 2  ;;  %v631_v4 = vrot.slane %v630_v0, 4 }
  0x76   :  { %v2134_v5 = vsel %vm2058_vm1, %v615_v61, -inf  ;;  %v622_v6 = vmax.f32 %v620_v54, %v621_v62  ;;  %v681_v7 = vmax.f32 %v679_v55, %v680_v63  ;;  %v686_v8 = vsel %vm265_vm0, %v69_v60, -inf  ;;  %v73_v55 = vld [vmem:[%s4048_s0 + $0x80] sm:$0x3] }
  0x77   :  { %v2135_v10 = vsel %vm2058_vm1, %v671_v1, -inf  ;;  %v678_v11 = vmax.f32 %v676_v58, %v677_v2  ;;  %v627_v12 = vmax.f32 %v625_v59, %v626_v3  ;;  %v632_v13 = vmax.f32 %v630_v0, %v631_v4 }
  0x78   :  { %v2136_v15 = vmax.f32 %v2134_v5, %v2135_v10  ;;  %v2137_v16 = vsel %vm2058_vm1, %v622_v6, -inf  ;;  %v682_v17 = vrot.slane %v681_v7, 2  ;;  %v687_v18 = vrot.slane %v686_v8, 4 }
  0x79   :  { %v2138_v20 = vsel %vm2058_vm1, %v678_v11, -inf  ;;  %v628_v21 = vrot.slane %v627_v12, 1  ;;  %v633_v22 = vrot.slane %v632_v13, 2  ;;  %v637_v23 = vsel %vm265_vm0, %v62_v9, -inf }
  0x7a   :  { %2469 = vst.msk [vmem:[#allocation2 + $0x19] sm:$0x1] %vm2443_vm2, %v2136_v15  ;;  %v2139_v24 = vmax.f32 %v2137_v16, %v2138_v20  ;;  %v683_v25 = vmax.f32 %v681_v7, %v682_v17  ;;  %v688_v26 = vmax.f32 %v686_v8, %v687_v18  ;;  %v638_v27 = vrot.slane %v637_v23, 4  ;;  %v81_v8 = vld [vmem:[%s4048_s0 + $0x90] sm:$0x3] }
  0x7b   :  { %v629_v29 = vmax.f32 %v627_v12, %v628_v21  ;;  %v634_v30 = vmax.f32 %v632_v13, %v633_v22  ;;  %v693_v31 = vsel %vm265_vm0, %v70_v14, -inf  ;;  %v644_v32 = vsel %vm265_vm0, %v63_v19, -inf  ;;  %v74_v21 = vld [vmem:[%s4048_s0 + $0x82] sm:$0x3] }
  0x7c   :  { %2470 = vst.msk [vmem:[#allocation2 + $0x1a] sm:$0x1] %vm2443_vm2, %v2139_v24  ;;  %v684_v33 = vrot.slane %v683_v25, 1  ;;  %v689_v34 = vrot.slane %v688_v26, 2  ;;  %v639_v35 = vmax.f32 %v637_v23, %v638_v27  ;;  %v694_v36 = vrot.slane %v693_v31, 4 }
  0x7d   :  { %v2140_v38 = vsel %vm2058_vm1, %v629_v29, -inf  ;;  %v635_v39 = vrot.slane %v634_v30, 1  ;;  %v645_v40 = vrot.slane %v644_v32, 4  ;;  %v700_v41 = vsel %vm265_vm0, %v71_v28, -inf }
  0x7e   :  { %v685_v42 = vmax.f32 %v683_v25, %v684_v33  ;;  %v690_v43 = vmax.f32 %v688_v26, %v689_v34  ;;  %v640_v44 = vrot.slane %v639_v35, 2  ;;  %v695_v45 = vmax.f32 %v693_v31, %v694_v36  ;;  %v82_v26 = vld [vmem:[%s4048_s0 + $0x92] sm:$0x3] }
  0x7f   :  { %v636_v46 = vmax.f32 %v634_v30, %v635_v39  ;;  %v646_v47 = vmax.f32 %v644_v32, %v645_v40  ;;  %v701_v48 = vrot.slane %v700_v41, 4  ;;  %v651_v50 = vsel %vm265_vm0, %v64_v37, -inf }
  0x80   :  { %v2141_v51 = vsel %vm2058_vm1, %v685_v42, -inf  ;;  %v691_v52 = vrot.slane %v690_v43, 1  ;;  %v641_v53 = vmax.f32 %v639_v35, %v640_v44  ;;  %v696_v54 = vrot.slane %v695_v45, 2  ;;  %v75_v35 = vld [vmem:[%s4048_s0 + $0x84] sm:$0x3] }
  0x81   :  { %v2142_v56 = vmax.f32 %v2140_v38, %v2141_v51  ;;  %v2143_v57 = vsel %vm2058_vm1, %v636_v46, -inf  ;;  %v647_v58 = vrot.slane %v646_v47, 2  ;;  %v702_v59 = vmax.f32 %v700_v41, %v701_v48  ;;  %v83_v44 = vld [vmem:[%s4048_s0 + $0x94] sm:$0x3] }
  0x82   :  { %v692_v60 = vmax.f32 %v690_v43, %v691_v52  ;;  %v642_v61 = vrot.slane %v641_v53, 1  ;;  %v697_v62 = vmax.f32 %v695_v45, %v696_v54  ;;  %v652_v63 = vrot.slane %v651_v50, 4 }
  0x83   :  { %2471 = vst.msk [vmem:[#allocation2 + $0x1b] sm:$0x1] %vm2443_vm2, %v2142_v56  ;;  %v648_v0 = vmax.f32 %v646_v47, %v647_v58  ;;  %v703_v1 = vrot.slane %v702_v59, 2  ;;  %v707_v2 = vsel %vm265_vm0, %v72_v49, -inf  ;;  %v714_v3 = vsel %vm265_vm0, %v73_v55, -inf }
  0x84   :  { %v2144_v4 = vsel %vm2058_vm1, %v692_v60, -inf  ;;  %v643_v5 = vmax.f32 %v641_v53, %v642_v61  ;;  %v698_v6 = vrot.slane %v697_v62, 1  ;;  %v653_v7 = vmax.f32 %v651_v50, %v652_v63  ;;  %v76_v53 = vld [vmem:[%s4048_s0 + $0x86] sm:$0x3] }
  0x85   :  { %v2145_v9 = vmax.f32 %v2143_v57, %v2144_v4  ;;  %v649_v10 = vrot.slane %v648_v0, 1  ;;  %v704_v11 = vmax.f32 %v702_v59, %v703_v1  ;;  %v708_v12 = vrot.slane %v707_v2, 4 }
  0x86   :  { %v699_v13 = vmax.f32 %v697_v62, %v698_v6  ;;  %v2146_v14 = vsel %vm2058_vm1, %v643_v5, -inf  ;;  %v654_v15 = vrot.slane %v653_v7, 2  ;;  %v715_v16 = vrot.slane %v714_v3, 4  ;;  %v84_v62 = vld [vmem:[%s4048_s0 + $0x96] sm:$0x3] }
  0x87   :  { %2472 = vst.msk [vmem:[#allocation2 + $0x1c] sm:$0x1] %vm2443_vm2, %v2145_v9  ;;  %v650_v17 = vmax.f32 %v648_v0, %v649_v10  ;;  %v705_v18 = vrot.slane %v704_v11, 1  ;;  %v709_v19 = vmax.f32 %v707_v2, %v708_v12  ;;  %v770_v20 = vsel %vm265_vm0, %v81_v8, -inf }
  0x88   :  { %v2147_v22 = vsel %vm2058_vm1, %v699_v13, -inf  ;;  %v655_v23 = vmax.f32 %v653_v7, %v654_v15  ;;  %v716_v24 = vmax.f32 %v714_v3, %v715_v16  ;;  %v771_v25 = vrot.slane %v770_v20, 4  ;;  %v77_v3 = vld [vmem:[%s4048_s0 + $0x88] sm:$0x3]  ;;  %v85_v15 = vld [vmem:[%s4048_s0 + $0x98] sm:$0x3] }
  0x89   :  { %v2148_v27 = vmax.f32 %v2146_v14, %v2147_v22  ;;  %v706_v28 = vmax.f32 %v704_v11, %v705_v18  ;;  %v2149_v29 = vsel %vm2058_vm1, %v650_v17, -inf  ;;  %v710_v30 = vrot.slane %v709_v19, 2 }
  0x8a   :  { %v656_v31 = vrot.slane %v655_v23, 1  ;;  %v717_v32 = vrot.slane %v716_v24, 2  ;;  %v772_v33 = vmax.f32 %v770_v20, %v771_v25  ;;  %v721_v34 = vsel %vm265_vm0, %v74_v21, -inf  ;;  %v78_v25 = vld [vmem:[%s4048_s0 + $0x8a] sm:$0x3] }
  0x8b   :  { %2473 = vst.msk [vmem:[#allocation2 + $0x1d] sm:$0x1] %vm2443_vm2, %v2148_v27  ;;  %v2150_v36 = vsel %vm2058_vm1, %v706_v28, -inf  ;;  %v711_v37 = vmax.f32 %v709_v19, %v710_v30  ;;  %v722_v38 = vrot.slane %v721_v34, 4  ;;  %v777_v39 = vsel %vm265_vm0, %v82_v26, -inf }
  0x8c   :  { %v2151_v40 = vmax.f32 %v2149_v29, %v2150_v36  ;;  %v657_v41 = vmax.f32 %v655_v23, %v656_v31  ;;  %v718_v42 = vmax.f32 %v716_v24, %v717_v32  ;;  %v773_v43 = vrot.slane %v772_v33, 2 }
  0x8d   :  { %v712_v45 = vrot.slane %v711_v37, 1  ;;  %v723_v46 = vmax.f32 %v721_v34, %v722_v38  ;;  %v778_v47 = vrot.slane %v777_v39, 4  ;;  %v728_v48 = vsel %vm265_vm0, %v75_v35, -inf  ;;  %v86_v34 = vld [vmem:[%s4048_s0 + $0x9a] sm:$0x3] }
  0x8e   :  { %2474 = vst.msk [vmem:[#allocation2 + $0x1e] sm:$0x1] %vm2443_vm2, %v2151_v40  ;;  %v2152_v49 = vsel %vm2058_vm1, %v657_v41, -inf  ;;  %v719_v50 = vrot.slane %v718_v42, 1  ;;  %v774_v51 = vmax.f32 %v772_v33, %v773_v43  ;;  %v729_v52 = vrot.slane %v728_v48, 4 }
  0x8f   :  { %v713_v54 = vmax.f32 %v711_v37, %v712_v45  ;;  %v724_v55 = vrot.slane %v723_v46, 2  ;;  %v779_v56 = vmax.f32 %v777_v39, %v778_v47  ;;  %v784_v57 = vsel %vm265_vm0, %v83_v44, -inf  ;;  %v79_v39 = vld [vmem:[%s4048_s0 + $0x8c] sm:$0x3] }
  0x90   :  { %v720_v58 = vmax.f32 %v718_v42, %v719_v50  ;;  %v775_v59 = vrot.slane %v774_v51, 1  ;;  %v730_v60 = vmax.f32 %v728_v48, %v729_v52  ;;  %v785_v61 = vrot.slane %v784_v57, 4 }
  0x91   :  { %v2153_v63 = vsel %vm2058_vm1, %v713_v54, -inf  ;;  %v725_v0 = vmax.f32 %v723_v46, %v724_v55  ;;  %v780_v1 = vrot.slane %v779_v56, 2  ;;  %v735_v2 = vsel %vm265_vm0, %v76_v53, -inf }
  0x92   :  { %v2154_v4 = vmax.f32 %v2152_v49, %v2153_v63  ;;  %v776_v5 = vmax.f32 %v774_v51, %v775_v59  ;;  %v2155_v6 = vsel %vm2058_vm1, %v720_v58, -inf  ;;  %v731_v7 = vrot.slane %v730_v60, 2 }
  0x93   :  { %v726_v8 = vrot.slane %v725_v0, 1  ;;  %v781_v9 = vmax.f32 %v779_v56, %v780_v1  ;;  %v786_v10 = vmax.f32 %v784_v57, %v785_v61  ;;  %v736_v11 = vrot.slane %v735_v2, 4  ;;  %v87_v56 = vld [vmem:[%s4048_s0 + $0x9c] sm:$0x3]  ;;  %v80_v1 = vld [vmem:[%s4048_s0 + $0x8e] sm:$0x3] }
  0x94   :  { %2475 = vst.msk [vmem:[#allocation2 + $0x1f] sm:$0x1] %vm2443_vm2, %v2154_v4  ;;  %v2156_v12 = vsel %vm2058_vm1, %v776_v5, -inf  ;;  %v732_v13 = vmax.f32 %v730_v60, %v731_v7  ;;  %v791_v14 = vsel %vm265_vm0, %v84_v62, -inf  ;;  %v742_v16 = vsel %vm265_vm0, %v77_v3, -inf }
  0x95   :  { %v2157_v17 = vmax.f32 %v2155_v6, %v2156_v12  ;;  %v727_v18 = vmax.f32 %v725_v0, %v726_v8  ;;  %v782_v19 = vrot.slane %v781_v9, 1  ;;  %v787_v20 = vrot.slane %v786_v10, 2 }
  0x96   :  { %v733_v21 = vrot.slane %v732_v13, 1  ;;  %v737_v22 = vmax.f32 %v735_v2, %v736_v11  ;;  %v792_v23 = vrot.slane %v791_v14, 4  ;;  %v743_v24 = vrot.slane %v742_v16, 4 }
  0x97   :  { %2476 = vst.msk [vmem:[#allocation2 + $0x20] sm:$0x1] %vm2443_vm2, %v2157_v17  ;;  %v783_v26 = vmax.f32 %v781_v9, %v782_v19  ;;  %v2158_v27 = vsel %vm2058_vm1, %v727_v18, -inf  ;;  %v788_v28 = vmax.f32 %v786_v10, %v787_v20  ;;  %v798_v29 = vsel %vm265_vm0, %v85_v15, -inf  ;;  %v88_v10 = vld [vmem:[%s4048_s0 + $0x9e] sm:$0x3] }
  0x98   :  { %v734_v30 = vmax.f32 %v732_v13, %v733_v21  ;;  %v738_v31 = vrot.slane %v737_v22, 2  ;;  %v793_v32 = vmax.f32 %v791_v14, %v792_v23  ;;  %v744_v33 = vmax.f32 %v742_v16, %v743_v24  ;;  %v89_v15 = vld [vmem:[%s4048_s0 + $0xa0] sm:$0x3] }
  0x99   :  { %v2159_v35 = vsel %vm2058_vm1, %v783_v26, -inf  ;;  %v789_v36 = vrot.slane %v788_v28, 1  ;;  %v799_v37 = vrot.slane %v798_v29, 4  ;;  %v749_v38 = vsel %vm265_vm0, %v78_v25, -inf }
  0x9a   :  { %v2160_v40 = vmax.f32 %v2158_v27, %v2159_v35  ;;  %v2161_v41 = vsel %vm2058_vm1, %v734_v30, -inf  ;;  %v739_v42 = vmax.f32 %v737_v22, %v738_v31  ;;  %v794_v43 = vrot.slane %v793_v32, 2  ;;  %v97_v27 = vld [vmem:[%s4048_s0 + $0xb0] sm:$0x3] }
  0x9b   :  { %v790_v44 = vmax.f32 %v788_v28, %v789_v36  ;;  %v745_v45 = vrot.slane %v744_v33, 2  ;;  %v800_v46 = vmax.f32 %v798_v29, %v799_v37  ;;  %v750_v47 = vrot.slane %v749_v38, 4  ;;  %v90_v37 = vld [vmem:[%s4048_s0 + $0xa2] sm:$0x3] }
  0x9c   :  { %2477 = vst.msk [vmem:[#allocation2 + $0x21] sm:$0x1] %vm2443_vm2, %v2160_v40  ;;  %v740_v48 = vrot.slane %v739_v42, 1  ;;  %v795_v49 = vmax.f32 %v793_v32, %v794_v43  ;;  %v805_v50 = vsel %vm265_vm0, %v86_v34, -inf  ;;  %v756_v51 = vsel %vm265_vm0, %v79_v39, -inf }
  0x9d   :  { %v2162_v52 = vsel %vm2058_vm1, %v790_v44, -inf  ;;  %v746_v53 = vmax.f32 %v744_v33, %v745_v45  ;;  %v801_v54 = vrot.slane %v800_v46, 2  ;;  %v751_v55 = vmax.f32 %v749_v38, %v750_v47 }
  0x9e   :  { %v2163_v57 = vmax.f32 %v2161_v41, %v2162_v52  ;;  %v741_v58 = vmax.f32 %v739_v42, %v740_v48  ;;  %v796_v59 = vrot.slane %v795_v49, 1  ;;  %v806_v60 = vrot.slane %v805_v50, 4 }
  0x9f   :  { %v747_v61 = vrot.slane %v746_v53, 1  ;;  %v802_v62 = vmax.f32 %v800_v46, %v801_v54  ;;  %v752_v63 = vrot.slane %v751_v55, 2  ;;  %v757_v0 = vrot.slane %v756_v51, 4 }
  0xa0   :  { %2478 = vst.msk [vmem:[#allocation2 + $0x22] sm:$0x1] %vm2443_vm2, %v2163_v57  ;;  %v797_v2 = vmax.f32 %v795_v49, %v796_v59  ;;  %v2164_v3 = vsel %vm2058_vm1, %v741_v58, -inf  ;;  %v807_v4 = vmax.f32 %v805_v50, %v806_v60  ;;  %v812_v5 = vsel %vm265_vm0, %v87_v56, -inf  ;;  %v98_v49 = vld [vmem:[%s4048_s0 + $0xb2] sm:$0x3] }
  0xa1   :  { %v748_v6 = vmax.f32 %v746_v53, %v747_v61  ;;  %v803_v7 = vrot.slane %v802_v62, 1  ;;  %v753_v8 = vmax.f32 %v751_v55, %v752_v63  ;;  %v758_v9 = vmax.f32 %v756_v51, %v757_v0  ;;  %v91_v63 = vld [vmem:[%s4048_s0 + $0xa4] sm:$0x3] }
  0xa2   :  { %v2165_v11 = vsel %vm2058_vm1, %v797_v2, -inf  ;;  %v808_v12 = vrot.slane %v807_v4, 2  ;;  %v813_v13 = vrot.slane %v812_v5, 4  ;;  %v763_v14 = vsel %vm265_vm0, %v80_v1, -inf }
  0xa3   :  { %v2166_v16 = vmax.f32 %v2164_v3, %v2165_v11  ;;  %v804_v17 = vmax.f32 %v802_v62, %v803_v7  ;;  %v2167_v18 = vsel %vm2058_vm1, %v748_v6, -inf  ;;  %v754_v19 = vrot.slane %v753_v8, 1 }
  0xa4   :  { %v809_v20 = vmax.f32 %v807_v4, %v808_v12  ;;  %v759_v21 = vrot.slane %v758_v9, 2  ;;  %v814_v22 = vmax.f32 %v812_v5, %v813_v13  ;;  %v764_v23 = vrot.slane %v763_v14, 4 }
  0xa5   :  { %2479 = vst.msk [vmem:[#allocation2 + $0x23] sm:$0x1] %vm2443_vm2, %v2166_v16  ;;  %v2168_v24 = vsel %vm2058_vm1, %v804_v17, -inf  ;;  %v755_v25 = vmax.f32 %v753_v8, %v754_v19  ;;  %v819_v26 = vsel %vm265_vm0, %v88_v10, -inf  ;;  %v826_v28 = vsel %vm265_vm0, %v89_v15, -inf }
  0xa6   :  { %v2169_v29 = vmax.f32 %v2167_v18, %v2168_v24  ;;  %v810_v30 = vrot.slane %v809_v20, 1  ;;  %v760_v31 = vmax.f32 %v758_v9, %v759_v21  ;;  %v815_v32 = vrot.slane %v814_v22, 2  ;;  %v99_v8 = vld [vmem:[%s4048_s0 + $0xb4] sm:$0x3]  ;;  %v92_v17 = vld [vmem:[%s4048_s0 + $0xa6] sm:$0x3] }
  0xa7   :  { %v2170_v33 = vsel %vm2058_vm1, %v755_v25, -inf  ;;  %v765_v34 = vmax.f32 %v763_v14, %v764_v23  ;;  %v820_v35 = vrot.slane %v819_v26, 4  ;;  %v827_v36 = vrot.slane %v826_v28, 4 }
  0xa8   :  { %2480 = vst.msk [vmem:[#allocation2 + $0x24] sm:$0x1] %vm2443_vm2, %v2169_v29  ;;  %v811_v38 = vmax.f32 %v809_v20, %v810_v30  ;;  %v761_v39 = vrot.slane %v760_v31, 1  ;;  %v816_v40 = vmax.f32 %v814_v22, %v815_v32  ;;  %v882_v41 = vsel %vm265_vm0, %v97_v27, -inf  ;;  %v100_v22 = vld [vmem:[%s4048_s0 + $0xb6] sm:$0x3] }
  0xa9   :  { %v766_v42 = vrot.slane %v765_v34, 2  ;;  %v821_v43 = vmax.f32 %v819_v26, %v820_v35  ;;  %v828_v44 = vmax.f32 %v826_v28, %v827_v36  ;;  %v883_v45 = vrot.slane %v882_v41, 4  ;;  %v93_v35 = vld [vmem:[%s4048_s0 + $0xa8] sm:$0x3] }
  0xaa   :  { %v2171_v46 = vsel %vm2058_vm1, %v811_v38, -inf  ;;  %v762_v47 = vmax.f32 %v760_v31, %v761_v39  ;;  %v817_v48 = vrot.slane %v816_v40, 1  ;;  %v833_v50 = vsel %vm265_vm0, %v90_v37, -inf }
  0xab   :  { %v2172_v51 = vmax.f32 %v2170_v33, %v2171_v46  ;;  %v767_v52 = vmax.f32 %v765_v34, %v766_v42  ;;  %v822_v53 = vrot.slane %v821_v43, 2  ;;  %v829_v54 = vrot.slane %v828_v44, 2 }
  0xac   :  { %v818_v55 = vmax.f32 %v816_v40, %v817_v48  ;;  %v2173_v56 = vsel %vm2058_vm1, %v762_v47, -inf  ;;  %v884_v57 = vmax.f32 %v882_v41, %v883_v45  ;;  %v834_v58 = vrot.slane %v833_v50, 4  ;;  %v94_v45 = vld [vmem:[%s4048_s0 + $0xaa] sm:$0x3] }
  0xad   :  { %2481 = vst.msk [vmem:[#allocation2 + $0x25] sm:$0x1] %vm2443_vm2, %v2172_v51  ;;  %v768_v59 = vrot.slane %v767_v52, 1  ;;  %v823_v60 = vmax.f32 %v821_v43, %v822_v53  ;;  %v830_v61 = vmax.f32 %v828_v44, %v829_v54  ;;  %v889_v62 = vsel %vm265_vm0, %v98_v49, -inf  ;;  %v101_v44 = vld [vmem:[%s4048_s0 + $0xb8] sm:$0x3] }
  0xae   :  { %v2174_v0 = vsel %vm2058_vm1, %v818_v55, -inf  ;;  %v885_v1 = vrot.slane %v884_v57, 2  ;;  %v835_v2 = vmax.f32 %v833_v50, %v834_v58  ;;  %v890_v3 = vrot.slane %v889_v62, 4 }
  0xaf   :  { %v2175_v4 = vmax.f32 %v2173_v56, %v2174_v0  ;;  %v769_v5 = vmax.f32 %v767_v52, %v768_v59  ;;  %v824_v6 = vrot.slane %v823_v60, 1  ;;  %v831_v7 = vrot.slane %v830_v61, 1 }
  0xb0   :  { %v886_v9 = vmax.f32 %v884_v57, %v885_v1  ;;  %v836_v10 = vrot.slane %v835_v2, 2  ;;  %v891_v11 = vmax.f32 %v889_v62, %v890_v3  ;;  %v840_v12 = vsel %vm265_vm0, %v91_v63, -inf  ;;  %v102_v57 = vld [vmem:[%s4048_s0 + $0xba] sm:$0x3]  ;;  %v95_v3 = vld [vmem:[%s4048_s0 + $0xac] sm:$0x3] }
  0xb1   :  { %2482 = vst.msk [vmem:[#allocation2 + $0x26] sm:$0x1] %vm2443_vm2, %v2175_v4  ;;  %v825_v13 = vmax.f32 %v823_v60, %v824_v6  ;;  %v2176_v14 = vsel %vm2058_vm1, %v769_v5, -inf  ;;  %v832_v15 = vmax.f32 %v830_v61, %v831_v7  ;;  %v841_v16 = vrot.slane %v840_v12, 4 }
  0xb2   :  { %v887_v18 = vrot.slane %v886_v9, 1  ;;  %v837_v19 = vmax.f32 %v835_v2, %v836_v10  ;;  %v892_v20 = vrot.slane %v891_v11, 2  ;;  %v896_v21 = vsel %vm265_vm0, %v99_v8, -inf }
  0xb3   :  { %v2177_v23 = vsel %vm2058_vm1, %v825_v13, -inf  ;;  %v2179_v24 = vsel %vm2058_vm1, %v832_v15, -inf  ;;  %v842_v25 = vmax.f32 %v840_v12, %v841_v16  ;;  %v897_v26 = vrot.slane %v896_v21, 4  ;;  %v103_v15 = vld [vmem:[%s4048_s0 + $0xbc] sm:$0x3] }
  0xb4   :  { %v2178_v27 = vmax.f32 %v2176_v14, %v2177_v23  ;;  %v888_v28 = vmax.f32 %v886_v9, %v887_v18  ;;  %v838_v29 = vrot.slane %v837_v19, 1  ;;  %v893_v30 = vmax.f32 %v891_v11, %v892_v20 }
  0xb5   :  { %v843_v31 = vrot.slane %v842_v25, 2  ;;  %v898_v32 = vmax.f32 %v896_v21, %v897_v26  ;;  %v847_v33 = vsel %vm265_vm0, %v92_v17, -inf  ;;  %v903_v34 = vsel %vm265_vm0, %v100_v22, -inf }
  0xb6   :  { %2483 = vst.msk [vmem:[#allocation2 + $0x27] sm:$0x1] %vm2443_vm2, %v2178_v27  ;;  %v2180_v36 = vsel %vm2058_vm1, %v888_v28, -inf  ;;  %v839_v37 = vmax.f32 %v837_v19, %v838_v29  ;;  %v894_v38 = vrot.slane %v893_v30, 1  ;;  %v848_v39 = vrot.slane %v847_v33, 4 }
  0xb7   :  { %v2181_v40 = vmax.f32 %v2179_v24, %v2180_v36  ;;  %v844_v41 = vmax.f32 %v842_v25, %v843_v31  ;;  %v899_v42 = vrot.slane %v898_v32, 2  ;;  %v904_v43 = vrot.slane %v903_v34, 4  ;;  %v96_v29 = vld [vmem:[%s4048_s0 + $0xae] sm:$0x3] }
  0xb8   :  { %v895_v46 = vmax.f32 %v893_v30, %v894_v38  ;;  %v2182_v47 = vsel %vm2058_vm1, %v839_v37, -inf  ;;  %v849_v48 = vmax.f32 %v847_v33, %v848_v39  ;;  %v854_v49 = vsel %vm265_vm0, %v93_v35, -inf  ;;  %v104_v38 = vld [vmem:[%s4048_s0 + $0xbe] sm:$0x3] }
  0xb9   :  { %2484 = vst.msk [vmem:[#allocation2 + $0x28] sm:$0x1] %vm2443_vm2, %v2181_v40  ;;  %v845_v50 = vrot.slane %v844_v41, 1  ;;  %v900_v51 = vmax.f32 %v898_v32, %v899_v42  ;;  %v905_v52 = vmax.f32 %v903_v34, %v904_v43  ;;  %v855_v53 = vrot.slane %v854_v49, 4 }
  0xba   :  { %v2183_v54 = vsel %vm2058_vm1, %v895_v46, -inf  ;;  %v850_v55 = vrot.slane %v849_v48, 2  ;;  %v910_v56 = vsel %vm265_vm0, %v101_v44, -inf  ;;  %v861_v58 = vsel %vm265_vm0, %v94_v45, -inf }
  0xbb   :  { %v2184_v59 = vmax.f32 %v2182_v47, %v2183_v54  ;;  %v846_v60 = vmax.f32 %v844_v41, %v845_v50  ;;  %v901_v61 = vrot.slane %v900_v51, 1  ;;  %v906_v62 = vrot.slane %v905_v52, 2 }
  0xbc   :  { %v851_v63 = vmax.f32 %v849_v48, %v850_v55  ;;  %v856_v0 = vmax.f32 %v854_v49, %v855_v53  ;;  %v911_v1 = vrot.slane %v910_v56, 4  ;;  %v862_v2 = vrot.slane %v861_v58, 4 }
  0xbd   :  { %2485 = vst.msk [vmem:[#allocation2 + $0x29] sm:$0x1] %vm2443_vm2, %v2184_v59  ;;  %v902_v4 = vmax.f32 %v900_v51, %v901_v61  ;;  %v2185_v5 = vsel %vm2058_vm1, %v846_v60, -inf  ;;  %v907_v6 = vmax.f32 %v905_v52, %v906_v62  ;;  %v917_v7 = vsel %vm265_vm0, %v102_v57, -inf  ;;  %v105_v51 = vld [vmem:[%s4048_s0 + $0xc0] sm:$0x3] }
  0xbe   :  { %v852_v8 = vrot.slane %v851_v63, 1  ;;  %v857_v9 = vrot.slane %v856_v0, 2  ;;  %v912_v10 = vmax.f32 %v910_v56, %v911_v1  ;;  %v863_v11 = vmax.f32 %v861_v58, %v862_v2  ;;  %v113_v56 = vld [vmem:[%s4048_s0 + $0xd0] sm:$0x3]  ;;  %v106_v1 = vld [vmem:[%s4048_s0 + $0xc2] sm:$0x3] }
  0xbf   :  { %v2186_v12 = vsel %vm2058_vm1, %v902_v4, -inf  ;;  %v908_v13 = vrot.slane %v907_v6, 1  ;;  %v918_v14 = vrot.slane %v917_v7, 4  ;;  %v868_v16 = vsel %vm265_vm0, %v95_v3, -inf }
  0xc0   :  { %v2187_v17 = vmax.f32 %v2185_v5, %v2186_v12  ;;  %v853_v18 = vmax.f32 %v851_v63, %v852_v8  ;;  %v858_v19 = vmax.f32 %v856_v0, %v857_v9  ;;  %v913_v20 = vrot.slane %v912_v10, 2 }
  0xc1   :  { %v909_v21 = vmax.f32 %v907_v6, %v908_v13  ;;  %v864_v22 = vrot.slane %v863_v11, 2  ;;  %v919_v23 = vmax.f32 %v917_v7, %v918_v14  ;;  %v869_v24 = vrot.slane %v868_v16, 4 }
  0xc2   :  { %2486 = vst.msk [vmem:[#allocation2 + $0x2a] sm:$0x1] %vm2443_vm2, %v2187_v17  ;;  %v2188_v25 = vsel %vm2058_vm1, %v853_v18, -inf  ;;  %v859_v26 = vrot.slane %v858_v19, 1  ;;  %v914_v27 = vmax.f32 %v912_v10, %v913_v20  ;;  %v924_v28 = vsel %vm265_vm0, %v103_v15, -inf }
  0xc3   :  { %v2189_v30 = vsel %vm2058_vm1, %v909_v21, -inf  ;;  %v865_v31 = vmax.f32 %v863_v11, %v864_v22  ;;  %v920_v32 = vrot.slane %v919_v23, 2  ;;  %v870_v33 = vmax.f32 %v868_v16, %v869_v24  ;;  %v114_v10 = vld [vmem:[%s4048_s0 + $0xd2] sm:$0x3]  ;;  %v107_v11 = vld [vmem:[%s4048_s0 + $0xc4] sm:$0x3] }
  0xc4   :  { %v2190_v34 = vmax.f32 %v2188_v25, %v2189_v30  ;;  %v860_v35 = vmax.f32 %v858_v19, %v859_v26  ;;  %v915_v36 = vrot.slane %v914_v27, 1  ;;  %v925_v37 = vrot.slane %v924_v28, 4 }
  0xc5   :  { %v866_v39 = vrot.slane %v865_v31, 1  ;;  %v921_v40 = vmax.f32 %v919_v23, %v920_v32  ;;  %v871_v41 = vrot.slane %v870_v33, 2  ;;  %v875_v42 = vsel %vm265_vm0, %v96_v29, -inf }
  0xc6   :  { %2487 = vst.msk [vmem:[#allocation2 + $0x2b] sm:$0x1] %vm2443_vm2, %v2190_v34  ;;  %v916_v43 = vmax.f32 %v914_v27, %v915_v36  ;;  %v2191_v44 = vsel %vm2058_vm1, %v860_v35, -inf  ;;  %v926_v45 = vmax.f32 %v924_v28, %v925_v37  ;;  %v876_v46 = vrot.slane %v875_v42, 4  ;;  %v115_v28 = vld [vmem:[%s4048_s0 + $0xd4] sm:$0x3] }
  0xc7   :  { %v867_v47 = vmax.f32 %v865_v31, %v866_v39  ;;  %v922_v48 = vrot.slane %v921_v40, 1  ;;  %v872_v49 = vmax.f32 %v870_v33, %v871_v41  ;;  %v931_v50 = vsel %vm265_vm0, %v104_v38, -inf  ;;  %v108_v41 = vld [vmem:[%s4048_s0 + $0xc6] sm:$0x3] }
  0xc8   :  { %v2192_v52 = vsel %vm2058_vm1, %v916_v43, -inf  ;;  %v927_v53 = vrot.slane %v926_v45, 2  ;;  %v877_v54 = vmax.f32 %v875_v42, %v876_v46  ;;  %v932_v55 = vrot.slane %v931_v50, 4 }
  0xc9   :  { %v2193_v57 = vmax.f32 %v2191_v44, %v2192_v52  ;;  %v923_v58 = vmax.f32 %v921_v40, %v922_v48  ;;  %v2194_v59 = vsel %vm2058_vm1, %v867_v47, -inf  ;;  %v873_v60 = vrot.slane %v872_v49, 1 }
  0xca   :  { %v928_v61 = vmax.f32 %v926_v45, %v927_v53  ;;  %v878_v62 = vrot.slane %v877_v54, 2  ;;  %v933_v63 = vmax.f32 %v931_v50, %v932_v55  ;;  %v938_v0 = vsel %vm265_vm0, %v105_v51, -inf  ;;  %v116_v50 = vld [vmem:[%s4048_s0 + $0xd6] sm:$0x3] }
  0xcb   :  { %2488 = vst.msk [vmem:[#allocation2 + $0x2c] sm:$0x1] %vm2443_vm2, %v2193_v57  ;;  %v2195_v2 = vsel %vm2058_vm1, %v923_v58, -inf  ;;  %v874_v3 = vmax.f32 %v872_v49, %v873_v60  ;;  %v939_v4 = vrot.slane %v938_v0, 4  ;;  %v994_v5 = vsel %vm265_vm0, %v113_v56, -inf }
  0xcc   :  { %v2196_v6 = vmax.f32 %v2194_v59, %v2195_v2  ;;  %v929_v7 = vrot.slane %v928_v61, 1  ;;  %v879_v8 = vmax.f32 %v877_v54, %v878_v62  ;;  %v934_v9 = vrot.slane %v933_v63, 2 }
  0xcd   :  { %v2197_v12 = vsel %vm2058_vm1, %v874_v3, -inf  ;;  %v940_v13 = vmax.f32 %v938_v0, %v939_v4  ;;  %v995_v14 = vrot.slane %v994_v5, 4  ;;  %v945_v15 = vsel %vm265_vm0, %v106_v1, -inf  ;;  %v117_v4 = vld [vmem:[%s4048_s0 + $0xd8] sm:$0x3] }
  0xce   :  { %2489 = vst.msk [vmem:[#allocation2 + $0x2d] sm:$0x1] %vm2443_vm2, %v2196_v6  ;;  %v930_v16 = vmax.f32 %v928_v61, %v929_v7  ;;  %v880_v17 = vrot.slane %v879_v8, 1  ;;  %v935_v18 = vmax.f32 %v933_v63, %v934_v9  ;;  %v946_v19 = vrot.slane %v945_v15, 4  ;;  %v109_v63 = vld [vmem:[%s4048_s0 + $0xc8] sm:$0x3] }
  0xcf   :  { %v941_v20 = vrot.slane %v940_v13, 2  ;;  %v996_v21 = vmax.f32 %v994_v5, %v995_v14  ;;  %v1001_v22 = vsel %vm265_vm0, %v114_v10, -inf  ;;  %v952_v23 = vsel %vm265_vm0, %v107_v11, -inf }
  0xd0   :  { %v2198_v24 = vsel %vm2058_vm1, %v930_v16, -inf  ;;  %v881_v25 = vmax.f32 %v879_v8, %v880_v17  ;;  %v936_v26 = vrot.slane %v935_v18, 1  ;;  %v947_v27 = vmax.f32 %v945_v15, %v946_v19  ;;  %v110_v17 = vld [vmem:[%s4048_s0 + $0xca] sm:$0x3] }
  0xd1   :  { %v2199_v29 = vmax.f32 %v2197_v12, %v2198_v24  ;;  %v942_v30 = vmax.f32 %v940_v13, %v941_v20  ;;  %v997_v31 = vrot.slane %v996_v21, 2  ;;  %v1002_v32 = vrot.slane %v1001_v22, 4 }
  0xd2   :  { %v937_v33 = vmax.f32 %v935_v18, %v936_v26  ;;  %v2200_v34 = vsel %vm2058_vm1, %v881_v25, -inf  ;;  %v948_v35 = vrot.slane %v947_v27, 2  ;;  %v953_v36 = vrot.slane %v952_v23, 4 }
  0xd3   :  { %2490 = vst.msk [vmem:[#allocation2 + $0x2e] sm:$0x1] %vm2443_vm2, %v2199_v29  ;;  %v943_v37 = vrot.slane %v942_v30, 1  ;;  %v998_v38 = vmax.f32 %v996_v21, %v997_v31  ;;  %v1003_v39 = vmax.f32 %v1001_v22, %v1002_v32  ;;  %v1008_v40 = vsel %vm265_vm0, %v115_v28, -inf  ;;  %v118_v22 = vld [vmem:[%s4048_s0 + $0xda] sm:$0x3] }
  0xd4   :  { %v2201_v42 = vsel %vm2058_vm1, %v937_v33, -inf  ;;  %v949_v43 = vmax.f32 %v947_v27, %v948_v35  ;;  %v954_v44 = vmax.f32 %v952_v23, %v953_v36  ;;  %v1009_v45 = vrot.slane %v1008_v40, 4  ;;  %v111_v31 = vld [vmem:[%s4048_s0 + $0xcc] sm:$0x3] }
  0xd5   :  { %v2202_v46 = vmax.f32 %v2200_v34, %v2201_v42  ;;  %v944_v47 = vmax.f32 %v942_v30, %v943_v37  ;;  %v999_v48 = vrot.slane %v998_v38, 1  ;;  %v1004_v49 = vrot.slane %v1003_v39, 2 }
  0xd6   :  { %v950_v51 = vrot.slane %v949_v43, 1  ;;  %v955_v52 = vrot.slane %v954_v44, 2  ;;  %v1010_v53 = vmax.f32 %v1008_v40, %v1009_v45  ;;  %v959_v54 = vsel %vm265_vm0, %v108_v41, -inf  ;;  %v119_v40 = vld [vmem:[%s4048_s0 + $0xdc] sm:$0x3] }
  0xd7   :  { %2491 = vst.msk [vmem:[#allocation2 + $0x2f] sm:$0x1] %vm2443_vm2, %v2202_v46  ;;  %v1000_v55 = vmax.f32 %v998_v38, %v999_v48  ;;  %v2203_v56 = vsel %vm2058_vm1, %v944_v47, -inf  ;;  %v1005_v57 = vmax.f32 %v1003_v39, %v1004_v49  ;;  %v960_v58 = vrot.slane %v959_v54, 4 }
  0xd8   :  { %v951_v59 = vmax.f32 %v949_v43, %v950_v51  ;;  %v956_v60 = vmax.f32 %v954_v44, %v955_v52  ;;  %v1011_v61 = vrot.slane %v1010_v53, 2  ;;  %v1015_v62 = vsel %vm265_vm0, %v116_v50, -inf }
  0xd9   :  { %v2204_v0 = vsel %vm2058_vm1, %v1000_v55, -inf  ;;  %v1006_v1 = vrot.slane %v1005_v57, 1  ;;  %v961_v2 = vmax.f32 %v959_v54, %v960_v58  ;;  %v1016_v3 = vrot.slane %v1015_v62, 4 }
  0xda   :  { %v2205_v5 = vmax.f32 %v2203_v56, %v2204_v0  ;;  %v2206_v6 = vsel %vm2058_vm1, %v951_v59, -inf  ;;  %v957_v7 = vrot.slane %v956_v60, 1  ;;  %v1012_v8 = vmax.f32 %v1010_v53, %v1011_v61  ;;  %v112_v53 = vld [vmem:[%s4048_s0 + $0xce] sm:$0x3] }
  0xdb   :  { %v1007_v9 = vmax.f32 %v1005_v57, %v1006_v1  ;;  %v962_v10 = vrot.slane %v961_v2, 2  ;;  %v1017_v11 = vmax.f32 %v1015_v62, %v1016_v3  ;;  %v966_v12 = vsel %vm265_vm0, %v109_v63, -inf  ;;  %v120_v62 = vld [vmem:[%s4048_s0 + $0xde] sm:$0x3] }
  0xdc   :  { %2492 = vst.msk [vmem:[#allocation2 + $0x30] sm:$0x1] %vm2443_vm2, %v2205_v5  ;;  %v958_v13 = vmax.f32 %v956_v60, %v957_v7  ;;  %v1013_v14 = vrot.slane %v1012_v8, 1  ;;  %v967_v15 = vrot.slane %v966_v12, 4  ;;  %v1022_v16 = vsel %vm265_vm0, %v117_v4, -inf }
  0xdd   :  { %v2207_v18 = vsel %vm2058_vm1, %v1007_v9, -inf  ;;  %v963_v19 = vmax.f32 %v961_v2, %v962_v10  ;;  %v1018_v20 = vrot.slane %v1017_v11, 2  ;;  %v1023_v21 = vrot.slane %v1022_v16, 4  ;;  %v121_v7 = vld [vmem:[%s4048_s0 + $0xe0] sm:$0x3] }
  0xde   :  { %v2208_v23 = vmax.f32 %v2206_v6, %v2207_v18  ;;  %v1014_v24 = vmax.f32 %v1012_v8, %v1013_v14  ;;  %v2209_v25 = vsel %vm2058_vm1, %v958_v13, -inf  ;;  %v968_v26 = vmax.f32 %v966_v12, %v967_v15 }
  0xdf   :  { %v964_v27 = vrot.slane %v963_v19, 1  ;;  %v1019_v28 = vmax.f32 %v1017_v11, %v1018_v20  ;;  %v1024_v29 = vmax.f32 %v1022_v16, %v1023_v21  ;;  %v973_v30 = vsel %vm265_vm0, %v110_v17, -inf  ;;  %v129_v16 = vld [vmem:[%s4048_s0 + $0xf0] sm:$0x3] }
  0xe0   :  { %2493 = vst.msk [vmem:[#allocation2 + $0x31] sm:$0x1] %vm2443_vm2, %v2208_v23  ;;  %v2210_v32 = vsel %vm2058_vm1, %v1014_v24, -inf  ;;  %v969_v33 = vrot.slane %v968_v26, 2  ;;  %v974_v34 = vrot.slane %v973_v30, 4  ;;  %v1029_v35 = vsel %vm265_vm0, %v118_v22, -inf }
  0xe1   :  { %v2211_v36 = vmax.f32 %v2209_v25, %v2210_v32  ;;  %v965_v37 = vmax.f32 %v963_v19, %v964_v27  ;;  %v1020_v38 = vrot.slane %v1019_v28, 1  ;;  %v1025_v39 = vrot.slane %v1024_v29, 2 }
  0xe2   :  { %v970_v41 = vmax.f32 %v968_v26, %v969_v33  ;;  %v975_v42 = vmax.f32 %v973_v30, %v974_v34  ;;  %v1030_v43 = vrot.slane %v1029_v35, 4  ;;  %v980_v44 = vsel %vm265_vm0, %v111_v31, -inf  ;;  %v130_v34 = vld [vmem:[%s4048_s0 + $0xf2] sm:$0x3] }
  0xe3   :  { %2494 = vst.msk [vmem:[#allocation2 + $0x32] sm:$0x1] %vm2443_vm2, %v2211_v36  ;;  %v1021_v45 = vmax.f32 %v1019_v28, %v1020_v38  ;;  %v2212_v46 = vsel %vm2058_vm1, %v965_v37, -inf  ;;  %v1026_v47 = vmax.f32 %v1024_v29, %v1025_v39  ;;  %v981_v48 = vrot.slane %v980_v44, 4  ;;  %v122_v29 = vld [vmem:[%s4048_s0 + $0xe2] sm:$0x3] }
  0xe4   :  { %v971_v49 = vrot.slane %v970_v41, 1  ;;  %v976_v50 = vrot.slane %v975_v42, 2  ;;  %v1031_v51 = vmax.f32 %v1029_v35, %v1030_v43  ;;  %v1036_v52 = vsel %vm265_vm0, %v119_v40, -inf  ;;  %v123_v43 = vld [vmem:[%s4048_s0 + $0xe4] sm:$0x3] }
  0xe5   :  { %v2213_v54 = vsel %vm2058_vm1, %v1021_v45, -inf  ;;  %v1027_v55 = vrot.slane %v1026_v47, 1  ;;  %v982_v56 = vmax.f32 %v980_v44, %v981_v48  ;;  %v1037_v57 = vrot.slane %v1036_v52, 4 }
  0xe6   :  { %v2214_v58 = vmax.f32 %v2212_v46, %v2213_v54  ;;  %v972_v59 = vmax.f32 %v970_v41, %v971_v49  ;;  %v977_v60 = vmax.f32 %v975_v42, %v976_v50  ;;  %v1032_v61 = vrot.slane %v1031_v51, 2 }
  0xe7   :  { %v1028_v63 = vmax.f32 %v1026_v47, %v1027_v55  ;;  %v983_v0 = vrot.slane %v982_v56, 2  ;;  %v1038_v1 = vmax.f32 %v1036_v52, %v1037_v57  ;;  %v987_v2 = vsel %vm265_vm0, %v112_v53, -inf  ;;  %v131_v52 = vld [vmem:[%s4048_s0 + $0xf4] sm:$0x3] }
  0xe8   :  { %2495 = vst.msk [vmem:[#allocation2 + $0x33] sm:$0x1] %vm2443_vm2, %v2214_v58  ;;  %v2215_v3 = vsel %vm2058_vm1, %v972_v59, -inf  ;;  %v978_v4 = vrot.slane %v977_v60, 1  ;;  %v1033_v5 = vmax.f32 %v1031_v51, %v1032_v61  ;;  %v988_v6 = vrot.slane %v987_v2, 4 }
  0xe9   :  { %v2216_v8 = vsel %vm2058_vm1, %v1028_v63, -inf  ;;  %v984_v9 = vmax.f32 %v982_v56, %v983_v0  ;;  %v1039_v10 = vrot.slane %v1038_v1, 2  ;;  %v1043_v11 = vsel %vm265_vm0, %v120_v62, -inf  ;;  %v124_v61 = vld [vmem:[%s4048_s0 + $0xe6] sm:$0x3] }
  0xea   :  { %v2217_v12 = vmax.f32 %v2215_v3, %v2216_v8  ;;  %v979_v13 = vmax.f32 %v977_v60, %v978_v4  ;;  %v1034_v14 = vrot.slane %v1033_v5, 1  ;;  %v989_v15 = vmax.f32 %v987_v2, %v988_v6  ;;  %v132_v6 = vld [vmem:[%s4048_s0 + $0xf6] sm:$0x3] }
  0xeb   :  { %v985_v17 = vrot.slane %v984_v9, 1  ;;  %v1040_v18 = vmax.f32 %v1038_v1, %v1039_v10  ;;  %v1044_v19 = vrot.slane %v1043_v11, 4  ;;  %v1050_v20 = vsel %vm265_vm0, %v121_v7, -inf }
  0xec   :  { %2496 = vst.msk [vmem:[#allocation2 + $0x34] sm:$0x1] %vm2443_vm2, %v2217_v12  ;;  %v1035_v21 = vmax.f32 %v1033_v5, %v1034_v14  ;;  %v2218_v22 = vsel %vm2058_vm1, %v979_v13, -inf  ;;  %v990_v23 = vrot.slane %v989_v15, 2  ;;  %v1051_v24 = vrot.slane %v1050_v20, 4 }
  0xed   :  { %v986_v25 = vmax.f32 %v984_v9, %v985_v17  ;;  %v1041_v26 = vrot.slane %v1040_v18, 1  ;;  %v1045_v27 = vmax.f32 %v1043_v11, %v1044_v19  ;;  %v1106_v28 = vsel %vm265_vm0, %v129_v16, -inf  ;;  %v125_v11 = vld [vmem:[%s4048_s0 + $0xe8] sm:$0x3] }
  0xee   :  { %v2219_v30 = vsel %vm2058_vm1, %v1035_v21, -inf  ;;  %v991_v31 = vmax.f32 %v989_v15, %v990_v23  ;;  %v1052_v32 = vmax.f32 %v1050_v20, %v1051_v24  ;;  %v1107_v33 = vrot.slane %v1106_v28, 4  ;;  %v133_v23 = vld [vmem:[%s4048_s0 + $0xf8] sm:$0x3] }
  0xef   :  { %v2220_v35 = vmax.f32 %v2218_v22, %v2219_v30  ;;  %v1042_v36 = vmax.f32 %v1040_v18, %v1041_v26  ;;  %v2221_v37 = vsel %vm2058_vm1, %v986_v25, -inf  ;;  %v1046_v38 = vrot.slane %v1045_v27, 2 }
  0xf0   :  { %v992_v39 = vrot.slane %v991_v31, 1  ;;  %v1053_v40 = vrot.slane %v1052_v32, 2  ;;  %v1108_v41 = vmax.f32 %v1106_v28, %v1107_v33  ;;  %v1057_v42 = vsel %vm265_vm0, %v122_v29, -inf  ;;  %v126_v33 = vld [vmem:[%s4048_s0 + $0xea] sm:$0x3] }
  0xf1   :  { %2497 = vst.msk [vmem:[#allocation2 + $0x35] sm:$0x1] %vm2443_vm2, %v2220_v35  ;;  %v2222_v44 = vsel %vm2058_vm1, %v1042_v36, -inf  ;;  %v1047_v45 = vmax.f32 %v1045_v27, %v1046_v38  ;;  %v1058_v46 = vrot.slane %v1057_v42, 4  ;;  %v1113_v47 = vsel %vm265_vm0, %v130_v34, -inf }
  0xf2   :  { %v2223_v48 = vmax.f32 %v2221_v37, %v2222_v44  ;;  %v993_v49 = vmax.f32 %v991_v31, %v992_v39  ;;  %v1054_v50 = vmax.f32 %v1052_v32, %v1053_v40  ;;  %v1109_v51 = vrot.slane %v1108_v41, 2 }
  0xf3   :  { %v1048_v53 = vrot.slane %v1047_v45, 1  ;;  %v1059_v54 = vmax.f32 %v1057_v42, %v1058_v46  ;;  %v1114_v55 = vrot.slane %v1113_v47, 4  ;;  %v1064_v56 = vsel %vm265_vm0, %v123_v43, -inf  ;;  %v134_v42 = vld [vmem:[%s4048_s0 + $0xfa] sm:$0x3] }
  0xf4   :  { %2498 = vst.msk [vmem:[#allocation2 + $0x36] sm:$0x1] %vm2443_vm2, %v2223_v48  ;;  %v2224_v57 = vsel %vm2058_vm1, %v993_v49, -inf  ;;  %v1055_v58 = vrot.slane %v1054_v50, 1  ;;  %v1110_v59 = vmax.f32 %v1108_v41, %v1109_v51  ;;  %v1065_v60 = vrot.slane %v1064_v56, 4 }
  0xf5   :  { %v1049_v62 = vmax.f32 %v1047_v45, %v1048_v53  ;;  %v1060_v63 = vrot.slane %v1059_v54, 2  ;;  %v1115_v0 = vmax.f32 %v1113_v47, %v1114_v55  ;;  %v1120_v1 = vsel %vm265_vm0, %v131_v52, -inf  ;;  %v127_v47 = vld [vmem:[%s4048_s0 + $0xec] sm:$0x3] }
  0xf6   :  { %v1056_v2 = vmax.f32 %v1054_v50, %v1055_v58  ;;  %v1111_v3 = vrot.slane %v1110_v59, 1  ;;  %v1066_v4 = vmax.f32 %v1064_v56, %v1065_v60  ;;  %v1121_v5 = vrot.slane %v1120_v1, 4 }
  0xf7   :  { %v2225_v7 = vsel %vm2058_vm1, %v1049_v62, -inf  ;;  %v1061_v8 = vmax.f32 %v1059_v54, %v1060_v63  ;;  %v1116_v9 = vrot.slane %v1115_v0, 2  ;;  %v1071_v10 = vsel %vm265_vm0, %v124_v61, -inf }
  0xf8   :  { %v2226_v12 = vmax.f32 %v2224_v57, %v2225_v7  ;;  %v1112_v13 = vmax.f32 %v1110_v59, %v1111_v3  ;;  %v2227_v14 = vsel %vm2058_vm1, %v1056_v2, -inf  ;;  %v1067_v15 = vrot.slane %v1066_v4, 2 }
  0xf9   :  { %v1062_v16 = vrot.slane %v1061_v8, 1  ;;  %v1117_v17 = vmax.f32 %v1115_v0, %v1116_v9  ;;  %v1122_v18 = vmax.f32 %v1120_v1, %v1121_v5  ;;  %v1072_v19 = vrot.slane %v1071_v10, 4  ;;  %v135_v0 = vld [vmem:[%s4048_s0 + $0xfc] sm:$0x3]  ;;  %v128_v9 = vld [vmem:[%s4048_s0 + $0xee] sm:$0x3] }
  0xfa   :  { %2499 = vst.msk [vmem:[#allocation2 + $0x37] sm:$0x1] %vm2443_vm2, %v2226_v12  ;;  %v2228_v20 = vsel %vm2058_vm1, %v1112_v13, -inf  ;;  %v1068_v21 = vmax.f32 %v1066_v4, %v1067_v15  ;;  %v1127_v22 = vsel %vm265_vm0, %v132_v6, -inf  ;;  %v1078_v24 = vsel %vm265_vm0, %v125_v11, -inf }
  0xfb   :  { %v2229_v25 = vmax.f32 %v2227_v14, %v2228_v20  ;;  %v1063_v26 = vmax.f32 %v1061_v8, %v1062_v16  ;;  %v1118_v27 = vrot.slane %v1117_v17, 1  ;;  %v1123_v28 = vrot.slane %v1122_v18, 2 }
  0xfc   :  { %v1069_v29 = vrot.slane %v1068_v21, 1  ;;  %v1073_v30 = vmax.f32 %v1071_v10, %v1072_v19  ;;  %v1128_v31 = vrot.slane %v1127_v22, 4  ;;  %v1079_v32 = vrot.slane %v1078_v24, 4 }
  0xfd   :  { %2500 = vst.msk [vmem:[#allocation2 + $0x38] sm:$0x1] %vm2443_vm2, %v2229_v25  ;;  %v1119_v34 = vmax.f32 %v1117_v17, %v1118_v27  ;;  %v2230_v35 = vsel %vm2058_vm1, %v1063_v26, -inf  ;;  %v1124_v36 = vmax.f32 %v1122_v18, %v1123_v28  ;;  %v1134_v37 = vsel %vm265_vm0, %v133_v23, -inf  ;;  %v136_v18 = vld [vmem:[%s4048_s0 + $0xfe] sm:$0x3] }
  0xfe   :  { %v1070_v38 = vmax.f32 %v1068_v21, %v1069_v29  ;;  %v1074_v39 = vrot.slane %v1073_v30, 2  ;;  %v1129_v40 = vmax.f32 %v1127_v22, %v1128_v31  ;;  %v1080_v41 = vmax.f32 %v1078_v24, %v1079_v32  ;;  %v137_v23 = vld [vmem:[%s4048_s0 + $0x100] sm:$0x3] }
  0xff   :  { %v2231_v43 = vsel %vm2058_vm1, %v1119_v34, -inf  ;;  %v1125_v44 = vrot.slane %v1124_v36, 1  ;;  %v1135_v45 = vrot.slane %v1134_v37, 4  ;;  %v1085_v46 = vsel %vm265_vm0, %v126_v33, -inf }
 0x100   :  { %v2232_v48 = vmax.f32 %v2230_v35, %v2231_v43  ;;  %v2233_v49 = vsel %vm2058_vm1, %v1070_v38, -inf  ;;  %v1075_v50 = vmax.f32 %v1073_v30, %v1074_v39  ;;  %v1130_v51 = vrot.slane %v1129_v40, 2  ;;  %v145_v35 = vld [vmem:[%s4048_s0 + $0x110] sm:$0x3] }
 0x101   :  { %v1126_v52 = vmax.f32 %v1124_v36, %v1125_v44  ;;  %v1081_v53 = vrot.slane %v1080_v41, 2  ;;  %v1136_v54 = vmax.f32 %v1134_v37, %v1135_v45  ;;  %v1086_v55 = vrot.slane %v1085_v46, 4  ;;  %v138_v45 = vld [vmem:[%s4048_s0 + $0x102] sm:$0x3] }
 0x102   :  { %2501 = vst.msk [vmem:[#allocation2 + $0x39] sm:$0x1] %vm2443_vm2, %v2232_v48  ;;  %v1076_v56 = vrot.slane %v1075_v50, 1  ;;  %v1131_v57 = vmax.f32 %v1129_v40, %v1130_v51  ;;  %v1141_v58 = vsel %vm265_vm0, %v134_v42, -inf  ;;  %v1092_v59 = vsel %vm265_vm0, %v127_v47, -inf }
 0x103   :  { %v2234_v60 = vsel %vm2058_vm1, %v1126_v52, -inf  ;;  %v1082_v61 = vmax.f32 %v1080_v41, %v1081_v53  ;;  %v1137_v62 = vrot.slane %v1136_v54, 2  ;;  %v1087_v63 = vmax.f32 %v1085_v46, %v1086_v55 }
 0x104   :  { %v2235_v1 = vmax.f32 %v2233_v49, %v2234_v60  ;;  %v1077_v2 = vmax.f32 %v1075_v50, %v1076_v56  ;;  %v1132_v3 = vrot.slane %v1131_v57, 1  ;;  %v1142_v4 = vrot.slane %v1141_v58, 4 }
 0x105   :  { %v1083_v5 = vrot.slane %v1082_v61, 1  ;;  %v1138_v6 = vmax.f32 %v1136_v54, %v1137_v62  ;;  %v1088_v7 = vrot.slane %v1087_v63, 2  ;;  %v1093_v8 = vrot.slane %v1092_v59, 4 }
 0x106   :  { %2502 = vst.msk [vmem:[#allocation2 + $0x3a] sm:$0x1] %vm2443_vm2, %v2235_v1  ;;  %v1133_v10 = vmax.f32 %v1131_v57, %v1132_v3  ;;  %v2236_v11 = vsel %vm2058_vm1, %v1077_v2, -inf  ;;  %v1143_v12 = vmax.f32 %v1141_v58, %v1142_v4  ;;  %v1148_v13 = vsel %vm265_vm0, %v135_v0, -inf  ;;  %v146_v57 = vld [vmem:[%s4048_s0 + $0x112] sm:$0x3] }
 0x107   :  { %v1084_v14 = vmax.f32 %v1082_v61, %v1083_v5  ;;  %v1139_v15 = vrot.slane %v1138_v6, 1  ;;  %v1089_v16 = vmax.f32 %v1087_v63, %v1088_v7  ;;  %v1094_v17 = vmax.f32 %v1092_v59, %v1093_v8  ;;  %v139_v7 = vld [vmem:[%s4048_s0 + $0x104] sm:$0x3] }
 0x108   :  { %v2237_v19 = vsel %vm2058_vm1, %v1133_v10, -inf  ;;  %v1144_v20 = vrot.slane %v1143_v12, 2  ;;  %v1149_v21 = vrot.slane %v1148_v13, 4  ;;  %v1099_v22 = vsel %vm265_vm0, %v128_v9, -inf }
 0x109   :  { %v2238_v24 = vmax.f32 %v2236_v11, %v2237_v19  ;;  %v1140_v25 = vmax.f32 %v1138_v6, %v1139_v15  ;;  %v2239_v26 = vsel %vm2058_vm1, %v1084_v14, -inf  ;;  %v1090_v27 = vrot.slane %v1089_v16, 1 }
 0x10a   :  { %v1145_v28 = vmax.f32 %v1143_v12, %v1144_v20  ;;  %v1095_v29 = vrot.slane %v1094_v17, 2  ;;  %v1150_v30 = vmax.f32 %v1148_v13, %v1149_v21  ;;  %v1100_v31 = vrot.slane %v1099_v22, 4 }
 0x10b   :  { %2503 = vst.msk [vmem:[#allocation2 + $0x3b] sm:$0x1] %vm2443_vm2, %v2238_v24  ;;  %v2240_v32 = vsel %vm2058_vm1, %v1140_v25, -inf  ;;  %v1091_v33 = vmax.f32 %v1089_v16, %v1090_v27  ;;  %v1155_v34 = vsel %vm265_vm0, %v136_v18, -inf  ;;  %v1162_v36 = vsel %vm265_vm0, %v137_v23, -inf }
 0x10c   :  { %v2241_v37 = vmax.f32 %v2239_v26, %v2240_v32  ;;  %v1146_v38 = vrot.slane %v1145_v28, 1  ;;  %v1096_v39 = vmax.f32 %v1094_v17, %v1095_v29  ;;  %v1151_v40 = vrot.slane %v1150_v30, 2  ;;  %v147_v16 = vld [vmem:[%s4048_s0 + $0x114] sm:$0x3]  ;;  %v140_v25 = vld [vmem:[%s4048_s0 + $0x106] sm:$0x3] }
 0x10d   :  { %v2242_v41 = vsel %vm2058_vm1, %v1091_v33, -inf  ;;  %v1101_v42 = vmax.f32 %v1099_v22, %v1100_v31  ;;  %v1156_v43 = vrot.slane %v1155_v34, 4  ;;  %v1163_v44 = vrot.slane %v1162_v36, 4 }
 0x10e   :  { %2504 = vst.msk [vmem:[#allocation2 + $0x3c] sm:$0x1] %vm2443_vm2, %v2241_v37  ;;  %v1147_v46 = vmax.f32 %v1145_v28, %v1146_v38  ;;  %v1097_v47 = vrot.slane %v1096_v39, 1  ;;  %v1152_v48 = vmax.f32 %v1150_v30, %v1151_v40  ;;  %v1218_v49 = vsel %vm265_vm0, %v145_v35, -inf  ;;  %v148_v30 = vld [vmem:[%s4048_s0 + $0x116] sm:$0x3] }
 0x10f   :  { %v1102_v50 = vrot.slane %v1101_v42, 2  ;;  %v1157_v51 = vmax.f32 %v1155_v34, %v1156_v43  ;;  %v1164_v52 = vmax.f32 %v1162_v36, %v1163_v44  ;;  %v1219_v53 = vrot.slane %v1218_v49, 4  ;;  %v141_v43 = vld [vmem:[%s4048_s0 + $0x108] sm:$0x3] }
 0x110   :  { %v2243_v54 = vsel %vm2058_vm1, %v1147_v46, -inf  ;;  %v1098_v55 = vmax.f32 %v1096_v39, %v1097_v47  ;;  %v1153_v56 = vrot.slane %v1152_v48, 1  ;;  %v1169_v58 = vsel %vm265_vm0, %v138_v45, -inf }
 0x111   :  { %v2244_v59 = vmax.f32 %v2242_v41, %v2243_v54  ;;  %v1103_v60 = vmax.f32 %v1101_v42, %v1102_v50  ;;  %v1158_v61 = vrot.slane %v1157_v51, 2  ;;  %v1165_v62 = vrot.slane %v1164_v52, 2 }
 0x112   :  { %v1154_v63 = vmax.f32 %v1152_v48, %v1153_v56  ;;  %v2245_v0 = vsel %vm2058_vm1, %v1098_v55, -inf  ;;  %v1220_v1 = vmax.f32 %v1218_v49, %v1219_v53  ;;  %v1170_v2 = vrot.slane %v1169_v58, 4  ;;  %v142_v53 = vld [vmem:[%s4048_s0 + $0x10a] sm:$0x3] }
 0x113   :  { %2505 = vst.msk [vmem:[#allocation2 + $0x3d] sm:$0x1] %vm2443_vm2, %v2244_v59  ;;  %v1104_v3 = vrot.slane %v1103_v60, 1  ;;  %v1159_v4 = vmax.f32 %v1157_v51, %v1158_v61  ;;  %v1166_v5 = vmax.f32 %v1164_v52, %v1165_v62  ;;  %v1225_v6 = vsel %vm265_vm0, %v146_v57, -inf  ;;  %v149_v52 = vld [vmem:[%s4048_s0 + $0x118] sm:$0x3] }
 0x114   :  { %v2246_v8 = vsel %vm2058_vm1, %v1154_v63, -inf  ;;  %v1221_v9 = vrot.slane %v1220_v1, 2  ;;  %v1171_v10 = vmax.f32 %v1169_v58, %v1170_v2  ;;  %v1226_v11 = vrot.slane %v1225_v6, 4 }
 0x115   :  { %v2247_v12 = vmax.f32 %v2245_v0, %v2246_v8  ;;  %v1105_v13 = vmax.f32 %v1103_v60, %v1104_v3  ;;  %v1160_v14 = vrot.slane %v1159_v4, 1  ;;  %v1167_v15 = vrot.slane %v1166_v5, 1 }
 0x116   :  { %v1222_v17 = vmax.f32 %v1220_v1, %v1221_v9  ;;  %v1172_v18 = vrot.slane %v1171_v10, 2  ;;  %v1227_v19 = vmax.f32 %v1225_v6, %v1226_v11  ;;  %v1176_v20 = vsel %vm265_vm0, %v139_v7, -inf  ;;  %v150_v1 = vld [vmem:[%s4048_s0 + $0x11a] sm:$0x3]  ;;  %v143_v11 = vld [vmem:[%s4048_s0 + $0x10c] sm:$0x3] }
 0x117   :  { %2506 = vst.msk [vmem:[#allocation2 + $0x3e] sm:$0x1] %vm2443_vm2, %v2247_v12  ;;  %v1161_v21 = vmax.f32 %v1159_v4, %v1160_v14  ;;  %v2248_v22 = vsel %vm2058_vm1, %v1105_v13, -inf  ;;  %v1168_v23 = vmax.f32 %v1166_v5, %v1167_v15  ;;  %v1177_v24 = vrot.slane %v1176_v20, 4 }
 0x118   :  { %v1223_v26 = vrot.slane %v1222_v17, 1  ;;  %v1173_v27 = vmax.f32 %v1171_v10, %v1172_v18  ;;  %v1228_v28 = vrot.slane %v1227_v19, 2  ;;  %v1232_v29 = vsel %vm265_vm0, %v147_v16, -inf }
 0x119   :  { %v2249_v31 = vsel %vm2058_vm1, %v1161_v21, -inf  ;;  %v2251_v32 = vsel %vm2058_vm1, %v1168_v23, -inf  ;;  %v1178_v33 = vmax.f32 %v1176_v20, %v1177_v24  ;;  %v1233_v34 = vrot.slane %v1232_v29, 4  ;;  %v151_v23 = vld [vmem:[%s4048_s0 + $0x11c] sm:$0x3] }
 0x11a   :  { %v2250_v35 = vmax.f32 %v2248_v22, %v2249_v31  ;;  %v1224_v36 = vmax.f32 %v1222_v17, %v1223_v26  ;;  %v1174_v37 = vrot.slane %v1173_v27, 1  ;;  %v1229_v38 = vmax.f32 %v1227_v19, %v1228_v28 }
 0x11b   :  { %v1179_v39 = vrot.slane %v1178_v33, 2  ;;  %v1234_v40 = vmax.f32 %v1232_v29, %v1233_v34  ;;  %v1183_v41 = vsel %vm265_vm0, %v140_v25, -inf  ;;  %v1239_v42 = vsel %vm265_vm0, %v148_v30, -inf }
 0x11c   :  { %2507 = vst.msk [vmem:[#allocation2 + $0x3f] sm:$0x1] %vm2443_vm2, %v2250_v35  ;;  %v2252_v44 = vsel %vm2058_vm1, %v1224_v36, -inf  ;;  %v1175_v45 = vmax.f32 %v1173_v27, %v1174_v37  ;;  %v1230_v46 = vrot.slane %v1229_v38, 1  ;;  %v1184_v47 = vrot.slane %v1183_v41, 4 }
 0x11d   :  { %v2253_v48 = vmax.f32 %v2251_v32, %v2252_v44  ;;  %v1180_v49 = vmax.f32 %v1178_v33, %v1179_v39  ;;  %v1235_v50 = vrot.slane %v1234_v40, 2  ;;  %v1240_v51 = vrot.slane %v1239_v42, 4  ;;  %v144_v37 = vld [vmem:[%s4048_s0 + $0x10e] sm:$0x3] }
 0x11e   :  { %v1231_v54 = vmax.f32 %v1229_v38, %v1230_v46  ;;  %v2254_v55 = vsel %vm2058_vm1, %v1175_v45, -inf  ;;  %v1185_v56 = vmax.f32 %v1183_v41, %v1184_v47  ;;  %v1190_v57 = vsel %vm265_vm0, %v141_v43, -inf  ;;  %v152_v46 = vld [vmem:[%s4048_s0 + $0x11e] sm:$0x3] }
 0x11f   :  { %2508 = vst.msk [vmem:[#allocation2 + $0x40] sm:$0x1] %vm2443_vm2, %v2253_v48  ;;  %v1181_v58 = vrot.slane %v1180_v49, 1  ;;  %v1236_v59 = vmax.f32 %v1234_v40, %v1235_v50  ;;  %v1241_v60 = vmax.f32 %v1239_v42, %v1240_v51  ;;  %v1191_v61 = vrot.slane %v1190_v57, 4 }
 0x120   :  { %v2255_v62 = vsel %vm2058_vm1, %v1231_v54, -inf  ;;  %v1186_v63 = vrot.slane %v1185_v56, 2  ;;  %v1246_v0 = vsel %vm265_vm0, %v149_v52, -inf  ;;  %v1197_v2 = vsel %vm265_vm0, %v142_v53, -inf }
 0x121   :  { %v2256_v3 = vmax.f32 %v2254_v55, %v2255_v62  ;;  %v1182_v4 = vmax.f32 %v1180_v49, %v1181_v58  ;;  %v1237_v5 = vrot.slane %v1236_v59, 1  ;;  %v1242_v6 = vrot.slane %v1241_v60, 2 }
 0x122   :  { %v1187_v7 = vmax.f32 %v1185_v56, %v1186_v63  ;;  %v1192_v8 = vmax.f32 %v1190_v57, %v1191_v61  ;;  %v1247_v9 = vrot.slane %v1246_v0, 4  ;;  %v1198_v10 = vrot.slane %v1197_v2, 4 }
 0x123   :  { %2509 = vst.msk [vmem:[#allocation2 + $0x41] sm:$0x1] %vm2443_vm2, %v2256_v3  ;;  %v1238_v12 = vmax.f32 %v1236_v59, %v1237_v5  ;;  %v2257_v13 = vsel %vm2058_vm1, %v1182_v4, -inf  ;;  %v1243_v14 = vmax.f32 %v1241_v60, %v1242_v6  ;;  %v1253_v15 = vsel %vm265_vm0, %v150_v1, -inf  ;;  %v153_v59 = vld [vmem:[%s4048_s0 + $0x120] sm:$0x3] }
 0x124   :  { %v1188_v16 = vrot.slane %v1187_v7, 1  ;;  %v1193_v17 = vrot.slane %v1192_v8, 2  ;;  %v1248_v18 = vmax.f32 %v1246_v0, %v1247_v9  ;;  %v1199_v19 = vmax.f32 %v1197_v2, %v1198_v10  ;;  %v161_v0 = vld [vmem:[%s4048_s0 + $0x130] sm:$0x3]  ;;  %v154_v9 = vld [vmem:[%s4048_s0 + $0x122] sm:$0x3] }
 0x125   :  { %v2258_v20 = vsel %vm2058_vm1, %v1238_v12, -inf  ;;  %v1244_v21 = vrot.slane %v1243_v14, 1  ;;  %v1254_v22 = vrot.slane %v1253_v15, 4  ;;  %v1204_v24 = vsel %vm265_vm0, %v143_v11, -inf }
 0x126   :  { %v2259_v25 = vmax.f32 %v2257_v13, %v2258_v20  ;;  %v1189_v26 = vmax.f32 %v1187_v7, %v1188_v16  ;;  %v1194_v27 = vmax.f32 %v1192_v8, %v1193_v17  ;;  %v1249_v28 = vrot.slane %v1248_v18, 2 }
 0x127   :  { %v1245_v29 = vmax.f32 %v1243_v14, %v1244_v21  ;;  %v1200_v30 = vrot.slane %v1199_v19, 2  ;;  %v1255_v31 = vmax.f32 %v1253_v15, %v1254_v22  ;;  %v1205_v32 = vrot.slane %v1204_v24, 4 }
 0x128   :  { %2510 = vst.msk [vmem:[#allocation2 + $0x42] sm:$0x1] %vm2443_vm2, %v2259_v25  ;;  %v2260_v33 = vsel %vm2058_vm1, %v1189_v26, -inf  ;;  %v1195_v34 = vrot.slane %v1194_v27, 1  ;;  %v1250_v35 = vmax.f32 %v1248_v18, %v1249_v28  ;;  %v1260_v36 = vsel %vm265_vm0, %v151_v23, -inf }
 0x129   :  { %v2261_v38 = vsel %vm2058_vm1, %v1245_v29, -inf  ;;  %v1201_v39 = vmax.f32 %v1199_v19, %v1200_v30  ;;  %v1256_v40 = vrot.slane %v1255_v31, 2  ;;  %v1206_v41 = vmax.f32 %v1204_v24, %v1205_v32  ;;  %v162_v18 = vld [vmem:[%s4048_s0 + $0x132] sm:$0x3]  ;;  %v155_v19 = vld [vmem:[%s4048_s0 + $0x124] sm:$0x3] }
 0x12a   :  { %v2262_v42 = vmax.f32 %v2260_v33, %v2261_v38  ;;  %v1196_v43 = vmax.f32 %v1194_v27, %v1195_v34  ;;  %v1251_v44 = vrot.slane %v1250_v35, 1  ;;  %v1261_v45 = vrot.slane %v1260_v36, 4 }
 0x12b   :  { %v1202_v47 = vrot.slane %v1201_v39, 1  ;;  %v1257_v48 = vmax.f32 %v1255_v31, %v1256_v40  ;;  %v1207_v49 = vrot.slane %v1206_v41, 2  ;;  %v1211_v50 = vsel %vm265_vm0, %v144_v37, -inf }
 0x12c   :  { %2511 = vst.msk [vmem:[#allocation2 + $0x43] sm:$0x1] %vm2443_vm2, %v2262_v42  ;;  %v1252_v51 = vmax.f32 %v1250_v35, %v1251_v44  ;;  %v2263_v52 = vsel %vm2058_vm1, %v1196_v43, -inf  ;;  %v1262_v53 = vmax.f32 %v1260_v36, %v1261_v45  ;;  %v1212_v54 = vrot.slane %v1211_v50, 4  ;;  %v163_v36 = vld [vmem:[%s4048_s0 + $0x134] sm:$0x3] }
 0x12d   :  { %v1203_v55 = vmax.f32 %v1201_v39, %v1202_v47  ;;  %v1258_v56 = vrot.slane %v1257_v48, 1  ;;  %v1208_v57 = vmax.f32 %v1206_v41, %v1207_v49  ;;  %v1267_v58 = vsel %vm265_vm0, %v152_v46, -inf  ;;  %v156_v49 = vld [vmem:[%s4048_s0 + $0x126] sm:$0x3] }
 0x12e   :  { %v2264_v60 = vsel %vm2058_vm1, %v1252_v51, -inf  ;;  %v1263_v61 = vrot.slane %v1262_v53, 2  ;;  %v1213_v62 = vmax.f32 %v1211_v50, %v1212_v54  ;;  %v1268_v63 = vrot.slane %v1267_v58, 4 }
 0x12f   :  { %v2265_v1 = vmax.f32 %v2263_v52, %v2264_v60  ;;  %v1259_v2 = vmax.f32 %v1257_v48, %v1258_v56  ;;  %v2266_v3 = vsel %vm2058_vm1, %v1203_v55, -inf  ;;  %v1209_v4 = vrot.slane %v1208_v57, 1 }
 0x130   :  { %v1264_v5 = vmax.f32 %v1262_v53, %v1263_v61  ;;  %v1214_v6 = vrot.slane %v1213_v62, 2  ;;  %v1269_v7 = vmax.f32 %v1267_v58, %v1268_v63  ;;  %v1274_v8 = vsel %vm265_vm0, %v153_v59, -inf  ;;  %v164_v58 = vld [vmem:[%s4048_s0 + $0x136] sm:$0x3] }
 0x131   :  { %2512 = vst.msk [vmem:[#allocation2 + $0x44] sm:$0x1] %vm2443_vm2, %v2265_v1  ;;  %v2267_v10 = vsel %vm2058_vm1, %v1259_v2, -inf  ;;  %v1210_v11 = vmax.f32 %v1208_v57, %v1209_v4  ;;  %v1275_v12 = vrot.slane %v1274_v8, 4  ;;  %v1330_v13 = vsel %vm265_vm0, %v161_v0, -inf }
 0x132   :  { %v2268_v14 = vmax.f32 %v2266_v3, %v2267_v10  ;;  %v1265_v15 = vrot.slane %v1264_v5, 1  ;;  %v1215_v16 = vmax.f32 %v1213_v62, %v1214_v6  ;;  %v1270_v17 = vrot.slane %v1269_v7, 2 }
 0x133   :  { %v2269_v20 = vsel %vm2058_vm1, %v1210_v11, -inf  ;;  %v1276_v21 = vmax.f32 %v1274_v8, %v1275_v12  ;;  %v1331_v22 = vrot.slane %v1330_v13, 4  ;;  %v1281_v23 = vsel %vm265_vm0, %v154_v9, -inf  ;;  %v165_v12 = vld [vmem:[%s4048_s0 + $0x138] sm:$0x3] }
 0x134   :  { %2513 = vst.msk [vmem:[#allocation2 + $0x45] sm:$0x1] %vm2443_vm2, %v2268_v14  ;;  %v1266_v24 = vmax.f32 %v1264_v5, %v1265_v15  ;;  %v1216_v25 = vrot.slane %v1215_v16, 1  ;;  %v1271_v26 = vmax.f32 %v1269_v7, %v1270_v17  ;;  %v1282_v27 = vrot.slane %v1281_v23, 4  ;;  %v157_v7 = vld [vmem:[%s4048_s0 + $0x128] sm:$0x3] }
 0x135   :  { %v1277_v28 = vrot.slane %v1276_v21, 2  ;;  %v1332_v29 = vmax.f32 %v1330_v13, %v1331_v22  ;;  %v1337_v30 = vsel %vm265_vm0, %v162_v18, -inf  ;;  %v1288_v31 = vsel %vm265_vm0, %v155_v19, -inf }
 0x136   :  { %v2270_v32 = vsel %vm2058_vm1, %v1266_v24, -inf  ;;  %v1217_v33 = vmax.f32 %v1215_v16, %v1216_v25  ;;  %v1272_v34 = vrot.slane %v1271_v26, 1  ;;  %v1283_v35 = vmax.f32 %v1281_v23, %v1282_v27  ;;  %v158_v25 = vld [vmem:[%s4048_s0 + $0x12a] sm:$0x3] }
 0x137   :  { %v2271_v37 = vmax.f32 %v2269_v20, %v2270_v32  ;;  %v1278_v38 = vmax.f32 %v1276_v21, %v1277_v28  ;;  %v1333_v39 = vrot.slane %v1332_v29, 2  ;;  %v1338_v40 = vrot.slane %v1337_v30, 4 }
 0x138   :  { %v1273_v41 = vmax.f32 %v1271_v26, %v1272_v34  ;;  %v2272_v42 = vsel %vm2058_vm1, %v1217_v33, -inf  ;;  %v1284_v43 = vrot.slane %v1283_v35, 2  ;;  %v1289_v44 = vrot.slane %v1288_v31, 4 }
 0x139   :  { %2514 = vst.msk [vmem:[#allocation2 + $0x46] sm:$0x1] %vm2443_vm2, %v2271_v37  ;;  %v1279_v45 = vrot.slane %v1278_v38, 1  ;;  %v1334_v46 = vmax.f32 %v1332_v29, %v1333_v39  ;;  %v1339_v47 = vmax.f32 %v1337_v30, %v1338_v40  ;;  %v1344_v48 = vsel %vm265_vm0, %v163_v36, -inf  ;;  %v166_v30 = vld [vmem:[%s4048_s0 + $0x13a] sm:$0x3] }
 0x13a   :  { %v2273_v50 = vsel %vm2058_vm1, %v1273_v41, -inf  ;;  %v1285_v51 = vmax.f32 %v1283_v35, %v1284_v43  ;;  %v1290_v52 = vmax.f32 %v1288_v31, %v1289_v44  ;;  %v1345_v53 = vrot.slane %v1344_v48, 4  ;;  %v159_v39 = vld [vmem:[%s4048_s0 + $0x12c] sm:$0x3] }
 0x13b   :  { %v2274_v54 = vmax.f32 %v2272_v42, %v2273_v50  ;;  %v1280_v55 = vmax.f32 %v1278_v38, %v1279_v45  ;;  %v1335_v56 = vrot.slane %v1334_v46, 1  ;;  %v1340_v57 = vrot.slane %v1339_v47, 2 }
 0x13c   :  { %v1286_v59 = vrot.slane %v1285_v51, 1  ;;  %v1291_v60 = vrot.slane %v1290_v52, 2  ;;  %v1346_v61 = vmax.f32 %v1344_v48, %v1345_v53  ;;  %v1295_v62 = vsel %vm265_vm0, %v156_v49, -inf  ;;  %v167_v48 = vld [vmem:[%s4048_s0 + $0x13c] sm:$0x3] }
 0x13d   :  { %2515 = vst.msk [vmem:[#allocation2 + $0x47] sm:$0x1] %vm2443_vm2, %v2274_v54  ;;  %v1336_v63 = vmax.f32 %v1334_v46, %v1335_v56  ;;  %v2275_v0 = vsel %vm2058_vm1, %v1280_v55, -inf  ;;  %v1341_v1 = vmax.f32 %v1339_v47, %v1340_v57  ;;  %v1296_v2 = vrot.slane %v1295_v62, 4 }
 0x13e   :  { %v1287_v3 = vmax.f32 %v1285_v51, %v1286_v59  ;;  %v1292_v4 = vmax.f32 %v1290_v52, %v1291_v60  ;;  %v1347_v5 = vrot.slane %v1346_v61, 2  ;;  %v1351_v6 = vsel %vm265_vm0, %v164_v58, -inf }
 0x13f   :  { %v2276_v8 = vsel %vm2058_vm1, %v1336_v63, -inf  ;;  %v1342_v9 = vrot.slane %v1341_v1, 1  ;;  %v1297_v10 = vmax.f32 %v1295_v62, %v1296_v2  ;;  %v1352_v11 = vrot.slane %v1351_v6, 4 }
 0x140   :  { %v2277_v13 = vmax.f32 %v2275_v0, %v2276_v8  ;;  %v2278_v14 = vsel %vm2058_vm1, %v1287_v3, -inf  ;;  %v1293_v15 = vrot.slane %v1292_v4, 1  ;;  %v1348_v16 = vmax.f32 %v1346_v61, %v1347_v5  ;;  %v160_v61 = vld [vmem:[%s4048_s0 + $0x12e] sm:$0x3] }
 0x141   :  { %v1343_v17 = vmax.f32 %v1341_v1, %v1342_v9  ;;  %v1298_v18 = vrot.slane %v1297_v10, 2  ;;  %v1353_v19 = vmax.f32 %v1351_v6, %v1352_v11  ;;  %v1302_v20 = vsel %vm265_vm0, %v157_v7, -inf  ;;  %v168_v6 = vld [vmem:[%s4048_s0 + $0x13e] sm:$0x3] }
 0x142   :  { %2516 = vst.msk [vmem:[#allocation2 + $0x48] sm:$0x1] %vm2443_vm2, %v2277_v13  ;;  %v1294_v21 = vmax.f32 %v1292_v4, %v1293_v15  ;;  %v1349_v22 = vrot.slane %v1348_v16, 1  ;;  %v1303_v23 = vrot.slane %v1302_v20, 4  ;;  %v1358_v24 = vsel %vm265_vm0, %v165_v12, -inf }
 0x143   :  { %v2279_v26 = vsel %vm2058_vm1, %v1343_v17, -inf  ;;  %v1299_v27 = vmax.f32 %v1297_v10, %v1298_v18  ;;  %v1354_v28 = vrot.slane %v1353_v19, 2  ;;  %v1359_v29 = vrot.slane %v1358_v24, 4  ;;  %v169_v15 = vld [vmem:[%s4048_s0 + $0x140] sm:$0x3] }
 0x144   :  { %v2280_v31 = vmax.f32 %v2278_v14, %v2279_v26  ;;  %v1350_v32 = vmax.f32 %v1348_v16, %v1349_v22  ;;  %v2281_v33 = vsel %vm2058_vm1, %v1294_v21, -inf  ;;  %v1304_v34 = vmax.f32 %v1302_v20, %v1303_v23 }
 0x145   :  { %v1300_v35 = vrot.slane %v1299_v27, 1  ;;  %v1355_v36 = vmax.f32 %v1353_v19, %v1354_v28  ;;  %v1360_v37 = vmax.f32 %v1358_v24, %v1359_v29  ;;  %v1309_v38 = vsel %vm265_vm0, %v158_v25, -inf  ;;  %v177_v24 = vld [vmem:[%s4048_s0 + $0x150] sm:$0x3] }
 0x146   :  { %2517 = vst.msk [vmem:[#allocation2 + $0x49] sm:$0x1] %vm2443_vm2, %v2280_v31  ;;  %v2282_v40 = vsel %vm2058_vm1, %v1350_v32, -inf  ;;  %v1305_v41 = vrot.slane %v1304_v34, 2  ;;  %v1310_v42 = vrot.slane %v1309_v38, 4  ;;  %v1365_v43 = vsel %vm265_vm0, %v166_v30, -inf }
 0x147   :  { %v2283_v44 = vmax.f32 %v2281_v33, %v2282_v40  ;;  %v1301_v45 = vmax.f32 %v1299_v27, %v1300_v35  ;;  %v1356_v46 = vrot.slane %v1355_v36, 1  ;;  %v1361_v47 = vrot.slane %v1360_v37, 2 }
 0x148   :  { %v1306_v49 = vmax.f32 %v1304_v34, %v1305_v41  ;;  %v1311_v50 = vmax.f32 %v1309_v38, %v1310_v42  ;;  %v1366_v51 = vrot.slane %v1365_v43, 4  ;;  %v1316_v52 = vsel %vm265_vm0, %v159_v39, -inf  ;;  %v178_v42 = vld [vmem:[%s4048_s0 + $0x152] sm:$0x3] }
 0x149   :  { %2518 = vst.msk [vmem:[#allocation2 + $0x4a] sm:$0x1] %vm2443_vm2, %v2283_v44  ;;  %v1357_v53 = vmax.f32 %v1355_v36, %v1356_v46  ;;  %v2284_v54 = vsel %vm2058_vm1, %v1301_v45, -inf  ;;  %v1362_v55 = vmax.f32 %v1360_v37, %v1361_v47  ;;  %v1317_v56 = vrot.slane %v1316_v52, 4  ;;  %v170_v37 = vld [vmem:[%s4048_s0 + $0x142] sm:$0x3] }
 0x14a   :  { %v1307_v57 = vrot.slane %v1306_v49, 1  ;;  %v1312_v58 = vrot.slane %v1311_v50, 2  ;;  %v1367_v59 = vmax.f32 %v1365_v43, %v1366_v51  ;;  %v1372_v60 = vsel %vm265_vm0, %v167_v48, -inf  ;;  %v171_v51 = vld [vmem:[%s4048_s0 + $0x144] sm:$0x3] }
 0x14b   :  { %v2285_v62 = vsel %vm2058_vm1, %v1357_v53, -inf  ;;  %v1363_v63 = vrot.slane %v1362_v55, 1  ;;  %v1318_v0 = vmax.f32 %v1316_v52, %v1317_v56  ;;  %v1373_v1 = vrot.slane %v1372_v60, 4 }
 0x14c   :  { %v2286_v2 = vmax.f32 %v2284_v54, %v2285_v62  ;;  %v1308_v3 = vmax.f32 %v1306_v49, %v1307_v57  ;;  %v1313_v4 = vmax.f32 %v1311_v50, %v1312_v58  ;;  %v1368_v5 = vrot.slane %v1367_v59, 2 }
 0x14d   :  { %v1364_v7 = vmax.f32 %v1362_v55, %v1363_v63  ;;  %v1319_v8 = vrot.slane %v1318_v0, 2  ;;  %v1374_v9 = vmax.f32 %v1372_v60, %v1373_v1  ;;  %v1323_v10 = vsel %vm265_vm0, %v160_v61, -inf  ;;  %v179_v60 = vld [vmem:[%s4048_s0 + $0x154] sm:$0x3] }
 0x14e   :  { %2519 = vst.msk [vmem:[#allocation2 + $0x4b] sm:$0x1] %vm2443_vm2, %v2286_v2  ;;  %v2287_v11 = vsel %vm2058_vm1, %v1308_v3, -inf  ;;  %v1314_v12 = vrot.slane %v1313_v4, 1  ;;  %v1369_v13 = vmax.f32 %v1367_v59, %v1368_v5  ;;  %v1324_v14 = vrot.slane %v1323_v10, 4 }
 0x14f   :  { %v2288_v16 = vsel %vm2058_vm1, %v1364_v7, -inf  ;;  %v1320_v17 = vmax.f32 %v1318_v0, %v1319_v8  ;;  %v1375_v18 = vrot.slane %v1374_v9, 2  ;;  %v1379_v19 = vsel %vm265_vm0, %v168_v6, -inf  ;;  %v172_v5 = vld [vmem:[%s4048_s0 + $0x146] sm:$0x3] }
 0x150   :  { %v2289_v20 = vmax.f32 %v2287_v11, %v2288_v16  ;;  %v1315_v21 = vmax.f32 %v1313_v4, %v1314_v12  ;;  %v1370_v22 = vrot.slane %v1369_v13, 1  ;;  %v1325_v23 = vmax.f32 %v1323_v10, %v1324_v14  ;;  %v180_v14 = vld [vmem:[%s4048_s0 + $0x156] sm:$0x3] }
 0x151   :  { %v1321_v25 = vrot.slane %v1320_v17, 1  ;;  %v1376_v26 = vmax.f32 %v1374_v9, %v1375_v18  ;;  %v1380_v27 = vrot.slane %v1379_v19, 4  ;;  %v1386_v28 = vsel %vm265_vm0, %v169_v15, -inf }
 0x152   :  { %2520 = vst.msk [vmem:[#allocation2 + $0x4c] sm:$0x1] %vm2443_vm2, %v2289_v20  ;;  %v1371_v29 = vmax.f32 %v1369_v13, %v1370_v22  ;;  %v2290_v30 = vsel %vm2058_vm1, %v1315_v21, -inf  ;;  %v1326_v31 = vrot.slane %v1325_v23, 2  ;;  %v1387_v32 = vrot.slane %v1386_v28, 4 }
 0x153   :  { %v1322_v33 = vmax.f32 %v1320_v17, %v1321_v25  ;;  %v1377_v34 = vrot.slane %v1376_v26, 1  ;;  %v1381_v35 = vmax.f32 %v1379_v19, %v1380_v27  ;;  %v1442_v36 = vsel %vm265_vm0, %v177_v24, -inf  ;;  %v173_v19 = vld [vmem:[%s4048_s0 + $0x148] sm:$0x3] }
 0x154   :  { %v2291_v38 = vsel %vm2058_vm1, %v1371_v29, -inf  ;;  %v1327_v39 = vmax.f32 %v1325_v23, %v1326_v31  ;;  %v1388_v40 = vmax.f32 %v1386_v28, %v1387_v32  ;;  %v1443_v41 = vrot.slane %v1442_v36, 4  ;;  %v181_v31 = vld [vmem:[%s4048_s0 + $0x158] sm:$0x3] }
 0x155   :  { %v2292_v43 = vmax.f32 %v2290_v30, %v2291_v38  ;;  %v1378_v44 = vmax.f32 %v1376_v26, %v1377_v34  ;;  %v2293_v45 = vsel %vm2058_vm1, %v1322_v33, -inf  ;;  %v1382_v46 = vrot.slane %v1381_v35, 2 }
 0x156   :  { %v1328_v47 = vrot.slane %v1327_v39, 1  ;;  %v1389_v48 = vrot.slane %v1388_v40, 2  ;;  %v1444_v49 = vmax.f32 %v1442_v36, %v1443_v41  ;;  %v1393_v50 = vsel %vm265_vm0, %v170_v37, -inf  ;;  %v174_v41 = vld [vmem:[%s4048_s0 + $0x14a] sm:$0x3] }
 0x157   :  { %2521 = vst.msk [vmem:[#allocation2 + $0x4d] sm:$0x1] %vm2443_vm2, %v2292_v43  ;;  %v2294_v52 = vsel %vm2058_vm1, %v1378_v44, -inf  ;;  %v1383_v53 = vmax.f32 %v1381_v35, %v1382_v46  ;;  %v1394_v54 = vrot.slane %v1393_v50, 4  ;;  %v1449_v55 = vsel %vm265_vm0, %v178_v42, -inf }
 0x158   :  { %v2295_v56 = vmax.f32 %v2293_v45, %v2294_v52  ;;  %v1329_v57 = vmax.f32 %v1327_v39, %v1328_v47  ;;  %v1390_v58 = vmax.f32 %v1388_v40, %v1389_v48  ;;  %v1445_v59 = vrot.slane %v1444_v49, 2 }
 0x159   :  { %v1384_v61 = vrot.slane %v1383_v53, 1  ;;  %v1395_v62 = vmax.f32 %v1393_v50, %v1394_v54  ;;  %v1450_v63 = vrot.slane %v1449_v55, 4  ;;  %v1400_v0 = vsel %vm265_vm0, %v171_v51, -inf  ;;  %v182_v50 = vld [vmem:[%s4048_s0 + $0x15a] sm:$0x3] }
 0x15a   :  { %2522 = vst.msk [vmem:[#allocation2 + $0x4e] sm:$0x1] %vm2443_vm2, %v2295_v56  ;;  %v2296_v1 = vsel %vm2058_vm1, %v1329_v57, -inf  ;;  %v1391_v2 = vrot.slane %v1390_v58, 1  ;;  %v1446_v3 = vmax.f32 %v1444_v49, %v1445_v59  ;;  %v1401_v4 = vrot.slane %v1400_v0, 4 }
 0x15b   :  { %v1385_v6 = vmax.f32 %v1383_v53, %v1384_v61  ;;  %v1396_v7 = vrot.slane %v1395_v62, 2  ;;  %v1451_v8 = vmax.f32 %v1449_v55, %v1450_v63  ;;  %v1456_v9 = vsel %vm265_vm0, %v179_v60, -inf  ;;  %v175_v55 = vld [vmem:[%s4048_s0 + $0x14c] sm:$0x3] }
 0x15c   :  { %v1392_v10 = vmax.f32 %v1390_v58, %v1391_v2  ;;  %v1447_v11 = vrot.slane %v1446_v3, 1  ;;  %v1402_v12 = vmax.f32 %v1400_v0, %v1401_v4  ;;  %v1457_v13 = vrot.slane %v1456_v9, 4 }
 0x15d   :  { %v2297_v15 = vsel %vm2058_vm1, %v1385_v6, -inf  ;;  %v1397_v16 = vmax.f32 %v1395_v62, %v1396_v7  ;;  %v1452_v17 = vrot.slane %v1451_v8, 2  ;;  %v1407_v18 = vsel %vm265_vm0, %v172_v5, -inf }
 0x15e   :  { %v2298_v20 = vmax.f32 %v2296_v1, %v2297_v15  ;;  %v1448_v21 = vmax.f32 %v1446_v3, %v1447_v11  ;;  %v2299_v22 = vsel %vm2058_vm1, %v1392_v10, -inf  ;;  %v1403_v23 = vrot.slane %v1402_v12, 2 }
 0x15f   :  { %v1398_v24 = vrot.slane %v1397_v16, 1  ;;  %v1453_v25 = vmax.f32 %v1451_v8, %v1452_v17  ;;  %v1458_v26 = vmax.f32 %v1456_v9, %v1457_v13  ;;  %v1408_v27 = vrot.slane %v1407_v18, 4  ;;  %v183_v8 = vld [vmem:[%s4048_s0 + $0x15c] sm:$0x3]  ;;  %v176_v17 = vld [vmem:[%s4048_s0 + $0x14e] sm:$0x3] }
 0x160   :  { %2523 = vst.msk [vmem:[#allocation2 + $0x4f] sm:$0x1] %vm2443_vm2, %v2298_v20  ;;  %v2300_v28 = vsel %vm2058_vm1, %v1448_v21, -inf  ;;  %v1404_v29 = vmax.f32 %v1402_v12, %v1403_v23  ;;  %v1463_v30 = vsel %vm265_vm0, %v180_v14, -inf  ;;  %v1414_v32 = vsel %vm265_vm0, %v173_v19, -inf }
 0x161   :  { %v2301_v33 = vmax.f32 %v2299_v22, %v2300_v28  ;;  %v1399_v34 = vmax.f32 %v1397_v16, %v1398_v24  ;;  %v1454_v35 = vrot.slane %v1453_v25, 1  ;;  %v1459_v36 = vrot.slane %v1458_v26, 2 }
 0x162   :  { %v1405_v37 = vrot.slane %v1404_v29, 1  ;;  %v1409_v38 = vmax.f32 %v1407_v18, %v1408_v27  ;;  %v1464_v39 = vrot.slane %v1463_v30, 4  ;;  %v1415_v40 = vrot.slane %v1414_v32, 4 }
 0x163   :  { %2524 = vst.msk [vmem:[#allocation2 + $0x50] sm:$0x1] %vm2443_vm2, %v2301_v33  ;;  %v1455_v42 = vmax.f32 %v1453_v25, %v1454_v35  ;;  %v2302_v43 = vsel %vm2058_vm1, %v1399_v34, -inf  ;;  %v1460_v44 = vmax.f32 %v1458_v26, %v1459_v36  ;;  %v1470_v45 = vsel %vm265_vm0, %v181_v31, -inf  ;;  %v184_v26 = vld [vmem:[%s4048_s0 + $0x15e] sm:$0x3] }
 0x164   :  { %v1406_v46 = vmax.f32 %v1404_v29, %v1405_v37  ;;  %v1410_v47 = vrot.slane %v1409_v38, 2  ;;  %v1465_v48 = vmax.f32 %v1463_v30, %v1464_v39  ;;  %v1416_v49 = vmax.f32 %v1414_v32, %v1415_v40  ;;  %v185_v31 = vld [vmem:[%s4048_s0 + $0x160] sm:$0x3] }
 0x165   :  { %v2303_v51 = vsel %vm2058_vm1, %v1455_v42, -inf  ;;  %v1461_v52 = vrot.slane %v1460_v44, 1  ;;  %v1471_v53 = vrot.slane %v1470_v45, 4  ;;  %v1421_v54 = vsel %vm265_vm0, %v174_v41, -inf }
 0x166   :  { %v2304_v56 = vmax.f32 %v2302_v43, %v2303_v51  ;;  %v2305_v57 = vsel %vm2058_vm1, %v1406_v46, -inf  ;;  %v1411_v58 = vmax.f32 %v1409_v38, %v1410_v47  ;;  %v1466_v59 = vrot.slane %v1465_v48, 2  ;;  %v193_v43 = vld [vmem:[%s4048_s0 + $0x170] sm:$0x3] }
 0x167   :  { %v1462_v60 = vmax.f32 %v1460_v44, %v1461_v52  ;;  %v1417_v61 = vrot.slane %v1416_v49, 2  ;;  %v1472_v62 = vmax.f32 %v1470_v45, %v1471_v53  ;;  %v1422_v63 = vrot.slane %v1421_v54, 4  ;;  %v186_v53 = vld [vmem:[%s4048_s0 + $0x162] sm:$0x3] }
 0x168   :  { %2525 = vst.msk [vmem:[#allocation2 + $0x51] sm:$0x1] %vm2443_vm2, %v2304_v56  ;;  %v1412_v0 = vrot.slane %v1411_v58, 1  ;;  %v1467_v1 = vmax.f32 %v1465_v48, %v1466_v59  ;;  %v1477_v2 = vsel %vm265_vm0, %v182_v50, -inf  ;;  %v1428_v3 = vsel %vm265_vm0, %v175_v55, -inf }
 0x169   :  { %v2306_v4 = vsel %vm2058_vm1, %v1462_v60, -inf  ;;  %v1418_v5 = vmax.f32 %v1416_v49, %v1417_v61  ;;  %v1473_v6 = vrot.slane %v1472_v62, 2  ;;  %v1423_v7 = vmax.f32 %v1421_v54, %v1422_v63 }
 0x16a   :  { %v2307_v9 = vmax.f32 %v2305_v57, %v2306_v4  ;;  %v1413_v10 = vmax.f32 %v1411_v58, %v1412_v0  ;;  %v1468_v11 = vrot.slane %v1467_v1, 1  ;;  %v1478_v12 = vrot.slane %v1477_v2, 4 }
 0x16b   :  { %v1419_v13 = vrot.slane %v1418_v5, 1  ;;  %v1474_v14 = vmax.f32 %v1472_v62, %v1473_v6  ;;  %v1424_v15 = vrot.slane %v1423_v7, 2  ;;  %v1429_v16 = vrot.slane %v1428_v3, 4 }
 0x16c   :  { %2526 = vst.msk [vmem:[#allocation2 + $0x52] sm:$0x1] %vm2443_vm2, %v2307_v9  ;;  %v1469_v18 = vmax.f32 %v1467_v1, %v1468_v11  ;;  %v2308_v19 = vsel %vm2058_vm1, %v1413_v10, -inf  ;;  %v1479_v20 = vmax.f32 %v1477_v2, %v1478_v12  ;;  %v1484_v21 = vsel %vm265_vm0, %v183_v8, -inf  ;;  %v194_v1 = vld [vmem:[%s4048_s0 + $0x172] sm:$0x3] }
 0x16d   :  { %v1420_v22 = vmax.f32 %v1418_v5, %v1419_v13  ;;  %v1475_v23 = vrot.slane %v1474_v14, 1  ;;  %v1425_v24 = vmax.f32 %v1423_v7, %v1424_v15  ;;  %v1430_v25 = vmax.f32 %v1428_v3, %v1429_v16  ;;  %v187_v15 = vld [vmem:[%s4048_s0 + $0x164] sm:$0x3] }
 0x16e   :  { %v2309_v27 = vsel %vm2058_vm1, %v1469_v18, -inf  ;;  %v1480_v28 = vrot.slane %v1479_v20, 2  ;;  %v1485_v29 = vrot.slane %v1484_v21, 4  ;;  %v1435_v30 = vsel %vm265_vm0, %v176_v17, -inf }
 0x16f   :  { %v2310_v32 = vmax.f32 %v2308_v19, %v2309_v27  ;;  %v1476_v33 = vmax.f32 %v1474_v14, %v1475_v23  ;;  %v2311_v34 = vsel %vm2058_vm1, %v1420_v22, -inf  ;;  %v1426_v35 = vrot.slane %v1425_v24, 1 }
 0x170   :  { %v1481_v36 = vmax.f32 %v1479_v20, %v1480_v28  ;;  %v1431_v37 = vrot.slane %v1430_v25, 2  ;;  %v1486_v38 = vmax.f32 %v1484_v21, %v1485_v29  ;;  %v1436_v39 = vrot.slane %v1435_v30, 4 }
 0x171   :  { %2527 = vst.msk [vmem:[#allocation2 + $0x53] sm:$0x1] %vm2443_vm2, %v2310_v32  ;;  %v2312_v40 = vsel %vm2058_vm1, %v1476_v33, -inf  ;;  %v1427_v41 = vmax.f32 %v1425_v24, %v1426_v35  ;;  %v1491_v42 = vsel %vm265_vm0, %v184_v26, -inf  ;;  %v1498_v44 = vsel %vm265_vm0, %v185_v31, -inf }
 0x172   :  { %v2313_v45 = vmax.f32 %v2311_v34, %v2312_v40  ;;  %v1482_v46 = vrot.slane %v1481_v36, 1  ;;  %v1432_v47 = vmax.f32 %v1430_v25, %v1431_v37  ;;  %v1487_v48 = vrot.slane %v1486_v38, 2  ;;  %v195_v24 = vld [vmem:[%s4048_s0 + $0x174] sm:$0x3]  ;;  %v188_v33 = vld [vmem:[%s4048_s0 + $0x166] sm:$0x3] }
 0x173   :  { %v2314_v49 = vsel %vm2058_vm1, %v1427_v41, -inf  ;;  %v1437_v50 = vmax.f32 %v1435_v30, %v1436_v39  ;;  %v1492_v51 = vrot.slane %v1491_v42, 4  ;;  %v1499_v52 = vrot.slane %v1498_v44, 4 }
 0x174   :  { %2528 = vst.msk [vmem:[#allocation2 + $0x54] sm:$0x1] %vm2443_vm2, %v2313_v45  ;;  %v1483_v54 = vmax.f32 %v1481_v36, %v1482_v46  ;;  %v1433_v55 = vrot.slane %v1432_v47, 1  ;;  %v1488_v56 = vmax.f32 %v1486_v38, %v1487_v48  ;;  %v1554_v57 = vsel %vm265_vm0, %v193_v43, -inf  ;;  %v196_v38 = vld [vmem:[%s4048_s0 + $0x176] sm:$0x3] }
 0x175   :  { %v1438_v58 = vrot.slane %v1437_v50, 2  ;;  %v1493_v59 = vmax.f32 %v1491_v42, %v1492_v51  ;;  %v1500_v60 = vmax.f32 %v1498_v44, %v1499_v52  ;;  %v1555_v61 = vrot.slane %v1554_v57, 4  ;;  %v189_v51 = vld [vmem:[%s4048_s0 + $0x168] sm:$0x3] }
 0x176   :  { %v2315_v62 = vsel %vm2058_vm1, %v1483_v54, -inf  ;;  %v1434_v63 = vmax.f32 %v1432_v47, %v1433_v55  ;;  %v1489_v0 = vrot.slane %v1488_v56, 1  ;;  %v1505_v2 = vsel %vm265_vm0, %v186_v53, -inf }
 0x177   :  { %v2316_v3 = vmax.f32 %v2314_v49, %v2315_v62  ;;  %v1439_v4 = vmax.f32 %v1437_v50, %v1438_v58  ;;  %v1494_v5 = vrot.slane %v1493_v59, 2  ;;  %v1501_v6 = vrot.slane %v1500_v60, 2 }
 0x178   :  { %v1490_v7 = vmax.f32 %v1488_v56, %v1489_v0  ;;  %v2317_v8 = vsel %vm2058_vm1, %v1434_v63, -inf  ;;  %v1556_v9 = vmax.f32 %v1554_v57, %v1555_v61  ;;  %v1506_v10 = vrot.slane %v1505_v2, 4  ;;  %v190_v61 = vld [vmem:[%s4048_s0 + $0x16a] sm:$0x3] }
 0x179   :  { %2529 = vst.msk [vmem:[#allocation2 + $0x55] sm:$0x1] %vm2443_vm2, %v2316_v3  ;;  %v1440_v11 = vrot.slane %v1439_v4, 1  ;;  %v1495_v12 = vmax.f32 %v1493_v59, %v1494_v5  ;;  %v1502_v13 = vmax.f32 %v1500_v60, %v1501_v6  ;;  %v1561_v14 = vsel %vm265_vm0, %v194_v1, -inf  ;;  %v197_v60 = vld [vmem:[%s4048_s0 + $0x178] sm:$0x3] }
 0x17a   :  { %v2318_v16 = vsel %vm2058_vm1, %v1490_v7, -inf  ;;  %v1557_v17 = vrot.slane %v1556_v9, 2  ;;  %v1507_v18 = vmax.f32 %v1505_v2, %v1506_v10  ;;  %v1562_v19 = vrot.slane %v1561_v14, 4 }
 0x17b   :  { %v2319_v20 = vmax.f32 %v2317_v8, %v2318_v16  ;;  %v1441_v21 = vmax.f32 %v1439_v4, %v1440_v11  ;;  %v1496_v22 = vrot.slane %v1495_v12, 1  ;;  %v1503_v23 = vrot.slane %v1502_v13, 1 }
 0x17c   :  { %v1558_v25 = vmax.f32 %v1556_v9, %v1557_v17  ;;  %v1508_v26 = vrot.slane %v1507_v18, 2  ;;  %v1563_v27 = vmax.f32 %v1561_v14, %v1562_v19  ;;  %v1512_v28 = vsel %vm265_vm0, %v187_v15, -inf  ;;  %v198_v9 = vld [vmem:[%s4048_s0 + $0x17a] sm:$0x3]  ;;  %v191_v19 = vld [vmem:[%s4048_s0 + $0x16c] sm:$0x3] }
 0x17d   :  { %2530 = vst.msk [vmem:[#allocation2 + $0x56] sm:$0x1] %vm2443_vm2, %v2319_v20  ;;  %v1497_v29 = vmax.f32 %v1495_v12, %v1496_v22  ;;  %v2320_v30 = vsel %vm2058_vm1, %v1441_v21, -inf  ;;  %v1504_v31 = vmax.f32 %v1502_v13, %v1503_v23  ;;  %v1513_v32 = vrot.slane %v1512_v28, 4 }
 0x17e   :  { %v1559_v34 = vrot.slane %v1558_v25, 1  ;;  %v1509_v35 = vmax.f32 %v1507_v18, %v1508_v26  ;;  %v1564_v36 = vrot.slane %v1563_v27, 2  ;;  %v1568_v37 = vsel %vm265_vm0, %v195_v24, -inf }
 0x17f   :  { %v2321_v39 = vsel %vm2058_vm1, %v1497_v29, -inf  ;;  %v2323_v40 = vsel %vm2058_vm1, %v1504_v31, -inf  ;;  %v1514_v41 = vmax.f32 %v1512_v28, %v1513_v32  ;;  %v1569_v42 = vrot.slane %v1568_v37, 4  ;;  %v199_v31 = vld [vmem:[%s4048_s0 + $0x17c] sm:$0x3] }
 0x180   :  { %v2322_v43 = vmax.f32 %v2320_v30, %v2321_v39  ;;  %v1560_v44 = vmax.f32 %v1558_v25, %v1559_v34  ;;  %v1510_v45 = vrot.slane %v1509_v35, 1  ;;  %v1565_v46 = vmax.f32 %v1563_v27, %v1564_v36 }
 0x181   :  { %v1515_v47 = vrot.slane %v1514_v41, 2  ;;  %v1570_v48 = vmax.f32 %v1568_v37, %v1569_v42  ;;  %v1519_v49 = vsel %vm265_vm0, %v188_v33, -inf  ;;  %v1575_v50 = vsel %vm265_vm0, %v196_v38, -inf }
 0x182   :  { %2531 = vst.msk [vmem:[#allocation2 + $0x57] sm:$0x1] %vm2443_vm2, %v2322_v43  ;;  %v2324_v52 = vsel %vm2058_vm1, %v1560_v44, -inf  ;;  %v1511_v53 = vmax.f32 %v1509_v35, %v1510_v45  ;;  %v1566_v54 = vrot.slane %v1565_v46, 1  ;;  %v1520_v55 = vrot.slane %v1519_v49, 4 }
 0x183   :  { %v2325_v56 = vmax.f32 %v2323_v40, %v2324_v52  ;;  %v1516_v57 = vmax.f32 %v1514_v41, %v1515_v47  ;;  %v1571_v58 = vrot.slane %v1570_v48, 2  ;;  %v1576_v59 = vrot.slane %v1575_v50, 4  ;;  %v192_v45 = vld [vmem:[%s4048_s0 + $0x16e] sm:$0x3] }
 0x184   :  { %v1567_v62 = vmax.f32 %v1565_v46, %v1566_v54  ;;  %v2326_v63 = vsel %vm2058_vm1, %v1511_v53, -inf  ;;  %v1521_v0 = vmax.f32 %v1519_v49, %v1520_v55  ;;  %v1526_v1 = vsel %vm265_vm0, %v189_v51, -inf  ;;  %v200_v54 = vld [vmem:[%s4048_s0 + $0x17e] sm:$0x3] }
 0x185   :  { %2532 = vst.msk [vmem:[#allocation2 + $0x58] sm:$0x1] %vm2443_vm2, %v2325_v56  ;;  %v1517_v2 = vrot.slane %v1516_v57, 1  ;;  %v1572_v3 = vmax.f32 %v1570_v48, %v1571_v58  ;;  %v1577_v4 = vmax.f32 %v1575_v50, %v1576_v59  ;;  %v1527_v5 = vrot.slane %v1526_v1, 4 }
 0x186   :  { %v2327_v6 = vsel %vm2058_vm1, %v1567_v62, -inf  ;;  %v1522_v7 = vrot.slane %v1521_v0, 2  ;;  %v1582_v8 = vsel %vm265_vm0, %v197_v60, -inf  ;;  %v1533_v10 = vsel %vm265_vm0, %v190_v61, -inf }
 0x187   :  { %v2328_v11 = vmax.f32 %v2326_v63, %v2327_v6  ;;  %v1518_v12 = vmax.f32 %v1516_v57, %v1517_v2  ;;  %v1573_v13 = vrot.slane %v1572_v3, 1  ;;  %v1578_v14 = vrot.slane %v1577_v4, 2 }
 0x188   :  { %v1523_v15 = vmax.f32 %v1521_v0, %v1522_v7  ;;  %v1528_v16 = vmax.f32 %v1526_v1, %v1527_v5  ;;  %v1583_v17 = vrot.slane %v1582_v8, 4  ;;  %v1534_v18 = vrot.slane %v1533_v10, 4 }
 0x189   :  { %2533 = vst.msk [vmem:[#allocation2 + $0x59] sm:$0x1] %vm2443_vm2, %v2328_v11  ;;  %v1574_v20 = vmax.f32 %v1572_v3, %v1573_v13  ;;  %v2329_v21 = vsel %vm2058_vm1, %v1518_v12, -inf  ;;  %v1579_v22 = vmax.f32 %v1577_v4, %v1578_v14  ;;  %v1589_v23 = vsel %vm265_vm0, %v198_v9, -inf  ;;  %v201_v3 = vld [vmem:[%s4048_s0 + $0x180] sm:$0x3] }
 0x18a   :  { %v1524_v24 = vrot.slane %v1523_v15, 1  ;;  %v1529_v25 = vrot.slane %v1528_v16, 2  ;;  %v1584_v26 = vmax.f32 %v1582_v8, %v1583_v17  ;;  %v1535_v27 = vmax.f32 %v1533_v10, %v1534_v18  ;;  %v209_v8 = vld [vmem:[%s4048_s0 + $0x190] sm:$0x3]  ;;  %v202_v17 = vld [vmem:[%s4048_s0 + $0x182] sm:$0x3] }
 0x18b   :  { %v2330_v28 = vsel %vm2058_vm1, %v1574_v20, -inf  ;;  %v1580_v29 = vrot.slane %v1579_v22, 1  ;;  %v1590_v30 = vrot.slane %v1589_v23, 4  ;;  %v1540_v32 = vsel %vm265_vm0, %v191_v19, -inf }
 0x18c   :  { %v2331_v33 = vmax.f32 %v2329_v21, %v2330_v28  ;;  %v1525_v34 = vmax.f32 %v1523_v15, %v1524_v24  ;;  %v1530_v35 = vmax.f32 %v1528_v16, %v1529_v25  ;;  %v1585_v36 = vrot.slane %v1584_v26, 2 }
 0x18d   :  { %v1581_v37 = vmax.f32 %v1579_v22, %v1580_v29  ;;  %v1536_v38 = vrot.slane %v1535_v27, 2  ;;  %v1591_v39 = vmax.f32 %v1589_v23, %v1590_v30  ;;  %v1541_v40 = vrot.slane %v1540_v32, 4 }
 0x18e   :  { %2534 = vst.msk [vmem:[#allocation2 + $0x5a] sm:$0x1] %vm2443_vm2, %v2331_v33  ;;  %v2332_v41 = vsel %vm2058_vm1, %v1525_v34, -inf  ;;  %v1531_v42 = vrot.slane %v1530_v35, 1  ;;  %v1586_v43 = vmax.f32 %v1584_v26, %v1585_v36  ;;  %v1596_v44 = vsel %vm265_vm0, %v199_v31, -inf }
 0x18f   :  { %v2333_v46 = vsel %vm2058_vm1, %v1581_v37, -inf  ;;  %v1537_v47 = vmax.f32 %v1535_v27, %v1536_v38  ;;  %v1592_v48 = vrot.slane %v1591_v39, 2  ;;  %v1542_v49 = vmax.f32 %v1540_v32, %v1541_v40  ;;  %v210_v26 = vld [vmem:[%s4048_s0 + $0x192] sm:$0x3]  ;;  %v203_v27 = vld [vmem:[%s4048_s0 + $0x184] sm:$0x3] }
 0x190   :  { %v2334_v50 = vmax.f32 %v2332_v41, %v2333_v46  ;;  %v1532_v51 = vmax.f32 %v1530_v35, %v1531_v42  ;;  %v1587_v52 = vrot.slane %v1586_v43, 1  ;;  %v1597_v53 = vrot.slane %v1596_v44, 4 }
 0x191   :  { %v1538_v55 = vrot.slane %v1537_v47, 1  ;;  %v1593_v56 = vmax.f32 %v1591_v39, %v1592_v48  ;;  %v1543_v57 = vrot.slane %v1542_v49, 2  ;;  %v1547_v58 = vsel %vm265_vm0, %v192_v45, -inf }
 0x192   :  { %2535 = vst.msk [vmem:[#allocation2 + $0x5b] sm:$0x1] %vm2443_vm2, %v2334_v50  ;;  %v1588_v59 = vmax.f32 %v1586_v43, %v1587_v52  ;;  %v2335_v60 = vsel %vm2058_vm1, %v1532_v51, -inf  ;;  %v1598_v61 = vmax.f32 %v1596_v44, %v1597_v53  ;;  %v1548_v62 = vrot.slane %v1547_v58, 4  ;;  %v211_v44 = vld [vmem:[%s4048_s0 + $0x194] sm:$0x3] }
 0x193   :  { %v1539_v63 = vmax.f32 %v1537_v47, %v1538_v55  ;;  %v1594_v0 = vrot.slane %v1593_v56, 1  ;;  %v1544_v1 = vmax.f32 %v1542_v49, %v1543_v57  ;;  %v1603_v2 = vsel %vm265_vm0, %v200_v54, -inf  ;;  %v204_v57 = vld [vmem:[%s4048_s0 + $0x186] sm:$0x3] }
 0x194   :  { %v2336_v4 = vsel %vm2058_vm1, %v1588_v59, -inf  ;;  %v1599_v5 = vrot.slane %v1598_v61, 2  ;;  %v1549_v6 = vmax.f32 %v1547_v58, %v1548_v62  ;;  %v1604_v7 = vrot.slane %v1603_v2, 4 }
 0x195   :  { %v2337_v9 = vmax.f32 %v2335_v60, %v2336_v4  ;;  %v1595_v10 = vmax.f32 %v1593_v56, %v1594_v0  ;;  %v2338_v11 = vsel %vm2058_vm1, %v1539_v63, -inf  ;;  %v1545_v12 = vrot.slane %v1544_v1, 1 }
 0x196   :  { %v1600_v13 = vmax.f32 %v1598_v61, %v1599_v5  ;;  %v1550_v14 = vrot.slane %v1549_v6, 2  ;;  %v1605_v15 = vmax.f32 %v1603_v2, %v1604_v7  ;;  %v1610_v16 = vsel %vm265_vm0, %v201_v3, -inf  ;;  %v212_v2 = vld [vmem:[%s4048_s0 + $0x196] sm:$0x3] }
 0x197   :  { %2536 = vst.msk [vmem:[#allocation2 + $0x5c] sm:$0x1] %vm2443_vm2, %v2337_v9  ;;  %v2339_v18 = vsel %vm2058_vm1, %v1595_v10, -inf  ;;  %v1546_v19 = vmax.f32 %v1544_v1, %v1545_v12  ;;  %v1611_v20 = vrot.slane %v1610_v16, 4  ;;  %v1666_v21 = vsel %vm265_vm0, %v209_v8, -inf }
 0x198   :  { %v2340_v22 = vmax.f32 %v2338_v11, %v2339_v18  ;;  %v1601_v23 = vrot.slane %v1600_v13, 1  ;;  %v1551_v24 = vmax.f32 %v1549_v6, %v1550_v14  ;;  %v1606_v25 = vrot.slane %v1605_v15, 2 }
 0x199   :  { %v2341_v28 = vsel %vm2058_vm1, %v1546_v19, -inf  ;;  %v1612_v29 = vmax.f32 %v1610_v16, %v1611_v20  ;;  %v1667_v30 = vrot.slane %v1666_v21, 4  ;;  %v1617_v31 = vsel %vm265_vm0, %v202_v17, -inf  ;;  %v213_v20 = vld [vmem:[%s4048_s0 + $0x198] sm:$0x3] }
 0x19a   :  { %2537 = vst.msk [vmem:[#allocation2 + $0x5d] sm:$0x1] %vm2443_vm2, %v2340_v22  ;;  %v1602_v32 = vmax.f32 %v1600_v13, %v1601_v23  ;;  %v1552_v33 = vrot.slane %v1551_v24, 1  ;;  %v1607_v34 = vmax.f32 %v1605_v15, %v1606_v25  ;;  %v1618_v35 = vrot.slane %v1617_v31, 4  ;;  %v205_v15 = vld [vmem:[%s4048_s0 + $0x188] sm:$0x3] }
 0x19b   :  { %v1613_v36 = vrot.slane %v1612_v29, 2  ;;  %v1668_v37 = vmax.f32 %v1666_v21, %v1667_v30  ;;  %v1673_v38 = vsel %vm265_vm0, %v210_v26, -inf  ;;  %v1624_v39 = vsel %vm265_vm0, %v203_v27, -inf }
 0x19c   :  { %v2342_v40 = vsel %vm2058_vm1, %v1602_v32, -inf  ;;  %v1553_v41 = vmax.f32 %v1551_v24, %v1552_v33  ;;  %v1608_v42 = vrot.slane %v1607_v34, 1  ;;  %v1619_v43 = vmax.f32 %v1617_v31, %v1618_v35  ;;  %v206_v33 = vld [vmem:[%s4048_s0 + $0x18a] sm:$0x3] }
 0x19d   :  { %v2343_v45 = vmax.f32 %v2341_v28, %v2342_v40  ;;  %v1614_v46 = vmax.f32 %v1612_v29, %v1613_v36  ;;  %v1669_v47 = vrot.slane %v1668_v37, 2  ;;  %v1674_v48 = vrot.slane %v1673_v38, 4 }
 0x19e   :  { %v1609_v49 = vmax.f32 %v1607_v34, %v1608_v42  ;;  %v2344_v50 = vsel %vm2058_vm1, %v1553_v41, -inf  ;;  %v1620_v51 = vrot.slane %v1619_v43, 2  ;;  %v1625_v52 = vrot.slane %v1624_v39, 4 }
 0x19f   :  { %2538 = vst.msk [vmem:[#allocation2 + $0x5e] sm:$0x1] %vm2443_vm2, %v2343_v45  ;;  %v1615_v53 = vrot.slane %v1614_v46, 1  ;;  %v1670_v54 = vmax.f32 %v1668_v37, %v1669_v47  ;;  %v1675_v55 = vmax.f32 %v1673_v38, %v1674_v48  ;;  %v1680_v56 = vsel %vm265_vm0, %v211_v44, -inf  ;;  %v214_v38 = vld [vmem:[%s4048_s0 + $0x19a] sm:$0x3] }
 0x1a0   :  { %v2345_v58 = vsel %vm2058_vm1, %v1609_v49, -inf  ;;  %v1621_v59 = vmax.f32 %v1619_v43, %v1620_v51  ;;  %v1626_v60 = vmax.f32 %v1624_v39, %v1625_v52  ;;  %v1681_v61 = vrot.slane %v1680_v56, 4  ;;  %v207_v47 = vld [vmem:[%s4048_s0 + $0x18c] sm:$0x3] }
 0x1a1   :  { %v2346_v62 = vmax.f32 %v2344_v50, %v2345_v58  ;;  %v1616_v63 = vmax.f32 %v1614_v46, %v1615_v53  ;;  %v1671_v0 = vrot.slane %v1670_v54, 1  ;;  %v1676_v1 = vrot.slane %v1675_v55, 2 }
 0x1a2   :  { %v1622_v3 = vrot.slane %v1621_v59, 1  ;;  %v1627_v4 = vrot.slane %v1626_v60, 2  ;;  %v1682_v5 = vmax.f32 %v1680_v56, %v1681_v61  ;;  %v1631_v6 = vsel %vm265_vm0, %v204_v57, -inf  ;;  %v215_v56 = vld [vmem:[%s4048_s0 + $0x19c] sm:$0x3] }
 0x1a3   :  { %2539 = vst.msk [vmem:[#allocation2 + $0x5f] sm:$0x1] %vm2443_vm2, %v2346_v62  ;;  %v1672_v7 = vmax.f32 %v1670_v54, %v1671_v0  ;;  %v2347_v8 = vsel %vm2058_vm1, %v1616_v63, -inf  ;;  %v1677_v9 = vmax.f32 %v1675_v55, %v1676_v1  ;;  %v1632_v10 = vrot.slane %v1631_v6, 4 }
 0x1a4   :  { %v1623_v11 = vmax.f32 %v1621_v59, %v1622_v3  ;;  %v1628_v12 = vmax.f32 %v1626_v60, %v1627_v4  ;;  %v1683_v13 = vrot.slane %v1682_v5, 2  ;;  %v1687_v14 = vsel %vm265_vm0, %v212_v2, -inf }
 0x1a5   :  { %v2348_v16 = vsel %vm2058_vm1, %v1672_v7, -inf  ;;  %v1678_v17 = vrot.slane %v1677_v9, 1  ;;  %v1633_v18 = vmax.f32 %v1631_v6, %v1632_v10  ;;  %v1688_v19 = vrot.slane %v1687_v14, 4 }
 0x1a6   :  { %v2349_v21 = vmax.f32 %v2347_v8, %v2348_v16  ;;  %v2350_v22 = vsel %vm2058_vm1, %v1623_v11, -inf  ;;  %v1629_v23 = vrot.slane %v1628_v12, 1  ;;  %v1684_v24 = vmax.f32 %v1682_v5, %v1683_v13  ;;  %v208_v5 = vld [vmem:[%s4048_s0 + $0x18e] sm:$0x3] }
 0x1a7   :  { %v1679_v25 = vmax.f32 %v1677_v9, %v1678_v17  ;;  %v1634_v26 = vrot.slane %v1633_v18, 2  ;;  %v1689_v27 = vmax.f32 %v1687_v14, %v1688_v19  ;;  %v1638_v28 = vsel %vm265_vm0, %v205_v15, -inf  ;;  %v216_v14 = vld [vmem:[%s4048_s0 + $0x19e] sm:$0x3] }
 0x1a8   :  { %2540 = vst.msk [vmem:[#allocation2 + $0x60] sm:$0x1] %vm2443_vm2, %v2349_v21  ;;  %v1630_v29 = vmax.f32 %v1628_v12, %v1629_v23  ;;  %v1685_v30 = vrot.slane %v1684_v24, 1  ;;  %v1639_v31 = vrot.slane %v1638_v28, 4  ;;  %v1694_v32 = vsel %vm265_vm0, %v213_v20, -inf }
 0x1a9   :  { %v2351_v34 = vsel %vm2058_vm1, %v1679_v25, -inf  ;;  %v1635_v35 = vmax.f32 %v1633_v18, %v1634_v26  ;;  %v1690_v36 = vrot.slane %v1689_v27, 2  ;;  %v1695_v37 = vrot.slane %v1694_v32, 4  ;;  %v217_v23 = vld [vmem:[%s4048_s0 + $0x1a0] sm:$0x3] }
 0x1aa   :  { %v2352_v39 = vmax.f32 %v2350_v22, %v2351_v34  ;;  %v1686_v40 = vmax.f32 %v1684_v24, %v1685_v30  ;;  %v2353_v41 = vsel %vm2058_vm1, %v1630_v29, -inf  ;;  %v1640_v42 = vmax.f32 %v1638_v28, %v1639_v31 }
 0x1ab   :  { %v1636_v43 = vrot.slane %v1635_v35, 1  ;;  %v1691_v44 = vmax.f32 %v1689_v27, %v1690_v36  ;;  %v1696_v45 = vmax.f32 %v1694_v32, %v1695_v37  ;;  %v1645_v46 = vsel %vm265_vm0, %v206_v33, -inf  ;;  %v225_v32 = vld [vmem:[%s4048_s0 + $0x1b0] sm:$0x3] }
 0x1ac   :  { %2541 = vst.msk [vmem:[#allocation2 + $0x61] sm:$0x1] %vm2443_vm2, %v2352_v39  ;;  %v2354_v48 = vsel %vm2058_vm1, %v1686_v40, -inf  ;;  %v1641_v49 = vrot.slane %v1640_v42, 2  ;;  %v1646_v50 = vrot.slane %v1645_v46, 4  ;;  %v1701_v51 = vsel %vm265_vm0, %v214_v38, -inf }
 0x1ad   :  { %v2355_v52 = vmax.f32 %v2353_v41, %v2354_v48  ;;  %v1637_v53 = vmax.f32 %v1635_v35, %v1636_v43  ;;  %v1692_v54 = vrot.slane %v1691_v44, 1  ;;  %v1697_v55 = vrot.slane %v1696_v45, 2 }
 0x1ae   :  { %v1642_v57 = vmax.f32 %v1640_v42, %v1641_v49  ;;  %v1647_v58 = vmax.f32 %v1645_v46, %v1646_v50  ;;  %v1702_v59 = vrot.slane %v1701_v51, 4  ;;  %v1652_v60 = vsel %vm265_vm0, %v207_v47, -inf  ;;  %v226_v50 = vld [vmem:[%s4048_s0 + $0x1b2] sm:$0x3] }
 0x1af   :  { %2542 = vst.msk [vmem:[#allocation2 + $0x62] sm:$0x1] %vm2443_vm2, %v2355_v52  ;;  %v1693_v61 = vmax.f32 %v1691_v44, %v1692_v54  ;;  %v2356_v62 = vsel %vm2058_vm1, %v1637_v53, -inf  ;;  %v1698_v63 = vmax.f32 %v1696_v45, %v1697_v55  ;;  %v1653_v0 = vrot.slane %v1652_v60, 4  ;;  %v218_v45 = vld [vmem:[%s4048_s0 + $0x1a2] sm:$0x3] }
 0x1b0   :  { %v1643_v1 = vrot.slane %v1642_v57, 1  ;;  %v1648_v2 = vrot.slane %v1647_v58, 2  ;;  %v1703_v3 = vmax.f32 %v1701_v51, %v1702_v59  ;;  %v1708_v4 = vsel %vm265_vm0, %v215_v56, -inf  ;;  %v219_v59 = vld [vmem:[%s4048_s0 + $0x1a4] sm:$0x3] }
 0x1b1   :  { %v2357_v6 = vsel %vm2058_vm1, %v1693_v61, -inf  ;;  %v1699_v7 = vrot.slane %v1698_v63, 1  ;;  %v1654_v8 = vmax.f32 %v1652_v60, %v1653_v0  ;;  %v1709_v9 = vrot.slane %v1708_v4, 4 }
 0x1b2   :  { %v2358_v10 = vmax.f32 %v2356_v62, %v2357_v6  ;;  %v1644_v11 = vmax.f32 %v1642_v57, %v1643_v1  ;;  %v1649_v12 = vmax.f32 %v1647_v58, %v1648_v2  ;;  %v1704_v13 = vrot.slane %v1703_v3, 2 }
 0x1b3   :  { %v1700_v15 = vmax.f32 %v1698_v63, %v1699_v7  ;;  %v1655_v16 = vrot.slane %v1654_v8, 2  ;;  %v1710_v17 = vmax.f32 %v1708_v4, %v1709_v9  ;;  %v1659_v18 = vsel %vm265_vm0, %v208_v5, -inf  ;;  %v227_v4 = vld [vmem:[%s4048_s0 + $0x1b4] sm:$0x3] }
 0x1b4   :  { %2543 = vst.msk [vmem:[#allocation2 + $0x63] sm:$0x1] %vm2443_vm2, %v2358_v10  ;;  %v2359_v19 = vsel %vm2058_vm1, %v1644_v11, -inf  ;;  %v1650_v20 = vrot.slane %v1649_v12, 1  ;;  %v1705_v21 = vmax.f32 %v1703_v3, %v1704_v13  ;;  %v1660_v22 = vrot.slane %v1659_v18, 4 }
 0x1b5   :  { %v2360_v24 = vsel %vm2058_vm1, %v1700_v15, -inf  ;;  %v1656_v25 = vmax.f32 %v1654_v8, %v1655_v16  ;;  %v1711_v26 = vrot.slane %v1710_v17, 2  ;;  %v1715_v27 = vsel %vm265_vm0, %v216_v14, -inf  ;;  %v220_v13 = vld [vmem:[%s4048_s0 + $0x1a6] sm:$0x3] }
 0x1b6   :  { %v2361_v28 = vmax.f32 %v2359_v19, %v2360_v24  ;;  %v1651_v29 = vmax.f32 %v1649_v12, %v1650_v20  ;;  %v1706_v30 = vrot.slane %v1705_v21, 1  ;;  %v1661_v31 = vmax.f32 %v1659_v18, %v1660_v22  ;;  %v228_v22 = vld [vmem:[%s4048_s0 + $0x1b6] sm:$0x3] }
 0x1b7   :  { %v1657_v33 = vrot.slane %v1656_v25, 1  ;;  %v1712_v34 = vmax.f32 %v1710_v17, %v1711_v26  ;;  %v1716_v35 = vrot.slane %v1715_v27, 4  ;;  %v1722_v36 = vsel %vm265_vm0, %v217_v23, -inf }
 0x1b8   :  { %2544 = vst.msk [vmem:[#allocation2 + $0x64] sm:$0x1] %vm2443_vm2, %v2361_v28  ;;  %v1707_v37 = vmax.f32 %v1705_v21, %v1706_v30  ;;  %v2362_v38 = vsel %vm2058_vm1, %v1651_v29, -inf  ;;  %v1662_v39 = vrot.slane %v1661_v31, 2  ;;  %v1723_v40 = vrot.slane %v1722_v36, 4 }
 0x1b9   :  { %v1658_v41 = vmax.f32 %v1656_v25, %v1657_v33  ;;  %v1713_v42 = vrot.slane %v1712_v34, 1  ;;  %v1717_v43 = vmax.f32 %v1715_v27, %v1716_v35  ;;  %v1778_v44 = vsel %vm265_vm0, %v225_v32, -inf  ;;  %v221_v27 = vld [vmem:[%s4048_s0 + $0x1a8] sm:$0x3] }
 0x1ba   :  { %v2363_v46 = vsel %vm2058_vm1, %v1707_v37, -inf  ;;  %v1663_v47 = vmax.f32 %v1661_v31, %v1662_v39  ;;  %v1724_v48 = vmax.f32 %v1722_v36, %v1723_v40  ;;  %v1779_v49 = vrot.slane %v1778_v44, 4  ;;  %v229_v39 = vld [vmem:[%s4048_s0 + $0x1b8] sm:$0x3] }
 0x1bb   :  { %v2364_v51 = vmax.f32 %v2362_v38, %v2363_v46  ;;  %v1714_v52 = vmax.f32 %v1712_v34, %v1713_v42  ;;  %v2365_v53 = vsel %vm2058_vm1, %v1658_v41, -inf  ;;  %v1718_v54 = vrot.slane %v1717_v43, 2 }
 0x1bc   :  { %v1664_v55 = vrot.slane %v1663_v47, 1  ;;  %v1725_v56 = vrot.slane %v1724_v48, 2  ;;  %v1780_v57 = vmax.f32 %v1778_v44, %v1779_v49  ;;  %v1729_v58 = vsel %vm265_vm0, %v218_v45, -inf  ;;  %v222_v49 = vld [vmem:[%s4048_s0 + $0x1aa] sm:$0x3] }
 0x1bd   :  { %2545 = vst.msk [vmem:[#allocation2 + $0x65] sm:$0x1] %vm2443_vm2, %v2364_v51  ;;  %v2366_v60 = vsel %vm2058_vm1, %v1714_v52, -inf  ;;  %v1719_v61 = vmax.f32 %v1717_v43, %v1718_v54  ;;  %v1730_v62 = vrot.slane %v1729_v58, 4  ;;  %v1785_v63 = vsel %vm265_vm0, %v226_v50, -inf }
 0x1be   :  { %v2367_v0 = vmax.f32 %v2365_v53, %v2366_v60  ;;  %v1665_v1 = vmax.f32 %v1663_v47, %v1664_v55  ;;  %v1726_v2 = vmax.f32 %v1724_v48, %v1725_v56  ;;  %v1781_v3 = vrot.slane %v1780_v57, 2 }
 0x1bf   :  { %v1720_v5 = vrot.slane %v1719_v61, 1  ;;  %v1731_v6 = vmax.f32 %v1729_v58, %v1730_v62  ;;  %v1786_v7 = vrot.slane %v1785_v63, 4  ;;  %v1736_v8 = vsel %vm265_vm0, %v219_v59, -inf  ;;  %v230_v58 = vld [vmem:[%s4048_s0 + $0x1ba] sm:$0x3] }
 0x1c0   :  { %2546 = vst.msk [vmem:[#allocation2 + $0x66] sm:$0x1] %vm2443_vm2, %v2367_v0  ;;  %v2368_v9 = vsel %vm2058_vm1, %v1665_v1, -inf  ;;  %v1727_v10 = vrot.slane %v1726_v2, 1  ;;  %v1782_v11 = vmax.f32 %v1780_v57, %v1781_v3  ;;  %v1737_v12 = vrot.slane %v1736_v8, 4 }
 0x1c1   :  { %v1721_v14 = vmax.f32 %v1719_v61, %v1720_v5  ;;  %v1732_v15 = vrot.slane %v1731_v6, 2  ;;  %v1787_v16 = vmax.f32 %v1785_v63, %v1786_v7  ;;  %v1792_v17 = vsel %vm265_vm0, %v227_v4, -inf  ;;  %v223_v63 = vld [vmem:[%s4048_s0 + $0x1ac] sm:$0x3] }
 0x1c2   :  { %v1728_v18 = vmax.f32 %v1726_v2, %v1727_v10  ;;  %v1783_v19 = vrot.slane %v1782_v11, 1  ;;  %v1738_v20 = vmax.f32 %v1736_v8, %v1737_v12  ;;  %v1793_v21 = vrot.slane %v1792_v17, 4 }
 0x1c3   :  { %v2369_v23 = vsel %vm2058_vm1, %v1721_v14, -inf  ;;  %v1733_v24 = vmax.f32 %v1731_v6, %v1732_v15  ;;  %v1788_v25 = vrot.slane %v1787_v16, 2  ;;  %v1743_v26 = vsel %vm265_vm0, %v220_v13, -inf }
 0x1c4   :  { %v2370_v28 = vmax.f32 %v2368_v9, %v2369_v23  ;;  %v1784_v29 = vmax.f32 %v1782_v11, %v1783_v19  ;;  %v2371_v30 = vsel %vm2058_vm1, %v1728_v18, -inf  ;;  %v1739_v31 = vrot.slane %v1738_v20, 2 }
 0x1c5   :  { %v1734_v32 = vrot.slane %v1733_v24, 1  ;;  %v1789_v33 = vmax.f32 %v1787_v16, %v1788_v25  ;;  %v1794_v34 = vmax.f32 %v1792_v17, %v1793_v21  ;;  %v1744_v35 = vrot.slane %v1743_v26, 4  ;;  %v231_v16 = vld [vmem:[%s4048_s0 + $0x1bc] sm:$0x3]  ;;  %v224_v25 = vld [vmem:[%s4048_s0 + $0x1ae] sm:$0x3] }
 0x1c6   :  { %2547 = vst.msk [vmem:[#allocation2 + $0x67] sm:$0x1] %vm2443_vm2, %v2370_v28  ;;  %v2372_v36 = vsel %vm2058_vm1, %v1784_v29, -inf  ;;  %v1740_v37 = vmax.f32 %v1738_v20, %v1739_v31  ;;  %v1799_v38 = vsel %vm265_vm0, %v228_v22, -inf  ;;  %v1750_v40 = vsel %vm265_vm0, %v221_v27, -inf }
 0x1c7   :  { %v2373_v41 = vmax.f32 %v2371_v30, %v2372_v36  ;;  %v1735_v42 = vmax.f32 %v1733_v24, %v1734_v32  ;;  %v1790_v43 = vrot.slane %v1789_v33, 1  ;;  %v1795_v44 = vrot.slane %v1794_v34, 2 }
 0x1c8   :  { %v1741_v45 = vrot.slane %v1740_v37, 1  ;;  %v1745_v46 = vmax.f32 %v1743_v26, %v1744_v35  ;;  %v1800_v47 = vrot.slane %v1799_v38, 4  ;;  %v1751_v48 = vrot.slane %v1750_v40, 4 }
 0x1c9   :  { %2548 = vst.msk [vmem:[#allocation2 + $0x68] sm:$0x1] %vm2443_vm2, %v2373_v41  ;;  %v1791_v50 = vmax.f32 %v1789_v33, %v1790_v43  ;;  %v2374_v51 = vsel %vm2058_vm1, %v1735_v42, -inf  ;;  %v1796_v52 = vmax.f32 %v1794_v34, %v1795_v44  ;;  %v1806_v53 = vsel %vm265_vm0, %v229_v39, -inf  ;;  %v232_v34 = vld [vmem:[%s4048_s0 + $0x1be] sm:$0x3] }
 0x1ca   :  { %v1742_v54 = vmax.f32 %v1740_v37, %v1741_v45  ;;  %v1746_v55 = vrot.slane %v1745_v46, 2  ;;  %v1801_v56 = vmax.f32 %v1799_v38, %v1800_v47  ;;  %v1752_v57 = vmax.f32 %v1750_v40, %v1751_v48  ;;  %v233_v39 = vld [vmem:[%s4048_s0 + $0x1c0] sm:$0x3] }
 0x1cb   :  { %v2375_v59 = vsel %vm2058_vm1, %v1791_v50, -inf  ;;  %v1797_v60 = vrot.slane %v1796_v52, 1  ;;  %v1807_v61 = vrot.slane %v1806_v53, 4  ;;  %v1757_v62 = vsel %vm265_vm0, %v222_v49, -inf }
 0x1cc   :  { %v2376_v0 = vmax.f32 %v2374_v51, %v2375_v59  ;;  %v2377_v1 = vsel %vm2058_vm1, %v1742_v54, -inf  ;;  %v1747_v2 = vmax.f32 %v1745_v46, %v1746_v55  ;;  %v1802_v3 = vrot.slane %v1801_v56, 2  ;;  %v241_v51 = vld [vmem:[%s4048_s0 + $0x1d0] sm:$0x3] }
 0x1cd   :  { %v1798_v4 = vmax.f32 %v1796_v52, %v1797_v60  ;;  %v1753_v5 = vrot.slane %v1752_v57, 2  ;;  %v1808_v6 = vmax.f32 %v1806_v53, %v1807_v61  ;;  %v1758_v7 = vrot.slane %v1757_v62, 4  ;;  %v234_v61 = vld [vmem:[%s4048_s0 + $0x1c2] sm:$0x3] }
 0x1ce   :  { %2549 = vst.msk [vmem:[#allocation2 + $0x69] sm:$0x1] %vm2443_vm2, %v2376_v0  ;;  %v1748_v8 = vrot.slane %v1747_v2, 1  ;;  %v1803_v9 = vmax.f32 %v1801_v56, %v1802_v3  ;;  %v1813_v10 = vsel %vm265_vm0, %v230_v58, -inf  ;;  %v1764_v11 = vsel %vm265_vm0, %v223_v63, -inf }
 0x1cf   :  { %v2378_v12 = vsel %vm2058_vm1, %v1798_v4, -inf  ;;  %v1754_v13 = vmax.f32 %v1752_v57, %v1753_v5  ;;  %v1809_v14 = vrot.slane %v1808_v6, 2  ;;  %v1759_v15 = vmax.f32 %v1757_v62, %v1758_v7 }
 0x1d0   :  { %v2379_v17 = vmax.f32 %v2377_v1, %v2378_v12  ;;  %v1749_v18 = vmax.f32 %v1747_v2, %v1748_v8  ;;  %v1804_v19 = vrot.slane %v1803_v9, 1  ;;  %v1814_v20 = vrot.slane %v1813_v10, 4 }
 0x1d1   :  { %v1755_v21 = vrot.slane %v1754_v13, 1  ;;  %v1810_v22 = vmax.f32 %v1808_v6, %v1809_v14  ;;  %v1760_v23 = vrot.slane %v1759_v15, 2  ;;  %v1765_v24 = vrot.slane %v1764_v11, 4 }
 0x1d2   :  { %2550 = vst.msk [vmem:[#allocation2 + $0x6a] sm:$0x1] %vm2443_vm2, %v2379_v17  ;;  %v1805_v26 = vmax.f32 %v1803_v9, %v1804_v19  ;;  %v2380_v27 = vsel %vm2058_vm1, %v1749_v18, -inf  ;;  %v1815_v28 = vmax.f32 %v1813_v10, %v1814_v20  ;;  %v1820_v29 = vsel %vm265_vm0, %v231_v16, -inf  ;;  %v242_v9 = vld [vmem:[%s4048_s0 + $0x1d2] sm:$0x3] }
 0x1d3   :  { %v1756_v30 = vmax.f32 %v1754_v13, %v1755_v21  ;;  %v1811_v31 = vrot.slane %v1810_v22, 1  ;;  %v1761_v32 = vmax.f32 %v1759_v15, %v1760_v23  ;;  %v1766_v33 = vmax.f32 %v1764_v11, %v1765_v24  ;;  %v235_v23 = vld [vmem:[%s4048_s0 + $0x1c4] sm:$0x3] }
 0x1d4   :  { %v2381_v35 = vsel %vm2058_vm1, %v1805_v26, -inf  ;;  %v1816_v36 = vrot.slane %v1815_v28, 2  ;;  %v1821_v37 = vrot.slane %v1820_v29, 4  ;;  %v1771_v38 = vsel %vm265_vm0, %v224_v25, -inf }
 0x1d5   :  { %v2382_v40 = vmax.f32 %v2380_v27, %v2381_v35  ;;  %v1812_v41 = vmax.f32 %v1810_v22, %v1811_v31  ;;  %v2383_v42 = vsel %vm2058_vm1, %v1756_v30, -inf  ;;  %v1762_v43 = vrot.slane %v1761_v32, 1 }
 0x1d6   :  { %v1817_v44 = vmax.f32 %v1815_v28, %v1816_v36  ;;  %v1767_v45 = vrot.slane %v1766_v33, 2  ;;  %v1822_v46 = vmax.f32 %v1820_v29, %v1821_v37  ;;  %v1772_v47 = vrot.slane %v1771_v38, 4 }
 0x1d7   :  { %2551 = vst.msk [vmem:[#allocation2 + $0x6b] sm:$0x1] %vm2443_vm2, %v2382_v40  ;;  %v2384_v48 = vsel %vm2058_vm1, %v1812_v41, -inf  ;;  %v1763_v49 = vmax.f32 %v1761_v32, %v1762_v43  ;;  %v1827_v50 = vsel %vm265_vm0, %v232_v34, -inf  ;;  %v1834_v52 = vsel %vm265_vm0, %v233_v39, -inf }
 0x1d8   :  { %v2385_v53 = vmax.f32 %v2383_v42, %v2384_v48  ;;  %v1818_v54 = vrot.slane %v1817_v44, 1  ;;  %v1768_v55 = vmax.f32 %v1766_v33, %v1767_v45  ;;  %v1823_v56 = vrot.slane %v1822_v46, 2  ;;  %v243_v32 = vld [vmem:[%s4048_s0 + $0x1d4] sm:$0x3]  ;;  %v236_v41 = vld [vmem:[%s4048_s0 + $0x1c6] sm:$0x3] }
 0x1d9   :  { %v2386_v57 = vsel %vm2058_vm1, %v1763_v49, -inf  ;;  %v1773_v58 = vmax.f32 %v1771_v38, %v1772_v47  ;;  %v1828_v59 = vrot.slane %v1827_v50, 4  ;;  %v1835_v60 = vrot.slane %v1834_v52, 4 }
 0x1da   :  { %2552 = vst.msk [vmem:[#allocation2 + $0x6c] sm:$0x1] %vm2443_vm2, %v2385_v53  ;;  %v1819_v62 = vmax.f32 %v1817_v44, %v1818_v54  ;;  %v1769_v63 = vrot.slane %v1768_v55, 1  ;;  %v1824_v0 = vmax.f32 %v1822_v46, %v1823_v56  ;;  %v1890_v1 = vsel %vm265_vm0, %v241_v51, -inf  ;;  %v244_v46 = vld [vmem:[%s4048_s0 + $0x1d6] sm:$0x3] }
 0x1db   :  { %v1774_v2 = vrot.slane %v1773_v58, 2  ;;  %v1829_v3 = vmax.f32 %v1827_v50, %v1828_v59  ;;  %v1836_v4 = vmax.f32 %v1834_v52, %v1835_v60  ;;  %v1891_v5 = vrot.slane %v1890_v1, 4  ;;  %v237_v59 = vld [vmem:[%s4048_s0 + $0x1c8] sm:$0x3] }
 0x1dc   :  { %v2387_v6 = vsel %vm2058_vm1, %v1819_v62, -inf  ;;  %v1770_v7 = vmax.f32 %v1768_v55, %v1769_v63  ;;  %v1825_v8 = vrot.slane %v1824_v0, 1  ;;  %v1841_v10 = vsel %vm265_vm0, %v234_v61, -inf }
 0x1dd   :  { %v2388_v11 = vmax.f32 %v2386_v57, %v2387_v6  ;;  %v1775_v12 = vmax.f32 %v1773_v58, %v1774_v2  ;;  %v1830_v13 = vrot.slane %v1829_v3, 2  ;;  %v1837_v14 = vrot.slane %v1836_v4, 2 }
 0x1de   :  { %v1826_v15 = vmax.f32 %v1824_v0, %v1825_v8  ;;  %v2389_v16 = vsel %vm2058_vm1, %v1770_v7, -inf  ;;  %v1892_v17 = vmax.f32 %v1890_v1, %v1891_v5  ;;  %v1842_v18 = vrot.slane %v1841_v10, 4  ;;  %v238_v5 = vld [vmem:[%s4048_s0 + $0x1ca] sm:$0x3] }
 0x1df   :  { %2553 = vst.msk [vmem:[#allocation2 + $0x6d] sm:$0x1] %vm2443_vm2, %v2388_v11  ;;  %v1776_v19 = vrot.slane %v1775_v12, 1  ;;  %v1831_v20 = vmax.f32 %v1829_v3, %v1830_v13  ;;  %v1838_v21 = vmax.f32 %v1836_v4, %v1837_v14  ;;  %v1897_v22 = vsel %vm265_vm0, %v242_v9, -inf  ;;  %v245_v4 = vld [vmem:[%s4048_s0 + $0x1d8] sm:$0x3] }
 0x1e0   :  { %v2390_v24 = vsel %vm2058_vm1, %v1826_v15, -inf  ;;  %v1893_v25 = vrot.slane %v1892_v17, 2  ;;  %v1843_v26 = vmax.f32 %v1841_v10, %v1842_v18  ;;  %v1898_v27 = vrot.slane %v1897_v22, 4 }
 0x1e1   :  { %v2391_v28 = vmax.f32 %v2389_v16, %v2390_v24  ;;  %v1777_v29 = vmax.f32 %v1775_v12, %v1776_v19  ;;  %v1832_v30 = vrot.slane %v1831_v20, 1  ;;  %v1839_v31 = vrot.slane %v1838_v21, 1 }
 0x1e2   :  { %v1894_v33 = vmax.f32 %v1892_v17, %v1893_v25  ;;  %v1844_v34 = vrot.slane %v1843_v26, 2  ;;  %v1899_v35 = vmax.f32 %v1897_v22, %v1898_v27  ;;  %v1848_v36 = vsel %vm265_vm0, %v235_v23, -inf  ;;  %v246_v17 = vld [vmem:[%s4048_s0 + $0x1da] sm:$0x3]  ;;  %v239_v27 = vld [vmem:[%s4048_s0 + $0x1cc] sm:$0x3] }
 0x1e3   :  { %2554 = vst.msk [vmem:[#allocation2 + $0x6e] sm:$0x1] %vm2443_vm2, %v2391_v28  ;;  %v1833_v37 = vmax.f32 %v1831_v20, %v1832_v30  ;;  %v2392_v38 = vsel %vm2058_vm1, %v1777_v29, -inf  ;;  %v1840_v39 = vmax.f32 %v1838_v21, %v1839_v31  ;;  %v1849_v40 = vrot.slane %v1848_v36, 4 }
 0x1e4   :  { %v1895_v42 = vrot.slane %v1894_v33, 1  ;;  %v1845_v43 = vmax.f32 %v1843_v26, %v1844_v34  ;;  %v1900_v44 = vrot.slane %v1899_v35, 2  ;;  %v1904_v45 = vsel %vm265_vm0, %v243_v32, -inf }
 0x1e5   :  { %v2393_v47 = vsel %vm2058_vm1, %v1833_v37, -inf  ;;  %v2395_v48 = vsel %vm2058_vm1, %v1840_v39, -inf  ;;  %v1850_v49 = vmax.f32 %v1848_v36, %v1849_v40  ;;  %v1905_v50 = vrot.slane %v1904_v45, 4  ;;  %v247_v39 = vld [vmem:[%s4048_s0 + $0x1dc] sm:$0x3] }
 0x1e6   :  { %v2394_v51 = vmax.f32 %v2392_v38, %v2393_v47  ;;  %v1896_v52 = vmax.f32 %v1894_v33, %v1895_v42  ;;  %v1846_v53 = vrot.slane %v1845_v43, 1  ;;  %v1901_v54 = vmax.f32 %v1899_v35, %v1900_v44 }
 0x1e7   :  { %v1851_v55 = vrot.slane %v1850_v49, 2  ;;  %v1906_v56 = vmax.f32 %v1904_v45, %v1905_v50  ;;  %v1855_v57 = vsel %vm265_vm0, %v236_v41, -inf  ;;  %v1911_v58 = vsel %vm265_vm0, %v244_v46, -inf }
 0x1e8   :  { %2555 = vst.msk [vmem:[#allocation2 + $0x6f] sm:$0x1] %vm2443_vm2, %v2394_v51  ;;  %v2396_v60 = vsel %vm2058_vm1, %v1896_v52, -inf  ;;  %v1847_v61 = vmax.f32 %v1845_v43, %v1846_v53  ;;  %v1902_v62 = vrot.slane %v1901_v54, 1  ;;  %v1856_v63 = vrot.slane %v1855_v57, 4 }
 0x1e9   :  { %v2397_v0 = vmax.f32 %v2395_v48, %v2396_v60  ;;  %v1852_v1 = vmax.f32 %v1850_v49, %v1851_v55  ;;  %v1907_v2 = vrot.slane %v1906_v56, 2  ;;  %v1912_v3 = vrot.slane %v1911_v58, 4  ;;  %v240_v53 = vld [vmem:[%s4048_s0 + $0x1ce] sm:$0x3] }
 0x1ea   :  { %v1903_v6 = vmax.f32 %v1901_v54, %v1902_v62  ;;  %v2398_v7 = vsel %vm2058_vm1, %v1847_v61, -inf  ;;  %v1857_v8 = vmax.f32 %v1855_v57, %v1856_v63  ;;  %v1862_v9 = vsel %vm265_vm0, %v237_v59, -inf  ;;  %v248_v62 = vld [vmem:[%s4048_s0 + $0x1de] sm:$0x3] }
 0x1eb   :  { %2556 = vst.msk [vmem:[#allocation2 + $0x70] sm:$0x1] %vm2443_vm2, %v2397_v0  ;;  %v1853_v10 = vrot.slane %v1852_v1, 1  ;;  %v1908_v11 = vmax.f32 %v1906_v56, %v1907_v2  ;;  %v1913_v12 = vmax.f32 %v1911_v58, %v1912_v3  ;;  %v1863_v13 = vrot.slane %v1862_v9, 4 }
 0x1ec   :  { %v2399_v14 = vsel %vm2058_vm1, %v1903_v6, -inf  ;;  %v1858_v15 = vrot.slane %v1857_v8, 2  ;;  %v1918_v16 = vsel %vm265_vm0, %v245_v4, -inf  ;;  %v1869_v18 = vsel %vm265_vm0, %v238_v5, -inf }
 0x1ed   :  { %v2400_v19 = vmax.f32 %v2398_v7, %v2399_v14  ;;  %v1854_v20 = vmax.f32 %v1852_v1, %v1853_v10  ;;  %v1909_v21 = vrot.slane %v1908_v11, 1  ;;  %v1914_v22 = vrot.slane %v1913_v12, 2 }
 0x1ee   :  { %v1859_v23 = vmax.f32 %v1857_v8, %v1858_v15  ;;  %v1864_v24 = vmax.f32 %v1862_v9, %v1863_v13  ;;  %v1919_v25 = vrot.slane %v1918_v16, 4  ;;  %v1870_v26 = vrot.slane %v1869_v18, 4 }
 0x1ef   :  { %2557 = vst.msk [vmem:[#allocation2 + $0x71] sm:$0x1] %vm2443_vm2, %v2400_v19  ;;  %v1910_v28 = vmax.f32 %v1908_v11, %v1909_v21  ;;  %v2401_v29 = vsel %vm2058_vm1, %v1854_v20, -inf  ;;  %v1915_v30 = vmax.f32 %v1913_v12, %v1914_v22  ;;  %v1925_v31 = vsel %vm265_vm0, %v246_v17, -inf  ;;  %v249_v11 = vld [vmem:[%s4048_s0 + $0x1e0] sm:$0x3] }
 0x1f0   :  { %v1860_v32 = vrot.slane %v1859_v23, 1  ;;  %v1865_v33 = vrot.slane %v1864_v24, 2  ;;  %v1920_v34 = vmax.f32 %v1918_v16, %v1919_v25  ;;  %v1871_v35 = vmax.f32 %v1869_v18, %v1870_v26  ;;  %v257_v16 = vld [vmem:[%s4048_s0 + $0x1f0] sm:$0x3]  ;;  %v250_v25 = vld [vmem:[%s4048_s0 + $0x1e2] sm:$0x3] }
 0x1f1   :  { %v2402_v36 = vsel %vm2058_vm1, %v1910_v28, -inf  ;;  %v1916_v37 = vrot.slane %v1915_v30, 1  ;;  %v1926_v38 = vrot.slane %v1925_v31, 4  ;;  %v1876_v40 = vsel %vm265_vm0, %v239_v27, -inf }
 0x1f2   :  { %v2403_v41 = vmax.f32 %v2401_v29, %v2402_v36  ;;  %v1861_v42 = vmax.f32 %v1859_v23, %v1860_v32  ;;  %v1866_v43 = vmax.f32 %v1864_v24, %v1865_v33  ;;  %v1921_v44 = vrot.slane %v1920_v34, 2 }
 0x1f3   :  { %v1917_v45 = vmax.f32 %v1915_v30, %v1916_v37  ;;  %v1872_v46 = vrot.slane %v1871_v35, 2  ;;  %v1927_v47 = vmax.f32 %v1925_v31, %v1926_v38  ;;  %v1877_v48 = vrot.slane %v1876_v40, 4 }
 0x1f4   :  { %2558 = vst.msk [vmem:[#allocation2 + $0x72] sm:$0x1] %vm2443_vm2, %v2403_v41  ;;  %v2404_v49 = vsel %vm2058_vm1, %v1861_v42, -inf  ;;  %v1867_v50 = vrot.slane %v1866_v43, 1  ;;  %v1922_v51 = vmax.f32 %v1920_v34, %v1921_v44  ;;  %v1932_v52 = vsel %vm265_vm0, %v247_v39, -inf }
 0x1f5   :  { %v2405_v54 = vsel %vm2058_vm1, %v1917_v45, -inf  ;;  %v1873_v55 = vmax.f32 %v1871_v35, %v1872_v46  ;;  %v1928_v56 = vrot.slane %v1927_v47, 2  ;;  %v1878_v57 = vmax.f32 %v1876_v40, %v1877_v48  ;;  %v258_v34 = vld [vmem:[%s4048_s0 + $0x1f2] sm:$0x3]  ;;  %v251_v35 = vld [vmem:[%s4048_s0 + $0x1e4] sm:$0x3] }
 0x1f6   :  { %v2406_v58 = vmax.f32 %v2404_v49, %v2405_v54  ;;  %v1868_v59 = vmax.f32 %v1866_v43, %v1867_v50  ;;  %v1923_v60 = vrot.slane %v1922_v51, 1  ;;  %v1933_v61 = vrot.slane %v1932_v52, 4 }
 0x1f7   :  { %v1874_v63 = vrot.slane %v1873_v55, 1  ;;  %v1929_v0 = vmax.f32 %v1927_v47, %v1928_v56  ;;  %v1879_v1 = vrot.slane %v1878_v57, 2  ;;  %v1883_v2 = vsel %vm265_vm0, %v240_v53, -inf }
 0x1f8   :  { %2559 = vst.msk [vmem:[#allocation2 + $0x73] sm:$0x1] %vm2443_vm2, %v2406_v58  ;;  %v1924_v3 = vmax.f32 %v1922_v51, %v1923_v60  ;;  %v2407_v4 = vsel %vm2058_vm1, %v1868_v59, -inf  ;;  %v1934_v5 = vmax.f32 %v1932_v52, %v1933_v61  ;;  %v1884_v6 = vrot.slane %v1883_v2, 4  ;;  %v259_v52 = vld [vmem:[%s4048_s0 + $0x1f4] sm:$0x3] }
 0x1f9   :  { %v1875_v7 = vmax.f32 %v1873_v55, %v1874_v63  ;;  %v1930_v8 = vrot.slane %v1929_v0, 1  ;;  %v1880_v9 = vmax.f32 %v1878_v57, %v1879_v1  ;;  %v1939_v10 = vsel %vm265_vm0, %v248_v62, -inf  ;;  %v252_v1 = vld [vmem:[%s4048_s0 + $0x1e6] sm:$0x3] }
 0x1fa   :  { %v2408_v12 = vsel %vm2058_vm1, %v1924_v3, -inf  ;;  %v1935_v13 = vrot.slane %v1934_v5, 2  ;;  %v1885_v14 = vmax.f32 %v1883_v2, %v1884_v6  ;;  %v1940_v15 = vrot.slane %v1939_v10, 4 }
 0x1fb   :  { %v2409_v17 = vmax.f32 %v2407_v4, %v2408_v12  ;;  %v1931_v18 = vmax.f32 %v1929_v0, %v1930_v8  ;;  %v2410_v19 = vsel %vm2058_vm1, %v1875_v7, -inf  ;;  %v1881_v20 = vrot.slane %v1880_v9, 1 }
 0x1fc   :  { %v1936_v21 = vmax.f32 %v1934_v5, %v1935_v13  ;;  %v1886_v22 = vrot.slane %v1885_v14, 2  ;;  %v1941_v23 = vmax.f32 %v1939_v10, %v1940_v15  ;;  %v1946_v24 = vsel %vm265_vm0, %v249_v11, -inf  ;;  %v260_v10 = vld [vmem:[%s4048_s0 + $0x1f6] sm:$0x3] }
 0x1fd   :  { %2560 = vst.msk [vmem:[#allocation2 + $0x74] sm:$0x1] %vm2443_vm2, %v2409_v17  ;;  %v2411_v26 = vsel %vm2058_vm1, %v1931_v18, -inf  ;;  %v1882_v27 = vmax.f32 %v1880_v9, %v1881_v20  ;;  %v1947_v28 = vrot.slane %v1946_v24, 4  ;;  %v2002_v29 = vsel %vm265_vm0, %v257_v16, -inf }
 0x1fe   :  { %v2412_v30 = vmax.f32 %v2410_v19, %v2411_v26  ;;  %v1937_v31 = vrot.slane %v1936_v21, 1  ;;  %v1887_v32 = vmax.f32 %v1885_v14, %v1886_v22  ;;  %v1942_v33 = vrot.slane %v1941_v23, 2 }
 0x1ff   :  { %v2413_v36 = vsel %vm2058_vm1, %v1882_v27, -inf  ;;  %v1948_v37 = vmax.f32 %v1946_v24, %v1947_v28  ;;  %v2003_v38 = vrot.slane %v2002_v29, 4  ;;  %v1953_v39 = vsel %vm265_vm0, %v250_v25, -inf  ;;  %v261_v28 = vld [vmem:[%s4048_s0 + $0x1f8] sm:$0x3] }
 0x200   :  { %2561 = vst.msk [vmem:[#allocation2 + $0x75] sm:$0x1] %vm2443_vm2, %v2412_v30  ;;  %v1938_v40 = vmax.f32 %v1936_v21, %v1937_v31  ;;  %v1888_v41 = vrot.slane %v1887_v32, 1  ;;  %v1943_v42 = vmax.f32 %v1941_v23, %v1942_v33  ;;  %v1954_v43 = vrot.slane %v1953_v39, 4  ;;  %v253_v23 = vld [vmem:[%s4048_s0 + $0x1e8] sm:$0x3] }
 0x201   :  { %v1949_v44 = vrot.slane %v1948_v37, 2  ;;  %v2004_v45 = vmax.f32 %v2002_v29, %v2003_v38  ;;  %v2009_v46 = vsel %vm265_vm0, %v258_v34, -inf  ;;  %v1960_v47 = vsel %vm265_vm0, %v251_v35, -inf }
 0x202   :  { %v2414_v48 = vsel %vm2058_vm1, %v1938_v40, -inf  ;;  %v1889_v49 = vmax.f32 %v1887_v32, %v1888_v41  ;;  %v1944_v50 = vrot.slane %v1943_v42, 1  ;;  %v1955_v51 = vmax.f32 %v1953_v39, %v1954_v43  ;;  %v254_v41 = vld [vmem:[%s4048_s0 + $0x1ea] sm:$0x3] }
 0x203   :  { %v2415_v53 = vmax.f32 %v2413_v36, %v2414_v48  ;;  %v1950_v54 = vmax.f32 %v1948_v37, %v1949_v44  ;;  %v2005_v55 = vrot.slane %v2004_v45, 2  ;;  %v2010_v56 = vrot.slane %v2009_v46, 4 }
 0x204   :  { %v1945_v57 = vmax.f32 %v1943_v42, %v1944_v50  ;;  %v2416_v58 = vsel %vm2058_vm1, %v1889_v49, -inf  ;;  %v1956_v59 = vrot.slane %v1955_v51, 2  ;;  %v1961_v60 = vrot.slane %v1960_v47, 4 }
 0x205   :  { %2562 = vst.msk [vmem:[#allocation2 + $0x76] sm:$0x1] %vm2443_vm2, %v2415_v53  ;;  %v1951_v61 = vrot.slane %v1950_v54, 1  ;;  %v2006_v62 = vmax.f32 %v2004_v45, %v2005_v55  ;;  %v2011_v63 = vmax.f32 %v2009_v46, %v2010_v56  ;;  %v2016_v0 = vsel %vm265_vm0, %v259_v52, -inf  ;;  %v262_v46 = vld [vmem:[%s4048_s0 + $0x1fa] sm:$0x3] }
 0x206   :  { %v2417_v2 = vsel %vm2058_vm1, %v1945_v57, -inf  ;;  %v1957_v3 = vmax.f32 %v1955_v51, %v1956_v59  ;;  %v1962_v4 = vmax.f32 %v1960_v47, %v1961_v60  ;;  %v2017_v5 = vrot.slane %v2016_v0, 4  ;;  %v255_v55 = vld [vmem:[%s4048_s0 + $0x1ec] sm:$0x3] }
 0x207   :  { %v2418_v6 = vmax.f32 %v2416_v58, %v2417_v2  ;;  %v1952_v7 = vmax.f32 %v1950_v54, %v1951_v61  ;;  %v2007_v8 = vrot.slane %v2006_v62, 1  ;;  %v2012_v9 = vrot.slane %v2011_v63, 2 }
 0x208   :  { %v1958_v11 = vrot.slane %v1957_v3, 1  ;;  %v1963_v12 = vrot.slane %v1962_v4, 2  ;;  %v2018_v13 = vmax.f32 %v2016_v0, %v2017_v5  ;;  %v1967_v14 = vsel %vm265_vm0, %v252_v1, -inf  ;;  %v263_v0 = vld [vmem:[%s4048_s0 + $0x1fc] sm:$0x3] }
 0x209   :  { %2563 = vst.msk [vmem:[#allocation2 + $0x77] sm:$0x1] %vm2443_vm2, %v2418_v6  ;;  %v2008_v15 = vmax.f32 %v2006_v62, %v2007_v8  ;;  %v2419_v16 = vsel %vm2058_vm1, %v1952_v7, -inf  ;;  %v2013_v17 = vmax.f32 %v2011_v63, %v2012_v9  ;;  %v1968_v18 = vrot.slane %v1967_v14, 4 }
 0x20a   :  { %v1959_v19 = vmax.f32 %v1957_v3, %v1958_v11  ;;  %v1964_v20 = vmax.f32 %v1962_v4, %v1963_v12  ;;  %v2019_v21 = vrot.slane %v2018_v13, 2  ;;  %v2023_v22 = vsel %vm265_vm0, %v260_v10, -inf }
 0x20b   :  { %v2420_v24 = vsel %vm2058_vm1, %v2008_v15, -inf  ;;  %v2014_v25 = vrot.slane %v2013_v17, 1  ;;  %v1969_v26 = vmax.f32 %v1967_v14, %v1968_v18  ;;  %v2024_v27 = vrot.slane %v2023_v22, 4 }
 0x20c   :  { %v2421_v29 = vmax.f32 %v2419_v16, %v2420_v24  ;;  %v2422_v30 = vsel %vm2058_vm1, %v1959_v19, -inf  ;;  %v1965_v31 = vrot.slane %v1964_v20, 1  ;;  %v2020_v32 = vmax.f32 %v2018_v13, %v2019_v21  ;;  %v256_v13 = vld [vmem:[%s4048_s0 + $0x1ee] sm:$0x3] }
 0x20d   :  { %v2015_v33 = vmax.f32 %v2013_v17, %v2014_v25  ;;  %v1970_v34 = vrot.slane %v1969_v26, 2  ;;  %v2025_v35 = vmax.f32 %v2023_v22, %v2024_v27  ;;  %v1974_v36 = vsel %vm265_vm0, %v253_v23, -inf  ;;  %v264_v22 = vld [vmem:[%s4048_s0 + $0x1fe] sm:$0x3]  ;;  %s2615_s0 = smov [#allocation2]  }
 0x20e   :  { %2564 = vst.msk [vmem:[#allocation2 + $0x78] sm:$0x1] %vm2443_vm2, %v2421_v29  ;;  %v1966_v37 = vmax.f32 %v1964_v20, %v1965_v31  ;;  %v2021_v38 = vrot.slane %v2020_v32, 1  ;;  %v1975_v39 = vrot.slane %v1974_v36, 4  ;;  %v2030_v40 = vsel %vm265_vm0, %v261_v28, -inf  ;;  %s2577_s25 = sshll.u32 %s2615_s0, 4  ;;  %s2578_s25 = int_to_ptr.vmem [resolvable:$true] %s2577_s25 }
 0x20f   :  { %v2423_v42 = vsel %vm2058_vm1, %v2015_v33, -inf  ;;  %v1971_v43 = vmax.f32 %v1969_v26, %v1970_v34  ;;  %v2026_v44 = vrot.slane %v2025_v35, 2  ;;  %v2031_v45 = vrot.slane %v2030_v40, 4  ;;  %s2591_s26 = scalar_lea.vmem %s2578_s25, 2048  ;;  %p2596_p1 = scmp.lt.s32.totalorder %s2578_s25, %s2578_s25 }
 0x210   :  { %v2424_v47 = vmax.f32 %v2422_v30, %v2423_v42  ;;  %v2022_v48 = vmax.f32 %v2020_v32, %v2021_v38  ;;  %v2425_v49 = vsel %vm2058_vm1, %v1966_v37, -inf  ;;  %v1976_v50 = vmax.f32 %v1974_v36, %v1975_v39  ;;  %p2592_p0 = scmp.ne.s32.totalorder %s2578_s25, %s2591_s26  ;;  %p2597_p2 = scmp.lt.s32.totalorder %s2591_s26, %s2591_s26 }
 0x211   :  { %v1972_v51 = vrot.slane %v1971_v43, 1  ;;  %v2027_v52 = vmax.f32 %v2025_v35, %v2026_v44  ;;  %v2032_v53 = vmax.f32 %v2030_v40, %v2031_v45  ;;  %v1981_v54 = vsel %vm265_vm0, %v254_v41, -inf }
 0x212   :  { %2565 = vst.msk [vmem:[#allocation2 + $0x79] sm:$0x1] %vm2443_vm2, %v2424_v47  ;;  %v2426_v56 = vsel %vm2058_vm1, %v2022_v48, -inf  ;;  %v1977_v57 = vrot.slane %v1976_v50, 2  ;;  %v1982_v58 = vrot.slane %v1981_v54, 4  ;;  %v2037_v59 = vsel %vm265_vm0, %v262_v46, -inf  ;;  %p2598_p3 = por %p2597_p2, %p2596_p1 }
 0x213   :  { %v2427_v60 = vmax.f32 %v2425_v49, %v2426_v56  ;;  %v1973_v61 = vmax.f32 %v1971_v43, %v1972_v51  ;;  %v2028_v62 = vrot.slane %v2027_v52, 1  ;;  %v2033_v63 = vrot.slane %v2032_v53, 2 }
 0x214   :  { %v1978_v1 = vmax.f32 %v1976_v50, %v1977_v57  ;;  %v1983_v2 = vmax.f32 %v1981_v54, %v1982_v58  ;;  %v2038_v3 = vrot.slane %v2037_v59, 4  ;;  %v1988_v4 = vsel %vm265_vm0, %v255_v55, -inf  ;;  %p2599_p4 = pnand %p2598_p3, %p2592_p0 }
 0x215   :  { %2566 = vst.msk [vmem:[#allocation2 + $0x7a] sm:$0x1] %vm2443_vm2, %v2427_v60  ;;  %v2029_v5 = vmax.f32 %v2027_v52, %v2028_v62  ;;  %v2428_v6 = vsel %vm2058_vm1, %v1973_v61, -inf  ;;  %v2034_v7 = vmax.f32 %v2032_v53, %v2033_v63  ;;  %v1989_v8 = vrot.slane %v1988_v4, 4 }
 0x216   :  { %v1979_v9 = vrot.slane %v1978_v1, 1  ;;  %v1984_v10 = vrot.slane %v1983_v2, 2  ;;  %v2039_v11 = vmax.f32 %v2037_v59, %v2038_v3  ;;  %v2044_v12 = vsel %vm265_vm0, %v263_v0, -inf }
 0x217   :  { %v2429_v14 = vsel %vm2058_vm1, %v2029_v5, -inf  ;;  %v2035_v15 = vrot.slane %v2034_v7, 1  ;;  %v1990_v16 = vmax.f32 %v1988_v4, %v1989_v8  ;;  %v2045_v17 = vrot.slane %v2044_v12, 4 }
 0x218   :  { %v2430_v18 = vmax.f32 %v2428_v6, %v2429_v14  ;;  %v1980_v19 = vmax.f32 %v1978_v1, %v1979_v9  ;;  %v1985_v20 = vmax.f32 %v1983_v2, %v1984_v10  ;;  %v2040_v21 = vrot.slane %v2039_v11, 2 }
 0x219   :  { %v2036_v23 = vmax.f32 %v2034_v7, %v2035_v15  ;;  %v1991_v24 = vrot.slane %v1990_v16, 2  ;;  %v2046_v25 = vmax.f32 %v2044_v12, %v2045_v17  ;;  %v1995_v26 = vsel %vm265_vm0, %v256_v13, -inf }
 0x21a   :  { %2567 = vst.msk [vmem:[#allocation2 + $0x7b] sm:$0x1] %vm2443_vm2, %v2430_v18  ;;  %v2431_v27 = vsel %vm2058_vm1, %v1980_v19, -inf  ;;  %v1986_v28 = vrot.slane %v1985_v20, 1  ;;  %v2041_v29 = vmax.f32 %v2039_v11, %v2040_v21  ;;  %v1996_v30 = vrot.slane %v1995_v26, 4 }
 0x21b   :  { %v2432_v31 = vsel %vm2058_vm1, %v2036_v23, -inf  ;;  %v1992_v32 = vmax.f32 %v1990_v16, %v1991_v24  ;;  %v2047_v33 = vrot.slane %v2046_v25, 2  ;;  %v2051_v34 = vsel %vm265_vm0, %v264_v22, -inf }
 0x21c   :  { %v2433_v35 = vmax.f32 %v2431_v27, %v2432_v31  ;;  %v1987_v36 = vmax.f32 %v1985_v20, %v1986_v28  ;;  %v2042_v37 = vrot.slane %v2041_v29, 1  ;;  %v1997_v38 = vmax.f32 %v1995_v26, %v1996_v30 }
 0x21d   :  { %v1993_v39 = vrot.slane %v1992_v32, 1  ;;  %v2048_v40 = vmax.f32 %v2046_v25, %v2047_v33  ;;  %v2052_v41 = vrot.slane %v2051_v34, 4 }
 0x21e   :  { %2568 = vst.msk [vmem:[#allocation2 + $0x7c] sm:$0x1] %vm2443_vm2, %v2433_v35  ;;  %v2043_v42 = vmax.f32 %v2041_v29, %v2042_v37  ;;  %v2434_v43 = vsel %vm2058_vm1, %v1987_v36, -inf  ;;  %v1998_v44 = vrot.slane %v1997_v38, 2 }
 0x21f   :  { %v1994_v45 = vmax.f32 %v1992_v32, %v1993_v39  ;;  %v2049_v46 = vrot.slane %v2048_v40, 1  ;;  %v2053_v47 = vmax.f32 %v2051_v34, %v2052_v41 }
 0x220   :  { %v2435_v48 = vsel %vm2058_vm1, %v2043_v42, -inf  ;;  %v1999_v49 = vmax.f32 %v1997_v38, %v1998_v44 }
 0x221   :  { %v2436_v50 = vmax.f32 %v2434_v43, %v2435_v48  ;;  %v2050_v51 = vmax.f32 %v2048_v40, %v2049_v46  ;;  %v2437_v52 = vsel %vm2058_vm1, %v1994_v45, -inf  ;;  %v2054_v53 = vrot.slane %v2053_v47, 2 }
 0x222   :  { %v2000_v54 = vrot.slane %v1999_v49, 1 }
 0x223   :  { %2569 = vst.msk [vmem:[#allocation2 + $0x7d] sm:$0x1] %vm2443_vm2, %v2436_v50  ;;  %v2438_v55 = vsel %vm2058_vm1, %v2050_v51, -inf  ;;  %v2055_v56 = vmax.f32 %v2053_v47, %v2054_v53 }
 0x224   :  { %v2439_v57 = vmax.f32 %v2437_v52, %v2438_v55  ;;  %v2001_v58 = vmax.f32 %v1999_v49, %v2000_v54 }
 0x225   :  { %v2056_v59 = vrot.slane %v2055_v56, 1 }
 0x226   :  { %2570 = vst.msk [vmem:[#allocation2 + $0x7e] sm:$0x1] %vm2443_vm2, %v2439_v57  ;;  %v2440_v61 = vsel %vm2058_vm1, %v2001_v58, -inf }
 0x227   :  { %v2057_v60 = vmax.f32 %v2055_v56, %v2056_v59 }
 0x229   :  { %v2441_v62 = vsel %vm2058_vm1, %v2057_v60, -inf }
 0x22a   :  { %v2442_v63 = vmax.f32 %v2440_v61, %v2441_v62 }
 0x22c   :  { %2571 = vst.msk [vmem:[#allocation2 + $0x7f] sm:$0x1] %vm2443_vm2, %v2442_v63 }
 0x22d   :  { %2602 = shalt.err (!%p2599_p4)
}
 0x22e   :  { %s2603_s29 = scalar_lea.hbm %s4049_s1, 2048 }
 0x22f   :  { %p2604_p5 = scmp.ne.s32.totalorder %s4049_s1, %s2603_s29  ;;  %p2607_p6 = scmp.lt.u32.totalorder %s2603_s29, %s4049_s1 }
 0x231   :  { %p2609_p7 = pnand %p2607_p6, %p2604_p5 }
 0x233   :  { %2612 = shalt.err (!%p2609_p7)
}
 0x234   :  { %s2616_s5 = smov 16   ;;  %s2617_s6 = smov 1  }
 0x235   :  { %2583 = dma.vmem_to_hbm [thread:$0]  %s2578_s25, 2048, %s4049_s1, [#allocation3], %s2616_s5, %s2616_s5, %s2617_s6  }
 0x236   :  { %2613 = dma.done.wait [#allocation3], 2048  }
 0x237   :  { %2614 = vsyncadd [#allocation3], 4294965248 }
 0x238   :  { %2587 = vsyncpa [#allocation3], 1 }

// kernel: encoder_block_forward.4
= control target key start
LH: loop header
LB: loop body
LE: loop exit
PB: predicated region body
PF: predicated region fallthrough
CT: control target
= control target key end

     0   :  { %s4349_s12 = smov 0   ;;  %s4351_s13 = smov 0   ;;  %s5456_s0 = inlined_call_operand.vmem [shape: bf16[2,18,18,32], index: 0, kind: input, shape index: {}]   ;;  %s5457_s1 = inlined_call_operand.vmem [shape: bf16[3,3,32,32], index: 1, kind: input, shape index: {}]   ;;  %s5458_s2 = inlined_call_operand.vmem [shape: f32[1,32], index: 2, kind: input, shape index: {}]   ;;  %s5459_s3 = inlined_call_operand.vmem [shape: f32[2,16,16,32], index: 3, kind: output, shape index: {}]  }
   0x1   :  { %s4353_s14 = smov 0  }
   0x2 LB: > { %s22_s15 = sadd.s32 1, %s4323_s13  ;;  %p3251_p0 = scmp.ge.s32.totalorder %s4327_s14, 1  ;;  %s4327_s14 = sphi %s4353_s14, %s13_s14   ;;  %s4323_s13 = sphi %s4351_s13, %s5535_s13   ;;  %s4319_s12 = sphi %s4349_s12, %s5534_s12  }
   0x3   : > { %p23_p1 = scmp.ge.s32.totalorder %s22_s15, 2  ;;  %p168_p2 = scmp.lt.s32.totalorder %s4327_s14, 3 }
   0x5   : > { %s5537_s15 = smov (%p23_p1, %s22_s15), 0  ;;  %p169_p3 = pnand %p3251_p0, %p168_p2 }
   0x7   : > { %172 = sbr.rel (%p169_p3) target bundleno = 554 (0x22a), region = 32 }
   0xe   : > { %v4264_v0 = vld [vmem:[%s5457_s1 + $0x10] sm:$0xff]   ;;  %p202_p4 = scmp.lt.s32.totalorder %s4319_s12, 1  ;;  %v4265_v1 = vld [vmem:[%s5457_s1 + $0x40] sm:$0xff]   ;;  %v4266_v2 = vld [vmem:[%s5457_s1 + $0x18] sm:$0xff]   ;;  %vm313_vm0 = vsmask.f32 3328 }
   0xf   : > { %3655 = vmatprep.subr.bf16.mxu1 %v4264_v0  ;;  %3799 = vmatprep.subr.bf16.mxu0 %v4265_v1  ;;  %v4267_v3 = vld [vmem:[%s5457_s1 + $0x48] sm:$0xff]   ;;  %v4385_v4 = vld [vmem:[%s5457_s1] sm:$0xff]   ;;  %vm314_vm1 = vsmask.f32 7440  ;;  %v4395_v5 = vld [vmem:[%s5457_s1 + $0x50] sm:$0xff]   ;;  %vm760_vm2 = vcmask 261120  }
  0x10   : > { %s5539_s12 = smov (!%p202_p4, %s4319_s12), 1  ;;  %3656 = vmatpush3.bf16.msra.mxu1 %v4264_v0  ;;  %3800 = vmatpush3.bf16.msra.mxu0 %v4265_v1  ;;  %vm4429_vm3 = vmor %vm313_vm0, %vm314_vm1  ;;  %vm1287_vm4 = vcmask 1042432   ;;  %vm1288_vm5 = vcmask 1046532  }
  0x11   : > { %3657 = vmatprep.subr.bf16.mxu1 %v4266_v2  ;;  %s4239_s24 = smul.u32 216, %s5539_s12  ;;  %3801 = vmatprep.subr.bf16.mxu0 %v4267_v3  ;;  %vm4619_vm6 = vmor %vm1287_vm4, %vm1288_vm5  ;;  %s3492_s16 = sshll.u32 %s5539_s12, 8 }
  0x12   : > { %s5346_s19 = scalar_lea.vmem %s5459_s3, %s3492_s16 }
  0x13   : > { %s4390_s29 = scalar_lea.vmem %s5456_s0, %s4239_s24 }
  0x14   : > { %3658 = vmatpush3.bf16.msra.mxu1 %v4266_v2  ;;  %v4398_v6 = vld [vmem:[%s4390_s29] sm:$0xf]  ;;  %v4401_v7 = vld [vmem:[%s4390_s29 + $0x4] sm:$0xf]  ;;  %v225_v8 = vld [vmem:[%s4390_s29 + $0x8] sm:$0x1]  ;;  %3802 = vmatpush3.bf16.msra.mxu0 %v4267_v3 }
  0x15   : > { %v317_v9 = vshrl.u32 %v4398_v6, 16  ;;  %v320_v10 = vshll.u32 %v4398_v6, 16  ;;  %v326_v11 = vshll.u32 %v4401_v7, 16  ;;  %v330_v12 = vshrl.u32 %v4401_v7, 16  ;;  %3691 = vmatprep.subr.bf16.mxu1 %v4385_v4  ;;  %v4410_v13 = vld [vmem:[%s4390_s29 + $0xc] sm:$0xf]  ;;  %3835 = vmatprep.subr.bf16.mxu0 %v4395_v5 }
  0x16   : > { %v336_v14 = vshll.u32 %v225_v8, 16  ;;  %v4413_v15 = vld [vmem:[%s4390_s29 + $0x10] sm:$0xf]  ;;  %v4416_v16 = vld [vmem:[%s4390_s29 + $0x14] sm:$0x1]  ;;  %v341_v22 = vshrl.u32 %v4410_v13, 16 }
  0x17   : > { %v319_v17 = vrot.slane %v317_v9, 4  ;;  %v322_v18 = vrot.slane %v320_v10, 5  ;;  %v328_v19 = vrot.slane %v326_v11, 5  ;;  %v332_v20 = vrot.slane %v330_v12, 4  ;;  %v4425_v29 = vld [vmem:[%s4390_s29 + $0x18] sm:$0xf] }
  0x18   : > { %v338_v21 = vrot.slane %v336_v14, 5  ;;  %v344_v23 = vshll.u32 %v4410_v13, 16  ;;  %v350_v24 = vshll.u32 %v4413_v15, 16  ;;  %v354_v27 = vshrl.u32 %v4413_v15, 16  ;;  %v4438_v35 = vld [vmem:[%s4390_s29 + $0x1c] sm:$0xf] }
  0x19   : > { %v323_v25 = vor.u32 %v322_v18, %v319_v17  ;;  %v333_v26 = vor.u32 %v332_v20, %v328_v19  ;;  %v360_v28 = vshll.u32 %v4416_v16, 16  ;;  %v343_v31 = vrot.slane %v341_v22, 4  ;;  %v4442_v42 = vld [vmem:[%s4390_s29 + $0x20] sm:$0x1]  ;;  %v4452_v49 = vld [vmem:[%s4390_s29 + $0x24] sm:$0xf] }
  0x1a   : > { %v346_v32 = vrot.slane %v344_v23, 5  ;;  %v352_v33 = vrot.slane %v350_v24, 5  ;;  %v4435_v34 = vcombine.low %v4410_v13, %v4413_v15  ;;  %v356_v38 = vrot.slane %v354_v27, 4  ;;  %v4455_v54 = vld [vmem:[%s4390_s29 + $0x28] sm:$0xf] }
  0x1b   : > { %v324_v36 = vrot.slane %v323_v25, 4  ;;  %v334_v37 = vrot.slane %v333_v26, 4  ;;  %v362_v39 = vrot.slane %v360_v28, 5  ;;  %v1302_v41 = vrot.slane %v4416_v16, 5  ;;  %v4460_v59 = vld [vmem:[%s4390_s29 + $0x2c] sm:$0x1] }
  0x1c   : > { %v347_v40 = vor.u32 %v346_v32, %v343_v31  ;;  %v365_v43 = vshrl.u32 %v4425_v29, 16  ;;  %v368_v44 = vshll.u32 %v4425_v29, 16  ;;  %v357_v47 = vor.u32 %v356_v38, %v352_v33  ;;  %v4468_v0 = vld [vmem:[%s4390_s29 + $0x30] sm:$0xf]  ;;  %v4272_v14 = vld [vmem:[%s5457_s1 + $0x8] sm:$0xff]  }
  0x1d   : > { %v329_v45 = vsel %vm4429_vm3, %v324_v36, %v328_v19  ;;  %v339_v46 = vsel %vm4429_vm3, %v334_v37, %v338_v21  ;;  %v374_v48 = vshll.u32 %v4438_v35, 16  ;;  %v378_v57 = vshrl.u32 %v4438_v35, 16  ;;  %v4481_v21 = vld [vmem:[%s4390_s29 + $0x34] sm:$0xf]  ;;  %v4488_v25 = vld [vmem:[%s4390_s29 + $0x38] sm:$0x1] }
  0x1e   : > { %v3255_v50 = vcombine.low %v329_v45, %v339_v46  ;;  %v348_v51 = vrot.slane %v347_v40, 4  ;;  %v367_v52 = vrot.slane %v365_v43, 4  ;;  %v370_v53 = vrot.slane %v368_v44, 5  ;;  %v4502_v45 = vld [vmem:[%s4390_s29 + $0x40] sm:$0xf] }
  0x1f   : > { %v358_v55 = vrot.slane %v357_v47, 4  ;;  %v376_v56 = vrot.slane %v374_v48, 5  ;;  %v384_v58 = vshll.u32 %v4442_v42, 16  ;;  %v1306_v62 = vrot.slane %v4438_v35, 5  ;;  %v4507_v46 = vld [vmem:[%s5457_s1 + $0x20] sm:$0xff]  }
  0x20   : > { %3659 = vmatprep.mubr.msk.bf16.mxu1 %vm760_vm2, %v3255_v50  ;;  %v353_v60 = vsel %vm4429_vm3, %v348_v51, %v352_v33  ;;  %v371_v61 = vor.u32 %v370_v53, %v367_v52  ;;  %v1309_v63 = vrot.slane %v4442_v42, 5  ;;  %v380_v2 = vrot.slane %v378_v57, 4  ;;  %v4512_v52 = vld [vmem:[%s4390_s29 + $0x44] sm:$0x1]  ;;  %v4271_v53 = vld [vmem:[%s5457_s1 + $0x58] sm:$0xff]  }
  0x21   : > { %v363_v1 = vsel %vm4429_vm3, %v358_v55, %v362_v39  ;;  %v386_v3 = vrot.slane %v384_v58, 5  ;;  %v389_v8 = vshrl.u32 %v4452_v49, 16  ;;  %v392_v11 = vshll.u32 %v4452_v49, 16  ;;  %v4496_v39 = vld [vmem:[%s4390_s29 + $0x3c] sm:$0xf] }
  0x22   : > { %v3256_v9 = vcombine.low %v353_v60, %v363_v1  ;;  %v372_v10 = vrot.slane %v371_v61, 4  ;;  %v398_v12 = vshll.u32 %v4455_v54, 16  ;;  %v381_v17 = vor.u32 %v380_v2, %v376_v56  ;;  %v4518_v55 = vld [vmem:[%s4390_s29 + $0x48] sm:$0xf]  ;;  %v4522_v61 = vld [vmem:[%s4390_s29 + $0x4c] sm:$0xf] }
  0x23   : > { %v391_v18 = vrot.slane %v389_v8, 4  ;;  %v402_v19 = vshrl.u32 %v4455_v54, 16  ;;  %v408_v20 = vshll.u32 %v4460_v59, 16  ;;  %v394_v23 = vrot.slane %v392_v11, 5 }
  0x24   : > { %3803 = vmatprep.mubr.msk.bf16.mxu0 %vm760_vm2, %v3256_v9  ;;  %3660 = vmatmul.mubr.msk.bf16.vlgmr.msra.gmra.mrb[0].mxu1 %vm760_vm2, %v3256_v9  ;;  %v377_v22 = vsel %vm4429_vm3, %v372_v10, %v376_v56  ;;  %v400_v24 = vrot.slane %v398_v12, 5  ;;  %v413_v26 = vshrl.u32 %v4468_v0, 16  ;;  %v382_v27 = vrot.slane %v381_v17, 4 }
  0x25   : > { %3692 = vmatpush3.bf16.msra.mxu1 %v4385_v4  ;;  %v404_v28 = vrot.slane %v402_v19, 4  ;;  %v410_v31 = vrot.slane %v408_v20, 5  ;;  %v416_v32 = vshll.u32 %v4468_v0, 16  ;;  %v395_v33 = vor.u32 %v394_v23, %v391_v18 }
  0x26   : > { %v415_v36 = vrot.slane %v413_v26, 4  ;;  %v422_v37 = vshll.u32 %v4481_v21, 16  ;;  %v426_v38 = vshrl.u32 %v4481_v21, 16  ;;  %3693 = vmatprep.subr.bf16.mxu1 %v4272_v14  ;;  %v387_v40 = vsel %vm4429_vm3, %v382_v27, %v386_v3 }
  0x27   : > { %v405_v4 = vor.u32 %v404_v28, %v400_v24  ;;  %v418_v43 = vrot.slane %v416_v32, 5  ;;  %v432_v44 = vshll.u32 %v4488_v25, 16  ;;  %v4509_v47 = vcombine.low %v377_v22, %v387_v40  ;;  %v4555_v28 = vld [vmem:[%s4390_s29 + $0x50] sm:$0x1] }
  0x28   : > { %v396_v48 = vrot.slane %v395_v33, 4  ;;  %v424_v50 = vrot.slane %v422_v37, 5  ;;  %v428_v51 = vrot.slane %v426_v38, 4  ;;  %v437_v60 = vshrl.u32 %v4496_v39, 16  ;;  %v4560_v33 = vld [vmem:[%s4390_s29 + $0x54] sm:$0xf] }
  0x29   : > { %5492 = vst [vmem:[#allocation2_spill] sm:$0xff] %v4509_v47  ;;  %v406_v56 = vrot.slane %v405_v4, 4  ;;  %v419_v57 = vor.u32 %v418_v43, %v415_v36  ;;  %v434_v58 = vrot.slane %v432_v44, 5  ;;  %3694 = vmatpush3.bf16.msra.mxu1 %v4272_v14  ;;  %3804 = vmatmul.mubr.msk.bf16.vlgmr.msra.gmra.mrb[0].mxu0 %vm760_vm2, %v4509_v47  ;;  %v440_v3 = vshll.u32 %v4496_v39, 16  ;;  %5494 = vst [vmem:[#allocation4_spill] sm:$0xff] %v4560_v33 }
  0x2a   : > { %3663 = vmatprep.mubr.msk.bf16.mxu1 %vm760_vm2, %v4509_v47  ;;  %v401_v1 = vsel %vm4429_vm3, %v396_v48, %v400_v24  ;;  %v429_v2 = vor.u32 %v428_v51, %v424_v50  ;;  %v446_v8 = vshll.u32 %v4502_v45, 16  ;;  %3836 = vmatpush3.bf16.msra.mxu0 %v4395_v5  ;;  %v439_v11 = vrot.slane %v437_v60, 4  ;;  %v4542_v5 = vld [vmem:[%s5457_s1 + $0x60] sm:$0xff]   ;;  %v4565_v4 = vld [vmem:[%s4390_s29 + $0x58] sm:$0xf] }
  0x2b   : > { %v411_v9 = vsel %vm4429_vm3, %v406_v56, %v410_v31  ;;  %v420_v10 = vrot.slane %v419_v57, 4  ;;  %v450_v12 = vshrl.u32 %v4502_v45, 16  ;;  %3727 = vmatprep.subr.bf16.mxu1 %v4507_v46  ;;  %v442_v18 = vrot.slane %v440_v3, 5  ;;  %3837 = vmatprep.subr.bf16.mxu0 %v4271_v53 }
  0x2c   : > { %v4537_v14 = vcombine.low %v401_v1, %v411_v9  ;;  %v430_v17 = vrot.slane %v429_v2, 4  ;;  %v448_v19 = vrot.slane %v446_v8, 5  ;;  %v456_v23 = vshll.u32 %v4512_v52, 16  ;;  %v4579_v2 = vld [vmem:[%s4390_s29 + $0x5c] sm:$0x1] }
  0x2d   : > { %v425_v20 = vsel %vm4429_vm3, %v420_v10, %v424_v50  ;;  %v452_v22 = vrot.slane %v450_v12, 4  ;;  %v461_v24 = vshrl.u32 %v4518_v55, 16  ;;  %v443_v27 = vor.u32 %v442_v18, %v439_v11  ;;  %v4583_v8 = vld [vmem:[%s4390_s29 + $0x60] sm:$0xf] }
  0x2e   : > { %5493 = vst [vmem:[#allocation3_spill] sm:$0xff] %v4537_v14  ;;  %3807 = vmatprep.mubr.msk.bf16.mxu0 %vm760_vm2, %v4537_v14  ;;  %3664 = vmatmul.mubr.msk.bf16.gmra.mrb[4].mxu1 %vm760_vm2, %v4537_v14  ;;  %v435_v26 = vsel %vm4429_vm3, %v430_v17, %v434_v58  ;;  %v464_v31 = vshll.u32 %v4518_v55, 16  ;;  %v470_v32 = vshll.u32 %v4522_v61, 16  ;;  %v458_v38 = vrot.slane %v456_v23, 5  ;;  %v4588_v17 = vld [vmem:[%s4390_s29 + $0x64] sm:$0xf] }
  0x2f   : > { %v4562_v36 = vcombine.low %v425_v20, %v435_v26  ;;  %v453_v37 = vor.u32 %v452_v22, %v448_v19  ;;  %v463_v40 = vrot.slane %v461_v24, 4  ;;  %3838 = vmatpush3.bf16.msra.mxu0 %v4271_v53  ;;  %v444_v43 = vrot.slane %v443_v27, 4  ;;  %v4802_v14 = vld [vmem:[%s4390_s29 + $0xa8] sm:$0xf] }
  0x30   : > { %v466_v44 = vrot.slane %v464_v31, 5  ;;  %v472_v48 = vrot.slane %v470_v32, 5  ;;  %v474_v50 = vshrl.u32 %v4522_v61, 16  ;;  %3871 = vmatprep.subr.bf16.mxu0 %v4542_v5  ;;  %v480_v56 = vshll.u32 %v4555_v28, 16 }
  0x31   : > { %5495 = vst [vmem:[#allocation5_spill] sm:$0xff] %v4562_v36  ;;  %3667 = vmatprep.mubr.msk.bf16.mxu1 %vm760_vm2, %v4562_v36  ;;  %v454_v51 = vrot.slane %v453_v37, 4  ;;  %v485_v53 = vshrl.u32 %v4560_v33, 16  ;;  %v488_v57 = vshll.u32 %v4560_v33, 16  ;;  %3808 = vmatmul.mubr.msk.bf16.gmra.mrb[4].mxu0 %vm760_vm2, %v4562_v36  ;;  %v449_v58 = vsel %vm4429_vm3, %v444_v43, %v448_v19  ;;  %v4602_v37 = vld [vmem:[%s4390_s29 + $0x68] sm:$0x1] }
  0x32   : > { %v467_v60 = vor.u32 %v466_v44, %v463_v40  ;;  %v476_v1 = vrot.slane %v474_v50, 4  ;;  %v494_v3 = vshll.u32 %v4565_v4, 16  ;;  %v482_v10 = vrot.slane %v480_v56, 5  ;;  %v4778_v36 = vld [vmem:[%s4390_s29 + $0xa0] sm:$0xf] }
  0x33   : > { %v459_v9 = vsel %vm4429_vm3, %v454_v51, %v458_v38  ;;  %v487_v11 = vrot.slane %v485_v53, 4  ;;  %v490_v12 = vrot.slane %v488_v57, 5  ;;  %v498_v24 = vshrl.u32 %v4565_v4, 16 }
  0x34   : > { %v4590_v18 = vcombine.low %v449_v58, %v459_v9  ;;  %v468_v19 = vrot.slane %v467_v60, 4  ;;  %v477_v20 = vor.u32 %v476_v1, %v472_v48  ;;  %v496_v22 = vrot.slane %v494_v3, 5 }
  0x35   : > { %v491_v23 = vor.u32 %v490_v12, %v487_v11  ;;  %v504_v26 = vshll.u32 %v4579_v2, 16  ;;  %v509_v27 = vshrl.u32 %v4583_v8, 16  ;;  %v512_v38 = vshll.u32 %v4583_v8, 16 }
  0x36   : > { %5496 = vst [vmem:[#allocation6_spill] sm:$0xff] %v4590_v18  ;;  %3811 = vmatprep.mubr.msk.bf16.mxu0 %vm760_vm2, %v4590_v18  ;;  %3668 = vmatmul.mubr.msk.bf16.gmra.mrb[8].mxu1 %vm760_vm2, %v4590_v18  ;;  %v473_v31 = vsel %vm4429_vm3, %v468_v19, %v472_v48  ;;  %v478_v32 = vrot.slane %v477_v20, 4  ;;  %v518_v40 = vshll.u32 %v4588_v17, 16  ;;  %v500_v44 = vrot.slane %v498_v24, 4  ;;  %v4610_v48 = vld [vmem:[%s4390_s29 + $0x6c] sm:$0xf] }
  0x37   : > { %v492_v43 = vrot.slane %v491_v23, 4  ;;  %v506_v50 = vrot.slane %v504_v26, 5  ;;  %v511_v51 = vrot.slane %v509_v27, 4  ;;  %v514_v53 = vrot.slane %v512_v38, 5  ;;  %v4626_v23 = vld [vmem:[%s4390_s29 + $0x70] sm:$0xf] }
  0x38   : > { %v483_v56 = vsel %vm4429_vm3, %v478_v32, %v482_v10  ;;  %v520_v57 = vrot.slane %v518_v40, 5  ;;  %v522_v58 = vshrl.u32 %v4588_v17, 16  ;;  %v501_v3 = vor.u32 %v500_v44, %v496_v22  ;;  %v4633_v26 = vld [vmem:[%s4390_s29 + $0x74] sm:$0x1]  ;;  %v4640_v40 = vld [vmem:[%s4390_s29 + $0x78] sm:$0xf] }
  0x39   : > { %v4612_v60 = vcombine.low %v473_v31, %v483_v56  ;;  %v497_v1 = vsel %vm4429_vm3, %v492_v43, %v496_v22  ;;  %v528_v9 = vshll.u32 %v4602_v37, 16  ;;  %v515_v10 = vor.u32 %v514_v53, %v511_v51 }
  0x3a   : > { %v524_v12 = vrot.slane %v522_v58, 4  ;;  %v3324_v19 = vrot.slane %v4410_v13, 9  ;;  %v1299_v20 = vrot.slane %v4413_v15, 5  ;;  %v502_v22 = vrot.slane %v501_v3, 4 }
  0x3b   : > { %5497 = vst [vmem:[#allocation7_spill] sm:$0xff] %v4612_v60  ;;  %3812 = vmatmul.mubr.msk.bf16.gmra.mrb[8].mxu0 %vm760_vm2, %v4612_v60  ;;  %3671 = vmatprep.mubr.msk.bf16.mxu1 %vm760_vm2, %v4612_v60  ;;  %v530_v24 = vrot.slane %v528_v9, 5  ;;  %v533_v27 = vshrl.u32 %v4610_v48, 16  ;;  %v536_v31 = vshll.u32 %v4610_v48, 16  ;;  %v516_v32 = vrot.slane %v515_v10, 4 }
  0x3c   : > { %v525_v13 = vor.u32 %v524_v12, %v520_v57  ;;  %v1300_v15 = vsel %vm4619_vm6, %v3324_v19, %v1299_v20  ;;  %v1301_v38 = vrot.slane %v1299_v20, 4  ;;  %v507_v43 = vsel %vm4429_vm3, %v502_v22, %v506_v50  ;;  %v4657_v20 = vld [vmem:[%s4390_s29 + $0x7c] sm:$0xf]  ;;  %v4670_v22 = vld [vmem:[%s4390_s29 + $0x80] sm:$0x1] }
  0x3d   : > { %v535_v44 = vrot.slane %v533_v27, 4  ;;  %v538_v51 = vrot.slane %v536_v31, 5  ;;  %v542_v56 = vshll.u32 %v4626_v23, 16  ;;  %v4645_v53 = vcombine.low %v497_v1, %v507_v43  ;;  %v4771_v60 = vld [vmem:[%s4390_s29 + $0x9c] sm:$0xf] }
  0x3e   : > { %v521_v58 = vsel %vm4429_vm3, %v516_v32, %v520_v57  ;;  %v526_v3 = vrot.slane %v525_v13, 4  ;;  %v1303_v9 = vsel %vm4619_vm6, %v1301_v38, %v1302_v41  ;;  %v546_v19 = vshrl.u32 %v4626_v23, 16 }
  0x3f   : > { %5500 = vst [vmem:[#allocation8_spill] sm:$0xff] %v4645_v53  ;;  %v4653_v10 = vcombine.low %v1300_v15, %v1303_v9  ;;  %v539_v12 = vor.u32 %v538_v51, %v535_v44  ;;  %v544_v50 = vrot.slane %v542_v56, 5  ;;  %3815 = vmatprep.mubr.msk.bf16.mxu0 %vm760_vm2, %v4645_v53  ;;  %3672 = vmatmul.mubr.msk.bf16.gmra.mrb[12].mxu1 %vm760_vm2, %v4645_v53  ;;  %v552_v41 = vshll.u32 %v4633_v26, 16  ;;  %v4685_v44 = vld [vmem:[%s4390_s29 + $0x84] sm:$0xf] }
  0x40   : > { %v531_v16 = vsel %vm4429_vm3, %v526_v3, %v530_v24  ;;  %v3325_v57 = vrot.slane %v4425_v29, 9  ;;  %v1308_v1 = vrot.slane %v1306_v62, 4  ;;  %v548_v32 = vrot.slane %v546_v19, 4 }
  0x41   : > { %5501 = vst [vmem:[#allocation9_spill] sm:$0xff] %v4653_v10  ;;  %v4672_v27 = vcombine.low %v521_v58, %v531_v16  ;;  %v540_v31 = vrot.slane %v539_v12, 4  ;;  %v557_v13 = vshrl.u32 %v4640_v40, 16  ;;  %v554_v15 = vrot.slane %v552_v41, 5  ;;  %v4701_v12 = vld [vmem:[%s4390_s29 + $0x88] sm:$0xf] }
  0x42   : > { %v1307_v24 = vsel %vm4619_vm6, %v3325_v57, %v1306_v62  ;;  %v1310_v38 = vsel %vm4619_vm6, %v1308_v1, %v1309_v63  ;;  %v560_v43 = vshll.u32 %v4640_v40, 16  ;;  %v549_v56 = vor.u32 %v548_v32, %v544_v50 }
  0x43   : > { %5502 = vst [vmem:[#allocation10_spill] sm:$0xff] %v4672_v27  ;;  %3816 = vmatmul.mubr.msk.bf16.gmra.mrb[12].mxu0 %vm760_vm2, %v4672_v27  ;;  %3675 = vmatprep.mubr.msk.bf16.mxu1 %vm760_vm2, %v4672_v27  ;;  %v545_v51 = vsel %vm4429_vm3, %v540_v31, %v544_v50  ;;  %v4693_v62 = vcombine.low %v1307_v24, %v1310_v38  ;;  %v559_v42 = vrot.slane %v557_v13, 4  ;;  %v566_v58 = vshll.u32 %v4657_v20, 16  ;;  %v4707_v13 = vld [vmem:[%s4390_s29 + $0x8c] sm:$0x1] }
  0x44   : > { %3839 = vmatprep.mubr.msk.bf16.mxu0 %vm760_vm2, %v4653_v10  ;;  %v562_v63 = vrot.slane %v560_v43, 5  ;;  %v570_v3 = vshrl.u32 %v4657_v20, 16  ;;  %v576_v9 = vshll.u32 %v4670_v22, 16  ;;  %v550_v19 = vrot.slane %v549_v56, 4 }
  0x45   : > { %5503 = vst [vmem:[#allocation11_spill] sm:$0xff] %v4693_v62  ;;  %v3326_v16 = vrot.slane %v4452_v49, 9  ;;  %v1313_v50 = vrot.slane %v4455_v54, 5  ;;  %v1316_v41 = vrot.slane %v4460_v59, 5  ;;  %v568_v1 = vrot.slane %v566_v58, 5 }
  0x46   : > { %v563_v57 = vor.u32 %v562_v63, %v559_v42  ;;  %v572_v31 = vrot.slane %v570_v3, 4  ;;  %v578_v32 = vrot.slane %v576_v9, 5  ;;  %v555_v24 = vsel %vm4429_vm3, %v550_v19, %v554_v15  ;;  %v4276_v9 = vld [vmem:[%s5457_s1 + $0x68] sm:$0xff]  }
  0x47   : > { %v1314_v38 = vsel %vm4619_vm6, %v3326_v16, %v1313_v50  ;;  %v1315_v43 = vrot.slane %v1313_v50, 4  ;;  %v581_v56 = vshrl.u32 %v4685_v44, 16  ;;  %v4714_v27 = vcombine.low %v545_v51, %v555_v24 }
  0x48   : > { %v564_v53 = vrot.slane %v563_v57, 4  ;;  %v573_v59 = vor.u32 %v572_v31, %v568_v1  ;;  %v584_v42 = vshll.u32 %v4685_v44, 16  ;;  %v590_v3 = vshll.u32 %v4701_v12, 16 }
  0x49   : > { %5504 = vst [vmem:[#allocation12_spill] sm:$0xff] %v4714_v27  ;;  %v1317_v63 = vsel %vm4619_vm6, %v1315_v43, %v1316_v41  ;;  %v583_v58 = vrot.slane %v581_v56, 4  ;;  %v594_v15 = vshrl.u32 %v4701_v12, 16  ;;  %3676 = vmatmul.mubr.msk.bf16.gmra.mrb[16].mxu1 %vm760_vm2, %v4714_v27  ;;  %v4731_v41 = vld [vmem:[%s4390_s29 + $0x90] sm:$0xf]  ;;  %v600_v24 = vshll.u32 %v4707_v13, 16 }
  0x4a   : > { %v569_v51 = vsel %vm4429_vm3, %v564_v53, %v568_v1  ;;  %v574_v19 = vrot.slane %v573_v59, 4  ;;  %v4728_v16 = vcombine.low %v1314_v38, %v1317_v63  ;;  %v586_v50 = vrot.slane %v584_v42, 5  ;;  %v4745_v59 = vld [vmem:[%s4390_s29 + $0x94] sm:$0xf] }
  0x4b   : > { %3840 = vmatmul.mubr.msk.bf16.vlgmr.msra.gmra.mrb[0].mxu0 %vm760_vm2, %v4693_v62  ;;  %v592_v57 = vrot.slane %v590_v3, 5  ;;  %v596_v31 = vrot.slane %v594_v15, 4  ;;  %v3327_v43 = vrot.slane %v4468_v0, 9  ;;  %v1320_v38 = vrot.slane %v4481_v21, 5  ;;  %v4750_v15 = vld [vmem:[%s4390_s29 + $0x98] sm:$0x1] }
  0x4c   : > { %5505 = vst [vmem:[#allocation13_spill] sm:$0xff] %v4728_v16  ;;  %3872 = vmatpush3.bf16.msra.mxu0 %v4542_v5  ;;  %v579_v53 = vsel %vm4429_vm3, %v574_v19, %v578_v32  ;;  %3843 = vmatprep.mubr.msk.bf16.mxu0 %vm760_vm2, %v4728_v16  ;;  %v587_v1 = vor.u32 %v586_v50, %v583_v58  ;;  %v1323_v56 = vrot.slane %v4488_v25, 5  ;;  %v602_v3 = vrot.slane %v600_v24, 5  ;;  %v4756_v32 = vld [vmem:[%s5457_s1 + $0x70] sm:$0xff]  }
  0x4d   : > { %v4747_v42 = vcombine.low %v569_v51, %v579_v53  ;;  %v597_v63 = vor.u32 %v596_v31, %v592_v57  ;;  %v605_v5 = vshrl.u32 %v4731_v41, 16  ;;  %3873 = vmatprep.subr.bf16.mxu0 %v4276_v9  ;;  %5507 = vst [vmem:[#allocation15_spill] sm:$0xff] %v4756_v32  ;;  %v1321_v25 = vsel %vm4619_vm6, %v3327_v43, %v1320_v38 }
  0x4e   : > { %v588_v58 = vrot.slane %v587_v1, 4  ;;  %v1322_v19 = vrot.slane %v1320_v38, 4  ;;  %v608_v51 = vshll.u32 %v4731_v41, 16  ;;  %v614_v24 = vshll.u32 %v4745_v59, 16 }
  0x4f   : > { %5506 = vst [vmem:[#allocation14_spill] sm:$0xff] %v4747_v42  ;;  %3679 = vmatprep.mubr.msk.bf16.mxu1 %vm760_vm2, %v4747_v42  ;;  %v598_v50 = vrot.slane %v597_v63, 4  ;;  %v607_v31 = vrot.slane %v605_v5, 4  ;;  %v618_v53 = vshrl.u32 %v4745_v59, 16  ;;  %v624_v38 = vshll.u32 %v4750_v15, 16 }
  0x50   : > { %v593_v27 = vsel %vm4429_vm3, %v588_v58, %v592_v57  ;;  %v1324_v1 = vsel %vm4619_vm6, %v1322_v19, %v1323_v56  ;;  %v610_v43 = vrot.slane %v608_v51, 5  ;;  %3874 = vmatpush3.bf16.msra.mxu0 %v4276_v9  ;;  %v616_v42 = vrot.slane %v614_v24, 5 }
  0x51   : > { %v603_v63 = vsel %vm4429_vm3, %v598_v50, %v602_v3  ;;  %v4775_v5 = vcombine.low %v1321_v25, %v1324_v1  ;;  %v620_v18 = vrot.slane %v618_v53, 4  ;;  %3907 = vmatprep.subr.bf16.mxu0 %v4756_v32  ;;  %v626_v58 = vrot.slane %v624_v38, 5  ;;  %v4792_v50 = vld [vmem:[%s4390_s29 + $0xa4] sm:$0x1] }
  0x52   : > { %v4781_v57 = vcombine.low %v593_v27, %v603_v63  ;;  %v611_v56 = vor.u32 %v610_v43, %v607_v31  ;;  %v3328_v19 = vrot.slane %v4496_v39, 9  ;;  %v1327_v3 = vrot.slane %v4502_v45, 5 }
  0x53   : > { %5508 = vst [vmem:[#allocation16_spill] sm:$0xff] %v4775_v5  ;;  %3844 = vmatmul.mubr.msk.bf16.gmra.mrb[4].mxu0 %vm760_vm2, %v4775_v5  ;;  %v621_v9 = vor.u32 %v620_v18, %v616_v42  ;;  %v1330_v25 = vrot.slane %v4512_v52, 5  ;;  %v629_v51 = vshrl.u32 %v4771_v60, 16  ;;  %v632_v31 = vshll.u32 %v4771_v60, 16 }
  0x54   : > { %5509 = vst [vmem:[#allocation17_spill] sm:$0xff] %v4781_v57  ;;  %3680 = vmatmul.mubr.msk.bf16.gmra.mrb[20].mxu1 %vm760_vm2, %v4781_v57  ;;  %v612_v27 = vrot.slane %v611_v56, 4  ;;  %v638_v24 = vshll.u32 %v4778_v36, 16  ;;  %v642_v18 = vshrl.u32 %v4778_v36, 16  ;;  %v1328_v52 = vsel %vm4619_vm6, %v3328_v19, %v1327_v3 }
  0x55   : > { %v622_v53 = vrot.slane %v621_v9, 4  ;;  %v1329_v1 = vrot.slane %v1327_v3, 4  ;;  %v631_v43 = vrot.slane %v629_v51, 4  ;;  %v634_v63 = vrot.slane %v632_v31, 5  ;;  %v4811_v3 = vld [vmem:[%s4390_s29 + $0xac] sm:$0xf] }
  0x56   : > { %v617_v38 = vsel %vm4429_vm3, %v612_v27, %v616_v42  ;;  %v640_v56 = vrot.slane %v638_v24, 5  ;;  %v644_v57 = vrot.slane %v642_v18, 4  ;;  %v648_v9 = vshll.u32 %v4792_v50, 16 }
  0x57   : > { %v627_v47 = vsel %vm4429_vm3, %v622_v53, %v626_v58  ;;  %v1331_v5 = vsel %vm4619_vm6, %v1329_v1, %v1330_v25  ;;  %v3329_v19 = vrot.slane %v4518_v55, 9  ;;  %v635_v27 = vor.u32 %v634_v63, %v631_v43 }
  0x58   : > { %v4813_v51 = vcombine.low %v617_v38, %v627_v47  ;;  %v4815_v42 = vcombine.low %v1328_v52, %v1331_v5  ;;  %v645_v31 = vor.u32 %v644_v57, %v640_v56  ;;  %v650_v24 = vrot.slane %v648_v9, 5  ;;  %v4825_v5 = vld [vmem:[%s4390_s29 + $0xb0] sm:$0x1] }
  0x59   : > { %v1334_v18 = vrot.slane %v4522_v61, 5  ;;  %v1337_v58 = vrot.slane %v4555_v28, 5  ;;  %v653_v25 = vshrl.u32 %v4802_v14, 16  ;;  %v636_v47 = vrot.slane %v635_v27, 4 }
  0x5a   : > { %5510 = vst [vmem:[#allocation18_spill] sm:$0xff] %v4813_v51  ;;  %5511 = vst [vmem:[#allocation19_spill] sm:$0xff] %v4815_v42  ;;  %3683 = vmatprep.mubr.msk.bf16.mxu1 %vm760_vm2, %v4813_v51  ;;  %3847 = vmatprep.mubr.msk.bf16.mxu0 %vm760_vm2, %v4815_v42  ;;  %v646_v53 = vrot.slane %v645_v31, 4  ;;  %v656_v57 = vshll.u32 %v4802_v14, 16  ;;  %v662_v52 = vshll.u32 %v4811_v3, 16  ;;  %v666_v38 = vshrl.u32 %v4811_v3, 16 }
  0x5b   : > { %v1335_v28 = vsel %vm4619_vm6, %v3329_v19, %v1334_v18  ;;  %v1336_v1 = vrot.slane %v1334_v18, 4  ;;  %v655_v43 = vrot.slane %v653_v25, 4  ;;  %v641_v63 = vsel %vm4429_vm3, %v636_v47, %v640_v56  ;;  %v4837_v51 = vld [vmem:[%s4390_s29 + $0xb4] sm:$0xf]  ;;  %v4849_v47 = vld [vmem:[%s4390_s29 + $0xb8] sm:$0xf] }
  0x5c   : > { %v651_v9 = vsel %vm4429_vm3, %v646_v53, %v650_v24  ;;  %v658_v27 = vrot.slane %v656_v57, 5  ;;  %v664_v31 = vrot.slane %v662_v52, 5  ;;  %v668_v18 = vrot.slane %v666_v38, 4 }
  0x5d   : > { %v4839_v42 = vcombine.low %v641_v63, %v651_v9  ;;  %v1338_v19 = vsel %vm4619_vm6, %v1336_v1, %v1337_v58  ;;  %v672_v25 = vshll.u32 %v4825_v5, 16  ;;  %v3330_v56 = vrot.slane %v4560_v33, 9  ;;  %v4855_v58 = vld [vmem:[%s4390_s29 + $0xbc] sm:$0x1] }
  0x5e   : > { %v4844_v16 = vcombine.low %v1335_v28, %v1338_v19  ;;  %v659_v62 = vor.u32 %v658_v27, %v655_v43  ;;  %v1341_v24 = vrot.slane %v4565_v4, 5  ;;  %v669_v53 = vor.u32 %v668_v18, %v664_v31 }
  0x5f   : > { %5512 = vst [vmem:[#allocation20_spill] sm:$0xff] %v4839_v42  ;;  %3684 = vmatmul.mubr.msk.bf16.gmra.mrb[24].mxu1 %vm760_vm2, %v4839_v42  ;;  %v674_v57 = vrot.slane %v672_v25, 5  ;;  %v1344_v52 = vrot.slane %v4579_v2, 5  ;;  %v677_v1 = vshrl.u32 %v4837_v51, 16  ;;  %v680_v63 = vshll.u32 %v4837_v51, 16 }
  0x60   : > { %5513 = vst [vmem:[#allocation21_spill] sm:$0xff] %v4844_v16  ;;  %3848 = vmatmul.mubr.msk.bf16.gmra.mrb[8].mxu0 %vm760_vm2, %v4844_v16  ;;  %v660_v28 = vrot.slane %v659_v62, 4  ;;  %v1342_v43 = vsel %vm4619_vm6, %v3330_v56, %v1341_v24  ;;  %v1343_v38 = vrot.slane %v1341_v24, 4  ;;  %v670_v9 = vrot.slane %v669_v53, 4 }
  0x61   : > { %v679_v27 = vrot.slane %v677_v1, 4  ;;  %v686_v19 = vshll.u32 %v4849_v47, 16  ;;  %v690_v2 = vshrl.u32 %v4849_v47, 16  ;;  %v682_v42 = vrot.slane %v680_v63, 5 }
  0x62   : > { %v665_v18 = vsel %vm4429_vm3, %v660_v28, %v664_v31  ;;  %v1345_v25 = vsel %vm4619_vm6, %v1343_v38, %v1344_v52  ;;  %v696_v62 = vshll.u32 %v4855_v58, 16  ;;  %v675_v56 = vsel %vm4429_vm3, %v670_v9, %v674_v57 }
  0x63   : > { %v4872_v24 = vcombine.low %v1342_v43, %v1345_v25  ;;  %v688_v53 = vrot.slane %v686_v19, 5  ;;  %v692_v1 = vrot.slane %v690_v2, 4  ;;  %v4874_v16 = vcombine.low %v665_v18, %v675_v56 }
  0x64   : > { %v683_v10 = vor.u32 %v682_v42, %v679_v27  ;;  %v698_v32 = vrot.slane %v696_v62, 5  ;;  %v3331_v33 = vrot.slane %v4583_v8, 9  ;;  %v1348_v52 = vrot.slane %v4588_v17, 5 }
  0x65   : > { %3851 = vmatprep.mubr.msk.bf16.mxu0 %vm760_vm2, %v4872_v24  ;;  %v693_v31 = vor.u32 %v692_v1, %v688_v53  ;;  %v1351_v28 = vrot.slane %v4602_v37, 5  ;;  %v3332_v57 = vrot.slane %v4610_v48, 9  ;;  %3687 = vmatprep.mubr.msk.bf16.mxu1 %vm760_vm2, %v4874_v16  ;;  %v3289_v42 = vcombine.low %v4398_v6, %v4401_v7 }
  0x66   : > { %v684_v43 = vrot.slane %v683_v10, 4  ;;  %v1355_v38 = vrot.slane %v4626_v23, 5  ;;  %v1358_v63 = vrot.slane %v4633_v26, 5  ;;  %v1349_v27 = vsel %vm4619_vm6, %v3331_v33, %v1348_v52 }
  0x67   : > { %v694_v9 = vrot.slane %v693_v31, 4  ;;  %v1350_v19 = vrot.slane %v1348_v52, 4  ;;  %v1362_v37 = vrot.slane %v4657_v20, 5  ;;  %v3333_v6 = vrot.slane %v4640_v40, 9 }
  0x68   : > { %v689_v2 = vsel %vm4429_vm3, %v684_v43, %v688_v53  ;;  %v1356_v10 = vsel %vm4619_vm6, %v3332_v57, %v1355_v38  ;;  %v1357_v18 = vrot.slane %v1355_v38, 4  ;;  %v1365_v33 = vrot.slane %v4670_v22, 5 }
  0x69   : > { %v699_v7 = vsel %vm4429_vm3, %v694_v9, %v698_v32  ;;  %v1352_v26 = vsel %vm4619_vm6, %v1350_v19, %v1351_v28  ;;  %v1364_v25 = vrot.slane %v1362_v37, 4  ;;  %v3334_v31 = vrot.slane %v4685_v44, 9 }
  0x6a   : > { %v4901_v62 = vcombine.low %v689_v2, %v699_v7  ;;  %v4903_v56 = vcombine.low %v1349_v27, %v1352_v26  ;;  %v1359_v53 = vsel %vm4619_vm6, %v1357_v18, %v1358_v63  ;;  %v1369_v52 = vrot.slane %v4701_v12, 5  ;;  %v4284_v7 = vld [vmem:[%s5457_s1 + $0x28] sm:$0xff]  }
  0x6b   : > { %v4907_v1 = vcombine.low %v1356_v10, %v1359_v53  ;;  %v1372_v22 = vrot.slane %v4707_v13, 5  ;;  %v1363_v32 = vsel %vm4619_vm6, %v3333_v6, %v1362_v37  ;;  %v1366_v28 = vsel %vm4619_vm6, %v1364_v25, %v1365_v33 }
  0x6c   : > { %3688 = vmatmul.mubr.msk.bf16.gmra.mrb[28].mxu1 %vm760_vm2, %v4901_v62  ;;  %3852 = vmatmul.mubr.msk.bf16.gmra.mrb[12].mxu0 %vm760_vm2, %v4903_v56  ;;  %v1371_v57 = vrot.slane %v1369_v52, 4  ;;  %v1376_v43 = vrot.slane %v4745_v59, 5  ;;  %v1383_v38 = vrot.slane %v4778_v36, 5  ;;  %v1370_v63 = vsel %vm4619_vm6, %v3334_v31, %v1369_v52 }
  0x6d   : > { %3695 = vmatprep.mubr.msk.bf16.mxu1 %vm760_vm2, %v3289_v42  ;;  %3855 = vmatprep.mubr.msk.bf16.mxu0 %vm760_vm2, %v4907_v1  ;;  %v4929_v42 = vcombine.low %v1363_v32, %v1366_v28  ;;  %v3335_v9 = vrot.slane %v4731_v41, 9  ;;  %v1379_v19 = vrot.slane %v4750_v15, 5  ;;  %v4935_v37 = vcombine.low %v4425_v29, %v4438_v35 }
  0x6e   : > { %v1373_v13 = vsel %vm4619_vm6, %v1371_v57, %v1372_v22  ;;  %v1378_v27 = vrot.slane %v1376_v43, 4  ;;  %v3336_v2 = vrot.slane %v4771_v60, 9  ;;  %v1385_v18 = vrot.slane %v1383_v38, 4 }
  0x6f   : > { %v4938_v10 = vcombine.low %v1370_v63, %v1373_v13  ;;  %v1386_v6 = vrot.slane %v4792_v50, 5  ;;  %v1390_v26 = vrot.slane %v4811_v3, 5  ;;  %v1377_v29 = vsel %vm4619_vm6, %v3335_v9, %v1376_v43 }
  0x70   : > { %v1380_v35 = vsel %vm4619_vm6, %v1378_v27, %v1379_v19  ;;  %v4958_v15 = vcombine.low %v4452_v49, %v4455_v54  ;;  %v1384_v50 = vsel %vm4619_vm6, %v3336_v2, %v1383_v38  ;;  %v4964_v25 = vcombine.low %v4583_v8, %v4588_v17  ;;  %v4979_v54 = vld [vmem:[%s5457_s1 + $0x30] sm:$0xff]  }
  0x71   : > { %v3337_v33 = vrot.slane %v4802_v14, 9  ;;  %v1397_v53 = vrot.slane %v4849_v47, 5  ;;  %v4974_v49 = vcombine.low %v4610_v48, %v4626_v23  ;;  %v4981_v8 = vcombine.low %v1377_v29, %v1380_v35 }
  0x72   : > { %v1392_v17 = vrot.slane %v1390_v26, 4  ;;  %v1393_v31 = vrot.slane %v4825_v5, 5  ;;  %v4986_v52 = vcombine.low %v4640_v40, %v4657_v20  ;;  %v4990_v22 = vcombine.low %v4685_v44, %v4701_v12  ;;  %v273_v5 = vld [vmem:[%s4390_s29 + $0xc8] sm:$0x1] }
  0x73   : > { %v4994_v48 = vcombine.low %v4731_v41, %v4745_v59  ;;  %v4998_v23 = vcombine.low %v4771_v60, %v4778_v36  ;;  %v5002_v32 = vcombine.low %v4802_v14, %v4811_v3  ;;  %v5006_v40 = vcombine.low %v4468_v0, %v4481_v21  ;;  %v5017_v14 = vld [vmem:[%s4390_s29 + $0xc4] sm:$0xf] }
  0x74   : > { %3696 = vmatmul.mubr.msk.bf16.vlgmr.msra.gmra.mrb[0].mxu1 %vm760_vm2, %v4435_v34  ;;  %3856 = vmatmul.mubr.msk.bf16.gmra.mrb[16].mxu0 %vm760_vm2, %v4929_v42  ;;  %v5012_v44 = vcombine.low %v4837_v51, %v4849_v47  ;;  %v3338_v36 = vrot.slane %v4837_v51, 9  ;;  %v1399_v60 = vrot.slane %v1397_v53, 4  ;;  %v1400_v12 = vrot.slane %v4855_v58, 5  ;;  %v5038_v51 = vld [vmem:[%s4390_s29 + $0xc0] sm:$0xf] }
  0x75   : > { %3728 = vmatpush3.bf16.msra.mxu1 %v4507_v46  ;;  %3699 = vmatprep.mubr.msk.bf16.mxu1 %vm760_vm2, %v4935_v37  ;;  %v1387_v46 = vsel %vm4619_vm6, %v1385_v18, %v1386_v6  ;;  %v1391_v0 = vsel %vm4619_vm6, %v3337_v33, %v1390_v26  ;;  %v1394_v21 = vsel %vm4619_vm6, %v1392_v17, %v1393_v31  ;;  %v2154_v41 = vrot.slane %v5017_v14, 5 }
  0x76   : > { %3859 = vmatprep.mubr.msk.bf16.mxu0 %vm760_vm2, %v4938_v10  ;;  %3729 = vmatprep.subr.bf16.mxu1 %v4284_v7  ;;  %v5008_v20 = vcombine.low %v1384_v50, %v1387_v46  ;;  %v1398_v59 = vsel %vm4619_vm6, %v3338_v36, %v1397_v53  ;;  %v1401_v3 = vsel %vm4619_vm6, %v1399_v60, %v1400_v12  ;;  %v1917_v57 = vshrl.u32 %v5038_v51, 16  ;;  %v5514_v46 = vld [vmem:[#allocation4_spill] sm:$0xff]  ;;  %v5515_v60 = vld [vmem:[#allocation15_spill] sm:$0xff]  ;;  %v4298_v12 = vld [vmem:[%s5457_s1 + $0x80] sm:$0xff]  }
  0x77   : > { %v5043_v47 = vcombine.low %v4496_v39, %v4502_v45  ;;  %v5045_v58 = vcombine.low %v1391_v0, %v1394_v21  ;;  %v5049_v28 = vcombine.low %v4518_v55, %v4522_v61  ;;  %v1920_v43 = vshll.u32 %v5038_v51, 16  ;;  %v4300_v0 = vld [vmem:[%s4390_s29 + $0x4] sm:$0xf] }
  0x78   : > { %v1926_v38 = vshll.u32 %v5017_v14, 16  ;;  %v1930_v63 = vshrl.u32 %v5017_v14, 16  ;;  %v5055_v13 = vcombine.low %v1398_v59, %v1401_v3  ;;  %v3411_v9 = vrot.slane %v5038_v51, 9  ;;  %v4302_v3 = vld [vmem:[%s4390_s29] sm:$0xf] }
  0x79   : > { %3730 = vmatpush3.bf16.msra.mxu1 %v4284_v7  ;;  %v2156_v39 = vrot.slane %v2154_v41, 4  ;;  %v2157_v45 = vrot.slane %v273_v5, 5  ;;  %v1919_v27 = vrot.slane %v1917_v57, 4  ;;  %v1922_v19 = vrot.slane %v1920_v43, 5 }
  0x7a   : > { %3763 = vmatprep.subr.bf16.mxu1 %v4979_v54  ;;  %v1928_v2 = vrot.slane %v1926_v38, 5  ;;  %v1932_v18 = vrot.slane %v1930_v63, 4  ;;  %v1936_v6 = vshll.u32 %v273_v5, 16  ;;  %v2155_v7 = vsel %vm4619_vm6, %v3411_v9, %v2154_v41  ;;  %v4301_v41 = vld [vmem:[%s4390_s29 + $0x8] sm:$0x1]  ;;  %v4297_v9 = vld [vmem:[%s5457_s1 + $0x38] sm:$0xff]  }
  0x7b   : > { %v1923_v55 = vor.u32 %v1922_v19, %v1919_v27  ;;  %v2158_v26 = vsel %vm4619_vm6, %v2156_v39, %v2157_v45  ;;  %v5072_v33 = vcombine.low %v5514_v46, %v4565_v4  ;;  %v4294_v4 = vld [vmem:[%s5457_s1 + $0x78] sm:$0xff]   ;;  %v1292_v21 = vrot.slane %v4300_v0, 5  ;;  %v5517_v45 = vld [vmem:[#allocation11_spill] sm:$0xff]  ;;  %v4303_v27 = vld [vmem:[%s5457_s1 + $0x40] sm:$0xff]  }
  0x7c   : > { %3700 = vmatmul.mubr.msk.bf16.gmra.mrb[4].mxu1 %vm760_vm2, %v4958_v15  ;;  %3860 = vmatmul.mubr.msk.bf16.gmra.mrb[20].mxu0 %vm760_vm2, %v4981_v8  ;;  %v1933_v61 = vor.u32 %v1932_v18, %v1928_v2  ;;  %v1938_v50 = vrot.slane %v1936_v6, 5  ;;  %v5074_v53 = vcombine.low %v2155_v7, %v2158_v26  ;;  %v1295_v59 = vrot.slane %v4301_v41, 5  ;;  %v5516_v39 = vld [vmem:[#allocation9_spill] sm:$0xff]  ;;  %v5520_v18 = vld [vmem:[#allocation19_spill] sm:$0xff]  ;;  %v5174_v6 = vld [vmem:[%s4390_s29 + $0xd0] sm:$0xf] }
  0x7d   : > { %3703 = vmatprep.mubr.msk.bf16.mxu1 %vm760_vm2, %v5006_v40  ;;  %3863 = vmatprep.mubr.msk.bf16.mxu0 %vm760_vm2, %v5008_v20  ;;  %v1924_v29 = vrot.slane %v1923_v55, 4  ;;  %v3323_v5 = vrot.slane %v4302_v3, 9  ;;  %v1294_v57 = vrot.slane %v1292_v21, 4  ;;  %v5518_v19 = vld [vmem:[#allocation13_spill] sm:$0xff]  ;;  %v4299_v7 = vld [vmem:[%s5457_s1 + $0x88] sm:$0xff]   ;;  %v5527_v46 = vld [vmem:[#allocation8_spill] sm:$0xff] }
  0x7e   : > { %v1934_v35 = vrot.slane %v1933_v61, 4  ;;  %v5521_v55 = vld [vmem:[#allocation21_spill] sm:$0xff]  ;;  %v5171_v61 = vld [vmem:[%s4390_s29 + $0xcc] sm:$0xf]  ;;  %v5532_v41 = vld [vmem:[#allocation18_spill] sm:$0xff]  ;;  %v2821_v30 = vrot.slane %v5174_v6, 5 }
  0x7f   : > { %v1929_v17 = vsel %vm4429_vm3, %v1924_v29, %v1928_v2  ;;  %v1293_v43 = vsel %vm4619_vm6, %v3323_v5, %v1292_v21  ;;  %v1296_v38 = vsel %vm4619_vm6, %v1294_v57, %v1295_v59  ;;  %v5160_v2 = vcombine.low %v5038_v51, %v5017_v14  ;;  %v5522_v51 = vld [vmem:[#allocation2_spill] sm:$0xff]  ;;  %v5523_v26 = vld [vmem:[#allocation3_spill] sm:$0xff]  ;;  %v5524_v29 = vld [vmem:[#allocation5_spill] sm:$0xff] }
  0x80   : > { %v1939_v31 = vsel %vm4429_vm3, %v1934_v35, %v1938_v50  ;;  %v3339_v63 = vcombine.low %v1293_v43, %v1296_v38  ;;  %v3431_v14 = vcombine.low %v5171_v61, %v5174_v6  ;;  %v5525_v35 = vld [vmem:[#allocation6_spill] sm:$0xff]  ;;  %v5526_v50 = vld [vmem:[#allocation7_spill] sm:$0xff]  ;;  %v2587_v0 = vshll.u32 %v5171_v61, 16  ;;  %v276_v43 = vld [vmem:[%s4390_s29 + $0xd4] sm:$0x1] }
  0x81   : > { %v5080_v36 = vcombine.low %v1929_v17, %v1939_v31  ;;  %v5528_v17 = vld [vmem:[#allocation10_spill] sm:$0xff]  ;;  %v5529_v31 = vld [vmem:[#allocation12_spill] sm:$0xff]  ;;  %v2597_v21 = vshrl.u32 %v5174_v6, 16 }
  0x82   : > { %v2589_v3 = vrot.slane %v2587_v0, 5 }
  0x83   : > { %v2599_v57 = vrot.slane %v2597_v21, 4 }
  0x84   : > { %3704 = vmatmul.mubr.msk.bf16.gmra.mrb[8].mxu1 %vm760_vm2, %v5043_v47  ;;  %3864 = vmatmul.mubr.msk.bf16.gmra.mrb[24].mxu0 %vm760_vm2, %v5045_v58 }
  0x85   : > { %3707 = vmatprep.mubr.msk.bf16.mxu1 %vm760_vm2, %v5049_v28  ;;  %3867 = vmatprep.mubr.msk.bf16.mxu0 %vm760_vm2, %v5055_v13 }
  0x8c   : > { %3708 = vmatmul.mubr.msk.bf16.gmra.mrb[12].mxu1 %vm760_vm2, %v5072_v33  ;;  %3868 = vmatmul.mubr.msk.bf16.gmra.mrb[28].mxu0 %vm760_vm2, %v5074_v53 }
  0x8d   : > { %3711 = vmatprep.mubr.msk.bf16.mxu1 %vm760_vm2, %v4964_v25  ;;  %3875 = vmatprep.mubr.msk.bf16.mxu0 %vm760_vm2, %v4935_v37 }
  0x94   : > { %3712 = vmatmul.mubr.msk.bf16.gmra.mrb[16].mxu1 %vm760_vm2, %v4974_v49  ;;  %3876 = vmatmul.mubr.msk.bf16.vlgmr.msra.gmra.mrb[0].mxu0 %vm760_vm2, %v4958_v15 }
  0x95   : > { %3908 = vmatpush3.bf16.msra.mxu0 %v5515_v60  ;;  %3715 = vmatprep.mubr.msk.bf16.mxu1 %vm760_vm2, %v4986_v52  ;;  %v5531_v60 = vld [vmem:[#allocation17_spill] sm:$0xff] }
  0x96   : > { %3879 = vmatprep.mubr.msk.bf16.mxu0 %vm760_vm2, %v5006_v40  ;;  %3909 = vmatprep.subr.bf16.mxu0 %v4294_v4 }
  0x99   : > { %3910 = vmatpush3.bf16.msra.mxu0 %v4294_v4  ;;  %v5530_v4 = vld [vmem:[#allocation14_spill] sm:$0xff] }
  0x9a   : > { %3943 = vmatprep.subr.bf16.mxu0 %v4298_v12 }
  0x9c   : > { %3716 = vmatmul.mubr.msk.bf16.gmra.mrb[20].mxu1 %vm760_vm2, %v4990_v22  ;;  %3880 = vmatmul.mubr.msk.bf16.gmra.mrb[4].mxu0 %vm760_vm2, %v5043_v47 }
  0x9d   : > { %3719 = vmatprep.mubr.msk.bf16.mxu1 %vm760_vm2, %v4994_v48  ;;  %3883 = vmatprep.mubr.msk.bf16.mxu0 %vm760_vm2, %v5049_v28 }
  0xa4   : > { %3720 = vmatmul.mubr.msk.bf16.gmra.mrb[24].mxu1 %vm760_vm2, %v4998_v23  ;;  %3884 = vmatmul.mubr.msk.bf16.gmra.mrb[8].mxu0 %vm760_vm2, %v5072_v33 }
  0xa5   : > { %3723 = vmatprep.mubr.msk.bf16.mxu1 %vm760_vm2, %v5002_v32  ;;  %3887 = vmatprep.mubr.msk.bf16.mxu0 %vm760_vm2, %v4964_v25 }
  0xac   : > { %3724 = vmatmul.mubr.msk.bf16.gmra.mrb[28].mxu1 %vm760_vm2, %v5012_v44  ;;  %3888 = vmatmul.mubr.msk.bf16.gmra.mrb[12].mxu0 %vm760_vm2, %v4974_v49 }
  0xad   : > { %3731 = vmatprep.mubr.msk.bf16.mxu1 %vm760_vm2, %v3339_v63  ;;  %3891 = vmatprep.mubr.msk.bf16.mxu0 %vm760_vm2, %v4986_v52 }
  0xb4   : > { %3732 = vmatmul.mubr.msk.bf16.vlgmr.msra.gmra.mrb[0].mxu1 %vm760_vm2, %v5516_v39  ;;  %3892 = vmatmul.mubr.msk.bf16.gmra.mrb[16].mxu0 %vm760_vm2, %v4990_v22 }
  0xb5   : > { %3764 = vmatpush3.bf16.msra.mxu1 %v4979_v54  ;;  %3735 = vmatprep.mubr.msk.bf16.mxu1 %vm760_vm2, %v5517_v45  ;;  %v5519_v54 = vld [vmem:[#allocation16_spill] sm:$0xff] }
  0xb6   : > { %3895 = vmatprep.mubr.msk.bf16.mxu0 %vm760_vm2, %v4994_v48  ;;  %3765 = vmatprep.subr.bf16.mxu1 %v4297_v9 }
  0xb9   : > { %3766 = vmatpush3.bf16.msra.mxu1 %v4297_v9  ;;  %v2603_v9 = vshll.u32 %v276_v43, 16 }
  0xba   : > { %3979 = vmatprep.subr.bf16.mxu1 %v4303_v27 }
  0xbc   : > { %3736 = vmatmul.mubr.msk.bf16.gmra.mrb[4].mxu1 %vm760_vm2, %v5518_v19  ;;  %3896 = vmatmul.mubr.msk.bf16.gmra.mrb[20].mxu0 %vm760_vm2, %v4998_v23 }
  0xbd   : > { %3739 = vmatprep.mubr.msk.bf16.mxu1 %vm760_vm2, %v5519_v54  ;;  %3899 = vmatprep.mubr.msk.bf16.mxu0 %vm760_vm2, %v5002_v32 }
  0xc4   : > { %3740 = vmatmul.mubr.msk.bf16.gmra.mrb[8].mxu1 %vm760_vm2, %v5520_v18  ;;  %3900 = vmatmul.mubr.msk.bf16.gmra.mrb[24].mxu0 %vm760_vm2, %v5012_v44 }
  0xc5   : > { %3743 = vmatprep.mubr.msk.bf16.mxu1 %vm760_vm2, %v5521_v55  ;;  %3903 = vmatprep.mubr.msk.bf16.mxu0 %vm760_vm2, %v5160_v2 }
  0xcc   : > { %3744 = vmatmul.mubr.msk.bf16.gmra.mrb[12].mxu1 %vm760_vm2, %v4872_v24  ;;  %3904 = vmatmul.mubr.msk.bf16.gmra.mrb[28].mxu0 %vm760_vm2, %v3431_v14  ;;  %v2605_v14 = vrot.slane %v2603_v9, 5 }
  0xcd   : > { %3747 = vmatprep.mubr.msk.bf16.mxu1 %vm760_vm2, %v4903_v56  ;;  %3911 = vmatprep.mubr.msk.bf16.mxu0 %vm760_vm2, %v5522_v51 }
  0xd4   : > { %3748 = vmatmul.mubr.msk.bf16.gmra.mrb[16].mxu1 %vm760_vm2, %v4907_v1  ;;  %3912 = vmatmul.mubr.msk.bf16.vlgmr.msra.gmra.mrb[0].mxu0 %vm760_vm2, %v5523_v26 }
  0xd5   : > { %3944 = vmatpush3.bf16.msra.mxu0 %v4298_v12  ;;  %3751 = vmatprep.mubr.msk.bf16.mxu1 %vm760_vm2, %v4929_v42  ;;  %v2584_v12 = vshrl.u32 %v5171_v61, 16 }
  0xd6   : > { %3915 = vmatprep.mubr.msk.bf16.mxu0 %vm760_vm2, %v5524_v29  ;;  %3945 = vmatprep.subr.bf16.mxu0 %v4299_v7 }
  0xd7   : > { %v2586_v59 = vrot.slane %v2584_v12, 4 }
  0xd9   : > { %3946 = vmatpush3.bf16.msra.mxu0 %v4299_v7  ;;  %v2590_v38 = vor.u32 %v2589_v3, %v2586_v59 }
  0xdb   : > { %v2591_v39 = vrot.slane %v2590_v38, 4 }
  0xdc   : > { %3752 = vmatmul.mubr.msk.bf16.gmra.mrb[20].mxu1 %vm760_vm2, %v4938_v10  ;;  %3916 = vmatmul.mubr.msk.bf16.gmra.mrb[4].mxu0 %vm760_vm2, %v5525_v35 }
  0xdd   : > { %3755 = vmatprep.mubr.msk.bf16.mxu1 %vm760_vm2, %v4981_v8  ;;  %3919 = vmatprep.mubr.msk.bf16.mxu0 %vm760_vm2, %v5526_v50 }
  0xe4   : > { %3756 = vmatmul.mubr.msk.bf16.gmra.mrb[24].mxu1 %vm760_vm2, %v5008_v20  ;;  %3920 = vmatmul.mubr.msk.bf16.gmra.mrb[8].mxu0 %vm760_vm2, %v5527_v46 }
  0xe5   : > { %3759 = vmatprep.mubr.msk.bf16.mxu1 %vm760_vm2, %v5045_v58  ;;  %3923 = vmatprep.mubr.msk.bf16.mxu0 %vm760_vm2, %v5528_v17 }
  0xec   : > { %3760 = vmatmul.mubr.msk.bf16.gmra.mrb[28].mxu1 %vm760_vm2, %v5055_v13  ;;  %3924 = vmatmul.mubr.msk.bf16.gmra.mrb[12].mxu0 %vm760_vm2, %v5529_v31 }
  0xed   : > { %3767 = vmatprep.mubr.msk.bf16.mxu1 %vm760_vm2, %v4435_v34  ;;  %3927 = vmatprep.mubr.msk.bf16.mxu0 %vm760_vm2, %v5530_v4  ;;  %v2593_v34 = vshll.u32 %v5174_v6, 16 }
  0xef   : > { %v2595_v5 = vrot.slane %v2593_v34, 5 }
  0xf1   : > { %v2600_v63 = vor.u32 %v2599_v57, %v2595_v5 }
  0xf4   : > { %3768 = vmatmul.mubr.msk.bf16.vlgmr.msra.gmra.mrb[0].mxu1 %vm760_vm2, %v4935_v37  ;;  %3928 = vmatmul.mubr.msk.bf16.gmra.mrb[16].mxu0 %vm760_vm2, %v5531_v60  ;;  %v4304_v37 = vld [vmem:[%s5457_s1 + $0x48] sm:$0xff]  }
  0xf5   : > { %3981 = vmatpush3.bf16.msra.mxu1 %v4303_v27  ;;  %3771 = vmatprep.mubr.msk.bf16.mxu1 %vm760_vm2, %v4958_v15  ;;  %v5533_v15 = vld [vmem:[#allocation20_spill] sm:$0xff]  ;;  %v2601_v27 = vrot.slane %v2600_v63, 4 }
  0xf6   : > { %3931 = vmatprep.mubr.msk.bf16.mxu0 %vm760_vm2, %v5532_v41  ;;  %3980 = vmatprep.subr.bf16.mxu1 %v4304_v37 }
  0xf9   : > { %3982 = vmatpush3.bf16.msra.mxu1 %v4304_v37 }
  0xfc   : > { %3772 = vmatmul.mubr.msk.bf16.gmra.mrb[4].mxu1 %vm760_vm2, %v5006_v40  ;;  %3932 = vmatmul.mubr.msk.bf16.gmra.mrb[20].mxu0 %vm760_vm2, %v5533_v15  ;;  %v2596_v40 = vsel %vm4429_vm3, %v2591_v39, %v2595_v5 }
  0xfd   : > { %3775 = vmatprep.mubr.msk.bf16.mxu1 %vm760_vm2, %v5043_v47  ;;  %3935 = vmatprep.mubr.msk.bf16.mxu0 %vm760_vm2, %v4874_v16  ;;  %v2606_v47 = vsel %vm4429_vm3, %v2601_v27, %v2605_v14 }
  0xfe   : > { %v3450_v51 = vcombine.low %v2596_v40, %v2606_v47 }
 0x104   : > { %3776 = vmatmul.mubr.msk.bf16.gmra.mrb[8].mxu1 %vm760_vm2, %v5049_v28  ;;  %3936 = vmatmul.mubr.msk.bf16.gmra.mrb[24].mxu0 %vm760_vm2, %v4901_v62 }
 0x105   : > { %3779 = vmatprep.mubr.msk.bf16.mxu1 %vm760_vm2, %v5072_v33  ;;  %3939 = vmatprep.mubr.msk.bf16.mxu0 %vm760_vm2, %v5080_v36 }
 0x10c   : > { %3780 = vmatmul.mubr.msk.bf16.gmra.mrb[12].mxu1 %vm760_vm2, %v4964_v25  ;;  %3940 = vmatmul.mubr.msk.bf16.gmra.mrb[28].mxu0 %vm760_vm2, %v3450_v51 }
 0x10d   : > { %3783 = vmatprep.mubr.msk.bf16.mxu1 %vm760_vm2, %v4974_v49  ;;  %3947 = vmatprep.mubr.msk.bf16.mxu0 %vm760_vm2, %v5517_v45 }
 0x114   : > { %3784 = vmatmul.mubr.msk.bf16.gmra.mrb[16].mxu1 %vm760_vm2, %v4986_v52  ;;  %3948 = vmatmul.mubr.msk.bf16.vlgmr.msra.gmra.mrb[0].mxu0 %vm760_vm2, %v5518_v19 }
 0x115   : > { %3787 = vmatprep.mubr.msk.bf16.mxu1 %vm760_vm2, %v4990_v22  ;;  %3951 = vmatprep.mubr.msk.bf16.mxu0 %vm760_vm2, %v5519_v54 }
 0x11c   : > { %3788 = vmatmul.mubr.msk.bf16.gmra.mrb[20].mxu1 %vm760_vm2, %v4994_v48  ;;  %3952 = vmatmul.mubr.msk.bf16.gmra.mrb[4].mxu0 %vm760_vm2, %v5520_v18 }
 0x11d   : > { %3791 = vmatprep.mubr.msk.bf16.mxu1 %vm760_vm2, %v4998_v23  ;;  %3955 = vmatprep.mubr.msk.bf16.mxu0 %vm760_vm2, %v5521_v55 }
 0x124   : > { %3792 = vmatmul.mubr.msk.bf16.gmra.mrb[24].mxu1 %vm760_vm2, %v5002_v32  ;;  %3956 = vmatmul.mubr.msk.bf16.gmra.mrb[8].mxu0 %vm760_vm2, %v4872_v24  ;;  %v3469_v24 = vrot.slane %v5171_v61, 9 }
 0x125   : > { %3795 = vmatprep.mubr.msk.bf16.mxu1 %vm760_vm2, %v5012_v44  ;;  %3959 = vmatprep.mubr.msk.bf16.mxu0 %vm760_vm2, %v4903_v56  ;;  %v2823_v56 = vrot.slane %v2821_v30, 4 }
 0x12c   : > { %3796 = vmatmul.mubr.msk.bf16.gmra.mrb[28].mxu1 %vm760_vm2, %v5160_v2  ;;  %3960 = vmatmul.mubr.msk.bf16.gmra.mrb[12].mxu0 %vm760_vm2, %v4907_v1  ;;  %v2824_v1 = vrot.slane %v276_v43, 5 }
 0x12d   : > { %3819 = vmatprep.mubr.msk.bf16.mxu1 %vm760_vm2, %v5529_v31  ;;  %3963 = vmatprep.mubr.msk.bf16.mxu0 %vm760_vm2, %v4929_v42  ;;  %v2822_v42 = vsel %vm4619_vm6, %v3469_v24, %v2821_v30 }
 0x134   : > { %3820 = vmatmul.mubr.msk.bf16.vlgmr.msra.gmra.mrb[16].mxu1 %vm760_vm2, %v5530_v4  ;;  %3964 = vmatmul.mubr.msk.bf16.gmra.mrb[16].mxu0 %vm760_vm2, %v4938_v10  ;;  %v2825_v10 = vsel %vm4619_vm6, %v2823_v56, %v2824_v1 }
 0x135   : > { %3823 = vmatprep.mubr.msk.bf16.mxu1 %vm760_vm2, %v5531_v60  ;;  %3967 = vmatprep.mubr.msk.bf16.mxu0 %vm760_vm2, %v4981_v8  ;;  %v3470_v25 = vcombine.low %v2822_v42, %v2825_v10 }
 0x13c   : > { %3824 = vmatmul.mubr.msk.bf16.gmra.mrb[20].mxu1 %vm760_vm2, %v5532_v41  ;;  %3968 = vmatmul.mubr.msk.bf16.gmra.mrb[20].mxu0 %vm760_vm2, %v5008_v20 }
 0x13d   : > { %3827 = vmatprep.mubr.msk.bf16.mxu1 %vm760_vm2, %v5533_v15  ;;  %3971 = vmatprep.mubr.msk.bf16.mxu0 %vm760_vm2, %v5045_v58 }
 0x144   : > { %3828 = vmatmul.mubr.msk.bf16.gmra.mrb[24].mxu1 %vm760_vm2, %v4874_v16  ;;  %3972 = vmatmul.mubr.msk.bf16.gmra.mrb[24].mxu0 %vm760_vm2, %v5055_v13 }
 0x145   : > { %3831 = vmatprep.mubr.msk.bf16.mxu1 %vm760_vm2, %v4901_v62  ;;  %3975 = vmatprep.mubr.msk.bf16.mxu0 %vm760_vm2, %v5074_v53 }
 0x14c   : > { %3832 = vmatmul.mubr.msk.bf16.gmra.mrb[28].mxu1 %vm760_vm2, %v5080_v36  ;;  %3976 = vmatmul.mubr.msk.bf16.gmra.mrb[28].mxu0 %vm760_vm2, %v3470_v25  ;;  %v5339_v36 = vld [vmem:[%s5458_s2] ss:$0 sm:$0xff] }
 0x1c7   : > { %v3769_v16 = vpop.f32.mrb[0].mxu1 }
 0x1c8   : > { %v1757_v49 = vpop.f32.mrb[1].mxu1 }
 0x1c9   : > { %v3770_v8 = vpop.f32.mrb[2].mxu1 }
 0x1ca   : > { %v1760_v62 = vpop.f32.mrb[3].mxu1 }
 0x1cf   : > { %v3773_v52 = vpop.f32.mrb[4].mxu1 }
 0x1d0   : > { %v1773_v22 = vpop.f32.mrb[5].mxu1 }
 0x1d1   : > { %v3774_v48 = vpop.f32.mrb[6].mxu1 }
 0x1d2   : > { %v1776_v23 = vpop.f32.mrb[7].mxu1 }
 0x1d7   : > { %v3777_v32 = vpop.f32.mrb[8].mxu1 }
 0x1d8   : > { %v1789_v20 = vpop.f32.mrb[9].mxu1 }
 0x1d9   : > { %v3778_v44 = vpop.f32.mrb[10].mxu1 }
 0x1da   : > { %v1792_v11 = vpop.f32.mrb[11].mxu1 }
 0x1df   : > { %v5328_v58 = vpop.f32.mrb[12].mxu1 }
 0x1e0   : > { %v5330_v28 = vpop.f32.mrb[13].mxu1 }
 0x1e1   : > { %v5332_v13 = vpop.f32.mrb[14].mxu1 }
 0x1e2   : > { %v5334_v33 = vpop.f32.mrb[15].mxu1 }
 0x1e7   : > { %v3949_v53 = vpop.f32.mrb[0].mxu0 }
 0x1e8   : > { %v3983_v45 = vadd.f32 %v3949_v53, %v3769_v16  ;;  %v2878_v19 = vpop.f32.mrb[1].mxu0 }
 0x1e9   : > { %v3984_v54 = vadd.f32 %v2878_v19, %v1757_v49  ;;  %v3950_v2 = vpop.f32.mrb[2].mxu0 }
 0x1ea   : > { %v3046_v18 = vadd.f32 %v3983_v45, %v5339_v36  ;;  %v3985_v55 = vadd.f32 %v3950_v2, %v3770_v8  ;;  %v2881_v61 = vpop.f32.mrb[3].mxu0 }
 0x1eb   : > { %v3044_v6 = vadd.f32 %v3984_v54, %v5339_v36  ;;  %v3986_v7 = vadd.f32 %v2881_v61, %v1760_v62 }
 0x1ec   : > { %v3078_v26 = vmax.f32 %v3046_v18, 0.0  ;;  %v3047_v29 = vadd.f32 %v3985_v55, %v5339_v36 }
 0x1ed   : > { %v3076_v35 = vmax.f32 %v3044_v6, 0.0  ;;  %v3045_v50 = vadd.f32 %v3986_v7, %v5339_v36 }
 0x1ee   : > { %3110 = vst.msk [vmem:[%s5346_s19 + $0x10] sm:$0xff] %vm760_vm2, %v3078_v26  ;;  %v3079_v46 = vmax.f32 %v3047_v29, 0.0 }
 0x1ef   : > { %3108 = vst.msk [vmem:[%s5346_s19] sm:$0xff] %vm760_vm2, %v3076_v35  ;;  %v3077_v17 = vmax.f32 %v3045_v50, 0.0  ;;  %v3953_v31 = vpop.f32.mrb[4].mxu0 }
 0x1f0   : > { %3111 = vst.msk [vmem:[%s5346_s19 + $0x18] sm:$0xff] %vm760_vm2, %v3079_v46  ;;  %v3987_v4 = vadd.f32 %v3953_v31, %v3773_v52  ;;  %v2894_v60 = vpop.f32.mrb[5].mxu0 }
 0x1f1   : > { %3109 = vst.msk [vmem:[%s5346_s19 + $0x8] sm:$0xff] %vm760_vm2, %v3077_v17  ;;  %v3988_v12 = vadd.f32 %v2894_v60, %v1773_v22  ;;  %v3954_v0 = vpop.f32.mrb[6].mxu0 }
 0x1f2   : > { %v3050_v21 = vadd.f32 %v3987_v4, %v5339_v36  ;;  %v3989_v34 = vadd.f32 %v3954_v0, %v3774_v48  ;;  %v2897_v41 = vpop.f32.mrb[7].mxu0 }
 0x1f3   : > { %v3048_v37 = vadd.f32 %v3988_v12, %v5339_v36  ;;  %v3990_v59 = vadd.f32 %v2897_v41, %v1776_v23 }
 0x1f4   : > { %v3082_v3 = vmax.f32 %v3050_v21, 0.0  ;;  %v3051_v5 = vadd.f32 %v3989_v34, %v5339_v36 }
 0x1f5   : > { %v3080_v57 = vmax.f32 %v3048_v37, 0.0  ;;  %v3049_v43 = vadd.f32 %v3990_v59, %v5339_v36 }
 0x1f6   : > { %3114 = vst.msk [vmem:[%s5346_s19 + $0x30] sm:$0xff] %vm760_vm2, %v3082_v3  ;;  %v3083_v15 = vmax.f32 %v3051_v5, 0.0 }
 0x1f7   : > { %3112 = vst.msk [vmem:[%s5346_s19 + $0x20] sm:$0xff] %vm760_vm2, %v3080_v57  ;;  %v3081_v38 = vmax.f32 %v3049_v43, 0.0  ;;  %v3957_v63 = vpop.f32.mrb[8].mxu0 }
 0x1f8   : > { %3115 = vst.msk [vmem:[%s5346_s19 + $0x38] sm:$0xff] %vm760_vm2, %v3083_v15  ;;  %v3991_v9 = vadd.f32 %v3957_v63, %v3777_v32  ;;  %v2910_v39 = vpop.f32.mrb[9].mxu0 }
 0x1f9   : > { %3113 = vst.msk [vmem:[%s5346_s19 + $0x28] sm:$0xff] %vm760_vm2, %v3081_v38  ;;  %v3992_v27 = vadd.f32 %v2910_v39, %v1789_v20  ;;  %v3958_v14 = vpop.f32.mrb[10].mxu0 }
 0x1fa   : > { %v3054_v40 = vadd.f32 %v3991_v9, %v5339_v36  ;;  %v3993_v47 = vadd.f32 %v3958_v14, %v3778_v44  ;;  %v2913_v51 = vpop.f32.mrb[11].mxu0 }
 0x1fb   : > { %v3052_v30 = vadd.f32 %v3992_v27, %v5339_v36  ;;  %v3994_v24 = vadd.f32 %v2913_v51, %v1792_v11 }
 0x1fc   : > { %v3086_v56 = vmax.f32 %v3054_v40, 0.0  ;;  %v3055_v1 = vadd.f32 %v3993_v47, %v5339_v36 }
 0x1fd   : > { %v3084_v42 = vmax.f32 %v3052_v30, 0.0  ;;  %v3053_v10 = vadd.f32 %v3994_v24, %v5339_v36 }
 0x1fe   : > { %3118 = vst.msk [vmem:[%s5346_s19 + $0x50] sm:$0xff] %vm760_vm2, %v3086_v56  ;;  %v3087_v25 = vmax.f32 %v3055_v1, 0.0 }
 0x1ff   : > { %3116 = vst.msk [vmem:[%s5346_s19 + $0x40] sm:$0xff] %vm760_vm2, %v3084_v42  ;;  %v3085_v16 = vmax.f32 %v3053_v10, 0.0  ;;  %v3961_v49 = vpop.f32.mrb[12].mxu0 }
 0x200   : > { %3119 = vst.msk [vmem:[%s5346_s19 + $0x58] sm:$0xff] %vm760_vm2, %v3087_v25  ;;  %v3995_v8 = vadd.f32 %v3961_v49, %v5328_v58  ;;  %v2926_v62 = vpop.f32.mrb[13].mxu0 }
 0x201   : > { %3117 = vst.msk [vmem:[%s5346_s19 + $0x48] sm:$0xff] %vm760_vm2, %v3085_v16  ;;  %v3996_v52 = vadd.f32 %v2926_v62, %v5330_v28  ;;  %v3962_v22 = vpop.f32.mrb[14].mxu0 }
 0x202   : > { %v3058_v48 = vadd.f32 %v3995_v8, %v5339_v36  ;;  %v3997_v23 = vadd.f32 %v3962_v22, %v5332_v13  ;;  %v2929_v32 = vpop.f32.mrb[15].mxu0 }
 0x203   : > { %v3056_v20 = vadd.f32 %v3996_v52, %v5339_v36  ;;  %v3998_v44 = vadd.f32 %v2929_v32, %v5334_v33 }
 0x204   : > { %v3090_v11 = vmax.f32 %v3058_v48, 0.0  ;;  %v3059_v58 = vadd.f32 %v3997_v23, %v5339_v36 }
 0x205   : > { %v3088_v53 = vmax.f32 %v3056_v20, 0.0  ;;  %v3057_v45 = vadd.f32 %v3998_v44, %v5339_v36 }
 0x206   : > { %3122 = vst.msk [vmem:[%s5346_s19 + $0x70] sm:$0xff] %vm760_vm2, %v3090_v11  ;;  %v3091_v28 = vmax.f32 %v3059_v58, 0.0 }
 0x207   : > { %3120 = vst.msk [vmem:[%s5346_s19 + $0x60] sm:$0xff] %vm760_vm2, %v3088_v53  ;;  %v3089_v19 = vmax.f32 %v3057_v45, 0.0  ;;  %v3821_v54 = vpop.f32.mrb[16].mxu1  ;;  %v3965_v13 = vpop.f32.mrb[16].mxu0 }
 0x208   : > { %3123 = vst.msk [vmem:[%s5346_s19 + $0x78] sm:$0xff] %vm760_vm2, %v3091_v28  ;;  %v3999_v2 = vadd.f32 %v3965_v13, %v3821_v54  ;;  %v2056_v18 = vpop.f32.mrb[17].mxu1  ;;  %v2942_v33 = vpop.f32.mrb[17].mxu0 }
 0x209   : > { %3121 = vst.msk [vmem:[%s5346_s19 + $0x68] sm:$0xff] %vm760_vm2, %v3089_v19  ;;  %v4000_v55 = vadd.f32 %v2942_v33, %v2056_v18  ;;  %v3822_v61 = vpop.f32.mrb[18].mxu1  ;;  %v3966_v6 = vpop.f32.mrb[18].mxu0 }
 0x20a   : > { %v3062_v7 = vadd.f32 %v3999_v2, %v5339_v36  ;;  %v4001_v26 = vadd.f32 %v3966_v6, %v3822_v61  ;;  %v2059_v29 = vpop.f32.mrb[19].mxu1  ;;  %v2945_v35 = vpop.f32.mrb[19].mxu0 }
 0x20b   : > { %v3060_v50 = vadd.f32 %v4000_v55, %v5339_v36  ;;  %v4002_v46 = vadd.f32 %v2945_v35, %v2059_v29 }
 0x20c   : > { %v3094_v17 = vmax.f32 %v3062_v7, 0.0  ;;  %v3063_v31 = vadd.f32 %v4001_v26, %v5339_v36 }
 0x20d   : > { %v3092_v4 = vmax.f32 %v3060_v50, 0.0  ;;  %v3061_v60 = vadd.f32 %v4002_v46, %v5339_v36 }
 0x20e   : > { %3126 = vst.msk [vmem:[%s5346_s19 + $0x90] sm:$0xff] %vm760_vm2, %v3094_v17  ;;  %v3095_v12 = vmax.f32 %v3063_v31, 0.0 }
 0x20f   : > { %3124 = vst.msk [vmem:[%s5346_s19 + $0x80] sm:$0xff] %vm760_vm2, %v3092_v4  ;;  %v3093_v0 = vmax.f32 %v3061_v60, 0.0  ;;  %v3825_v21 = vpop.f32.mrb[20].mxu1  ;;  %v3969_v34 = vpop.f32.mrb[20].mxu0 }
 0x210   : > { %3127 = vst.msk [vmem:[%s5346_s19 + $0x98] sm:$0xff] %vm760_vm2, %v3095_v12  ;;  %v4003_v41 = vadd.f32 %v3969_v34, %v3825_v21  ;;  %v2072_v37 = vpop.f32.mrb[21].mxu1  ;;  %v2958_v59 = vpop.f32.mrb[21].mxu0 }
 0x211   : > { %3125 = vst.msk [vmem:[%s5346_s19 + $0x88] sm:$0xff] %vm760_vm2, %v3093_v0  ;;  %v4004_v3 = vadd.f32 %v2958_v59, %v2072_v37  ;;  %v3826_v5 = vpop.f32.mrb[22].mxu1  ;;  %v3970_v57 = vpop.f32.mrb[22].mxu0 }
 0x212   : > { %v3066_v43 = vadd.f32 %v4003_v41, %v5339_v36  ;;  %v4005_v15 = vadd.f32 %v3970_v57, %v3826_v5  ;;  %v2075_v38 = vpop.f32.mrb[23].mxu1  ;;  %v2961_v63 = vpop.f32.mrb[23].mxu0 }
 0x213   : > { %v3064_v9 = vadd.f32 %v4004_v3, %v5339_v36  ;;  %v4006_v39 = vadd.f32 %v2961_v63, %v2075_v38 }
 0x214   : > { %v3098_v27 = vmax.f32 %v3066_v43, 0.0  ;;  %v3067_v14 = vadd.f32 %v4005_v15, %v5339_v36 }
 0x215   : > { %v3096_v40 = vmax.f32 %v3064_v9, 0.0  ;;  %v3065_v47 = vadd.f32 %v4006_v39, %v5339_v36 }
 0x216   : > { %3130 = vst.msk [vmem:[%s5346_s19 + $0xb0] sm:$0xff] %vm760_vm2, %v3098_v27  ;;  %v3099_v51 = vmax.f32 %v3067_v14, 0.0 }
 0x217   : > { %3128 = vst.msk [vmem:[%s5346_s19 + $0xa0] sm:$0xff] %vm760_vm2, %v3096_v40  ;;  %v3097_v30 = vmax.f32 %v3065_v47, 0.0  ;;  %v3829_v24 = vpop.f32.mrb[24].mxu1  ;;  %v3973_v56 = vpop.f32.mrb[24].mxu0 }
 0x218   : > { %3131 = vst.msk [vmem:[%s5346_s19 + $0xb8] sm:$0xff] %vm760_vm2, %v3099_v51  ;;  %v4007_v1 = vadd.f32 %v3973_v56, %v3829_v24  ;;  %v2088_v42 = vpop.f32.mrb[25].mxu1  ;;  %v2974_v10 = vpop.f32.mrb[25].mxu0 }
 0x219   : > { %3129 = vst.msk [vmem:[%s5346_s19 + $0xa8] sm:$0xff] %vm760_vm2, %v3097_v30  ;;  %v4008_v25 = vadd.f32 %v2974_v10, %v2088_v42  ;;  %v3830_v16 = vpop.f32.mrb[26].mxu1  ;;  %v3974_v49 = vpop.f32.mrb[26].mxu0 }
 0x21a   : > { %v3070_v8 = vadd.f32 %v4007_v1, %v5339_v36  ;;  %v4009_v62 = vadd.f32 %v3974_v49, %v3830_v16  ;;  %v2091_v52 = vpop.f32.mrb[27].mxu1  ;;  %v2977_v22 = vpop.f32.mrb[27].mxu0 }
 0x21b   : > { %v3068_v48 = vadd.f32 %v4008_v25, %v5339_v36  ;;  %v4010_v23 = vadd.f32 %v2977_v22, %v2091_v52 }
 0x21c   : > { %v3102_v32 = vmax.f32 %v3070_v8, 0.0  ;;  %v3071_v20 = vadd.f32 %v4009_v62, %v5339_v36 }
 0x21d   : > { %v3100_v44 = vmax.f32 %v3068_v48, 0.0  ;;  %v3069_v11 = vadd.f32 %v4010_v23, %v5339_v36 }
 0x21e   : > { %3134 = vst.msk [vmem:[%s5346_s19 + $0xd0] sm:$0xff] %vm760_vm2, %v3102_v32  ;;  %v3103_v58 = vmax.f32 %v3071_v20, 0.0 }
 0x21f   : > { %3132 = vst.msk [vmem:[%s5346_s19 + $0xc0] sm:$0xff] %vm760_vm2, %v3100_v44  ;;  %v3101_v53 = vmax.f32 %v3069_v11, 0.0  ;;  %v3833_v45 = vpop.f32.mrb[28].mxu1  ;;  %v3977_v28 = vpop.f32.mrb[28].mxu0 }
 0x220   : > { %3135 = vst.msk [vmem:[%s5346_s19 + $0xd8] sm:$0xff] %vm760_vm2, %v3103_v58  ;;  %v4011_v19 = vadd.f32 %v3977_v28, %v3833_v45  ;;  %v2104_v54 = vpop.f32.mrb[29].mxu1  ;;  %v2990_v13 = vpop.f32.mrb[29].mxu0 }
 0x221   : > { %3133 = vst.msk [vmem:[%s5346_s19 + $0xc8] sm:$0xff] %vm760_vm2, %v3101_v53  ;;  %v4012_v2 = vadd.f32 %v2990_v13, %v2104_v54  ;;  %v3834_v18 = vpop.f32.mrb[30].mxu1  ;;  %v3978_v33 = vpop.f32.mrb[30].mxu0 }
 0x222   : > { %v3074_v55 = vadd.f32 %v4011_v19, %v5339_v36  ;;  %v4013_v61 = vadd.f32 %v3978_v33, %v3834_v18  ;;  %v2107_v6 = vpop.f32.mrb[31].mxu1  ;;  %v2993_v7 = vpop.f32.mrb[31].mxu0 }
 0x223   : > { %v3072_v26 = vadd.f32 %v4012_v2, %v5339_v36  ;;  %v4014_v29 = vadd.f32 %v2993_v7, %v2107_v6 }
 0x224   : > { %v3106_v35 = vmax.f32 %v3074_v55, 0.0  ;;  %v3075_v50 = vadd.f32 %v4013_v61, %v5339_v36 }
 0x225   : > { %v3104_v46 = vmax.f32 %v3072_v26, 0.0  ;;  %v3073_v17 = vadd.f32 %v4014_v29, %v5339_v36 }
 0x226   : > { %3138 = vst.msk [vmem:[%s5346_s19 + $0xf0] sm:$0xff] %vm760_vm2, %v3106_v35  ;;  %v3107_v31 = vmax.f32 %v3075_v50, 0.0 }
 0x227   : > { %3136 = vst.msk [vmem:[%s5346_s19 + $0xe0] sm:$0xff] %vm760_vm2, %v3104_v46  ;;  %v3105_v4 = vmax.f32 %v3073_v17, 0.0 }
 0x228   : > { %3139 = vst.msk [vmem:[%s5346_s19 + $0xf8] sm:$0xff] %vm760_vm2, %v3107_v31 }
 0x229   : > { %3137 = vst.msk [vmem:[%s5346_s19 + $0xe8] sm:$0xff] %vm760_vm2, %v3105_v4 }
 0x22a PF: > { %s13_s14 = sadd.s32 1, %s4327_s14   ;;  %s5534_s12 = smov %s4323_s13 }
 0x22b   : > { %p10_p5 = scmp.ge.s32.totalorder %s13_s14, 4   ;;  %s5535_s13 = smov %s5537_s15 }
 0x22d   :  { %12 = sbr.rel (!%p10_p5) target bundleno = 2 (0x2), region = 68 }

// kernel: encoder_block_forward.3
= control target key start
LH: loop header
LB: loop body
LE: loop exit
PB: predicated region body
PF: predicated region fallthrough
CT: control target
= control target key end

     0   :  { %s4379_s12 = smov 0   ;;  %s4381_s13 = smov 0   ;;  %s5486_s0 = inlined_call_operand.vmem [shape: bf16[2,18,18,4], index: 0, kind: input, shape index: {}]   ;;  %s5487_s1 = inlined_call_operand.vmem [shape: bf16[3,3,4,32], index: 1, kind: input, shape index: {}]   ;;  %s5488_s2 = inlined_call_operand.vmem [shape: f32[1,32], index: 2, kind: input, shape index: {}]   ;;  %s5489_s3 = inlined_call_operand.vmem [shape: bf16[2,16,16,32], index: 3, kind: output, shape index: {}]  }
   0x1   :  { %s4383_s14 = smov 0  }
   0x2 LB: > { %s22_s15 = sadd.s32 1, %s4353_s13  ;;  %p3273_p0 = scmp.ge.s32.totalorder %s4357_s14, 1  ;;  %s4357_s14 = sphi %s4383_s14, %s13_s14   ;;  %s4353_s13 = sphi %s4381_s13, %s5568_s13   ;;  %s4349_s12 = sphi %s4379_s12, %s5567_s12  }
   0x3   : > { %p23_p1 = scmp.ge.s32.totalorder %s22_s15, 2  ;;  %p168_p2 = scmp.lt.s32.totalorder %s4357_s14, 3 }
   0x5   : > { %s5570_s15 = smov (%p23_p1, %s22_s15), 0  ;;  %p169_p3 = pnand %p3273_p0, %p168_p2 }
   0x7   : > { %172 = sbr.rel (%p169_p3) target bundleno = 556 (0x22c), region = 32 }
   0xe   : > { %v278_v0 = vld [vmem:[%s5487_s1 + $0x2] sm:$0x3]  ;;  %vm770_vm0 = vcmask 1041408   ;;  %v281_v1 = vld [vmem:[%s5487_s1 + $0x8] sm:$0x3]  ;;  %p202_p4 = scmp.lt.s32.totalorder %s4349_s12, 1 }
   0xf   : > { %4278 = vmatprep.subr.msk.bf16.mxu1 %vm770_vm0, %v278_v0  ;;  %4282 = vmatprep.subr.msk.bf16.mxu0 %vm770_vm0, %v281_v1  ;;  %v772_v2 = vsel %vm770_vm0, %v278_v0, 0  ;;  %v4407_v3 = vsel %vm770_vm0, %v281_v1, 0  ;;  %v277_v4 = vld [vmem:[%s5487_s1] sm:$0x3]  ;;  %v282_v5 = vld [vmem:[%s5487_s1 + $0xa] sm:$0x3] }
  0x10   : > { %5521 = vst [vmem:[#allocation2_spill] sm:$0xff] %v4407_v3  ;;  %3715 = vmatpush3.bf16.msra.mxu1 %v772_v2  ;;  %3851 = vmatpush3.bf16.msra.mxu0 %v4407_v3  ;;  %s5572_s12 = smov (!%p202_p4, %s4349_s12), 1  ;;  %vm286_vm1 = vsmask.f32 3328  ;;  %vm287_vm2 = vsmask.f32 7440 }
  0x11   : > { %4279 = vmatprep.subr.msk.bf16.mxu1 %vm770_vm0, %v277_v4  ;;  %4284 = vmatprep.subr.msk.bf16.mxu0 %vm770_vm0, %v282_v5  ;;  %s4288_s24 = smul.u32 216, %s5572_s12  ;;  %v4427_v6 = vsel %vm770_vm0, %v277_v4, 0  ;;  %v4430_v7 = vsel %vm770_vm0, %v282_v5, 0  ;;  %v4435_v8 = vld [vmem:[%s5487_s1 + $0xc] sm:$0x3]  ;;  %vm721_vm3 = vcmask 31744   ;;  %vm4471_vm4 = vmor %vm286_vm1, %vm287_vm2 }
  0x12   : > { %v4459_v20 = vsel %vm770_vm0, %v4435_v8, 0  ;;  %vm1243_vm5 = vcmask 1042432   ;;  %vm1244_vm6 = vcmask 1046532   ;;  %s3528_s19 = sshll.u32 %s5572_s12, 7  ;;  %vm3129_vm8 = vcmask 257024  }
  0x13   : > { %s4424_s27 = scalar_lea.vmem %s5486_s0, %s4288_s24  ;;  %vm4652_vm7 = vmor %vm1243_vm5, %vm1244_vm6  ;;  %s5376_s22 = scalar_lea.vmem %s5489_s3, %s3528_s19 }
  0x14   : > { %v4438_v9 = vld [vmem:[%s4424_s27] sm:$0xf]  ;;  %v4441_v10 = vld [vmem:[%s4424_s27 + $0x4] sm:$0xf]  ;;  %v225_v11 = vld [vmem:[%s4424_s27 + $0x8] sm:$0x1] }
  0x15   : > { %v290_v12 = vshrl.u32 %v4438_v9, 16  ;;  %v293_v13 = vshll.u32 %v4438_v9, 16  ;;  %v299_v14 = vshll.u32 %v4441_v10, 16  ;;  %v303_v15 = vshrl.u32 %v4441_v10, 16  ;;  %v4449_v16 = vld [vmem:[%s4424_s27 + $0xc] sm:$0xf] }
  0x16   : > { %v309_v17 = vshll.u32 %v225_v11, 16  ;;  %v4452_v18 = vld [vmem:[%s4424_s27 + $0x10] sm:$0xf]  ;;  %v4455_v19 = vld [vmem:[%s4424_s27 + $0x14] sm:$0x1]  ;;  %v314_v26 = vshrl.u32 %v4449_v16, 16 }
  0x17   : > { %v292_v21 = vrot.slane %v290_v12, 4  ;;  %v295_v22 = vrot.slane %v293_v13, 5  ;;  %v301_v23 = vrot.slane %v299_v14, 5  ;;  %v305_v24 = vrot.slane %v303_v15, 4  ;;  %v4467_v33 = vld [vmem:[%s4424_s27 + $0x18] sm:$0xf] }
  0x18   : > { %v311_v25 = vrot.slane %v309_v17, 5  ;;  %v317_v27 = vshll.u32 %v4449_v16, 16  ;;  %v323_v28 = vshll.u32 %v4452_v18, 16  ;;  %v327_v31 = vshrl.u32 %v4452_v18, 16  ;;  %v4480_v39 = vld [vmem:[%s4424_s27 + $0x1c] sm:$0xf] }
  0x19   : > { %v296_v29 = vor.u32 %v295_v22, %v292_v21  ;;  %v306_v30 = vor.u32 %v305_v24, %v301_v23  ;;  %v333_v32 = vshll.u32 %v4455_v19, 16  ;;  %v316_v35 = vrot.slane %v314_v26, 4  ;;  %v4484_v46 = vld [vmem:[%s4424_s27 + $0x20] sm:$0x1]  ;;  %v4494_v57 = vld [vmem:[%s4424_s27 + $0x24] sm:$0xf] }
  0x1a   : > { %v319_v36 = vrot.slane %v317_v27, 5  ;;  %v325_v37 = vrot.slane %v323_v28, 5  ;;  %v4477_v38 = vcombine.low %v4449_v16, %v4452_v18  ;;  %v329_v42 = vrot.slane %v327_v31, 4  ;;  %v4499_v62 = vld [vmem:[%s4424_s27 + $0x28] sm:$0xf] }
  0x1b   : > { %v297_v40 = vrot.slane %v296_v29, 4  ;;  %v307_v41 = vrot.slane %v306_v30, 4  ;;  %v335_v43 = vrot.slane %v333_v32, 5  ;;  %v1258_v45 = vrot.slane %v4455_v19, 5  ;;  %v4507_v4 = vld [vmem:[%s4424_s27 + $0x2c] sm:$0x1] }
  0x1c   : > { %v320_v44 = vor.u32 %v319_v36, %v316_v35  ;;  %v338_v47 = vshrl.u32 %v4467_v33, 16  ;;  %v341_v48 = vshll.u32 %v4467_v33, 16  ;;  %v330_v51 = vor.u32 %v329_v42, %v325_v37  ;;  %v4513_v14 = vld [vmem:[%s4424_s27 + $0x30] sm:$0xf]  ;;  %v4525_v28 = vld [vmem:[%s4424_s27 + $0x34] sm:$0xf] }
  0x1d   : > { %v302_v49 = vsel %vm4471_vm4, %v297_v40, %v301_v23  ;;  %v312_v50 = vsel %vm4471_vm4, %v307_v41, %v311_v25  ;;  %v347_v52 = vshll.u32 %v4480_v39, 16  ;;  %v351_v60 = vshrl.u32 %v4480_v39, 16  ;;  %v4520_v23 = vld [vmem:[%s5487_s1 + $0x4] sm:$0x3]  ;;  %v4532_v32 = vld [vmem:[%s4424_s27 + $0x38] sm:$0x1] }
  0x1e   : > { %v3277_v53 = vcombine.low %v302_v49, %v312_v50  ;;  %v321_v54 = vrot.slane %v320_v44, 4  ;;  %v340_v55 = vrot.slane %v338_v47, 4  ;;  %v343_v56 = vrot.slane %v341_v48, 5  ;;  %v4540_v48 = vld [vmem:[%s4424_s27 + $0x3c] sm:$0xf] }
  0x1f   : > { %v331_v58 = vrot.slane %v330_v51, 4  ;;  %v349_v59 = vrot.slane %v347_v52, 5  ;;  %v357_v61 = vshll.u32 %v4484_v46, 16  ;;  %v1262_v1 = vrot.slane %v4480_v39, 5  ;;  %v4548_v52 = vld [vmem:[%s4424_s27 + $0x40] sm:$0xf] }
  0x20   : > { %3716 = vmatprep.mubr.msk.bf16.mxu1 %vm721_vm3, %v3277_v53  ;;  %v326_v63 = vsel %vm4471_vm4, %v321_v54, %v325_v37  ;;  %v344_v0 = vor.u32 %v343_v56, %v340_v55  ;;  %v1265_v2 = vrot.slane %v4484_v46, 5  ;;  %v353_v11 = vrot.slane %v351_v60, 4 }
  0x21   : > { %v336_v5 = vsel %vm4471_vm4, %v331_v58, %v335_v43  ;;  %v359_v12 = vrot.slane %v357_v61, 5  ;;  %v362_v13 = vshrl.u32 %v4494_v57, 16  ;;  %v365_v21 = vshll.u32 %v4494_v57, 16 }
  0x22   : > { %v3278_v15 = vcombine.low %v326_v63, %v336_v5  ;;  %v345_v17 = vrot.slane %v344_v0, 4  ;;  %v371_v22 = vshll.u32 %v4499_v62, 16  ;;  %v354_v24 = vor.u32 %v353_v11, %v349_v59  ;;  %v4560_v5 = vld [vmem:[%s4424_s27 + $0x44] sm:$0x1] }
  0x23   : > { %v364_v25 = vrot.slane %v362_v13, 4  ;;  %v375_v26 = vshrl.u32 %v4499_v62, 16  ;;  %v381_v27 = vshll.u32 %v4507_v4, 16  ;;  %v367_v30 = vrot.slane %v365_v21, 5  ;;  %v4565_v13 = vld [vmem:[%s4424_s27 + $0x48] sm:$0xf] }
  0x24   : > { %3852 = vmatprep.mubr.msk.bf16.mxu0 %vm721_vm3, %v3278_v15  ;;  %3717 = vmatmul.mubr.msk.bf16.vlgmr.msra.gmra.mrb[0].mxu1 %vm721_vm3, %v3278_v15  ;;  %v350_v29 = vsel %vm4471_vm4, %v345_v17, %v349_v59  ;;  %v373_v31 = vrot.slane %v371_v22, 5  ;;  %v386_v35 = vshrl.u32 %v4513_v14, 16  ;;  %v355_v36 = vrot.slane %v354_v24, 4  ;;  %v4572_v24 = vld [vmem:[%s4424_s27 + $0x4c] sm:$0xf] }
  0x25   : > { %3749 = vmatpush3.bf16.msra.mxu1 %v4427_v6  ;;  %v377_v37 = vrot.slane %v375_v26, 4  ;;  %v383_v40 = vrot.slane %v381_v27, 5  ;;  %v389_v41 = vshll.u32 %v4513_v14, 16  ;;  %v368_v42 = vor.u32 %v367_v30, %v364_v25 }
  0x26   : > { %v388_v43 = vrot.slane %v386_v35, 4  ;;  %v395_v44 = vshll.u32 %v4525_v28, 16  ;;  %v399_v47 = vshrl.u32 %v4525_v28, 16  ;;  %4280 = vmatprep.subr.msk.bf16.mxu1 %vm770_vm0, %v4520_v23  ;;  %v360_v49 = vsel %vm4471_vm4, %v355_v36, %v359_v12 }
  0x27   : > { %v378_v6 = vor.u32 %v377_v37, %v373_v31  ;;  %v391_v50 = vrot.slane %v389_v41, 5  ;;  %v405_v51 = vshll.u32 %v4532_v32, 16  ;;  %v4550_v53 = vcombine.low %v350_v29, %v360_v49 }
  0x28   : > { %v369_v54 = vrot.slane %v368_v42, 4  ;;  %v397_v55 = vrot.slane %v395_v44, 5  ;;  %v401_v56 = vrot.slane %v399_v47, 4  ;;  %v410_v61 = vshrl.u32 %v4540_v48, 16  ;;  %v4594_v42 = vld [vmem:[%s4424_s27 + $0x54] sm:$0xf] }
  0x29   : > { %5524 = vst [vmem:[#allocation3_spill] sm:$0xff] %v4550_v53  ;;  %v379_v58 = vrot.slane %v378_v6, 4  ;;  %v392_v59 = vor.u32 %v391_v50, %v388_v43  ;;  %v407_v60 = vrot.slane %v405_v51, 5  ;;  %3853 = vmatmul.mubr.msk.bf16.vlgmr.msra.gmra.mrb[0].mxu0 %vm721_vm3, %v4550_v53  ;;  %3720 = vmatprep.mubr.msk.bf16.mxu1 %vm721_vm3, %v4550_v53  ;;  %v413_v11 = vshll.u32 %v4540_v48, 16  ;;  %5526 = vst [vmem:[#allocation5_spill] sm:$0xff] %v4594_v42 }
  0x2a   : > { %v374_v63 = vsel %vm4471_vm4, %v369_v54, %v373_v31  ;;  %v402_v0 = vor.u32 %v401_v56, %v397_v55  ;;  %v419_v12 = vshll.u32 %v4548_v52, 16  ;;  %3885 = vmatpush3.bf16.msra.mxu0 %v4430_v7  ;;  %v412_v21 = vrot.slane %v410_v61, 4  ;;  %v4599_v6 = vld [vmem:[%s4424_s27 + $0x58] sm:$0xf] }
  0x2b   : > { %v384_v15 = vsel %vm4471_vm4, %v379_v58, %v383_v40  ;;  %v393_v17 = vrot.slane %v392_v59, 4  ;;  %v423_v22 = vshrl.u32 %v4548_v52, 16  ;;  %v415_v27 = vrot.slane %v413_v11, 5  ;;  %4285 = vmatprep.subr.msk.bf16.mxu0 %vm770_vm0, %v4435_v8  ;;  %v4589_v8 = vld [vmem:[%s4424_s27 + $0x50] sm:$0x1] }
  0x2c   : > { %v4574_v25 = vcombine.low %v374_v63, %v384_v15  ;;  %v403_v26 = vrot.slane %v402_v0, 4  ;;  %v421_v29 = vrot.slane %v419_v12, 5  ;;  %v429_v31 = vshll.u32 %v4560_v5, 16  ;;  %v4612_v11 = vld [vmem:[%s4424_s27 + $0x5c] sm:$0x1] }
  0x2d   : > { %v398_v7 = vsel %vm4471_vm4, %v393_v17, %v397_v55  ;;  %v425_v30 = vrot.slane %v423_v22, 4  ;;  %v434_v35 = vshrl.u32 %v4565_v13, 16  ;;  %v416_v37 = vor.u32 %v415_v27, %v412_v21  ;;  %v4616_v15 = vld [vmem:[%s4424_s27 + $0x60] sm:$0xf]  ;;  %v4621_v27 = vld [vmem:[%s4424_s27 + $0x64] sm:$0xf] }
  0x2e   : > { %5525 = vst [vmem:[#allocation4_spill] sm:$0xff] %v4574_v25  ;;  %3856 = vmatprep.mubr.msk.bf16.mxu0 %vm721_vm3, %v4574_v25  ;;  %3721 = vmatmul.mubr.msk.bf16.gmra.mrb[4].mxu1 %vm721_vm3, %v4574_v25  ;;  %v408_v36 = vsel %vm4471_vm4, %v403_v26, %v407_v60  ;;  %v437_v40 = vshll.u32 %v4565_v13, 16  ;;  %v443_v41 = vshll.u32 %v4572_v24, 16  ;;  %v431_v47 = vrot.slane %v429_v31, 5  ;;  %v4833_v25 = vld [vmem:[%s4424_s27 + $0xa8] sm:$0xf] }
  0x2f   : > { %v4596_v43 = vcombine.low %v398_v7, %v408_v36  ;;  %v426_v44 = vor.u32 %v425_v30, %v421_v29  ;;  %v436_v49 = vrot.slane %v434_v35, 4  ;;  %v417_v50 = vrot.slane %v416_v37, 4 }
  0x30   : > { %v439_v51 = vrot.slane %v437_v40, 5  ;;  %v445_v54 = vrot.slane %v443_v41, 5  ;;  %v447_v55 = vshrl.u32 %v4572_v24, 16  ;;  %v453_v58 = vshll.u32 %v4589_v8, 16 }
  0x31   : > { %5527 = vst [vmem:[#allocation6_spill] sm:$0xff] %v4596_v43  ;;  %3724 = vmatprep.mubr.msk.bf16.mxu1 %vm721_vm3, %v4596_v43  ;;  %v427_v56 = vrot.slane %v426_v44, 4  ;;  %v458_v59 = vshrl.u32 %v4594_v42, 16  ;;  %v461_v60 = vshll.u32 %v4594_v42, 16  ;;  %3857 = vmatmul.mubr.msk.bf16.gmra.mrb[4].mxu0 %vm721_vm3, %v4596_v43  ;;  %v422_v61 = vsel %vm4471_vm4, %v417_v50, %v421_v29 }
  0x32   : > { %v440_v63 = vor.u32 %v439_v51, %v436_v49  ;;  %v449_v0 = vrot.slane %v447_v55, 4  ;;  %v467_v12 = vshll.u32 %v4599_v6, 16  ;;  %v455_v21 = vrot.slane %v453_v58, 5 }
  0x33   : > { %v432_v17 = vsel %vm4471_vm4, %v427_v56, %v431_v47  ;;  %v460_v22 = vrot.slane %v458_v59, 4  ;;  %v463_v26 = vrot.slane %v461_v60, 5  ;;  %v471_v36 = vshrl.u32 %v4599_v6, 16  ;;  %v4635_v47 = vld [vmem:[%s4424_s27 + $0x68] sm:$0x1] }
  0x34   : > { %v4623_v7 = vcombine.low %v422_v61, %v432_v17  ;;  %v441_v29 = vrot.slane %v440_v63, 4  ;;  %v450_v30 = vor.u32 %v449_v0, %v445_v54  ;;  %v469_v31 = vrot.slane %v467_v12, 5 }
  0x35   : > { %v464_v35 = vor.u32 %v463_v26, %v460_v22  ;;  %v477_v37 = vshll.u32 %v4612_v11, 16  ;;  %v482_v40 = vshrl.u32 %v4616_v15, 16  ;;  %v485_v49 = vshll.u32 %v4616_v15, 16 }
  0x36   : > { %5528 = vst [vmem:[#allocation7_spill] sm:$0xff] %v4623_v7  ;;  %3860 = vmatprep.mubr.msk.bf16.mxu0 %vm721_vm3, %v4623_v7  ;;  %3725 = vmatmul.mubr.msk.bf16.gmra.mrb[8].mxu1 %vm721_vm3, %v4623_v7  ;;  %v446_v41 = vsel %vm4471_vm4, %v441_v29, %v445_v54  ;;  %v451_v44 = vrot.slane %v450_v30, 4  ;;  %v491_v50 = vshll.u32 %v4621_v27, 16  ;;  %v473_v55 = vrot.slane %v471_v36, 4  ;;  %v4643_v54 = vld [vmem:[%s4424_s27 + $0x6c] sm:$0xf] }
  0x37   : > { %v465_v51 = vrot.slane %v464_v35, 4  ;;  %v479_v56 = vrot.slane %v477_v37, 5  ;;  %v484_v58 = vrot.slane %v482_v40, 4  ;;  %v487_v60 = vrot.slane %v485_v49, 5  ;;  %v4659_v36 = vld [vmem:[%s4424_s27 + $0x70] sm:$0xf] }
  0x38   : > { %v456_v59 = vsel %vm4471_vm4, %v451_v44, %v455_v21  ;;  %v493_v61 = vrot.slane %v491_v50, 5  ;;  %v495_v63 = vshrl.u32 %v4621_v27, 16  ;;  %v474_v17 = vor.u32 %v473_v55, %v469_v31  ;;  %v4810_v7 = vld [vmem:[%s4424_s27 + $0xa0] sm:$0xf] }
  0x39   : > { %v4645_v0 = vcombine.low %v446_v41, %v456_v59  ;;  %v470_v12 = vsel %vm4471_vm4, %v465_v51, %v469_v31  ;;  %v501_v22 = vshll.u32 %v4635_v47, 16  ;;  %v488_v21 = vor.u32 %v487_v60, %v484_v58  ;;  %v4672_v51 = vld [vmem:[%s4424_s27 + $0x74] sm:$0x1] }
  0x3a   : > { %v497_v29 = vrot.slane %v495_v63, 4  ;;  %v3342_v30 = vrot.slane %v4449_v16, 9  ;;  %v1255_v35 = vrot.slane %v4452_v18, 5  ;;  %v475_v31 = vrot.slane %v474_v17, 4 }
  0x3b   : > { %5529 = vst [vmem:[#allocation8_spill] sm:$0xff] %v4645_v0  ;;  %3861 = vmatmul.mubr.msk.bf16.gmra.mrb[8].mxu0 %vm721_vm3, %v4645_v0  ;;  %3728 = vmatprep.mubr.msk.bf16.mxu1 %vm721_vm3, %v4645_v0  ;;  %v503_v37 = vrot.slane %v501_v22, 5  ;;  %v506_v40 = vshrl.u32 %v4643_v54, 16  ;;  %v509_v41 = vshll.u32 %v4643_v54, 16  ;;  %v489_v44 = vrot.slane %v488_v21, 4 }
  0x3c   : > { %v498_v49 = vor.u32 %v497_v29, %v493_v61  ;;  %v1256_v16 = vsel %vm4652_vm7, %v3342_v30, %v1255_v35  ;;  %v1257_v18 = vrot.slane %v1255_v35, 4  ;;  %v480_v50 = vsel %vm4471_vm4, %v475_v31, %v479_v56  ;;  %v4684_v56 = vld [vmem:[%s4424_s27 + $0x78] sm:$0xf]  ;;  %v4700_v31 = vld [vmem:[%s4424_s27 + $0x7c] sm:$0xf] }
  0x3d   : > { %v508_v55 = vrot.slane %v506_v40, 4  ;;  %v511_v58 = vrot.slane %v509_v41, 5  ;;  %v515_v59 = vshll.u32 %v4659_v36, 16  ;;  %v4675_v60 = vcombine.low %v470_v12, %v480_v50 }
  0x3e   : > { %v494_v63 = vsel %vm4471_vm4, %v489_v44, %v493_v61  ;;  %v499_v17 = vrot.slane %v498_v49, 4  ;;  %v1259_v22 = vsel %vm4652_vm7, %v1257_v18, %v1258_v45  ;;  %v519_v35 = vshrl.u32 %v4659_v36, 16  ;;  %v4705_v49 = vld [vmem:[%s4424_s27 + $0x80] sm:$0x1] }
  0x3f   : > { %5532 = vst [vmem:[#allocation9_spill] sm:$0xff] %v4675_v60  ;;  %v4686_v21 = vcombine.low %v1256_v16, %v1259_v22  ;;  %v512_v29 = vor.u32 %v511_v58, %v508_v55  ;;  %v517_v30 = vrot.slane %v515_v59, 5  ;;  %3864 = vmatprep.mubr.msk.bf16.mxu0 %vm721_vm3, %v4675_v60  ;;  %3729 = vmatmul.mubr.msk.bf16.gmra.mrb[12].mxu1 %vm721_vm3, %v4675_v60  ;;  %v525_v45 = vshll.u32 %v4672_v51, 16  ;;  %v4803_v60 = vld [vmem:[%s4424_s27 + $0x9c] sm:$0xf] }
  0x40   : > { %v504_v19 = vsel %vm4471_vm4, %v499_v17, %v503_v37  ;;  %v3343_v61 = vrot.slane %v4467_v33, 9  ;;  %v1264_v12 = vrot.slane %v1262_v1, 4  ;;  %v521_v44 = vrot.slane %v519_v35, 4 }
  0x41   : > { %5533 = vst [vmem:[#allocation10_spill] sm:$0xff] %v4686_v21  ;;  %v4702_v40 = vcombine.low %v494_v63, %v504_v19  ;;  %v513_v41 = vrot.slane %v512_v29, 4  ;;  %v530_v16 = vshrl.u32 %v4684_v56, 16  ;;  %v527_v18 = vrot.slane %v525_v45, 5  ;;  %v4731_v29 = vld [vmem:[%s4424_s27 + $0x84] sm:$0xf] }
  0x42   : > { %v1263_v37 = vsel %vm4652_vm7, %v3343_v61, %v1262_v1  ;;  %v1266_v50 = vsel %vm4652_vm7, %v1264_v12, %v1265_v2  ;;  %v533_v55 = vshll.u32 %v4684_v56, 16  ;;  %v522_v59 = vor.u32 %v521_v44, %v517_v30 }
  0x43   : > { %5534 = vst [vmem:[#allocation11_spill] sm:$0xff] %v4702_v40  ;;  %3865 = vmatmul.mubr.msk.bf16.gmra.mrb[12].mxu0 %vm721_vm3, %v4702_v40  ;;  %3732 = vmatprep.mubr.msk.bf16.mxu1 %vm721_vm3, %v4702_v40  ;;  %v518_v58 = vsel %vm4471_vm4, %v513_v41, %v517_v30  ;;  %v4723_v63 = vcombine.low %v1263_v37, %v1266_v50  ;;  %v532_v1 = vrot.slane %v530_v16, 4  ;;  %v539_v2 = vshll.u32 %v4700_v31, 16  ;;  %v4737_v16 = vld [vmem:[%s4424_s27 + $0x88] sm:$0xf] }
  0x44   : > { %3886 = vmatprep.mubr.msk.bf16.mxu0 %vm721_vm3, %v4686_v21  ;;  %v535_v46 = vrot.slane %v533_v55, 5  ;;  %v543_v17 = vshrl.u32 %v4700_v31, 16  ;;  %v549_v22 = vshll.u32 %v4705_v49, 16  ;;  %v523_v35 = vrot.slane %v522_v59, 4 }
  0x45   : > { %5535 = vst [vmem:[#allocation12_spill] sm:$0xff] %v4723_v63  ;;  %v3344_v30 = vrot.slane %v4494_v57, 9  ;;  %v1269_v19 = vrot.slane %v4499_v62, 5  ;;  %v1272_v45 = vrot.slane %v4507_v4, 5  ;;  %v541_v12 = vrot.slane %v539_v2, 5 }
  0x46   : > { %v536_v61 = vor.u32 %v535_v46, %v532_v1  ;;  %v545_v41 = vrot.slane %v543_v17, 4  ;;  %v551_v44 = vrot.slane %v549_v22, 5  ;;  %v528_v37 = vsel %vm4471_vm4, %v523_v35, %v527_v18  ;;  %v4747_v1 = vld [vmem:[%s4424_s27 + $0x8c] sm:$0x1] }
  0x47   : > { %v1270_v50 = vsel %vm4652_vm7, %v3344_v30, %v1269_v19  ;;  %v1271_v55 = vrot.slane %v1269_v19, 4  ;;  %v554_v59 = vshrl.u32 %v4731_v29, 16  ;;  %v4744_v3 = vcombine.low %v518_v58, %v528_v37 }
  0x48   : > { %v537_v40 = vrot.slane %v536_v61, 4  ;;  %v546_v4 = vor.u32 %v545_v41, %v541_v12  ;;  %v557_v46 = vshll.u32 %v4731_v29, 16  ;;  %v563_v18 = vshll.u32 %v4737_v16, 16  ;;  %v4761_v61 = vld [vmem:[%s4424_s27 + $0x90] sm:$0xf] }
  0x49   : > { %5536 = vst [vmem:[#allocation13_spill] sm:$0xff] %v4744_v3  ;;  %v1273_v2 = vsel %vm4652_vm7, %v1271_v55, %v1272_v45  ;;  %v556_v17 = vrot.slane %v554_v59, 4  ;;  %v567_v22 = vshrl.u32 %v4737_v16, 16  ;;  %3733 = vmatmul.mubr.msk.bf16.gmra.mrb[16].mxu1 %vm721_vm3, %v4744_v3  ;;  %v4766_v45 = vld [vmem:[%s5487_s1 + $0xe] sm:$0x3]  ;;  %v1276_v59 = vrot.slane %v4525_v28, 5 }
  0x4a   : > { %v542_v58 = vsel %vm4471_vm4, %v537_v40, %v541_v12  ;;  %v547_v35 = vrot.slane %v546_v4, 4  ;;  %v4758_v30 = vcombine.low %v1270_v50, %v1273_v2  ;;  %v559_v19 = vrot.slane %v557_v46, 5  ;;  %5538 = vst [vmem:[#allocation15_spill] sm:$0xff] %v4766_v45  ;;  %v4780_v46 = vld [vmem:[%s4424_s27 + $0x94] sm:$0xf] }
  0x4b   : > { %3887 = vmatmul.mubr.msk.bf16.vlgmr.msra.gmra.mrb[0].mxu0 %vm721_vm3, %v4723_v63  ;;  %v565_v41 = vrot.slane %v563_v18, 5  ;;  %v569_v37 = vrot.slane %v567_v22, 4  ;;  %v573_v40 = vshll.u32 %v4747_v1, 16  ;;  %v3345_v12 = vrot.slane %v4513_v14, 9  ;;  %v4785_v3 = vld [vmem:[%s4424_s27 + $0x98] sm:$0x1] }
  0x4c   : > { %5537 = vst [vmem:[#allocation14_spill] sm:$0xff] %v4758_v30  ;;  %3919 = vmatpush3.bf16.msra.mxu0 %v4459_v20  ;;  %v552_v50 = vsel %vm4471_vm4, %v547_v35, %v551_v44  ;;  %3890 = vmatprep.mubr.msk.bf16.mxu0 %vm721_vm3, %v4758_v30  ;;  %v560_v55 = vor.u32 %v559_v19, %v556_v17  ;;  %v1279_v4 = vrot.slane %v4532_v32, 5  ;;  %v578_v20 = vshrl.u32 %v4761_v61, 16 }
  0x4d   : > { %v4782_v2 = vcombine.low %v542_v58, %v552_v50  ;;  %v570_v18 = vor.u32 %v569_v37, %v565_v41  ;;  %v575_v22 = vrot.slane %v573_v40, 5  ;;  %4286 = vmatprep.subr.msk.bf16.mxu0 %vm770_vm0, %v4766_v45  ;;  %v1277_v17 = vsel %vm4652_vm7, %v3345_v12, %v1276_v59 }
  0x4e   : > { %v561_v44 = vrot.slane %v560_v55, 4  ;;  %v1278_v35 = vrot.slane %v1276_v59, 4  ;;  %v581_v32 = vshll.u32 %v4761_v61, 16  ;;  %v580_v19 = vrot.slane %v578_v20, 4 }
  0x4f   : > { %5539 = vst [vmem:[#allocation16_spill] sm:$0xff] %v4782_v2  ;;  %3736 = vmatprep.mubr.msk.bf16.mxu1 %vm721_vm3, %v4782_v2  ;;  %v571_v58 = vrot.slane %v570_v18, 4  ;;  %v587_v37 = vshll.u32 %v4780_v46, 16  ;;  %v591_v40 = vshrl.u32 %v4780_v46, 16  ;;  %v597_v59 = vshll.u32 %v4785_v3, 16 }
  0x50   : > { %v566_v50 = vsel %vm4471_vm4, %v561_v44, %v565_v41  ;;  %v1280_v55 = vsel %vm4652_vm7, %v1278_v35, %v1279_v4  ;;  %v583_v12 = vrot.slane %v581_v32, 5  ;;  %v3346_v4 = vrot.slane %v4540_v48, 9 }
  0x51   : > { %v576_v2 = vsel %vm4471_vm4, %v571_v58, %v575_v22  ;;  %v4807_v18 = vcombine.low %v1277_v17, %v1280_v55  ;;  %v589_v20 = vrot.slane %v587_v37, 5  ;;  %v593_v0 = vrot.slane %v591_v40, 4  ;;  %v4823_v58 = vld [vmem:[%s4424_s27 + $0xa4] sm:$0x1] }
  0x52   : > { %v4812_v43 = vcombine.low %v566_v50, %v576_v2  ;;  %v584_v41 = vor.u32 %v583_v12, %v580_v19  ;;  %v599_v44 = vrot.slane %v597_v59, 5  ;;  %v1283_v32 = vrot.slane %v4548_v52, 5 }
  0x53   : > { %5540 = vst [vmem:[#allocation17_spill] sm:$0xff] %v4807_v18  ;;  %3891 = vmatmul.mubr.msk.bf16.gmra.mrb[4].mxu0 %vm721_vm3, %v4807_v18  ;;  %v594_v35 = vor.u32 %v593_v0, %v589_v20  ;;  %v1286_v22 = vrot.slane %v4560_v5, 5  ;;  %v602_v17 = vshrl.u32 %v4803_v60, 16  ;;  %v605_v19 = vshll.u32 %v4803_v60, 16 }
  0x54   : > { %5541 = vst [vmem:[#allocation18_spill] sm:$0xff] %v4812_v43  ;;  %3737 = vmatmul.mubr.msk.bf16.gmra.mrb[20].mxu1 %vm721_vm3, %v4812_v43  ;;  %v585_v2 = vrot.slane %v584_v41, 4  ;;  %v611_v37 = vshll.u32 %v4810_v7, 16  ;;  %v615_v0 = vshrl.u32 %v4810_v7, 16  ;;  %v1284_v5 = vsel %vm4652_vm7, %v3346_v4, %v1283_v32 }
  0x55   : > { %v595_v40 = vrot.slane %v594_v35, 4  ;;  %v1285_v50 = vrot.slane %v1283_v32, 4  ;;  %v604_v55 = vrot.slane %v602_v17, 4  ;;  %v607_v59 = vrot.slane %v605_v19, 5  ;;  %v4842_v32 = vld [vmem:[%s4424_s27 + $0xac] sm:$0xf] }
  0x56   : > { %v590_v12 = vsel %vm4471_vm4, %v585_v2, %v589_v20  ;;  %v613_v41 = vrot.slane %v611_v37, 5  ;;  %v617_v43 = vrot.slane %v615_v0, 4  ;;  %v621_v35 = vshll.u32 %v4823_v58, 16 }
  0x57   : > { %v600_v53 = vsel %vm4471_vm4, %v595_v40, %v599_v44  ;;  %v1287_v18 = vsel %vm4652_vm7, %v1285_v50, %v1286_v22  ;;  %v3347_v4 = vrot.slane %v4565_v13, 9  ;;  %v608_v2 = vor.u32 %v607_v59, %v604_v55 }
  0x58   : > { %v4844_v17 = vcombine.low %v590_v12, %v600_v53  ;;  %v4846_v20 = vcombine.low %v1284_v5, %v1287_v18  ;;  %v618_v19 = vor.u32 %v617_v43, %v613_v41  ;;  %v623_v37 = vrot.slane %v621_v35, 5  ;;  %v4856_v18 = vld [vmem:[%s4424_s27 + $0xb0] sm:$0x1] }
  0x59   : > { %v1290_v0 = vrot.slane %v4572_v24, 5  ;;  %v1293_v44 = vrot.slane %v4589_v8, 5  ;;  %v626_v22 = vshrl.u32 %v4833_v25, 16  ;;  %v609_v53 = vrot.slane %v608_v2, 4 }
  0x5a   : > { %5542 = vst [vmem:[#allocation19_spill] sm:$0xff] %v4844_v17  ;;  %5543 = vst [vmem:[#allocation20_spill] sm:$0xff] %v4846_v20  ;;  %3740 = vmatprep.mubr.msk.bf16.mxu1 %vm721_vm3, %v4844_v17  ;;  %3894 = vmatprep.mubr.msk.bf16.mxu0 %vm721_vm3, %v4846_v20  ;;  %v619_v40 = vrot.slane %v618_v19, 4  ;;  %v629_v43 = vshll.u32 %v4833_v25, 16  ;;  %v635_v5 = vshll.u32 %v4842_v32, 16  ;;  %v639_v12 = vshrl.u32 %v4842_v32, 16 }
  0x5b   : > { %v1291_v8 = vsel %vm4652_vm7, %v3347_v4, %v1290_v0  ;;  %v1292_v50 = vrot.slane %v1290_v0, 4  ;;  %v628_v55 = vrot.slane %v626_v22, 4  ;;  %v614_v59 = vsel %vm4471_vm4, %v609_v53, %v613_v41  ;;  %v4868_v17 = vld [vmem:[%s4424_s27 + $0xb4] sm:$0xf]  ;;  %v4880_v53 = vld [vmem:[%s4424_s27 + $0xb8] sm:$0xf] }
  0x5c   : > { %v624_v35 = vsel %vm4471_vm4, %v619_v40, %v623_v37  ;;  %v631_v2 = vrot.slane %v629_v43, 5  ;;  %v637_v19 = vrot.slane %v635_v5, 5  ;;  %v641_v0 = vrot.slane %v639_v12, 4 }
  0x5d   : > { %v4870_v20 = vcombine.low %v614_v59, %v624_v35  ;;  %v1294_v4 = vsel %vm4652_vm7, %v1292_v50, %v1293_v44  ;;  %v645_v22 = vshll.u32 %v4856_v18, 16  ;;  %v3348_v41 = vrot.slane %v4594_v42, 9  ;;  %v4886_v44 = vld [vmem:[%s4424_s27 + $0xbc] sm:$0x1] }
  0x5e   : > { %v4875_v30 = vcombine.low %v1291_v8, %v1294_v4  ;;  %v632_v63 = vor.u32 %v631_v2, %v628_v55  ;;  %v1297_v37 = vrot.slane %v4599_v6, 5  ;;  %v642_v40 = vor.u32 %v641_v0, %v637_v19 }
  0x5f   : > { %5544 = vst [vmem:[#allocation21_spill] sm:$0xff] %v4870_v20  ;;  %3741 = vmatmul.mubr.msk.bf16.gmra.mrb[24].mxu1 %vm721_vm3, %v4870_v20  ;;  %v647_v43 = vrot.slane %v645_v22, 5  ;;  %v1300_v5 = vrot.slane %v4612_v11, 5  ;;  %v650_v50 = vshrl.u32 %v4868_v17, 16  ;;  %v653_v59 = vshll.u32 %v4868_v17, 16 }
  0x60   : > { %5545 = vst [vmem:[#allocation22_spill] sm:$0xff] %v4875_v30  ;;  %3895 = vmatmul.mubr.msk.bf16.gmra.mrb[8].mxu0 %vm721_vm3, %v4875_v30  ;;  %v633_v8 = vrot.slane %v632_v63, 4  ;;  %v1298_v55 = vsel %vm4652_vm7, %v3348_v41, %v1297_v37  ;;  %v1299_v12 = vrot.slane %v1297_v37, 4  ;;  %v643_v35 = vrot.slane %v642_v40, 4 }
  0x61   : > { %v652_v2 = vrot.slane %v650_v50, 4  ;;  %v659_v4 = vshll.u32 %v4880_v53, 16  ;;  %v663_v11 = vshrl.u32 %v4880_v53, 16  ;;  %v655_v20 = vrot.slane %v653_v59, 5 }
  0x62   : > { %v638_v0 = vsel %vm4471_vm4, %v633_v8, %v637_v19  ;;  %v1301_v22 = vsel %vm4652_vm7, %v1299_v12, %v1300_v5  ;;  %v669_v63 = vshll.u32 %v4886_v44, 16  ;;  %v648_v41 = vsel %vm4471_vm4, %v643_v35, %v647_v43 }
  0x63   : > { %v4903_v37 = vcombine.low %v1298_v55, %v1301_v22  ;;  %v661_v40 = vrot.slane %v659_v4, 5  ;;  %v665_v50 = vrot.slane %v663_v11, 4  ;;  %v4905_v30 = vcombine.low %v638_v0, %v648_v41 }
  0x64   : > { %v656_v21 = vor.u32 %v655_v20, %v652_v2  ;;  %v671_v45 = vrot.slane %v669_v63, 5  ;;  %v3349_v42 = vrot.slane %v4616_v15, 9  ;;  %v1304_v5 = vrot.slane %v4621_v27, 5 }
  0x65   : > { %3898 = vmatprep.mubr.msk.bf16.mxu0 %vm721_vm3, %v4903_v37  ;;  %v666_v19 = vor.u32 %v665_v50, %v661_v40  ;;  %v1307_v8 = vrot.slane %v4635_v47, 5  ;;  %v3350_v43 = vrot.slane %v4643_v54, 9  ;;  %3744 = vmatprep.mubr.msk.bf16.mxu1 %vm721_vm3, %v4905_v30  ;;  %v3309_v20 = vcombine.low %v4438_v9, %v4441_v10 }
  0x66   : > { %v657_v55 = vrot.slane %v656_v21, 4  ;;  %v1311_v12 = vrot.slane %v4659_v36, 5  ;;  %v1314_v59 = vrot.slane %v4672_v51, 5  ;;  %v1305_v2 = vsel %vm4652_vm7, %v3349_v42, %v1304_v5 }
  0x67   : > { %v667_v35 = vrot.slane %v666_v19, 4  ;;  %v1306_v4 = vrot.slane %v1304_v5, 4  ;;  %v1318_v47 = vrot.slane %v4700_v31, 5  ;;  %v3351_v9 = vrot.slane %v4684_v56, 9 }
  0x68   : > { %v662_v11 = vsel %vm4471_vm4, %v657_v55, %v661_v40  ;;  %v1312_v21 = vsel %vm4652_vm7, %v3350_v43, %v1311_v12  ;;  %v1313_v0 = vrot.slane %v1311_v12, 4  ;;  %v1321_v42 = vrot.slane %v4705_v49, 5 }
  0x69   : > { %v672_v10 = vsel %vm4471_vm4, %v667_v35, %v671_v45  ;;  %v1308_v51 = vsel %vm4652_vm7, %v1306_v4, %v1307_v8  ;;  %v1320_v22 = vrot.slane %v1318_v47, 4  ;;  %v3352_v19 = vrot.slane %v4731_v29, 9 }
  0x6a   : > { %v4932_v63 = vcombine.low %v662_v11, %v672_v10  ;;  %v4934_v41 = vcombine.low %v1305_v2, %v1308_v51  ;;  %v1315_v40 = vsel %vm4652_vm7, %v1313_v0, %v1314_v59  ;;  %v1325_v5 = vrot.slane %v4737_v16, 5 }
  0x6b   : > { %v4938_v50 = vcombine.low %v1312_v21, %v1315_v40  ;;  %v1328_v49 = vrot.slane %v4747_v1, 5  ;;  %v1319_v45 = vsel %vm4652_vm7, %v3351_v9, %v1318_v47  ;;  %v1322_v8 = vsel %vm4652_vm7, %v1320_v22, %v1321_v42 }
  0x6c   : > { %3745 = vmatmul.mubr.msk.bf16.gmra.mrb[28].mxu1 %vm721_vm3, %v4932_v63  ;;  %3899 = vmatmul.mubr.msk.bf16.gmra.mrb[12].mxu0 %vm721_vm3, %v4934_v41  ;;  %v1327_v43 = vrot.slane %v1325_v5, 4  ;;  %v1332_v55 = vrot.slane %v4780_v46, 5  ;;  %v1339_v12 = vrot.slane %v4810_v7, 5  ;;  %v1326_v59 = vsel %vm4652_vm7, %v3352_v19, %v1325_v5 }
  0x6d   : > { %3750 = vmatprep.mubr.msk.bf16.mxu1 %vm721_vm3, %v3309_v20  ;;  %3902 = vmatprep.mubr.msk.bf16.mxu0 %vm721_vm3, %v4938_v50  ;;  %v4960_v20 = vcombine.low %v1319_v45, %v1322_v8  ;;  %v3353_v35 = vrot.slane %v4761_v61, 9  ;;  %v1335_v4 = vrot.slane %v4785_v3, 5  ;;  %v4966_v47 = vcombine.low %v4467_v33, %v4480_v39  ;;  %v4978_v3 = vld [vmem:[%s5487_s1 + $0x6] sm:$0x3] }
  0x6e   : > { %v1329_v1 = vsel %vm4652_vm7, %v1327_v43, %v1328_v49  ;;  %v1334_v2 = vrot.slane %v1332_v55, 4  ;;  %v3354_v11 = vrot.slane %v4803_v60, 9  ;;  %v1455_v21 = vsel %vm770_vm0, %v4520_v23, 0 }
  0x6f   : > { %v4971_v0 = vcombine.low %v1326_v59, %v1329_v1  ;;  %v1341_v9 = vrot.slane %v1339_v12, 4  ;;  %v1342_v10 = vrot.slane %v4823_v58, 5  ;;  %v1346_v51 = vrot.slane %v4842_v32, 5 }
  0x70   : > { %v1333_v33 = vsel %vm4652_vm7, %v3353_v35, %v1332_v55  ;;  %v1336_v39 = vsel %vm4652_vm7, %v1334_v2, %v1335_v4  ;;  %v4992_v23 = vcombine.low %v4494_v57, %v4499_v62  ;;  %v1340_v58 = vsel %vm4652_vm7, %v3354_v11, %v1339_v12 }
  0x71   : > { %v4998_v22 = vcombine.low %v4616_v15, %v4621_v27  ;;  %v1343_v42 = vsel %vm4652_vm7, %v1341_v9, %v1342_v10  ;;  %v3355_v40 = vrot.slane %v4833_v25, 9  ;;  %v1353_v19 = vrot.slane %v4880_v53, 5 }
  0x72   : > { %v5008_v57 = vcombine.low %v4643_v54, %v4659_v36  ;;  %v5012_v62 = vcombine.low %v1333_v33, %v1336_v39  ;;  %v1348_v15 = vrot.slane %v1346_v51, 4  ;;  %v1349_v27 = vrot.slane %v4856_v18, 5  ;;  %v273_v18 = vld [vmem:[%s4424_s27 + $0xc8] sm:$0x1] }
  0x73   : > { %v5017_v5 = vcombine.low %v4684_v56, %v4700_v31  ;;  %v5021_v49 = vcombine.low %v4731_v29, %v4737_v16  ;;  %v5025_v54 = vcombine.low %v4761_v61, %v4780_v46  ;;  %v5029_v36 = vcombine.low %v4803_v60, %v4810_v7  ;;  %v5048_v61 = vld [vmem:[%s4424_s27 + $0xc4] sm:$0xf] }
  0x74   : > { %3751 = vmatmul.mubr.msk.bf16.vlgmr.msra.gmra.mrb[0].mxu1 %vm721_vm3, %v4477_v38  ;;  %3903 = vmatmul.mubr.msk.bf16.gmra.mrb[16].mxu0 %vm721_vm3, %v4960_v20  ;;  %v5033_v45 = vcombine.low %v4833_v25, %v4842_v32  ;;  %v5037_v56 = vcombine.low %v4513_v14, %v4525_v28  ;;  %v5039_v31 = vcombine.low %v1340_v58, %v1343_v42  ;;  %v3356_v16 = vrot.slane %v4868_v17, 9  ;;  %v5546_v42 = vld [vmem:[#allocation5_spill] sm:$0xff] }
  0x75   : > { %3783 = vmatpush3.bf16.msra.mxu1 %v1455_v21  ;;  %3754 = vmatprep.mubr.msk.bf16.mxu1 %vm721_vm3, %v4966_v47  ;;  %v5043_v29 = vcombine.low %v4868_v17, %v4880_v53  ;;  %v1355_v7 = vrot.slane %v1353_v19, 4  ;;  %v1356_v60 = vrot.slane %v4886_v44, 5  ;;  %v1347_v14 = vsel %vm4652_vm7, %v3355_v40, %v1346_v51  ;;  %v5068_v17 = vld [vmem:[%s4424_s27 + $0xc0] sm:$0xf] }
  0x76   : > { %3906 = vmatprep.mubr.msk.bf16.mxu0 %vm721_vm3, %v4971_v0  ;;  %4281 = vmatprep.subr.msk.bf16.mxu1 %vm770_vm0, %v4978_v3  ;;  %v1350_v28 = vsel %vm4652_vm7, %v1348_v15, %v1349_v27  ;;  %v2083_v25 = vrot.slane %v5048_v61, 5  ;;  %v1354_v46 = vsel %vm4652_vm7, %v3356_v16, %v1353_v19  ;;  %v5073_v53 = vcombine.low %v4540_v48, %v4548_v52 }
  0x77   : > { %v1357_v32 = vsel %vm4652_vm7, %v1355_v7, %v1356_v60  ;;  %v5075_v44 = vcombine.low %v1347_v14, %v1350_v28  ;;  %v5079_v8 = vcombine.low %v4565_v13, %v4572_v24  ;;  %v1855_v43 = vshrl.u32 %v5068_v17, 16  ;;  %v285_v60 = vld [vmem:[%s5487_s1 + $0x10] sm:$0x3]  ;;  %v4331_v14 = vld [vmem:[%s4424_s27 + $0x4] sm:$0xf] }
  0x78   : > { %v1858_v55 = vshll.u32 %v5068_v17, 16  ;;  %v1864_v12 = vshll.u32 %v5048_v61, 16  ;;  %v1868_v59 = vshrl.u32 %v5048_v61, 16  ;;  %v5085_v1 = vcombine.low %v1354_v46, %v1357_v32  ;;  %v4333_v32 = vld [vmem:[%s4424_s27] sm:$0xf] }
  0x79   : > { %v3423_v35 = vrot.slane %v5068_v17, 9  ;;  %v2085_v48 = vrot.slane %v2083_v25, 4  ;;  %v2086_v52 = vrot.slane %v273_v18, 5  ;;  %v1857_v2 = vrot.slane %v1855_v43, 4 }
  0x7a   : > { %v1860_v4 = vrot.slane %v1858_v55, 5  ;;  %v1866_v11 = vrot.slane %v1864_v12, 5  ;;  %v1870_v21 = vrot.slane %v1868_v59, 4  ;;  %v1874_v9 = vshll.u32 %v273_v18, 16 }
  0x7b   : > { %v2084_v10 = vsel %vm4652_vm7, %v3423_v35, %v2083_v25  ;;  %v2087_v51 = vsel %vm4652_vm7, %v2085_v48, %v2086_v52  ;;  %v5102_v40 = vcombine.low %v5546_v42, %v4599_v6  ;;  %v5547_v6 = vld [vmem:[#allocation15_spill] sm:$0xff]  ;;  %v1248_v28 = vrot.slane %v4331_v14, 5  ;;  %v5548_v48 = vld [vmem:[#allocation10_spill] sm:$0xff]  ;;  %v5549_v52 = vld [vmem:[#allocation12_spill] sm:$0xff] }
  0x7c   : > { %3755 = vmatmul.mubr.msk.bf16.gmra.mrb[4].mxu1 %vm721_vm3, %v4992_v23  ;;  %3907 = vmatmul.mubr.msk.bf16.gmra.mrb[20].mxu0 %vm721_vm3, %v5012_v62  ;;  %v1861_v13 = vor.u32 %v1860_v4, %v1857_v2  ;;  %v1871_v24 = vor.u32 %v1870_v21, %v1866_v11  ;;  %v1876_v58 = vrot.slane %v1874_v9, 5  ;;  %v5104_v19 = vcombine.low %v2084_v10, %v2087_v51  ;;  %v4332_v25 = vld [vmem:[%s4424_s27 + $0x8] sm:$0x1]  ;;  %v5551_v4 = vld [vmem:[#allocation17_spill] sm:$0xff]  ;;  %v5552_v21 = vld [vmem:[#allocation20_spill] sm:$0xff] }
  0x7d   : > { %3758 = vmatprep.mubr.msk.bf16.mxu1 %vm721_vm3, %v5037_v56  ;;  %3910 = vmatprep.mubr.msk.bf16.mxu0 %vm721_vm3, %v5039_v31  ;;  %v2525_v7 = vsel %vm770_vm0, %v5547_v6, 0  ;;  %v1251_v46 = vrot.slane %v4332_v25, 5  ;;  %v3341_v18 = vrot.slane %v4333_v32, 9  ;;  %v1250_v43 = vrot.slane %v1248_v28, 4  ;;  %v4334_v2 = vld [vmem:[%s5487_s1 + $0x8] sm:$0x3] }
  0x7e   : > { %v1862_v33 = vrot.slane %v1861_v13, 4  ;;  %v1872_v39 = vrot.slane %v1871_v24, 4  ;;  %v1659_v35 = vsel %vm770_vm0, %v4978_v3, 0  ;;  %v5550_v3 = vld [vmem:[#allocation14_spill] sm:$0xff]  ;;  %v5199_v24 = vld [vmem:[%s4424_s27 + $0xcc] sm:$0xf] }
  0x7f   : > { %v1249_v55 = vsel %vm4652_vm7, %v3341_v18, %v1248_v28  ;;  %v1252_v12 = vsel %vm4652_vm7, %v1250_v43, %v1251_v46  ;;  %v5553_v13 = vld [vmem:[#allocation22_spill] sm:$0xff]  ;;  %v5202_v9 = vld [vmem:[%s4424_s27 + $0xd0] sm:$0xf]  ;;  %v2735_v10 = vsel %vm770_vm0, %v285_v60, 0  ;;  %v5559_v42 = vld [vmem:[#allocation9_spill] sm:$0xff]  ;;  %v2498_v14 = vshll.u32 %v5199_v24, 16 }
  0x80   : > { %v1867_v15 = vsel %vm4471_vm4, %v1862_v33, %v1866_v11  ;;  %v1877_v27 = vsel %vm4471_vm4, %v1872_v39, %v1876_v58  ;;  %v3357_v59 = vcombine.low %v1249_v55, %v1252_v12  ;;  %v5188_v11 = vcombine.low %v5068_v17, %v5048_v61  ;;  %v5554_v17 = vld [vmem:[#allocation3_spill] sm:$0xff]  ;;  %v5555_v51 = vld [vmem:[#allocation4_spill] sm:$0xff]  ;;  %v5556_v33 = vld [vmem:[#allocation6_spill] sm:$0xff] }
  0x81   : > { %v5110_v16 = vcombine.low %v1867_v15, %v1877_v27  ;;  %v3441_v61 = vcombine.low %v5199_v24, %v5202_v9  ;;  %v5557_v39 = vld [vmem:[#allocation7_spill] sm:$0xff]  ;;  %v5558_v58 = vld [vmem:[#allocation8_spill] sm:$0xff]  ;;  %v5561_v27 = vld [vmem:[#allocation13_spill] sm:$0xff]  ;;  %v2508_v28 = vshrl.u32 %v5202_v9, 16  ;;  %v2500_v32 = vrot.slane %v2498_v14, 5 }
  0x82   : > { %v5560_v15 = vld [vmem:[#allocation11_spill] sm:$0xff]  ;;  %v5562_v6 = vld [vmem:[#allocation16_spill] sm:$0xff]  ;;  %v5564_v25 = vld [vmem:[#allocation2_spill] sm:$0xff]  ;;  %v2723_v34 = vrot.slane %v5202_v9, 5 }
  0x83   : > { %v5565_v46 = vld [vmem:[#allocation19_spill] sm:$0xff]  ;;  %v2510_v43 = vrot.slane %v2508_v28, 4  ;;  %v276_v55 = vld [vmem:[%s4424_s27 + $0xd4] sm:$0x1]  ;;  %v5566_v12 = vld [vmem:[#allocation21_spill] sm:$0xff] }
  0x84   : > { %3759 = vmatmul.mubr.msk.bf16.gmra.mrb[8].mxu1 %vm721_vm3, %v5073_v53  ;;  %3911 = vmatmul.mubr.msk.bf16.gmra.mrb[24].mxu0 %vm721_vm3, %v5075_v44 }
  0x85   : > { %3762 = vmatprep.mubr.msk.bf16.mxu1 %vm721_vm3, %v5079_v8  ;;  %3914 = vmatprep.mubr.msk.bf16.mxu0 %vm721_vm3, %v5085_v1 }
  0x8c   : > { %3763 = vmatmul.mubr.msk.bf16.gmra.mrb[12].mxu1 %vm721_vm3, %v5102_v40  ;;  %3915 = vmatmul.mubr.msk.bf16.gmra.mrb[28].mxu0 %vm721_vm3, %v5104_v19 }
  0x8d   : > { %3766 = vmatprep.mubr.msk.bf16.mxu1 %vm721_vm3, %v4998_v22  ;;  %3920 = vmatprep.mubr.msk.bf16.mxu0 %vm721_vm3, %v4966_v47 }
  0x94   : > { %3767 = vmatmul.mubr.msk.bf16.gmra.mrb[16].mxu1 %vm721_vm3, %v5008_v57  ;;  %3921 = vmatmul.mubr.msk.bf16.vlgmr.msra.gmra.mrb[0].mxu0 %vm721_vm3, %v4992_v23 }
  0x95   : > { %3953 = vmatpush3.bf16.msra.mxu0 %v2525_v7  ;;  %3770 = vmatprep.mubr.msk.bf16.mxu1 %vm721_vm3, %v5017_v5  ;;  %v5563_v7 = vld [vmem:[#allocation18_spill] sm:$0xff] }
  0x96   : > { %3924 = vmatprep.mubr.msk.bf16.mxu0 %vm721_vm3, %v5037_v56  ;;  %4287 = vmatprep.subr.msk.bf16.mxu0 %vm770_vm0, %v285_v60  ;;  %v2495_v60 = vshrl.u32 %v5199_v24, 16 }
  0x9c   : > { %3771 = vmatmul.mubr.msk.bf16.gmra.mrb[20].mxu1 %vm721_vm3, %v5021_v49  ;;  %3925 = vmatmul.mubr.msk.bf16.gmra.mrb[4].mxu0 %vm721_vm3, %v5073_v53 }
  0x9d   : > { %3774 = vmatprep.mubr.msk.bf16.mxu1 %vm721_vm3, %v5025_v54  ;;  %3928 = vmatprep.mubr.msk.bf16.mxu0 %vm721_vm3, %v5079_v8 }
  0xa4   : > { %3775 = vmatmul.mubr.msk.bf16.gmra.mrb[24].mxu1 %vm721_vm3, %v5029_v36  ;;  %3929 = vmatmul.mubr.msk.bf16.gmra.mrb[8].mxu0 %vm721_vm3, %v5102_v40 }
  0xa5   : > { %3778 = vmatprep.mubr.msk.bf16.mxu1 %vm721_vm3, %v5033_v45  ;;  %3932 = vmatprep.mubr.msk.bf16.mxu0 %vm721_vm3, %v4998_v22 }
  0xac   : > { %3779 = vmatmul.mubr.msk.bf16.gmra.mrb[28].mxu1 %vm721_vm3, %v5043_v29  ;;  %3933 = vmatmul.mubr.msk.bf16.gmra.mrb[12].mxu0 %vm721_vm3, %v5008_v57 }
  0xad   : > { %3784 = vmatprep.mubr.msk.bf16.mxu1 %vm721_vm3, %v3357_v59  ;;  %3936 = vmatprep.mubr.msk.bf16.mxu0 %vm721_vm3, %v5017_v5 }
  0xb4   : > { %3785 = vmatmul.mubr.msk.bf16.vlgmr.msra.gmra.mrb[0].mxu1 %vm721_vm3, %v5548_v48  ;;  %3937 = vmatmul.mubr.msk.bf16.gmra.mrb[16].mxu0 %vm721_vm3, %v5021_v49 }
  0xb5   : > { %3817 = vmatpush3.bf16.msra.mxu1 %v1659_v35  ;;  %3788 = vmatprep.mubr.msk.bf16.mxu1 %vm721_vm3, %v5549_v52  ;;  %v2514_v35 = vshll.u32 %v276_v55, 16 }
  0xb6   : > { %3940 = vmatprep.mubr.msk.bf16.mxu0 %vm721_vm3, %v5025_v54  ;;  %4283 = vmatprep.subr.msk.bf16.mxu1 %vm770_vm0, %v4334_v2 }
  0xbc   : > { %3789 = vmatmul.mubr.msk.bf16.gmra.mrb[4].mxu1 %vm721_vm3, %v5550_v3  ;;  %3941 = vmatmul.mubr.msk.bf16.gmra.mrb[20].mxu0 %vm721_vm3, %v5029_v36 }
  0xbd   : > { %3792 = vmatprep.mubr.msk.bf16.mxu1 %vm721_vm3, %v5551_v4  ;;  %3944 = vmatprep.mubr.msk.bf16.mxu0 %vm721_vm3, %v5033_v45 }
  0xc4   : > { %3793 = vmatmul.mubr.msk.bf16.gmra.mrb[8].mxu1 %vm721_vm3, %v5552_v21  ;;  %3945 = vmatmul.mubr.msk.bf16.gmra.mrb[24].mxu0 %vm721_vm3, %v5043_v29 }
  0xc5   : > { %3796 = vmatprep.mubr.msk.bf16.mxu1 %vm721_vm3, %v5553_v13  ;;  %3948 = vmatprep.mubr.msk.bf16.mxu0 %vm721_vm3, %v5188_v11 }
  0xcc   : > { %3797 = vmatmul.mubr.msk.bf16.gmra.mrb[12].mxu1 %vm721_vm3, %v4903_v37  ;;  %3949 = vmatmul.mubr.msk.bf16.gmra.mrb[28].mxu0 %vm721_vm3, %v3441_v61  ;;  %v2516_v61 = vrot.slane %v2514_v35, 5 }
  0xcd   : > { %3800 = vmatprep.mubr.msk.bf16.mxu1 %vm721_vm3, %v4934_v41  ;;  %3954 = vmatprep.mubr.msk.bf16.mxu0 %vm721_vm3, %v5554_v17 }
  0xd4   : > { %3801 = vmatmul.mubr.msk.bf16.gmra.mrb[16].mxu1 %vm721_vm3, %v4938_v50  ;;  %3955 = vmatmul.mubr.msk.bf16.vlgmr.msra.gmra.mrb[0].mxu0 %vm721_vm3, %v5555_v51 }
  0xd5   : > { %3987 = vmatpush3.bf16.msra.mxu0 %v2735_v10  ;;  %3804 = vmatprep.mubr.msk.bf16.mxu1 %vm721_vm3, %v4960_v20 }
  0xd6   : > { %3958 = vmatprep.mubr.msk.bf16.mxu0 %vm721_vm3, %v5556_v33 }
  0xdc   : > { %3805 = vmatmul.mubr.msk.bf16.gmra.mrb[20].mxu1 %vm721_vm3, %v4971_v0  ;;  %3959 = vmatmul.mubr.msk.bf16.gmra.mrb[4].mxu0 %vm721_vm3, %v5557_v39 }
  0xdd   : > { %3808 = vmatprep.mubr.msk.bf16.mxu1 %vm721_vm3, %v5012_v62  ;;  %3962 = vmatprep.mubr.msk.bf16.mxu0 %vm721_vm3, %v5558_v58 }
  0xe4   : > { %3809 = vmatmul.mubr.msk.bf16.gmra.mrb[24].mxu1 %vm721_vm3, %v5039_v31  ;;  %3963 = vmatmul.mubr.msk.bf16.gmra.mrb[8].mxu0 %vm721_vm3, %v5559_v42 }
  0xe5   : > { %3812 = vmatprep.mubr.msk.bf16.mxu1 %vm721_vm3, %v5075_v44  ;;  %3966 = vmatprep.mubr.msk.bf16.mxu0 %vm721_vm3, %v5560_v15 }
  0xec   : > { %3813 = vmatmul.mubr.msk.bf16.gmra.mrb[28].mxu1 %vm721_vm3, %v5085_v1  ;;  %3967 = vmatmul.mubr.msk.bf16.gmra.mrb[12].mxu0 %vm721_vm3, %v5561_v27 }
  0xed   : > { %3818 = vmatprep.mubr.msk.bf16.mxu1 %vm721_vm3, %v4477_v38  ;;  %3970 = vmatprep.mubr.msk.bf16.mxu0 %vm721_vm3, %v5562_v6  ;;  %v2504_v38 = vshll.u32 %v5202_v9, 16 }
  0xef   : > { %v2506_v18 = vrot.slane %v2504_v38, 5 }
  0xf1   : > { %v2511_v59 = vor.u32 %v2510_v43, %v2506_v18 }
  0xf3   : > { %v2512_v2 = vrot.slane %v2511_v59, 4 }
  0xf4   : > { %3819 = vmatmul.mubr.msk.bf16.vlgmr.msra.gmra.mrb[0].mxu1 %vm721_vm3, %v4966_v47  ;;  %3971 = vmatmul.mubr.msk.bf16.gmra.mrb[16].mxu0 %vm721_vm3, %v5563_v7  ;;  %v2497_v47 = vrot.slane %v2495_v60, 4 }
  0xf5   : > { %4021 = vmatpush3.bf16.msra.mxu1 %v5564_v25  ;;  %3822 = vmatprep.mubr.msk.bf16.mxu1 %vm721_vm3, %v4992_v23 }
  0xf6   : > { %3974 = vmatprep.mubr.msk.bf16.mxu0 %vm721_vm3, %v5565_v46  ;;  %v2501_v23 = vor.u32 %v2500_v32, %v2497_v47 }
  0xf8   : > { %v2502_v48 = vrot.slane %v2501_v23, 4 }
  0xfc   : > { %3823 = vmatmul.mubr.msk.bf16.gmra.mrb[4].mxu1 %vm721_vm3, %v5037_v56  ;;  %3975 = vmatmul.mubr.msk.bf16.gmra.mrb[20].mxu0 %vm721_vm3, %v5566_v12  ;;  %v2507_v56 = vsel %vm4471_vm4, %v2502_v48, %v2506_v18 }
  0xfd   : > { %3826 = vmatprep.mubr.msk.bf16.mxu1 %vm721_vm3, %v5073_v53  ;;  %3978 = vmatprep.mubr.msk.bf16.mxu0 %vm721_vm3, %v4905_v30  ;;  %v2517_v53 = vsel %vm4471_vm4, %v2512_v2, %v2516_v61 }
  0xfe   : > { %v3458_v17 = vcombine.low %v2507_v56, %v2517_v53 }
 0x104   : > { %3827 = vmatmul.mubr.msk.bf16.gmra.mrb[8].mxu1 %vm721_vm3, %v5079_v8  ;;  %3979 = vmatmul.mubr.msk.bf16.gmra.mrb[24].mxu0 %vm721_vm3, %v4932_v63 }
 0x105   : > { %3830 = vmatprep.mubr.msk.bf16.mxu1 %vm721_vm3, %v5102_v40  ;;  %3982 = vmatprep.mubr.msk.bf16.mxu0 %vm721_vm3, %v5110_v16 }
 0x10c   : > { %3831 = vmatmul.mubr.msk.bf16.gmra.mrb[12].mxu1 %vm721_vm3, %v4998_v22  ;;  %3983 = vmatmul.mubr.msk.bf16.gmra.mrb[28].mxu0 %vm721_vm3, %v3458_v17 }
 0x10d   : > { %3834 = vmatprep.mubr.msk.bf16.mxu1 %vm721_vm3, %v5008_v57  ;;  %3988 = vmatprep.mubr.msk.bf16.mxu0 %vm721_vm3, %v5549_v52 }
 0x114   : > { %3835 = vmatmul.mubr.msk.bf16.gmra.mrb[16].mxu1 %vm721_vm3, %v5017_v5  ;;  %3989 = vmatmul.mubr.msk.bf16.vlgmr.msra.gmra.mrb[0].mxu0 %vm721_vm3, %v5550_v3 }
 0x115   : > { %3838 = vmatprep.mubr.msk.bf16.mxu1 %vm721_vm3, %v5021_v49  ;;  %3992 = vmatprep.mubr.msk.bf16.mxu0 %vm721_vm3, %v5551_v4 }
 0x11c   : > { %3839 = vmatmul.mubr.msk.bf16.gmra.mrb[20].mxu1 %vm721_vm3, %v5025_v54  ;;  %3993 = vmatmul.mubr.msk.bf16.gmra.mrb[4].mxu0 %vm721_vm3, %v5552_v21 }
 0x11d   : > { %3842 = vmatprep.mubr.msk.bf16.mxu1 %vm721_vm3, %v5029_v36  ;;  %3996 = vmatprep.mubr.msk.bf16.mxu0 %vm721_vm3, %v5553_v13 }
 0x124   : > { %3843 = vmatmul.mubr.msk.bf16.gmra.mrb[24].mxu1 %vm721_vm3, %v5033_v45  ;;  %3997 = vmatmul.mubr.msk.bf16.gmra.mrb[8].mxu0 %vm721_vm3, %v4903_v37  ;;  %v3475_v37 = vrot.slane %v5199_v24, 9 }
 0x125   : > { %3846 = vmatprep.mubr.msk.bf16.mxu1 %vm721_vm3, %v5043_v29  ;;  %4000 = vmatprep.mubr.msk.bf16.mxu0 %vm721_vm3, %v4934_v41  ;;  %v2725_v41 = vrot.slane %v2723_v34, 4 }
 0x12c   : > { %3847 = vmatmul.mubr.msk.bf16.gmra.mrb[28].mxu1 %vm721_vm3, %v5188_v11  ;;  %4001 = vmatmul.mubr.msk.bf16.gmra.mrb[12].mxu0 %vm721_vm3, %v4938_v50  ;;  %v2726_v50 = vrot.slane %v276_v55, 5 }
 0x12d   : > { %3868 = vmatprep.mubr.msk.bf16.mxu1 %vm721_vm3, %v5561_v27  ;;  %4004 = vmatprep.mubr.msk.bf16.mxu0 %vm721_vm3, %v4960_v20  ;;  %v2724_v20 = vsel %vm4652_vm7, %v3475_v37, %v2723_v34 }
 0x134   : > { %3869 = vmatmul.mubr.msk.bf16.vlgmr.msra.gmra.mrb[16].mxu1 %vm721_vm3, %v5562_v6  ;;  %4005 = vmatmul.mubr.msk.bf16.gmra.mrb[16].mxu0 %vm721_vm3, %v4971_v0  ;;  %v2727_v0 = vsel %vm4652_vm7, %v2725_v41, %v2726_v50 }
 0x135   : > { %3872 = vmatprep.mubr.msk.bf16.mxu1 %vm721_vm3, %v5563_v7  ;;  %4008 = vmatprep.mubr.msk.bf16.mxu0 %vm721_vm3, %v5012_v62  ;;  %v3476_v22 = vcombine.low %v2724_v20, %v2727_v0 }
 0x13c   : > { %3873 = vmatmul.mubr.msk.bf16.gmra.mrb[20].mxu1 %vm721_vm3, %v5565_v46  ;;  %4009 = vmatmul.mubr.msk.bf16.gmra.mrb[20].mxu0 %vm721_vm3, %v5039_v31 }
 0x13d   : > { %3876 = vmatprep.mubr.msk.bf16.mxu1 %vm721_vm3, %v5566_v12  ;;  %4012 = vmatprep.mubr.msk.bf16.mxu0 %vm721_vm3, %v5075_v44 }
 0x144   : > { %3877 = vmatmul.mubr.msk.bf16.gmra.mrb[24].mxu1 %vm721_vm3, %v4905_v30  ;;  %4013 = vmatmul.mubr.msk.bf16.gmra.mrb[24].mxu0 %vm721_vm3, %v5085_v1 }
 0x145   : > { %3880 = vmatprep.mubr.msk.bf16.mxu1 %vm721_vm3, %v4932_v63  ;;  %4016 = vmatprep.mubr.msk.bf16.mxu0 %vm721_vm3, %v5104_v19 }
 0x14c   : > { %3881 = vmatmul.mubr.msk.bf16.gmra.mrb[28].mxu1 %vm721_vm3, %v5110_v16  ;;  %4017 = vmatmul.mubr.msk.bf16.gmra.mrb[28].mxu0 %vm721_vm3, %v3476_v22  ;;  %v5367_v16 = vld [vmem:[%s5488_s2] ss:$0 sm:$0xff] }
 0x1c7   : > { %v3820_v30 = vpop.f32.mrb[0].mxu1 }
 0x1c8   : > { %v1695_v57 = vpop.f32.mrb[1].mxu1 }
 0x1c9   : > { %v3821_v62 = vpop.f32.mrb[2].mxu1 }
 0x1ca   : > { %v1698_v5 = vpop.f32.mrb[3].mxu1 }
 0x1cf   : > { %v3824_v63 = vpop.f32.mrb[4].mxu1 }
 0x1d0   : > { %v1711_v49 = vpop.f32.mrb[5].mxu1 }
 0x1d1   : > { %v3825_v54 = vpop.f32.mrb[6].mxu1 }
 0x1d2   : > { %v1714_v36 = vpop.f32.mrb[7].mxu1 }
 0x1d7   : > { %v3828_v45 = vpop.f32.mrb[8].mxu1 }
 0x1d8   : > { %v1727_v31 = vpop.f32.mrb[9].mxu1 }
 0x1d9   : > { %v5352_v29 = vpop.f32.mrb[10].mxu1 }
 0x1da   : > { %v5354_v26 = vpop.f32.mrb[11].mxu1 }
 0x1df   : > { %v5356_v44 = vpop.f32.mrb[12].mxu1 }
 0x1e0   : > { %v5358_v8 = vpop.f32.mrb[13].mxu1 }
 0x1e1   : > { %v5360_v1 = vpop.f32.mrb[14].mxu1 }
 0x1e2   : > { %v5362_v40 = vpop.f32.mrb[15].mxu1 }
 0x1e7   : > { %v3990_v19 = vpop.f32.mrb[0].mxu0 }
 0x1e8   : > { %v4022_v52 = vadd.f32 %v3990_v19, %v3820_v30  ;;  %v2771_v3 = vpop.f32.mrb[1].mxu0 }
 0x1e9   : > { %v4023_v4 = vadd.f32 %v2771_v3, %v1695_v57  ;;  %v3991_v11 = vpop.f32.mrb[2].mxu0 }
 0x1ea   : > { %v2939_v21 = vadd.f32 %v4022_v52, %v5367_v16  ;;  %v4024_v13 = vadd.f32 %v3991_v11, %v3821_v62  ;;  %v2774_v24 = vpop.f32.mrb[3].mxu0 }
 0x1eb   : > { %v2937_v9 = vadd.f32 %v4023_v4, %v5367_v16  ;;  %v4025_v10 = vadd.f32 %v2774_v24, %v1698_v5 }
 0x1ec   : > { %v2971_v51 = vmax.f32 %v2939_v21, 0.0  ;;  %v2940_v33 = vadd.f32 %v4024_v13, %v5367_v16 }
 0x1ed   : > { %v2969_v39 = vmax.f32 %v2937_v9, 0.0  ;;  %v2938_v58 = vadd.f32 %v4025_v10, %v5367_v16 }
 0x1ee   : > { %v3531_v42 = vpack.c.bf16 %v2971_v51, %v2971_v51  ;;  %v2972_v15 = vmax.f32 %v2940_v33, 0.0 }
 0x1ef   : > { %v3529_v27 = vpack.c.bf16 %v2969_v39, %v2969_v39  ;;  %v2970_v6 = vmax.f32 %v2938_v58, 0.0  ;;  %v3994_v7 = vpop.f32.mrb[4].mxu0 }
 0x1f0   : > { %3132 = vst.msk [vmem:[%s5376_s22 + $0x8] sm:$0xf] %vm3129_vm8, %v3531_v42  ;;  %v3532_v60 = vpack.c.bf16 %v2972_v15, %v2972_v15  ;;  %v4026_v14 = vadd.f32 %v3994_v7, %v3824_v63  ;;  %v2787_v28 = vpop.f32.mrb[5].mxu0 }
 0x1f1   : > { %3130 = vst.msk [vmem:[%s5376_s22] sm:$0xf] %vm3129_vm8, %v3529_v27  ;;  %v3530_v25 = vpack.c.bf16 %v2970_v6, %v2970_v6  ;;  %v4027_v38 = vadd.f32 %v2787_v28, %v1711_v49  ;;  %v3995_v46 = vpop.f32.mrb[6].mxu0 }
 0x1f2   : > { %3133 = vst.msk [vmem:[%s5376_s22 + $0xc] sm:$0xf] %vm3129_vm8, %v3532_v60  ;;  %v2943_v47 = vadd.f32 %v4026_v14, %v5367_v16  ;;  %v4028_v32 = vadd.f32 %v3995_v46, %v3825_v54  ;;  %v2790_v18 = vpop.f32.mrb[7].mxu0 }
 0x1f3   : > { %3131 = vst.msk [vmem:[%s5376_s22 + $0x4] sm:$0xf] %vm3129_vm8, %v3530_v25  ;;  %v2941_v43 = vadd.f32 %v4027_v38, %v5367_v16  ;;  %v4029_v55 = vadd.f32 %v2790_v18, %v1714_v36 }
 0x1f4   : > { %v2975_v12 = vmax.f32 %v2943_v47, 0.0  ;;  %v2944_v23 = vadd.f32 %v4028_v32, %v5367_v16 }
 0x1f5   : > { %v2973_v59 = vmax.f32 %v2941_v43, 0.0  ;;  %v2942_v35 = vadd.f32 %v4029_v55, %v5367_v16 }
 0x1f6   : > { %v3535_v48 = vpack.c.bf16 %v2975_v12, %v2975_v12  ;;  %v2976_v2 = vmax.f32 %v2944_v23, 0.0 }
 0x1f7   : > { %v3533_v61 = vpack.c.bf16 %v2973_v59, %v2973_v59  ;;  %v2974_v56 = vmax.f32 %v2942_v35, 0.0  ;;  %v3998_v53 = vpop.f32.mrb[8].mxu0 }
 0x1f8   : > { %3136 = vst.msk [vmem:[%s5376_s22 + $0x18] sm:$0xf] %vm3129_vm8, %v3535_v48  ;;  %v3536_v17 = vpack.c.bf16 %v2976_v2, %v2976_v2  ;;  %v4030_v34 = vadd.f32 %v3998_v53, %v3828_v45  ;;  %v2803_v37 = vpop.f32.mrb[9].mxu0 }
 0x1f9   : > { %3134 = vst.msk [vmem:[%s5376_s22 + $0x10] sm:$0xf] %vm3129_vm8, %v3533_v61  ;;  %v3534_v41 = vpack.c.bf16 %v2974_v56, %v2974_v56  ;;  %v4031_v50 = vadd.f32 %v2803_v37, %v1727_v31  ;;  %v3999_v20 = vpop.f32.mrb[10].mxu0 }
 0x1fa   : > { %3137 = vst.msk [vmem:[%s5376_s22 + $0x1c] sm:$0xf] %vm3129_vm8, %v3536_v17  ;;  %v2947_v0 = vadd.f32 %v4030_v34, %v5367_v16  ;;  %v4032_v22 = vadd.f32 %v3999_v20, %v5352_v29  ;;  %v2806_v30 = vpop.f32.mrb[11].mxu0 }
 0x1fb   : > { %3135 = vst.msk [vmem:[%s5376_s22 + $0x14] sm:$0xf] %vm3129_vm8, %v3534_v41  ;;  %v2945_v57 = vadd.f32 %v4031_v50, %v5367_v16  ;;  %v4033_v62 = vadd.f32 %v2806_v30, %v5354_v26 }
 0x1fc   : > { %v2979_v5 = vmax.f32 %v2947_v0, 0.0  ;;  %v2948_v63 = vadd.f32 %v4032_v22, %v5367_v16 }
 0x1fd   : > { %v2977_v49 = vmax.f32 %v2945_v57, 0.0  ;;  %v2946_v54 = vadd.f32 %v4033_v62, %v5367_v16 }
 0x1fe   : > { %v3539_v36 = vpack.c.bf16 %v2979_v5, %v2979_v5  ;;  %v2980_v45 = vmax.f32 %v2948_v63, 0.0 }
 0x1ff   : > { %v3537_v31 = vpack.c.bf16 %v2977_v49, %v2977_v49  ;;  %v2978_v29 = vmax.f32 %v2946_v54, 0.0  ;;  %v4002_v19 = vpop.f32.mrb[12].mxu0 }
 0x200   : > { %3140 = vst.msk [vmem:[%s5376_s22 + $0x28] sm:$0xf] %vm3129_vm8, %v3539_v36  ;;  %v3540_v52 = vpack.c.bf16 %v2980_v45, %v2980_v45  ;;  %v4034_v3 = vadd.f32 %v4002_v19, %v5356_v44  ;;  %v2819_v4 = vpop.f32.mrb[13].mxu0 }
 0x201   : > { %3138 = vst.msk [vmem:[%s5376_s22 + $0x20] sm:$0xf] %vm3129_vm8, %v3537_v31  ;;  %v3538_v26 = vpack.c.bf16 %v2978_v29, %v2978_v29  ;;  %v4035_v11 = vadd.f32 %v2819_v4, %v5358_v8  ;;  %v4003_v21 = vpop.f32.mrb[14].mxu0 }
 0x202   : > { %3141 = vst.msk [vmem:[%s5376_s22 + $0x2c] sm:$0xf] %vm3129_vm8, %v3540_v52  ;;  %v2951_v13 = vadd.f32 %v4034_v3, %v5367_v16  ;;  %v4036_v24 = vadd.f32 %v4003_v21, %v5360_v1  ;;  %v2822_v9 = vpop.f32.mrb[15].mxu0 }
 0x203   : > { %3139 = vst.msk [vmem:[%s5376_s22 + $0x24] sm:$0xf] %vm3129_vm8, %v3538_v26  ;;  %v2949_v10 = vadd.f32 %v4035_v11, %v5367_v16  ;;  %v4037_v44 = vadd.f32 %v2822_v9, %v5362_v40 }
 0x204   : > { %v2983_v51 = vmax.f32 %v2951_v13, 0.0  ;;  %v2952_v33 = vadd.f32 %v4036_v24, %v5367_v16 }
 0x205   : > { %v2981_v8 = vmax.f32 %v2949_v10, 0.0  ;;  %v2950_v39 = vadd.f32 %v4037_v44, %v5367_v16 }
 0x206   : > { %v3543_v58 = vpack.c.bf16 %v2983_v51, %v2983_v51  ;;  %v2984_v42 = vmax.f32 %v2952_v33, 0.0 }
 0x207   : > { %v3541_v15 = vpack.c.bf16 %v2981_v8, %v2981_v8  ;;  %v2982_v27 = vmax.f32 %v2950_v39, 0.0  ;;  %v3870_v1 = vpop.f32.mrb[16].mxu1  ;;  %v4006_v6 = vpop.f32.mrb[16].mxu0 }
 0x208   : > { %3144 = vst.msk [vmem:[%s5376_s22 + $0x38] sm:$0xf] %vm3129_vm8, %v3543_v58  ;;  %v3544_v7 = vpack.c.bf16 %v2984_v42, %v2984_v42  ;;  %v4038_v60 = vadd.f32 %v4006_v6, %v3870_v1  ;;  %v1985_v40 = vpop.f32.mrb[17].mxu1  ;;  %v2835_v14 = vpop.f32.mrb[17].mxu0 }
 0x209   : > { %3142 = vst.msk [vmem:[%s5376_s22 + $0x30] sm:$0xf] %vm3129_vm8, %v3541_v15  ;;  %v3542_v28 = vpack.c.bf16 %v2982_v27, %v2982_v27  ;;  %v4039_v25 = vadd.f32 %v2835_v14, %v1985_v40  ;;  %v3871_v38 = vpop.f32.mrb[18].mxu1  ;;  %v4007_v46 = vpop.f32.mrb[18].mxu0 }
 0x20a   : > { %3145 = vst.msk [vmem:[%s5376_s22 + $0x3c] sm:$0xf] %vm3129_vm8, %v3544_v7  ;;  %v2955_v47 = vadd.f32 %v4038_v60, %v5367_v16  ;;  %v4040_v32 = vadd.f32 %v4007_v46, %v3871_v38  ;;  %v1988_v18 = vpop.f32.mrb[19].mxu1  ;;  %v2838_v43 = vpop.f32.mrb[19].mxu0 }
 0x20b   : > { %3143 = vst.msk [vmem:[%s5376_s22 + $0x34] sm:$0xf] %vm3129_vm8, %v3542_v28  ;;  %v2953_v55 = vadd.f32 %v4039_v25, %v5367_v16  ;;  %v4041_v12 = vadd.f32 %v2838_v43, %v1988_v18 }
 0x20c   : > { %v2987_v23 = vmax.f32 %v2955_v47, 0.0  ;;  %v2956_v59 = vadd.f32 %v4040_v32, %v5367_v16 }
 0x20d   : > { %v2985_v35 = vmax.f32 %v2953_v55, 0.0  ;;  %v2954_v48 = vadd.f32 %v4041_v12, %v5367_v16 }
 0x20e   : > { %v3547_v2 = vpack.c.bf16 %v2987_v23, %v2987_v23  ;;  %v2988_v61 = vmax.f32 %v2956_v59, 0.0 }
 0x20f   : > { %v3545_v56 = vpack.c.bf16 %v2985_v35, %v2985_v35  ;;  %v2986_v53 = vmax.f32 %v2954_v48, 0.0  ;;  %v3874_v17 = vpop.f32.mrb[20].mxu1  ;;  %v4010_v34 = vpop.f32.mrb[20].mxu0 }
 0x210   : > { %3148 = vst.msk [vmem:[%s5376_s22 + $0x48] sm:$0xf] %vm3129_vm8, %v3547_v2  ;;  %v3548_v37 = vpack.c.bf16 %v2988_v61, %v2988_v61  ;;  %v4042_v41 = vadd.f32 %v4010_v34, %v3874_v17  ;;  %v2001_v50 = vpop.f32.mrb[21].mxu1  ;;  %v2851_v20 = vpop.f32.mrb[21].mxu0 }
 0x211   : > { %3146 = vst.msk [vmem:[%s5376_s22 + $0x40] sm:$0xf] %vm3129_vm8, %v3545_v56  ;;  %v3546_v0 = vpack.c.bf16 %v2986_v53, %v2986_v53  ;;  %v4043_v22 = vadd.f32 %v2851_v20, %v2001_v50  ;;  %v3875_v30 = vpop.f32.mrb[22].mxu1  ;;  %v4011_v57 = vpop.f32.mrb[22].mxu0 }
 0x212   : > { %3149 = vst.msk [vmem:[%s5376_s22 + $0x4c] sm:$0xf] %vm3129_vm8, %v3548_v37  ;;  %v2959_v62 = vadd.f32 %v4042_v41, %v5367_v16  ;;  %v4044_v5 = vadd.f32 %v4011_v57, %v3875_v30  ;;  %v2004_v63 = vpop.f32.mrb[23].mxu1  ;;  %v2854_v49 = vpop.f32.mrb[23].mxu0 }
 0x213   : > { %3147 = vst.msk [vmem:[%s5376_s22 + $0x44] sm:$0xf] %vm3129_vm8, %v3546_v0  ;;  %v2957_v54 = vadd.f32 %v4043_v22, %v5367_v16  ;;  %v4045_v36 = vadd.f32 %v2854_v49, %v2004_v63 }
 0x214   : > { %v2991_v45 = vmax.f32 %v2959_v62, 0.0  ;;  %v2960_v31 = vadd.f32 %v4044_v5, %v5367_v16 }
 0x215   : > { %v2989_v29 = vmax.f32 %v2957_v54, 0.0  ;;  %v2958_v19 = vadd.f32 %v4045_v36, %v5367_v16 }
 0x216   : > { %v3551_v52 = vpack.c.bf16 %v2991_v45, %v2991_v45  ;;  %v2992_v3 = vmax.f32 %v2960_v31, 0.0 }
 0x217   : > { %v3549_v4 = vpack.c.bf16 %v2989_v29, %v2989_v29  ;;  %v2990_v26 = vmax.f32 %v2958_v19, 0.0  ;;  %v3878_v11 = vpop.f32.mrb[24].mxu1  ;;  %v4014_v21 = vpop.f32.mrb[24].mxu0 }
 0x218   : > { %3152 = vst.msk [vmem:[%s5376_s22 + $0x58] sm:$0xf] %vm3129_vm8, %v3551_v52  ;;  %v3552_v13 = vpack.c.bf16 %v2992_v3, %v2992_v3  ;;  %v4046_v24 = vadd.f32 %v4014_v21, %v3878_v11  ;;  %v2017_v9 = vpop.f32.mrb[25].mxu1  ;;  %v2867_v10 = vpop.f32.mrb[25].mxu0 }
 0x219   : > { %3150 = vst.msk [vmem:[%s5376_s22 + $0x50] sm:$0xf] %vm3129_vm8, %v3549_v4  ;;  %v3550_v44 = vpack.c.bf16 %v2990_v26, %v2990_v26  ;;  %v4047_v51 = vadd.f32 %v2867_v10, %v2017_v9  ;;  %v3879_v33 = vpop.f32.mrb[26].mxu1  ;;  %v4015_v8 = vpop.f32.mrb[26].mxu0 }
 0x21a   : > { %3153 = vst.msk [vmem:[%s5376_s22 + $0x5c] sm:$0xf] %vm3129_vm8, %v3552_v13  ;;  %v2963_v39 = vadd.f32 %v4046_v24, %v5367_v16  ;;  %v4048_v58 = vadd.f32 %v4015_v8, %v3879_v33  ;;  %v2020_v42 = vpop.f32.mrb[27].mxu1  ;;  %v2870_v15 = vpop.f32.mrb[27].mxu0 }
 0x21b   : > { %3151 = vst.msk [vmem:[%s5376_s22 + $0x54] sm:$0xf] %vm3129_vm8, %v3550_v44  ;;  %v2961_v27 = vadd.f32 %v4047_v51, %v5367_v16  ;;  %v4049_v1 = vadd.f32 %v2870_v15, %v2020_v42 }
 0x21c   : > { %v2995_v6 = vmax.f32 %v2963_v39, 0.0  ;;  %v2964_v7 = vadd.f32 %v4048_v58, %v5367_v16 }
 0x21d   : > { %v2993_v60 = vmax.f32 %v2961_v27, 0.0  ;;  %v2962_v40 = vadd.f32 %v4049_v1, %v5367_v16 }
 0x21e   : > { %v3555_v14 = vpack.c.bf16 %v2995_v6, %v2995_v6  ;;  %v2996_v28 = vmax.f32 %v2964_v7, 0.0 }
 0x21f   : > { %v3553_v25 = vpack.c.bf16 %v2993_v60, %v2993_v60  ;;  %v2994_v38 = vmax.f32 %v2962_v40, 0.0  ;;  %v3882_v46 = vpop.f32.mrb[28].mxu1  ;;  %v4018_v47 = vpop.f32.mrb[28].mxu0 }
 0x220   : > { %3156 = vst.msk [vmem:[%s5376_s22 + $0x68] sm:$0xf] %vm3129_vm8, %v3555_v14  ;;  %v3556_v32 = vpack.c.bf16 %v2996_v28, %v2996_v28  ;;  %v4050_v18 = vadd.f32 %v4018_v47, %v3882_v46  ;;  %v2033_v43 = vpop.f32.mrb[29].mxu1  ;;  %v2883_v55 = vpop.f32.mrb[29].mxu0 }
 0x221   : > { %3154 = vst.msk [vmem:[%s5376_s22 + $0x60] sm:$0xf] %vm3129_vm8, %v3553_v25  ;;  %v3554_v12 = vpack.c.bf16 %v2994_v38, %v2994_v38  ;;  %v4051_v23 = vadd.f32 %v2883_v55, %v2033_v43  ;;  %v3883_v59 = vpop.f32.mrb[30].mxu1  ;;  %v4019_v35 = vpop.f32.mrb[30].mxu0 }
 0x222   : > { %3157 = vst.msk [vmem:[%s5376_s22 + $0x6c] sm:$0xf] %vm3129_vm8, %v3556_v32  ;;  %v2967_v48 = vadd.f32 %v4050_v18, %v5367_v16  ;;  %v4052_v2 = vadd.f32 %v4019_v35, %v3883_v59  ;;  %v2036_v61 = vpop.f32.mrb[31].mxu1  ;;  %v2886_v56 = vpop.f32.mrb[31].mxu0 }
 0x223   : > { %3155 = vst.msk [vmem:[%s5376_s22 + $0x64] sm:$0xf] %vm3129_vm8, %v3554_v12  ;;  %v2965_v53 = vadd.f32 %v4051_v23, %v5367_v16  ;;  %v4053_v17 = vadd.f32 %v2886_v56, %v2036_v61 }
 0x224   : > { %v2999_v34 = vmax.f32 %v2967_v48, 0.0  ;;  %v2968_v37 = vadd.f32 %v4052_v2, %v5367_v16 }
 0x225   : > { %v2997_v41 = vmax.f32 %v2965_v53, 0.0  ;;  %v2966_v50 = vadd.f32 %v4053_v17, %v5367_v16 }
 0x226   : > { %v3559_v20 = vpack.c.bf16 %v2999_v34, %v2999_v34  ;;  %v3000_v0 = vmax.f32 %v2968_v37, 0.0 }
 0x227   : > { %v3557_v22 = vpack.c.bf16 %v2997_v41, %v2997_v41  ;;  %v2998_v30 = vmax.f32 %v2966_v50, 0.0 }
 0x228   : > { %3160 = vst.msk [vmem:[%s5376_s22 + $0x78] sm:$0xf] %vm3129_vm8, %v3559_v20  ;;  %v3560_v57 = vpack.c.bf16 %v3000_v0, %v3000_v0 }
 0x229   : > { %3158 = vst.msk [vmem:[%s5376_s22 + $0x70] sm:$0xf] %vm3129_vm8, %v3557_v22  ;;  %v3558_v62 = vpack.c.bf16 %v2998_v30, %v2998_v30 }
 0x22a   : > { %3161 = vst.msk [vmem:[%s5376_s22 + $0x7c] sm:$0xf] %vm3129_vm8, %v3560_v57 }
 0x22b   : > { %3159 = vst.msk [vmem:[%s5376_s22 + $0x74] sm:$0xf] %vm3129_vm8, %v3558_v62 }
 0x22c PF: > { %s13_s14 = sadd.s32 1, %s4357_s14   ;;  %s5567_s12 = smov %s4353_s13 }
 0x22d   : > { %p10_p5 = scmp.ge.s32.totalorder %s13_s14, 4   ;;  %s5568_s13 = smov %s5570_s15 }
 0x22f   :  { %12 = sbr.rel (!%p10_p5) target bundleno = 2 (0x2), region = 68 }

</bundles_post_ra>
